<compile_context>
chip_gen: v7x
topology: tpu7x:2x2x1
jax: 0.10.0
libtpu: 0.0.40
codegen_flags: <defaults>
</compile_context>

<pallas_src>
import functools

import numpy as np

import jax
import jax.numpy as jnp
from jax.experimental import pallas as pl
from jax.experimental.pallas import tpu as pltpu


# --------------------------------------------------------------------------
# Fused Pallas kernel (one grid step == one batch element)
# --------------------------------------------------------------------------
def _fused_kernel(cols1_ref, resid_ref, masks_ref,
                  w1_ref, b1_ref, w2_ref, b2_ref, w3_ref, b3_ref, w4_ref,
                  o_ref,
                  act1_ref, act2_ref, dup_ref,
                  *, H, W, shifts):
    HW = H * W
    C0 = 8                                   # image column offset in padded scratch
    bf16 = jnp.bfloat16

    # ---- Layer 1: 9x9 conv (C -> 256) as ONE im2col matmul -----------------
    a1 = jnp.dot(cols1_ref[0], w1_ref[...],
                 preferred_element_type=jnp.float32)             # (HW, 256) f32
    a1 = jnp.maximum(a1 + b1_ref[...], 0.0)

    act1_ref[...] = jnp.zeros_like(act1_ref)                     # zero halo
    act1_ref[1:H + 1, C0:C0 + W, :] = a1.reshape(H, W, 256)

    # ---- Layer 2: 3x3 conv (256 -> 128), per-tap K=256 matmuls -------------
    acc2 = None
    for kh in range(3):
        for kw in range(3):
            patch = act1_ref[kh:kh + H, C0 - 1 + kw:C0 - 1 + kw + W, :]
            d = jnp.dot(patch.reshape(HW, 256).astype(bf16),
                        w2_ref[kh * 3 + kw],
                        preferred_element_type=jnp.float32)
            acc2 = d if acc2 is None else acc2 + d
    a2 = jnp.maximum(acc2 + b2_ref[...], 0.0)                    # (HW, 128) f32

    act2_ref[...] = jnp.zeros_like(act2_ref)
    act2_ref[1:H + 1, C0:C0 + W, :] = a2.reshape(H, W, 128)

    # ---- Layer 3: 3x3 conv (128 -> 64), no activation ------------------------
    acc3 = None
    for kh in range(3):
        for kw in range(3):
            patch = act2_ref[kh:kh + H, C0 - 1 + kw:C0 - 1 + kw + W, :]
            d = jnp.dot(patch.reshape(HW, 128).astype(bf16),
                        w3_ref[kh * 3 + kw],
                        preferred_element_type=jnp.float32)
            acc3 = d if acc3 is None else acc3 + d
    a3 = (acc3 + b3_ref[...]).astype(bf16)                       # (HW, 64)

    # ---- Layer 4: 9x9 conv (64 -> 1), lane-dense ------------------------------
    # tap_dot[t, q] = sum_c w4[t, c] * a3[q, c]  (taps on M, pixels on lanes)
    tap_dot = jax.lax.dot_general(
        w4_ref[...], a3, (((1,), (1,)), ((), ())),
        preferred_element_type=jnp.float32)                      # (88, HW) f32
    # Duplicate along lanes so a circular pixel shift is a plain static slice.
    dup_ref[:, 0:HW] = tap_dot
    dup_ref[:, HW:2 * HW] = tap_dot

    y = resid_ref[0]                                             # (1, HW), incl. b4
    for t, s in enumerate(shifts):
        y = y + masks_ref[t:t + 1, :] * dup_ref[t:t + 1, s:s + HW]
    o_ref[...] = y.reshape(o_ref.shape)


# --------------------------------------------------------------------------
# Host-side tables for the layer-4 shift/mask combine
# --------------------------------------------------------------------------
def _layer4_shift_tables(H, W):
    HW = H * W
    hh = np.arange(H)[:, None]
    ww = np.arange(W)[None, :]
    masks, shifts = [], []
    for kh in range(9):
        for kw in range(9):
            dh, dw = kh - 4, kw - 4
            valid = ((hh + dh >= 0) & (hh + dh < H) &
                     (ww + dw >= 0) & (ww + dw < W))
            masks.append(valid.reshape(HW).astype(np.float32))
            shifts.append((dh * W + dw) % HW)
    return np.stack(masks, axis=0), tuple(shifts)


# --------------------------------------------------------------------------
# Wrapper
# --------------------------------------------------------------------------
@jax.jit
def rescnn_forward(x_nchw, params):
    """x_nchw: (N, C, H, W) like PyTorch. Returns (N, 1, H, W)."""
    x = jnp.transpose(x_nchw, (0, 2, 3, 1)).astype(jnp.float32)   # NCHW -> NHWC
    N, H, W, C = x.shape
    HW = H * W
    bf16 = jnp.bfloat16

    # residual = mean of first split-of-4 channels, + layer-4 bias, lane-dense.
    resid = (jnp.mean(x[..., :4], axis=-1).reshape(N, 1, HW)
             + params["b4"][0]).astype(jnp.float32)

    # Layer-1 im2col (lane-dense, K padded to a multiple of 128).
    K1 = 81 * C
    K1p = ((K1 + 127) // 128) * 128
    xp = jnp.pad(x, ((0, 0), (4, 4), (4, 4), (0, 0)))
    cols = jnp.concatenate(
        [xp[:, kh:kh + H, kw:kw + W, :] for kh in range(9) for kw in range(9)],
        axis=-1).reshape(N, HW, K1)
    cols = jnp.pad(cols, ((0, 0), (0, 0), (0, K1p - K1))).astype(bf16)

    w1 = jnp.pad(params["w1"].reshape(K1, 256),
                 ((0, K1p - K1), (0, 0))).astype(bf16)
    b1 = params["b1"].reshape(1, 256).astype(jnp.float32)
    w2 = params["w2"].reshape(9, 256, 128).astype(bf16)
    b2 = params["b2"].reshape(1, 128).astype(jnp.float32)
    w3 = params["w3"].reshape(9, 128, 64).astype(bf16)
    b3 = params["b3"].reshape(1, 64).astype(jnp.float32)
    T4, T4p = 81, 88
    w4 = jnp.pad(params["w4"].reshape(T4, 64),
                 ((0, T4p - T4), (0, 0))).astype(bf16)

    masks_np, shifts = _layer4_shift_tables(H, W)
    masks = jnp.asarray(masks_np)

    kernel = functools.partial(_fused_kernel, H=H, W=W, shifts=shifts)

    HP, WP = H + 2, W + 16      # padded activation scratch (image at rows 1.., cols 8..)

    out = pl.pallas_call(
        kernel,
        out_shape=jax.ShapeDtypeStruct((N, 1, HW), jnp.float32),
        grid=(N,),
        in_specs=[
            pl.BlockSpec((1, HW, K1p), lambda n: (n, 0, 0)),     # im2col'ed input
            pl.BlockSpec((1, 1, HW), lambda n: (n, 0, 0)),       # residual (+ b4)
            pl.BlockSpec((T4, HW), lambda n: (0, 0)),            # layer-4 masks
            pl.BlockSpec((K1p, 256), lambda n: (0, 0)),          # w1 (im2col)
            pl.BlockSpec((1, 256), lambda n: (0, 0)),            # b1
            pl.BlockSpec((9, 256, 128), lambda n: (0, 0, 0)),    # w2
            pl.BlockSpec((1, 128), lambda n: (0, 0)),            # b2
            pl.BlockSpec((9, 128, 64), lambda n: (0, 0, 0)),     # w3
            pl.BlockSpec((1, 64), lambda n: (0, 0)),             # b3
            pl.BlockSpec((T4p, 64), lambda n: (0, 0)),           # w4 (taps x Cin)
        ],
        out_specs=pl.BlockSpec((1, 1, HW), lambda n: (n, 0, 0)),
        scratch_shapes=[
            pltpu.VMEM((HP, WP, 256), jnp.float32),   # padded layer-1 activations
            pltpu.VMEM((HP, WP, 128), jnp.float32),   # padded layer-2 activations
            pltpu.VMEM((T4p, 2 * HW), jnp.float32),   # lane-duplicated layer-4 taps
        ],
        compiler_params=pltpu.CompilerParams(
            dimension_semantics=("parallel",)),
    )(cols, resid, masks, w1, b1, w2, b2, w3, b3, w4)

    return out.reshape(N, 1, H, W)


# --------------------------------------------------------------------------
# Parameters (normal_init weights; small random biases to exercise bias adds)
# --------------------------------------------------------------------------
def init_params(key, num_channels, std=0.02):
    ks = jax.random.split(key, 8)

    def w(k, shape):
        return std * jax.random.normal(k, shape, jnp.float32)

    return {
        "w1": w(ks[0], (9, 9, num_channels, 256)), "b1": w(ks[1], (256,)),
        "w2": w(ks[2], (3, 3, 256, 128)),          "b2": w(ks[3], (128,)),
        "w3": w(ks[4], (3, 3, 128, 64)),           "b3": w(ks[5], (64,)),
        "w4": w(ks[6], (9, 9, 64, 1)),             "b4": w(ks[7], (1,)),
    }


# --------------------------------------------------------------------------
# Pure-JAX reference (f32, for correctness check)
# --------------------------------------------------------------------------
def _conv_ref(x, w, b, padding):
    y = jax.lax.conv_general_dilated(
        x, w, window_strides=(1, 1),
        padding=((padding, padding), (padding, padding)),
        dimension_numbers=("NHWC", "HWIO", "NHWC"),
        precision=jax.lax.Precision.HIGHEST)
    return y + b


def rescnn_forward_ref(x_nchw, params):
    x = jnp.transpose(x_nchw, (0, 2, 3, 1))
    resid = jnp.mean(x[..., :4], axis=-1, keepdims=True)
    h = jax.nn.relu(_conv_ref(x, params["w1"], params["b1"], 4))
    h = jax.nn.relu(_conv_ref(h, params["w2"], params["b2"], 1))
    h = _conv_ref(h, params["w3"], params["b3"], 1)
    h = _conv_ref(h, params["w4"], params["b4"], 4)
    return jnp.transpose(h + resid, (0, 3, 1, 2))


# --------------------------------------------------------------------------
# Main
# --------------------------------------------------------------------------
if __name__ == "__main__":
    key = jax.random.PRNGKey(0)
    kx, kp = jax.random.split(key)

    N, C, H, W = 2, 4, 16, 16
    x = jax.random.normal(kx, (N, C, H, W), jnp.float32)
    params = init_params(kp, num_channels=C)

    out = jax.block_until_ready(rescnn_forward(x, params))
    assert out.shape == (N, 1, H, W), out.shape

    ref = rescnn_forward_ref(x, params)
    max_err = float(jnp.max(jnp.abs(out - ref)))
    # bf16 MXU operands (f32 accumulation) -> relaxed but tight-enough tolerance.
    assert jnp.allclose(out, ref, atol=3e-2, rtol=3e-2), max_err

    print("KERNEL_OK")
</pallas_src>

<mosaic_0001>
module attributes {stable_mosaic.version = 11 : i64} {
  func.func @_fused_kernel(%arg0: i32, %arg1: memref<1x256x384xbf16, #tpu.memory_space<vmem>>, %arg2: memref<1x1x256xf32, #tpu.memory_space<vmem>>, %arg3: memref<81x256xf32, #tpu.memory_space<vmem>>, %arg4: memref<384x256xbf16, #tpu.memory_space<vmem>>, %arg5: memref<1x256xf32, #tpu.memory_space<vmem>>, %arg6: memref<9x256x128xbf16, #tpu.memory_space<vmem>>, %arg7: memref<1x128xf32, #tpu.memory_space<vmem>>, %arg8: memref<9x128x64xbf16, #tpu.memory_space<vmem>>, %arg9: memref<1x64xf32, #tpu.memory_space<vmem>>, %arg10: memref<88x64xbf16, #tpu.memory_space<vmem>>, %arg11: memref<1x1x256xf32, #tpu.memory_space<vmem>>, %arg12: memref<18x32x256xf32, #tpu.memory_space<vmem>>, %arg13: memref<18x32x128xf32, #tpu.memory_space<vmem>>, %arg14: memref<88x512xf32, #tpu.memory_space<vmem>>) attributes {dimension_semantics = [#tpu.dimension_semantics<parallel>], iteration_bounds = array<i64: 2>, scalar_prefetch = 0 : i64, scratch_operands = 3 : i64, tpu.core_type = #tpu.core_type<tc>, window_params = [{transform_indices = @transform_0, window_bounds = array<i64: 1, 256, 384>}, {transform_indices = @transform_1, window_bounds = array<i64: 1, 1, 256>}, {pipeline_mode = #tpu.pipeline_mode<synchronous>, transform_indices = @transform_2, window_bounds = array<i64: 81, 256>}, {pipeline_mode = #tpu.pipeline_mode<synchronous>, transform_indices = @transform_3, window_bounds = array<i64: 384, 256>}, {pipeline_mode = #tpu.pipeline_mode<synchronous>, transform_indices = @transform_4, window_bounds = array<i64: 1, 256>}, {pipeline_mode = #tpu.pipeline_mode<synchronous>, transform_indices = @transform_5, window_bounds = array<i64: 9, 256, 128>}, {pipeline_mode = #tpu.pipeline_mode<synchronous>, transform_indices = @transform_6, window_bounds = array<i64: 1, 128>}, {pipeline_mode = #tpu.pipeline_mode<synchronous>, transform_indices = @transform_7, window_bounds = array<i64: 9, 128, 64>}, {pipeline_mode = #tpu.pipeline_mode<synchronous>, transform_indices = @transform_8, window_bounds = array<i64: 1, 64>}, {pipeline_mode = #tpu.pipeline_mode<synchronous>, transform_indices = @transform_9, window_bounds = array<i64: 88, 64>}, {transform_indices = @transform_10, window_bounds = array<i64: 1, 1, 256>}]} {
    %c0 = arith.constant 0 : index
    %c0_0 = arith.constant 0 : index
    %c0_1 = arith.constant 0 : index
    %0 = vector.load %arg1[%c0, %c0_0, %c0_1] : memref<1x256x384xbf16, #tpu.memory_space<vmem>>, vector<1x256x384xbf16>
    %1 = vector.shape_cast %0 : vector<1x256x384xbf16> to vector<256x384xbf16>
    %c0_2 = arith.constant 0 : index
    %c0_3 = arith.constant 0 : index
    %2 = vector.load %arg4[%c0_2, %c0_3] : memref<384x256xbf16, #tpu.memory_space<vmem>>, vector<384x256xbf16>
    %cst = arith.constant dense<0.000000e+00> : vector<256x256xf32>
    %3 = tpu.matmul %1, %2, %cst {dimension_numbers = #tpu.dot_dimension_numbers<[1], [0], [0], [1], [0, 0, 1, 1], [], []>} : vector<256x384xbf16>, vector<384x256xbf16>, vector<256x256xf32> -> vector<256x256xf32>
    %c0_4 = arith.constant 0 : index
    %c0_5 = arith.constant 0 : index
    %4 = vector.load %arg5[%c0_4, %c0_5] : memref<1x256xf32, #tpu.memory_space<vmem>>, vector<1x256xf32>
    %5 = vector.broadcast %4 : vector<1x256xf32> to vector<256x256xf32>
    %6 = arith.addf %3, %5 : vector<256x256xf32>
    %cst_6 = arith.constant 0.000000e+00 : f32
    %7 = vector.broadcast %cst_6 : f32 to vector<256x256xf32>
    %8 = arith.maximumf %6, %7 : vector<256x256xf32>
    %cst_7 = arith.constant 0.000000e+00 : f32
    %9 = vector.broadcast %cst_7 : f32 to vector<18x32x256xf32>
    %c0_8 = arith.constant 0 : index
    %c0_9 = arith.constant 0 : index
    %c0_10 = arith.constant 0 : index
    %10 = vector.load %arg12[%c0_8, %c0_9, %c0_10] : memref<18x32x256xf32, #tpu.memory_space<vmem>>, vector<18x32x256xf32>
    tpu.vector_store %arg12[%c0_8, %c0_9, %c0_10], %9 {strides = array<i32>} : memref<18x32x256xf32, #tpu.memory_space<vmem>>, vector<18x32x256xf32>,
    %11 = vector.shape_cast %8 : vector<256x256xf32> to vector<16x16x256xf32>
    %c1 = arith.constant 1 : index
    %c8 = arith.constant 8 : index
    %c0_11 = arith.constant 0 : index
    %12 = vector.load %arg12[%c1, %c8, %c0_11] : memref<18x32x256xf32, #tpu.memory_space<vmem>>, vector<16x16x256xf32>
    tpu.vector_store %arg12[%c1, %c8, %c0_11], %11 {strides = array<i32>} : memref<18x32x256xf32, #tpu.memory_space<vmem>>, vector<16x16x256xf32>,
    %c0_12 = arith.constant 0 : index
    %c7 = arith.constant 7 : index
    %c0_13 = arith.constant 0 : index
    %13 = vector.load %arg12[%c0_12, %c7, %c0_13] : memref<18x32x256xf32, #tpu.memory_space<vmem>>, vector<16x16x256xf32>
    %14 = vector.shape_cast %13 : vector<16x16x256xf32> to vector<256x256xf32>
    %15 = arith.truncf %14 : vector<256x256xf32> to vector<256x256xbf16>
    %c0_14 = arith.constant 0 : index
    %c0_15 = arith.constant 0 : index
    %c0_16 = arith.constant 0 : index
    %16 = vector.load %arg6[%c0_14, %c0_15, %c0_16] : memref<9x256x128xbf16, #tpu.memory_space<vmem>>, vector<1x256x128xbf16>
    %17 = vector.shape_cast %16 : vector<1x256x128xbf16> to vector<256x128xbf16>
    %cst_17 = arith.constant dense<0.000000e+00> : vector<256x128xf32>
    %18 = tpu.matmul %15, %17, %cst_17 {dimension_numbers = #tpu.dot_dimension_numbers<[1], [0], [0], [1], [0, 0, 1, 1], [], []>} : vector<256x256xbf16>, vector<256x128xbf16>, vector<256x128xf32> -> vector<256x128xf32>
    %c0_18 = arith.constant 0 : index
    %c8_19 = arith.constant 8 : index
    %c0_20 = arith.constant 0 : index
    %19 = vector.load %arg12[%c0_18, %c8_19, %c0_20] : memref<18x32x256xf32, #tpu.memory_space<vmem>>, vector<16x16x256xf32>
    %20 = vector.shape_cast %19 : vector<16x16x256xf32> to vector<256x256xf32>
    %21 = arith.truncf %20 : vector<256x256xf32> to vector<256x256xbf16>
    %c1_21 = arith.constant 1 : index
    %c0_22 = arith.constant 0 : index
    %c0_23 = arith.constant 0 : index
    %22 = vector.load %arg6[%c1_21, %c0_22, %c0_23] : memref<9x256x128xbf16, #tpu.memory_space<vmem>>, vector<1x256x128xbf16>
    %23 = vector.shape_cast %22 : vector<1x256x128xbf16> to vector<256x128xbf16>
    %cst_24 = arith.constant dense<0.000000e+00> : vector<256x128xf32>
    %24 = tpu.matmul %21, %23, %cst_24 {dimension_numbers = #tpu.dot_dimension_numbers<[1], [0], [0], [1], [0, 0, 1, 1], [], []>} : vector<256x256xbf16>, vector<256x128xbf16>, vector<256x128xf32> -> vector<256x128xf32>
    %25 = arith.addf %18, %24 : vector<256x128xf32>
    %c0_25 = arith.constant 0 : index
    %c9 = arith.constant 9 : index
    %c0_26 = arith.constant 0 : index
    %26 = vector.load %arg12[%c0_25, %c9, %c0_26] : memref<18x32x256xf32, #tpu.memory_space<vmem>>, vector<16x16x256xf32>
    %27 = vector.shape_cast %26 : vector<16x16x256xf32> to vector<256x256xf32>
    %28 = arith.truncf %27 : vector<256x256xf32> to vector<256x256xbf16>
    %c2 = arith.constant 2 : index
    %c0_27 = arith.constant 0 : index
    %c0_28 = arith.constant 0 : index
    %29 = vector.load %arg6[%c2, %c0_27, %c0_28] : memref<9x256x128xbf16, #tpu.memory_space<vmem>>, vector<1x256x128xbf16>
    %30 = vector.shape_cast %29 : vector<1x256x128xbf16> to vector<256x128xbf16>
    %cst_29 = arith.constant dense<0.000000e+00> : vector<256x128xf32>
    %31 = tpu.matmul %28, %30, %cst_29 {dimension_numbers = #tpu.dot_dimension_numbers<[1], [0], [0], [1], [0, 0, 1, 1], [], []>} : vector<256x256xbf16>, vector<256x128xbf16>, vector<256x128xf32> -> vector<256x128xf32>
    %32 = arith.addf %25, %31 : vector<256x128xf32>
    %c1_30 = arith.constant 1 : index
    %c7_31 = arith.constant 7 : index
    %c0_32 = arith.constant 0 : index
    %33 = vector.load %arg12[%c1_30, %c7_31, %c0_32] : memref<18x32x256xf32, #tpu.memory_space<vmem>>, vector<16x16x256xf32>
    %34 = vector.shape_cast %33 : vector<16x16x256xf32> to vector<256x256xf32>
    %35 = arith.truncf %34 : vector<256x256xf32> to vector<256x256xbf16>
    %c3 = arith.constant 3 : index
    %c0_33 = arith.constant 0 : index
    %c0_34 = arith.constant 0 : index
    %36 = vector.load %arg6[%c3, %c0_33, %c0_34] : memref<9x256x128xbf16, #tpu.memory_space<vmem>>, vector<1x256x128xbf16>
    %37 = vector.shape_cast %36 : vector<1x256x128xbf16> to vector<256x128xbf16>
    %cst_35 = arith.constant dense<0.000000e+00> : vector<256x128xf32>
    %38 = tpu.matmul %35, %37, %cst_35 {dimension_numbers = #tpu.dot_dimension_numbers<[1], [0], [0], [1], [0, 0, 1, 1], [], []>} : vector<256x256xbf16>, vector<256x128xbf16>, vector<256x128xf32> -> vector<256x128xf32>
    %39 = arith.addf %32, %38 : vector<256x128xf32>
    %c1_36 = arith.constant 1 : index
    %c8_37 = arith.constant 8 : index
    %c0_38 = arith.constant 0 : index
    %40 = vector.load %arg12[%c1_36, %c8_37, %c0_38] : memref<18x32x256xf32, #tpu.memory_space<vmem>>, vector<16x16x256xf32>
    %41 = vector.shape_cast %40 : vector<16x16x256xf32> to vector<256x256xf32>
    %42 = arith.truncf %41 : vector<256x256xf32> to vector<256x256xbf16>
    %c4 = arith.constant 4 : index
    %c0_39 = arith.constant 0 : index
    %c0_40 = arith.constant 0 : index
    %43 = vector.load %arg6[%c4, %c0_39, %c0_40] : memref<9x256x128xbf16, #tpu.memory_space<vmem>>, vector<1x256x128xbf16>
    %44 = vector.shape_cast %43 : vector<1x256x128xbf16> to vector<256x128xbf16>
    %cst_41 = arith.constant dense<0.000000e+00> : vector<256x128xf32>
    %45 = tpu.matmul %42, %44, %cst_41 {dimension_numbers = #tpu.dot_dimension_numbers<[1], [0], [0], [1], [0, 0, 1, 1], [], []>} : vector<256x256xbf16>, vector<256x128xbf16>, vector<256x128xf32> -> vector<256x128xf32>
    %46 = arith.addf %39, %45 : vector<256x128xf32>
    %c1_42 = arith.constant 1 : index
    %c9_43 = arith.constant 9 : index
    %c0_44 = arith.constant 0 : index
    %47 = vector.load %arg12[%c1_42, %c9_43, %c0_44] : memref<18x32x256xf32, #tpu.memory_space<vmem>>, vector<16x16x256xf32>
    %48 = vector.shape_cast %47 : vector<16x16x256xf32> to vector<256x256xf32>
    %49 = arith.truncf %48 : vector<256x256xf32> to vector<256x256xbf16>
    %c5 = arith.constant 5 : index
    %c0_45 = arith.constant 0 : index
    %c0_46 = arith.constant 0 : index
    %50 = vector.load %arg6[%c5, %c0_45, %c0_46] : memref<9x256x128xbf16, #tpu.memory_space<vmem>>, vector<1x256x128xbf16>
    %51 = vector.shape_cast %50 : vector<1x256x128xbf16> to vector<256x128xbf16>
    %cst_47 = arith.constant dense<0.000000e+00> : vector<256x128xf32>
    %52 = tpu.matmul %49, %51, %cst_47 {dimension_numbers = #tpu.dot_dimension_numbers<[1], [0], [0], [1], [0, 0, 1, 1], [], []>} : vector<256x256xbf16>, vector<256x128xbf16>, vector<256x128xf32> -> vector<256x128xf32>
    %53 = arith.addf %46, %52 : vector<256x128xf32>
    %c2_48 = arith.constant 2 : index
    %c7_49 = arith.constant 7 : index
    %c0_50 = arith.constant 0 : index
    %54 = vector.load %arg12[%c2_48, %c7_49, %c0_50] : memref<18x32x256xf32, #tpu.memory_space<vmem>>, vector<16x16x256xf32>
    %55 = vector.shape_cast %54 : vector<16x16x256xf32> to vector<256x256xf32>
    %56 = arith.truncf %55 : vector<256x256xf32> to vector<256x256xbf16>
    %c6 = arith.constant 6 : index
    %c0_51 = arith.constant 0 : index
    %c0_52 = arith.constant 0 : index
    %57 = vector.load %arg6[%c6, %c0_51, %c0_52] : memref<9x256x128xbf16, #tpu.memory_space<vmem>>, vector<1x256x128xbf16>
    %58 = vector.shape_cast %57 : vector<1x256x128xbf16> to vector<256x128xbf16>
    %cst_53 = arith.constant dense<0.000000e+00> : vector<256x128xf32>
    %59 = tpu.matmul %56, %58, %cst_53 {dimension_numbers = #tpu.dot_dimension_numbers<[1], [0], [0], [1], [0, 0, 1, 1], [], []>} : vector<256x256xbf16>, vector<256x128xbf16>, vector<256x128xf32> -> vector<256x128xf32>
    %60 = arith.addf %53, %59 : vector<256x128xf32>
    %c2_54 = arith.constant 2 : index
    %c8_55 = arith.constant 8 : index
    %c0_56 = arith.constant 0 : index
    %61 = vector.load %arg12[%c2_54, %c8_55, %c0_56] : memref<18x32x256xf32, #tpu.memory_space<vmem>>, vector<16x16x256xf32>
    %62 = vector.shape_cast %61 : vector<16x16x256xf32> to vector<256x256xf32>
    %63 = arith.truncf %62 : vector<256x256xf32> to vector<256x256xbf16>
    %c7_57 = arith.constant 7 : index
    %c0_58 = arith.constant 0 : index
    %c0_59 = arith.constant 0 : index
    %64 = vector.load %arg6[%c7_57, %c0_58, %c0_59] : memref<9x256x128xbf16, #tpu.memory_space<vmem>>, vector<1x256x128xbf16>
    %65 = vector.shape_cast %64 : vector<1x256x128xbf16> to vector<256x128xbf16>
    %cst_60 = arith.constant dense<0.000000e+00> : vector<256x128xf32>
    %66 = tpu.matmul %63, %65, %cst_60 {dimension_numbers = #tpu.dot_dimension_numbers<[1], [0], [0], [1], [0, 0, 1, 1], [], []>} : vector<256x256xbf16>, vector<256x128xbf16>, vector<256x128xf32> -> vector<256x128xf32>
    %67 = arith.addf %60, %66 : vector<256x128xf32>
    %c2_61 = arith.constant 2 : index
    %c9_62 = arith.constant 9 : index
    %c0_63 = arith.constant 0 : index
    %68 = vector.load %arg12[%c2_61, %c9_62, %c0_63] : memref<18x32x256xf32, #tpu.memory_space<vmem>>, vector<16x16x256xf32>
    %69 = vector.shape_cast %68 : vector<16x16x256xf32> to vector<256x256xf32>
    %70 = arith.truncf %69 : vector<256x256xf32> to vector<256x256xbf16>
    %c8_64 = arith.constant 8 : index
    %c0_65 = arith.constant 0 : index
    %c0_66 = arith.constant 0 : index
    %71 = vector.load %arg6[%c8_64, %c0_65, %c0_66] : memref<9x256x128xbf16, #tpu.memory_space<vmem>>, vector<1x256x128xbf16>
    %72 = vector.shape_cast %71 : vector<1x256x128xbf16> to vector<256x128xbf16>
    %cst_67 = arith.constant dense<0.000000e+00> : vector<256x128xf32>
    %73 = tpu.matmul %70, %72, %cst_67 {dimension_numbers = #tpu.dot_dimension_numbers<[1], [0], [0], [1], [0, 0, 1, 1], [], []>} : vector<256x256xbf16>, vector<256x128xbf16>, vector<256x128xf32> -> vector<256x128xf32>
    %74 = arith.addf %67, %73 : vector<256x128xf32>
    %c0_68 = arith.constant 0 : index
    %c0_69 = arith.constant 0 : index
    %75 = vector.load %arg7[%c0_68, %c0_69] : memref<1x128xf32, #tpu.memory_space<vmem>>, vector<1x128xf32>
    %76 = vector.broadcast %75 : vector<1x128xf32> to vector<256x128xf32>
    %77 = arith.addf %74, %76 : vector<256x128xf32>
    %cst_70 = arith.constant 0.000000e+00 : f32
    %78 = vector.broadcast %cst_70 : f32 to vector<256x128xf32>
    %79 = arith.maximumf %77, %78 : vector<256x128xf32>
    %cst_71 = arith.constant 0.000000e+00 : f32
    %80 = vector.broadcast %cst_71 : f32 to vector<18x32x128xf32>
    %c0_72 = arith.constant 0 : index
    %c0_73 = arith.constant 0 : index
    %c0_74 = arith.constant 0 : index
    %81 = vector.load %arg13[%c0_72, %c0_73, %c0_74] : memref<18x32x128xf32, #tpu.memory_space<vmem>>, vector<18x32x128xf32>
    tpu.vector_store %arg13[%c0_72, %c0_73, %c0_74], %80 {strides = array<i32>} : memref<18x32x128xf32, #tpu.memory_space<vmem>>, vector<18x32x128xf32>,
    %82 = vector.shape_cast %79 : vector<256x128xf32> to vector<16x16x128xf32>
    %c1_75 = arith.constant 1 : index
    %c8_76 = arith.constant 8 : index
    %c0_77 = arith.constant 0 : index
    %83 = vector.load %arg13[%c1_75, %c8_76, %c0_77] : memref<18x32x128xf32, #tpu.memory_space<vmem>>, vector<16x16x128xf32>
    tpu.vector_store %arg13[%c1_75, %c8_76, %c0_77], %82 {strides = array<i32>} : memref<18x32x128xf32, #tpu.memory_space<vmem>>, vector<16x16x128xf32>,
    %c0_78 = arith.constant 0 : index
    %c7_79 = arith.constant 7 : index
    %c0_80 = arith.constant 0 : index
    %84 = vector.load %arg13[%c0_78, %c7_79, %c0_80] : memref<18x32x128xf32, #tpu.memory_space<vmem>>, vector<16x16x128xf32>
    %85 = vector.shape_cast %84 : vector<16x16x128xf32> to vector<256x128xf32>
    %86 = arith.truncf %85 : vector<256x128xf32> to vector<256x128xbf16>
    %c0_81 = arith.constant 0 : index
    %c0_82 = arith.constant 0 : index
    %c0_83 = arith.constant 0 : index
    %87 = vector.load %arg8[%c0_81, %c0_82, %c0_83] : memref<9x128x64xbf16, #tpu.memory_space<vmem>>, vector<1x128x64xbf16>
    %88 = vector.shape_cast %87 : vector<1x128x64xbf16> to vector<128x64xbf16>
    %cst_84 = arith.constant dense<0.000000e+00> : vector<256x64xf32>
    %89 = tpu.matmul %86, %88, %cst_84 {dimension_numbers = #tpu.dot_dimension_numbers<[1], [0], [0], [1], [0, 0, 1, 1], [], []>} : vector<256x128xbf16>, vector<128x64xbf16>, vector<256x64xf32> -> vector<256x64xf32>
    %c0_85 = arith.constant 0 : index
    %c8_86 = arith.constant 8 : index
    %c0_87 = arith.constant 0 : index
    %90 = vector.load %arg13[%c0_85, %c8_86, %c0_87] : memref<18x32x128xf32, #tpu.memory_space<vmem>>, vector<16x16x128xf32>
    %91 = vector.shape_cast %90 : vector<16x16x128xf32> to vector<256x128xf32>
    %92 = arith.truncf %91 : vector<256x128xf32> to vector<256x128xbf16>
    %c1_88 = arith.constant 1 : index
    %c0_89 = arith.constant 0 : index
    %c0_90 = arith.constant 0 : index
    %93 = vector.load %arg8[%c1_88, %c0_89, %c0_90] : memref<9x128x64xbf16, #tpu.memory_space<vmem>>, vector<1x128x64xbf16>
    %94 = vector.shape_cast %93 : vector<1x128x64xbf16> to vector<128x64xbf16>
    %cst_91 = arith.constant dense<0.000000e+00> : vector<256x64xf32>
    %95 = tpu.matmul %92, %94, %cst_91 {dimension_numbers = #tpu.dot_dimension_numbers<[1], [0], [0], [1], [0, 0, 1, 1], [], []>} : vector<256x128xbf16>, vector<128x64xbf16>, vector<256x64xf32> -> vector<256x64xf32>
    %96 = arith.addf %89, %95 : vector<256x64xf32>
    %c0_92 = arith.constant 0 : index
    %c9_93 = arith.constant 9 : index
    %c0_94 = arith.constant 0 : index
    %97 = vector.load %arg13[%c0_92, %c9_93, %c0_94] : memref<18x32x128xf32, #tpu.memory_space<vmem>>, vector<16x16x128xf32>
    %98 = vector.shape_cast %97 : vector<16x16x128xf32> to vector<256x128xf32>
    %99 = arith.truncf %98 : vector<256x128xf32> to vector<256x128xbf16>
    %c2_95 = arith.constant 2 : index
    %c0_96 = arith.constant 0 : index
    %c0_97 = arith.constant 0 : index
    %100 = vector.load %arg8[%c2_95, %c0_96, %c0_97] : memref<9x128x64xbf16, #tpu.memory_space<vmem>>, vector<1x128x64xbf16>
    %101 = vector.shape_cast %100 : vector<1x128x64xbf16> to vector<128x64xbf16>
    %cst_98 = arith.constant dense<0.000000e+00> : vector<256x64xf32>
    %102 = tpu.matmul %99, %101, %cst_98 {dimension_numbers = #tpu.dot_dimension_numbers<[1], [0], [0], [1], [0, 0, 1, 1], [], []>} : vector<256x128xbf16>, vector<128x64xbf16>, vector<256x64xf32> -> vector<256x64xf32>
    %103 = arith.addf %96, %102 : vector<256x64xf32>
    %c1_99 = arith.constant 1 : index
    %c7_100 = arith.constant 7 : index
    %c0_101 = arith.constant 0 : index
    %104 = vector.load %arg13[%c1_99, %c7_100, %c0_101] : memref<18x32x128xf32, #tpu.memory_space<vmem>>, vector<16x16x128xf32>
    %105 = vector.shape_cast %104 : vector<16x16x128xf32> to vector<256x128xf32>
    %106 = arith.truncf %105 : vector<256x128xf32> to vector<256x128xbf16>
    %c3_102 = arith.constant 3 : index
    %c0_103 = arith.constant 0 : index
    %c0_104 = arith.constant 0 : index
    %107 = vector.load %arg8[%c3_102, %c0_103, %c0_104] : memref<9x128x64xbf16, #tpu.memory_space<vmem>>, vector<1x128x64xbf16>
    %108 = vector.shape_cast %107 : vector<1x128x64xbf16> to vector<128x64xbf16>
    %cst_105 = arith.constant dense<0.000000e+00> : vector<256x64xf32>
    %109 = tpu.matmul %106, %108, %cst_105 {dimension_numbers = #tpu.dot_dimension_numbers<[1], [0], [0], [1], [0, 0, 1, 1], [], []>} : vector<256x128xbf16>, vector<128x64xbf16>, vector<256x64xf32> -> vector<256x64xf32>
    %110 = arith.addf %103, %109 : vector<256x64xf32>
    %c1_106 = arith.constant 1 : index
    %c8_107 = arith.constant 8 : index
    %c0_108 = arith.constant 0 : index
    %111 = vector.load %arg13[%c1_106, %c8_107, %c0_108] : memref<18x32x128xf32, #tpu.memory_space<vmem>>, vector<16x16x128xf32>
    %112 = vector.shape_cast %111 : vector<16x16x128xf32> to vector<256x128xf32>
    %113 = arith.truncf %112 : vector<256x128xf32> to vector<256x128xbf16>
    %c4_109 = arith.constant 4 : index
    %c0_110 = arith.constant 0 : index
    %c0_111 = arith.constant 0 : index
    %114 = vector.load %arg8[%c4_109, %c0_110, %c0_111] : memref<9x128x64xbf16, #tpu.memory_space<vmem>>, vector<1x128x64xbf16>
    %115 = vector.shape_cast %114 : vector<1x128x64xbf16> to vector<128x64xbf16>
    %cst_112 = arith.constant dense<0.000000e+00> : vector<256x64xf32>
    %116 = tpu.matmul %113, %115, %cst_112 {dimension_numbers = #tpu.dot_dimension_numbers<[1], [0], [0], [1], [0, 0, 1, 1], [], []>} : vector<256x128xbf16>, vector<128x64xbf16>, vector<256x64xf32> -> vector<256x64xf32>
    %117 = arith.addf %110, %116 : vector<256x64xf32>
    %c1_113 = arith.constant 1 : index
    %c9_114 = arith.constant 9 : index
    %c0_115 = arith.constant 0 : index
    %118 = vector.load %arg13[%c1_113, %c9_114, %c0_115] : memref<18x32x128xf32, #tpu.memory_space<vmem>>, vector<16x16x128xf32>
    %119 = vector.shape_cast %118 : vector<16x16x128xf32> to vector<256x128xf32>
    %120 = arith.truncf %119 : vector<256x128xf32> to vector<256x128xbf16>
    %c5_116 = arith.constant 5 : index
    %c0_117 = arith.constant 0 : index
    %c0_118 = arith.constant 0 : index
    %121 = vector.load %arg8[%c5_116, %c0_117, %c0_118] : memref<9x128x64xbf16, #tpu.memory_space<vmem>>, vector<1x128x64xbf16>
    %122 = vector.shape_cast %121 : vector<1x128x64xbf16> to vector<128x64xbf16>
    %cst_119 = arith.constant dense<0.000000e+00> : vector<256x64xf32>
    %123 = tpu.matmul %120, %122, %cst_119 {dimension_numbers = #tpu.dot_dimension_numbers<[1], [0], [0], [1], [0, 0, 1, 1], [], []>} : vector<256x128xbf16>, vector<128x64xbf16>, vector<256x64xf32> -> vector<256x64xf32>
    %124 = arith.addf %117, %123 : vector<256x64xf32>
    %c2_120 = arith.constant 2 : index
    %c7_121 = arith.constant 7 : index
    %c0_122 = arith.constant 0 : index
    %125 = vector.load %arg13[%c2_120, %c7_121, %c0_122] : memref<18x32x128xf32, #tpu.memory_space<vmem>>, vector<16x16x128xf32>
    %126 = vector.shape_cast %125 : vector<16x16x128xf32> to vector<256x128xf32>
    %127 = arith.truncf %126 : vector<256x128xf32> to vector<256x128xbf16>
    %c6_123 = arith.constant 6 : index
    %c0_124 = arith.constant 0 : index
    %c0_125 = arith.constant 0 : index
    %128 = vector.load %arg8[%c6_123, %c0_124, %c0_125] : memref<9x128x64xbf16, #tpu.memory_space<vmem>>, vector<1x128x64xbf16>
    %129 = vector.shape_cast %128 : vector<1x128x64xbf16> to vector<128x64xbf16>
    %cst_126 = arith.constant dense<0.000000e+00> : vector<256x64xf32>
    %130 = tpu.matmul %127, %129, %cst_126 {dimension_numbers = #tpu.dot_dimension_numbers<[1], [0], [0], [1], [0, 0, 1, 1], [], []>} : vector<256x128xbf16>, vector<128x64xbf16>, vector<256x64xf32> -> vector<256x64xf32>
    %131 = arith.addf %124, %130 : vector<256x64xf32>
    %c2_127 = arith.constant 2 : index
    %c8_128 = arith.constant 8 : index
    %c0_129 = arith.constant 0 : index
    %132 = vector.load %arg13[%c2_127, %c8_128, %c0_129] : memref<18x32x128xf32, #tpu.memory_space<vmem>>, vector<16x16x128xf32>
    %133 = vector.shape_cast %132 : vector<16x16x128xf32> to vector<256x128xf32>
    %134 = arith.truncf %133 : vector<256x128xf32> to vector<256x128xbf16>
    %c7_130 = arith.constant 7 : index
    %c0_131 = arith.constant 0 : index
    %c0_132 = arith.constant 0 : index
    %135 = vector.load %arg8[%c7_130, %c0_131, %c0_132] : memref<9x128x64xbf16, #tpu.memory_space<vmem>>, vector<1x128x64xbf16>
    %136 = vector.shape_cast %135 : vector<1x128x64xbf16> to vector<128x64xbf16>
    %cst_133 = arith.constant dense<0.000000e+00> : vector<256x64xf32>
    %137 = tpu.matmul %134, %136, %cst_133 {dimension_numbers = #tpu.dot_dimension_numbers<[1], [0], [0], [1], [0, 0, 1, 1], [], []>} : vector<256x128xbf16>, vector<128x64xbf16>, vector<256x64xf32> -> vector<256x64xf32>
    %138 = arith.addf %131, %137 : vector<256x64xf32>
    %c2_134 = arith.constant 2 : index
    %c9_135 = arith.constant 9 : index
    %c0_136 = arith.constant 0 : index
    %139 = vector.load %arg13[%c2_134, %c9_135, %c0_136] : memref<18x32x128xf32, #tpu.memory_space<vmem>>, vector<16x16x128xf32>
    %140 = vector.shape_cast %139 : vector<16x16x128xf32> to vector<256x128xf32>
    %141 = arith.truncf %140 : vector<256x128xf32> to vector<256x128xbf16>
    %c8_137 = arith.constant 8 : index
    %c0_138 = arith.constant 0 : index
    %c0_139 = arith.constant 0 : index
    %142 = vector.load %arg8[%c8_137, %c0_138, %c0_139] : memref<9x128x64xbf16, #tpu.memory_space<vmem>>, vector<1x128x64xbf16>
    %143 = vector.shape_cast %142 : vector<1x128x64xbf16> to vector<128x64xbf16>
    %cst_140 = arith.constant dense<0.000000e+00> : vector<256x64xf32>
    %144 = tpu.matmul %141, %143, %cst_140 {dimension_numbers = #tpu.dot_dimension_numbers<[1], [0], [0], [1], [0, 0, 1, 1], [], []>} : vector<256x128xbf16>, vector<128x64xbf16>, vector<256x64xf32> -> vector<256x64xf32>
    %145 = arith.addf %138, %144 : vector<256x64xf32>
    %c0_141 = arith.constant 0 : index
    %c0_142 = arith.constant 0 : index
    %146 = vector.load %arg9[%c0_141, %c0_142] : memref<1x64xf32, #tpu.memory_space<vmem>>, vector<1x64xf32>
    %147 = vector.broadcast %146 : vector<1x64xf32> to vector<256x64xf32>
    %148 = arith.addf %145, %147 : vector<256x64xf32>
    %149 = arith.truncf %148 : vector<256x64xf32> to vector<256x64xbf16>
    %c0_143 = arith.constant 0 : index
    %c0_144 = arith.constant 0 : index
    %150 = vector.load %arg10[%c0_143, %c0_144] : memref<88x64xbf16, #tpu.memory_space<vmem>>, vector<88x64xbf16>
    %cst_145 = arith.constant dense<0.000000e+00> : vector<88x256xf32>
    %151 = tpu.matmul %150, %149, %cst_145 {dimension_numbers = #tpu.dot_dimension_numbers<[1], [1], [0], [0], [0, 0, 1, 0], [], []>} : vector<88x64xbf16>, vector<256x64xbf16>, vector<88x256xf32> -> vector<88x256xf32>
    %c0_146 = arith.constant 0 : index
    %c0_147 = arith.constant 0 : index
    %152 = vector.load %arg14[%c0_146, %c0_147] : memref<88x512xf32, #tpu.memory_space<vmem>>, vector<88x256xf32>
    tpu.vector_store %arg14[%c0_146, %c0_147], %151 {strides = array<i32>} : memref<88x512xf32, #tpu.memory_space<vmem>>, vector<88x256xf32>,
    %c0_148 = arith.constant 0 : index
    %c256 = arith.constant 256 : index
    %153 = vector.load %arg14[%c0_148, %c256] : memref<88x512xf32, #tpu.memory_space<vmem>>, vector<88x256xf32>
    tpu.vector_store %arg14[%c0_148, %c256], %151 {strides = array<i32>} : memref<88x512xf32, #tpu.memory_space<vmem>>, vector<88x256xf32>,
    %c0_149 = arith.constant 0 : index
    %c0_150 = arith.constant 0 : index
    %c0_151 = arith.constant 0 : index
    %154 = vector.load %arg2[%c0_149, %c0_150, %c0_151] : memref<1x1x256xf32, #tpu.memory_space<vmem>>, vector<1x1x256xf32>
    %155 = vector.shape_cast %154 : vector<1x1x256xf32> to vector<1x256xf32>
    %c0_152 = arith.constant 0 : index
    %c0_153 = arith.constant 0 : index
    %156 = vector.load %arg3[%c0_152, %c0_153] : memref<81x256xf32, #tpu.memory_space<vmem>>, vector<1x256xf32>
    %c0_154 = arith.constant 0 : index
    %c188 = arith.constant 188 : index
    %157 = vector.load %arg14[%c0_154, %c188] : memref<88x512xf32, #tpu.memory_space<vmem>>, vector<1x256xf32>
    %158 = arith.mulf %156, %157 : vector<1x256xf32>
    %159 = arith.addf %155, %158 : vector<1x256xf32>
    %c1_155 = arith.constant 1 : index
    %c0_156 = arith.constant 0 : index
    %160 = vector.load %arg3[%c1_155, %c0_156] : memref<81x256xf32, #tpu.memory_space<vmem>>, vector<1x256xf32>
    %c1_157 = arith.constant 1 : index
    %c189 = arith.constant 189 : index
    %161 = vector.load %arg14[%c1_157, %c189] : memref<88x512xf32, #tpu.memory_space<vmem>>, vector<1x256xf32>
    %162 = arith.mulf %160, %161 : vector<1x256xf32>
    %163 = arith.addf %159, %162 : vector<1x256xf32>
    %c2_158 = arith.constant 2 : index
    %c0_159 = arith.constant 0 : index
    %164 = vector.load %arg3[%c2_158, %c0_159] : memref<81x256xf32, #tpu.memory_space<vmem>>, vector<1x256xf32>
    %c2_160 = arith.constant 2 : index
    %c190 = arith.constant 190 : index
    %165 = vector.load %arg14[%c2_160, %c190] : memref<88x512xf32, #tpu.memory_space<vmem>>, vector<1x256xf32>
    %166 = arith.mulf %164, %165 : vector<1x256xf32>
    %167 = arith.addf %163, %166 : vector<1x256xf32>
    %c3_161 = arith.constant 3 : index
    %c0_162 = arith.constant 0 : index
    %168 = vector.load %arg3[%c3_161, %c0_162] : memref<81x256xf32, #tpu.memory_space<vmem>>, vector<1x256xf32>
    %c3_163 = arith.constant 3 : index
    %c191 = arith.constant 191 : index
    %169 = vector.load %arg14[%c3_163, %c191] : memref<88x512xf32, #tpu.memory_space<vmem>>, vector<1x256xf32>
    %170 = arith.mulf %168, %169 : vector<1x256xf32>
    %171 = arith.addf %167, %170 : vector<1x256xf32>
    %c4_164 = arith.constant 4 : index
    %c0_165 = arith.constant 0 : index
    %172 = vector.load %arg3[%c4_164, %c0_165] : memref<81x256xf32, #tpu.memory_space<vmem>>, vector<1x256xf32>
    %c4_166 = arith.constant 4 : index
    %c192 = arith.constant 192 : index
    %173 = vector.load %arg14[%c4_166, %c192] : memref<88x512xf32, #tpu.memory_space<vmem>>, vector<1x256xf32>
    %174 = arith.mulf %172, %173 : vector<1x256xf32>
    %175 = arith.addf %171, %174 : vector<1x256xf32>
    %c5_167 = arith.constant 5 : index
    %c0_168 = arith.constant 0 : index
    %176 = vector.load %arg3[%c5_167, %c0_168] : memref<81x256xf32, #tpu.memory_space<vmem>>, vector<1x256xf32>
    %c5_169 = arith.constant 5 : index
    %c193 = arith.constant 193 : index
    %177 = vector.load %arg14[%c5_169, %c193] : memref<88x512xf32, #tpu.memory_space<vmem>>, vector<1x256xf32>
    %178 = arith.mulf %176, %177 : vector<1x256xf32>
    %179 = arith.addf %175, %178 : vector<1x256xf32>
    %c6_170 = arith.constant 6 : index
    %c0_171 = arith.constant 0 : index
    %180 = vector.load %arg3[%c6_170, %c0_171] : memref<81x256xf32, #tpu.memory_space<vmem>>, vector<1x256xf32>
    %c6_172 = arith.constant 6 : index
    %c194 = arith.constant 194 : index
    %181 = vector.load %arg14[%c6_172, %c194] : memref<88x512xf32, #tpu.memory_space<vmem>>, vector<1x256xf32>
    %182 = arith.mulf %180, %181 : vector<1x256xf32>
    %183 = arith.addf %179, %182 : vector<1x256xf32>
    %c7_173 = arith.constant 7 : index
    %c0_174 = arith.constant 0 : index
    %184 = vector.load %arg3[%c7_173, %c0_174] : memref<81x256xf32, #tpu.memory_space<vmem>>, vector<1x256xf32>
    %c7_175 = arith.constant 7 : index
    %c195 = arith.constant 195 : index
    %185 = vector.load %arg14[%c7_175, %c195] : memref<88x512xf32, #tpu.memory_space<vmem>>, vector<1x256xf32>
    %186 = arith.mulf %184, %185 : vector<1x256xf32>
    %187 = arith.addf %183, %186 : vector<1x256xf32>
    %c8_176 = arith.constant 8 : index
    %c0_177 = arith.constant 0 : index
    %188 = vector.load %arg3[%c8_176, %c0_177] : memref<81x256xf32, #tpu.memory_space<vmem>>, vector<1x256xf32>
    %c8_178 = arith.constant 8 : index
    %c196 = arith.constant 196 : index
    %189 = vector.load %arg14[%c8_178, %c196] : memref<88x512xf32, #tpu.memory_space<vmem>>, vector<1x256xf32>
    %190 = arith.mulf %188, %189 : vector<1x256xf32>
    %191 = arith.addf %187, %190 : vector<1x256xf32>
    %c9_179 = arith.constant 9 : index
    %c0_180 = arith.constant 0 : index
    %192 = vector.load %arg3[%c9_179, %c0_180] : memref<81x256xf32, #tpu.memory_space<vmem>>, vector<1x256xf32>
    %c9_181 = arith.constant 9 : index
    %c204 = arith.constant 204 : index
    %193 = vector.load %arg14[%c9_181, %c204] : memref<88x512xf32, #tpu.memory_space<vmem>>, vector<1x256xf32>
    %194 = arith.mulf %192, %193 : vector<1x256xf32>
    %195 = arith.addf %191, %194 : vector<1x256xf32>
    %c10 = arith.constant 10 : index
    %c0_182 = arith.constant 0 : index
    %196 = vector.load %arg3[%c10, %c0_182] : memref<81x256xf32, #tpu.memory_space<vmem>>, vector<1x256xf32>
    %c10_183 = arith.constant 10 : index
    %c205 = arith.constant 205 : index
    %197 = vector.load %arg14[%c10_183, %c205] : memref<88x512xf32, #tpu.memory_space<vmem>>, vector<1x256xf32>
    %198 = arith.mulf %196, %197 : vector<1x256xf32>
    %199 = arith.addf %195, %198 : vector<1x256xf32>
    %c11 = arith.constant 11 : index
    %c0_184 = arith.constant 0 : index
    %200 = vector.load %arg3[%c11, %c0_184] : memref<81x256xf32, #tpu.memory_space<vmem>>, vector<1x256xf32>
    %c11_185 = arith.constant 11 : index
    %c206 = arith.constant 206 : index
    %201 = vector.load %arg14[%c11_185, %c206] : memref<88x512xf32, #tpu.memory_space<vmem>>, vector<1x256xf32>
    %202 = arith.mulf %200, %201 : vector<1x256xf32>
    %203 = arith.addf %199, %202 : vector<1x256xf32>
    %c12 = arith.constant 12 : index
    %c0_186 = arith.constant 0 : index
    %204 = vector.load %arg3[%c12, %c0_186] : memref<81x256xf32, #tpu.memory_space<vmem>>, vector<1x256xf32>
    %c12_187 = arith.constant 12 : index
    %c207 = arith.constant 207 : index
    %205 = vector.load %arg14[%c12_187, %c207] : memref<88x512xf32, #tpu.memory_space<vmem>>, vector<1x256xf32>
    %206 = arith.mulf %204, %205 : vector<1x256xf32>
    %207 = arith.addf %203, %206 : vector<1x256xf32>
    %c13 = arith.constant 13 : index
    %c0_188 = arith.constant 0 : index
    %208 = vector.load %arg3[%c13, %c0_188] : memref<81x256xf32, #tpu.memory_space<vmem>>, vector<1x256xf32>
    %c13_189 = arith.constant 13 : index
    %c208 = arith.constant 208 : index
    %209 = vector.load %arg14[%c13_189, %c208] : memref<88x512xf32, #tpu.memory_space<vmem>>, vector<1x256xf32>
    %210 = arith.mulf %208, %209 : vector<1x256xf32>
    %211 = arith.addf %207, %210 : vector<1x256xf32>
    %c14 = arith.constant 14 : index
    %c0_190 = arith.constant 0 : index
    %212 = vector.load %arg3[%c14, %c0_190] : memref<81x256xf32, #tpu.memory_space<vmem>>, vector<1x256xf32>
    %c14_191 = arith.constant 14 : index
    %c209 = arith.constant 209 : index
    %213 = vector.load %arg14[%c14_191, %c209] : memref<88x512xf32, #tpu.memory_space<vmem>>, vector<1x256xf32>
    %214 = arith.mulf %212, %213 : vector<1x256xf32>
    %215 = arith.addf %211, %214 : vector<1x256xf32>
    %c15 = arith.constant 15 : index
    %c0_192 = arith.constant 0 : index
    %216 = vector.load %arg3[%c15, %c0_192] : memref<81x256xf32, #tpu.memory_space<vmem>>, vector<1x256xf32>
    %c15_193 = arith.constant 15 : index
    %c210 = arith.constant 210 : index
    %217 = vector.load %arg14[%c15_193, %c210] : memref<88x512xf32, #tpu.memory_space<vmem>>, vector<1x256xf32>
    %218 = arith.mulf %216, %217 : vector<1x256xf32>
    %219 = arith.addf %215, %218 : vector<1x256xf32>
    %c16 = arith.constant 16 : index
    %c0_194 = arith.constant 0 : index
    %220 = vector.load %arg3[%c16, %c0_194] : memref<81x256xf32, #tpu.memory_space<vmem>>, vector<1x256xf32>
    %c16_195 = arith.constant 16 : index
    %c211 = arith.constant 211 : index
    %221 = vector.load %arg14[%c16_195, %c211] : memref<88x512xf32, #tpu.memory_space<vmem>>, vector<1x256xf32>
    %222 = arith.mulf %220, %221 : vector<1x256xf32>
    %223 = arith.addf %219, %222 : vector<1x256xf32>
    %c17 = arith.constant 17 : index
    %c0_196 = arith.constant 0 : index
    %224 = vector.load %arg3[%c17, %c0_196] : memref<81x256xf32, #tpu.memory_space<vmem>>, vector<1x256xf32>
    %c17_197 = arith.constant 17 : index
    %c212 = arith.constant 212 : index
    %225 = vector.load %arg14[%c17_197, %c212] : memref<88x512xf32, #tpu.memory_space<vmem>>, vector<1x256xf32>
    %226 = arith.mulf %224, %225 : vector<1x256xf32>
    %227 = arith.addf %223, %226 : vector<1x256xf32>
    %c18 = arith.constant 18 : index
    %c0_198 = arith.constant 0 : index
    %228 = vector.load %arg3[%c18, %c0_198] : memref<81x256xf32, #tpu.memory_space<vmem>>, vector<1x256xf32>
    %c18_199 = arith.constant 18 : index
    %c220 = arith.constant 220 : index
    %229 = vector.load %arg14[%c18_199, %c220] : memref<88x512xf32, #tpu.memory_space<vmem>>, vector<1x256xf32>
    %230 = arith.mulf %228, %229 : vector<1x256xf32>
    %231 = arith.addf %227, %230 : vector<1x256xf32>
    %c19 = arith.constant 19 : index
    %c0_200 = arith.constant 0 : index
    %232 = vector.load %arg3[%c19, %c0_200] : memref<81x256xf32, #tpu.memory_space<vmem>>, vector<1x256xf32>
    %c19_201 = arith.constant 19 : index
    %c221 = arith.constant 221 : index
    %233 = vector.load %arg14[%c19_201, %c221] : memref<88x512xf32, #tpu.memory_space<vmem>>, vector<1x256xf32>
    %234 = arith.mulf %232, %233 : vector<1x256xf32>
    %235 = arith.addf %231, %234 : vector<1x256xf32>
    %c20 = arith.constant 20 : index
    %c0_202 = arith.constant 0 : index
    %236 = vector.load %arg3[%c20, %c0_202] : memref<81x256xf32, #tpu.memory_space<vmem>>, vector<1x256xf32>
    %c20_203 = arith.constant 20 : index
    %c222 = arith.constant 222 : index
    %237 = vector.load %arg14[%c20_203, %c222] : memref<88x512xf32, #tpu.memory_space<vmem>>, vector<1x256xf32>
    %238 = arith.mulf %236, %237 : vector<1x256xf32>
    %239 = arith.addf %235, %238 : vector<1x256xf32>
    %c21 = arith.constant 21 : index
    %c0_204 = arith.constant 0 : index
    %240 = vector.load %arg3[%c21, %c0_204] : memref<81x256xf32, #tpu.memory_space<vmem>>, vector<1x256xf32>
    %c21_205 = arith.constant 21 : index
    %c223 = arith.constant 223 : index
    %241 = vector.load %arg14[%c21_205, %c223] : memref<88x512xf32, #tpu.memory_space<vmem>>, vector<1x256xf32>
    %242 = arith.mulf %240, %241 : vector<1x256xf32>
    %243 = arith.addf %239, %242 : vector<1x256xf32>
    %c22 = arith.constant 22 : index
    %c0_206 = arith.constant 0 : index
    %244 = vector.load %arg3[%c22, %c0_206] : memref<81x256xf32, #tpu.memory_space<vmem>>, vector<1x256xf32>
    %c22_207 = arith.constant 22 : index
    %c224 = arith.constant 224 : index
    %245 = vector.load %arg14[%c22_207, %c224] : memref<88x512xf32, #tpu.memory_space<vmem>>, vector<1x256xf32>
    %246 = arith.mulf %244, %245 : vector<1x256xf32>
    %247 = arith.addf %243, %246 : vector<1x256xf32>
    %c23 = arith.constant 23 : index
    %c0_208 = arith.constant 0 : index
    %248 = vector.load %arg3[%c23, %c0_208] : memref<81x256xf32, #tpu.memory_space<vmem>>, vector<1x256xf32>
    %c23_209 = arith.constant 23 : index
    %c225 = arith.constant 225 : index
    %249 = vector.load %arg14[%c23_209, %c225] : memref<88x512xf32, #tpu.memory_space<vmem>>, vector<1x256xf32>
    %250 = arith.mulf %248, %249 : vector<1x256xf32>
    %251 = arith.addf %247, %250 : vector<1x256xf32>
    %c24 = arith.constant 24 : index
    %c0_210 = arith.constant 0 : index
    %252 = vector.load %arg3[%c24, %c0_210] : memref<81x256xf32, #tpu.memory_space<vmem>>, vector<1x256xf32>
    %c24_211 = arith.constant 24 : index
    %c226 = arith.constant 226 : index
    %253 = vector.load %arg14[%c24_211, %c226] : memref<88x512xf32, #tpu.memory_space<vmem>>, vector<1x256xf32>
    %254 = arith.mulf %252, %253 : vector<1x256xf32>
    %255 = arith.addf %251, %254 : vector<1x256xf32>
    %c25 = arith.constant 25 : index
    %c0_212 = arith.constant 0 : index
    %256 = vector.load %arg3[%c25, %c0_212] : memref<81x256xf32, #tpu.memory_space<vmem>>, vector<1x256xf32>
    %c25_213 = arith.constant 25 : index
    %c227 = arith.constant 227 : index
    %257 = vector.load %arg14[%c25_213, %c227] : memref<88x512xf32, #tpu.memory_space<vmem>>, vector<1x256xf32>
    %258 = arith.mulf %256, %257 : vector<1x256xf32>
    %259 = arith.addf %255, %258 : vector<1x256xf32>
    %c26 = arith.constant 26 : index
    %c0_214 = arith.constant 0 : index
    %260 = vector.load %arg3[%c26, %c0_214] : memref<81x256xf32, #tpu.memory_space<vmem>>, vector<1x256xf32>
    %c26_215 = arith.constant 26 : index
    %c228 = arith.constant 228 : index
    %261 = vector.load %arg14[%c26_215, %c228] : memref<88x512xf32, #tpu.memory_space<vmem>>, vector<1x256xf32>
    %262 = arith.mulf %260, %261 : vector<1x256xf32>
    %263 = arith.addf %259, %262 : vector<1x256xf32>
    %c27 = arith.constant 27 : index
    %c0_216 = arith.constant 0 : index
    %264 = vector.load %arg3[%c27, %c0_216] : memref<81x256xf32, #tpu.memory_space<vmem>>, vector<1x256xf32>
    %c27_217 = arith.constant 27 : index
    %c236 = arith.constant 236 : index
    %265 = vector.load %arg14[%c27_217, %c236] : memref<88x512xf32, #tpu.memory_space<vmem>>, vector<1x256xf32>
    %266 = arith.mulf %264, %265 : vector<1x256xf32>
    %267 = arith.addf %263, %266 : vector<1x256xf32>
    %c28 = arith.constant 28 : index
    %c0_218 = arith.constant 0 : index
    %268 = vector.load %arg3[%c28, %c0_218] : memref<81x256xf32, #tpu.memory_space<vmem>>, vector<1x256xf32>
    %c28_219 = arith.constant 28 : index
    %c237 = arith.constant 237 : index
    %269 = vector.load %arg14[%c28_219, %c237] : memref<88x512xf32, #tpu.memory_space<vmem>>, vector<1x256xf32>
    %270 = arith.mulf %268, %269 : vector<1x256xf32>
    %271 = arith.addf %267, %270 : vector<1x256xf32>
    %c29 = arith.constant 29 : index
    %c0_220 = arith.constant 0 : index
    %272 = vector.load %arg3[%c29, %c0_220] : memref<81x256xf32, #tpu.memory_space<vmem>>, vector<1x256xf32>
    %c29_221 = arith.constant 29 : index
    %c238 = arith.constant 238 : index
    %273 = vector.load %arg14[%c29_221, %c238] : memref<88x512xf32, #tpu.memory_space<vmem>>, vector<1x256xf32>
    %274 = arith.mulf %272, %273 : vector<1x256xf32>
    %275 = arith.addf %271, %274 : vector<1x256xf32>
    %c30 = arith.constant 30 : index
    %c0_222 = arith.constant 0 : index
    %276 = vector.load %arg3[%c30, %c0_222] : memref<81x256xf32, #tpu.memory_space<vmem>>, vector<1x256xf32>
    %c30_223 = arith.constant 30 : index
    %c239 = arith.constant 239 : index
    %277 = vector.load %arg14[%c30_223, %c239] : memref<88x512xf32, #tpu.memory_space<vmem>>, vector<1x256xf32>
    %278 = arith.mulf %276, %277 : vector<1x256xf32>
    %279 = arith.addf %275, %278 : vector<1x256xf32>
    %c31 = arith.constant 31 : index
    %c0_224 = arith.constant 0 : index
    %280 = vector.load %arg3[%c31, %c0_224] : memref<81x256xf32, #tpu.memory_space<vmem>>, vector<1x256xf32>
    %c31_225 = arith.constant 31 : index
    %c240 = arith.constant 240 : index
    %281 = vector.load %arg14[%c31_225, %c240] : memref<88x512xf32, #tpu.memory_space<vmem>>, vector<1x256xf32>
    %282 = arith.mulf %280, %281 : vector<1x256xf32>
    %283 = arith.addf %279, %282 : vector<1x256xf32>
    %c32 = arith.constant 32 : index
    %c0_226 = arith.constant 0 : index
    %284 = vector.load %arg3[%c32, %c0_226] : memref<81x256xf32, #tpu.memory_space<vmem>>, vector<1x256xf32>
    %c32_227 = arith.constant 32 : index
    %c241 = arith.constant 241 : index
    %285 = vector.load %arg14[%c32_227, %c241] : memref<88x512xf32, #tpu.memory_space<vmem>>, vector<1x256xf32>
    %286 = arith.mulf %284, %285 : vector<1x256xf32>
    %287 = arith.addf %283, %286 : vector<1x256xf32>
    %c33 = arith.constant 33 : index
    %c0_228 = arith.constant 0 : index
    %288 = vector.load %arg3[%c33, %c0_228] : memref<81x256xf32, #tpu.memory_space<vmem>>, vector<1x256xf32>
    %c33_229 = arith.constant 33 : index
    %c242 = arith.constant 242 : index
    %289 = vector.load %arg14[%c33_229, %c242] : memref<88x512xf32, #tpu.memory_space<vmem>>, vector<1x256xf32>
    %290 = arith.mulf %288, %289 : vector<1x256xf32>
    %291 = arith.addf %287, %290 : vector<1x256xf32>
    %c34 = arith.constant 34 : index
    %c0_230 = arith.constant 0 : index
    %292 = vector.load %arg3[%c34, %c0_230] : memref<81x256xf32, #tpu.memory_space<vmem>>, vector<1x256xf32>
    %c34_231 = arith.constant 34 : index
    %c243 = arith.constant 243 : index
    %293 = vector.load %arg14[%c34_231, %c243] : memref<88x512xf32, #tpu.memory_space<vmem>>, vector<1x256xf32>
    %294 = arith.mulf %292, %293 : vector<1x256xf32>
    %295 = arith.addf %291, %294 : vector<1x256xf32>
    %c35 = arith.constant 35 : index
    %c0_232 = arith.constant 0 : index
    %296 = vector.load %arg3[%c35, %c0_232] : memref<81x256xf32, #tpu.memory_space<vmem>>, vector<1x256xf32>
    %c35_233 = arith.constant 35 : index
    %c244 = arith.constant 244 : index
    %297 = vector.load %arg14[%c35_233, %c244] : memref<88x512xf32, #tpu.memory_space<vmem>>, vector<1x256xf32>
    %298 = arith.mulf %296, %297 : vector<1x256xf32>
    %299 = arith.addf %295, %298 : vector<1x256xf32>
    %c36 = arith.constant 36 : index
    %c0_234 = arith.constant 0 : index
    %300 = vector.load %arg3[%c36, %c0_234] : memref<81x256xf32, #tpu.memory_space<vmem>>, vector<1x256xf32>
    %c36_235 = arith.constant 36 : index
    %c252 = arith.constant 252 : index
    %301 = vector.load %arg14[%c36_235, %c252] : memref<88x512xf32, #tpu.memory_space<vmem>>, vector<1x256xf32>
    %302 = arith.mulf %300, %301 : vector<1x256xf32>
    %303 = arith.addf %299, %302 : vector<1x256xf32>
    %c37 = arith.constant 37 : index
    %c0_236 = arith.constant 0 : index
    %304 = vector.load %arg3[%c37, %c0_236] : memref<81x256xf32, #tpu.memory_space<vmem>>, vector<1x256xf32>
    %c37_237 = arith.constant 37 : index
    %c253 = arith.constant 253 : index
    %305 = vector.load %arg14[%c37_237, %c253] : memref<88x512xf32, #tpu.memory_space<vmem>>, vector<1x256xf32>
    %306 = arith.mulf %304, %305 : vector<1x256xf32>
    %307 = arith.addf %303, %306 : vector<1x256xf32>
    %c38 = arith.constant 38 : index
    %c0_238 = arith.constant 0 : index
    %308 = vector.load %arg3[%c38, %c0_238] : memref<81x256xf32, #tpu.memory_space<vmem>>, vector<1x256xf32>
    %c38_239 = arith.constant 38 : index
    %c254 = arith.constant 254 : index
    %309 = vector.load %arg14[%c38_239, %c254] : memref<88x512xf32, #tpu.memory_space<vmem>>, vector<1x256xf32>
    %310 = arith.mulf %308, %309 : vector<1x256xf32>
    %311 = arith.addf %307, %310 : vector<1x256xf32>
    %c39 = arith.constant 39 : index
    %c0_240 = arith.constant 0 : index
    %312 = vector.load %arg3[%c39, %c0_240] : memref<81x256xf32, #tpu.memory_space<vmem>>, vector<1x256xf32>
    %c39_241 = arith.constant 39 : index
    %c255 = arith.constant 255 : index
    %313 = vector.load %arg14[%c39_241, %c255] : memref<88x512xf32, #tpu.memory_space<vmem>>, vector<1x256xf32>
    %314 = arith.mulf %312, %313 : vector<1x256xf32>
    %315 = arith.addf %311, %314 : vector<1x256xf32>
    %c40 = arith.constant 40 : index
    %c0_242 = arith.constant 0 : index
    %316 = vector.load %arg3[%c40, %c0_242] : memref<81x256xf32, #tpu.memory_space<vmem>>, vector<1x256xf32>
    %c40_243 = arith.constant 40 : index
    %c0_244 = arith.constant 0 : index
    %317 = vector.load %arg14[%c40_243, %c0_244] : memref<88x512xf32, #tpu.memory_space<vmem>>, vector<1x256xf32>
    %318 = arith.mulf %316, %317 : vector<1x256xf32>
    %319 = arith.addf %315, %318 : vector<1x256xf32>
    %c41 = arith.constant 41 : index
    %c0_245 = arith.constant 0 : index
    %320 = vector.load %arg3[%c41, %c0_245] : memref<81x256xf32, #tpu.memory_space<vmem>>, vector<1x256xf32>
    %c41_246 = arith.constant 41 : index
    %c1_247 = arith.constant 1 : index
    %321 = vector.load %arg14[%c41_246, %c1_247] : memref<88x512xf32, #tpu.memory_space<vmem>>, vector<1x256xf32>
    %322 = arith.mulf %320, %321 : vector<1x256xf32>
    %323 = arith.addf %319, %322 : vector<1x256xf32>
    %c42 = arith.constant 42 : index
    %c0_248 = arith.constant 0 : index
    %324 = vector.load %arg3[%c42, %c0_248] : memref<81x256xf32, #tpu.memory_space<vmem>>, vector<1x256xf32>
    %c42_249 = arith.constant 42 : index
    %c2_250 = arith.constant 2 : index
    %325 = vector.load %arg14[%c42_249, %c2_250] : memref<88x512xf32, #tpu.memory_space<vmem>>, vector<1x256xf32>
    %326 = arith.mulf %324, %325 : vector<1x256xf32>
    %327 = arith.addf %323, %326 : vector<1x256xf32>
    %c43 = arith.constant 43 : index
    %c0_251 = arith.constant 0 : index
    %328 = vector.load %arg3[%c43, %c0_251] : memref<81x256xf32, #tpu.memory_space<vmem>>, vector<1x256xf32>
    %c43_252 = arith.constant 43 : index
    %c3_253 = arith.constant 3 : index
    %329 = vector.load %arg14[%c43_252, %c3_253] : memref<88x512xf32, #tpu.memory_space<vmem>>, vector<1x256xf32>
    %330 = arith.mulf %328, %329 : vector<1x256xf32>
    %331 = arith.addf %327, %330 : vector<1x256xf32>
    %c44 = arith.constant 44 : index
    %c0_254 = arith.constant 0 : index
    %332 = vector.load %arg3[%c44, %c0_254] : memref<81x256xf32, #tpu.memory_space<vmem>>, vector<1x256xf32>
    %c44_255 = arith.constant 44 : index
    %c4_256 = arith.constant 4 : index
    %333 = vector.load %arg14[%c44_255, %c4_256] : memref<88x512xf32, #tpu.memory_space<vmem>>, vector<1x256xf32>
    %334 = arith.mulf %332, %333 : vector<1x256xf32>
    %335 = arith.addf %331, %334 : vector<1x256xf32>
    %c45 = arith.constant 45 : index
    %c0_257 = arith.constant 0 : index
    %336 = vector.load %arg3[%c45, %c0_257] : memref<81x256xf32, #tpu.memory_space<vmem>>, vector<1x256xf32>
    %c45_258 = arith.constant 45 : index
    %c12_259 = arith.constant 12 : index
    %337 = vector.load %arg14[%c45_258, %c12_259] : memref<88x512xf32, #tpu.memory_space<vmem>>, vector<1x256xf32>
    %338 = arith.mulf %336, %337 : vector<1x256xf32>
    %339 = arith.addf %335, %338 : vector<1x256xf32>
    %c46 = arith.constant 46 : index
    %c0_260 = arith.constant 0 : index
    %340 = vector.load %arg3[%c46, %c0_260] : memref<81x256xf32, #tpu.memory_space<vmem>>, vector<1x256xf32>
    %c46_261 = arith.constant 46 : index
    %c13_262 = arith.constant 13 : index
    %341 = vector.load %arg14[%c46_261, %c13_262] : memref<88x512xf32, #tpu.memory_space<vmem>>, vector<1x256xf32>
    %342 = arith.mulf %340, %341 : vector<1x256xf32>
    %343 = arith.addf %339, %342 : vector<1x256xf32>
    %c47 = arith.constant 47 : index
    %c0_263 = arith.constant 0 : index
    %344 = vector.load %arg3[%c47, %c0_263] : memref<81x256xf32, #tpu.memory_space<vmem>>, vector<1x256xf32>
    %c47_264 = arith.constant 47 : index
    %c14_265 = arith.constant 14 : index
    %345 = vector.load %arg14[%c47_264, %c14_265] : memref<88x512xf32, #tpu.memory_space<vmem>>, vector<1x256xf32>
    %346 = arith.mulf %344, %345 : vector<1x256xf32>
    %347 = arith.addf %343, %346 : vector<1x256xf32>
    %c48 = arith.constant 48 : index
    %c0_266 = arith.constant 0 : index
    %348 = vector.load %arg3[%c48, %c0_266] : memref<81x256xf32, #tpu.memory_space<vmem>>, vector<1x256xf32>
    %c48_267 = arith.constant 48 : index
    %c15_268 = arith.constant 15 : index
    %349 = vector.load %arg14[%c48_267, %c15_268] : memref<88x512xf32, #tpu.memory_space<vmem>>, vector<1x256xf32>
    %350 = arith.mulf %348, %349 : vector<1x256xf32>
    %351 = arith.addf %347, %350 : vector<1x256xf32>
    %c49 = arith.constant 49 : index
    %c0_269 = arith.constant 0 : index
    %352 = vector.load %arg3[%c49, %c0_269] : memref<81x256xf32, #tpu.memory_space<vmem>>, vector<1x256xf32>
    %c49_270 = arith.constant 49 : index
    %c16_271 = arith.constant 16 : index
    %353 = vector.load %arg14[%c49_270, %c16_271] : memref<88x512xf32, #tpu.memory_space<vmem>>, vector<1x256xf32>
    %354 = arith.mulf %352, %353 : vector<1x256xf32>
    %355 = arith.addf %351, %354 : vector<1x256xf32>
    %c50 = arith.constant 50 : index
    %c0_272 = arith.constant 0 : index
    %356 = vector.load %arg3[%c50, %c0_272] : memref<81x256xf32, #tpu.memory_space<vmem>>, vector<1x256xf32>
    %c50_273 = arith.constant 50 : index
    %c17_274 = arith.constant 17 : index
    %357 = vector.load %arg14[%c50_273, %c17_274] : memref<88x512xf32, #tpu.memory_space<vmem>>, vector<1x256xf32>
    %358 = arith.mulf %356, %357 : vector<1x256xf32>
    %359 = arith.addf %355, %358 : vector<1x256xf32>
    %c51 = arith.constant 51 : index
    %c0_275 = arith.constant 0 : index
    %360 = vector.load %arg3[%c51, %c0_275] : memref<81x256xf32, #tpu.memory_space<vmem>>, vector<1x256xf32>
    %c51_276 = arith.constant 51 : index
    %c18_277 = arith.constant 18 : index
    %361 = vector.load %arg14[%c51_276, %c18_277] : memref<88x512xf32, #tpu.memory_space<vmem>>, vector<1x256xf32>
    %362 = arith.mulf %360, %361 : vector<1x256xf32>
    %363 = arith.addf %359, %362 : vector<1x256xf32>
    %c52 = arith.constant 52 : index
    %c0_278 = arith.constant 0 : index
    %364 = vector.load %arg3[%c52, %c0_278] : memref<81x256xf32, #tpu.memory_space<vmem>>, vector<1x256xf32>
    %c52_279 = arith.constant 52 : index
    %c19_280 = arith.constant 19 : index
    %365 = vector.load %arg14[%c52_279, %c19_280] : memref<88x512xf32, #tpu.memory_space<vmem>>, vector<1x256xf32>
    %366 = arith.mulf %364, %365 : vector<1x256xf32>
    %367 = arith.addf %363, %366 : vector<1x256xf32>
    %c53 = arith.constant 53 : index
    %c0_281 = arith.constant 0 : index
    %368 = vector.load %arg3[%c53, %c0_281] : memref<81x256xf32, #tpu.memory_space<vmem>>, vector<1x256xf32>
    %c53_282 = arith.constant 53 : index
    %c20_283 = arith.constant 20 : index
    %369 = vector.load %arg14[%c53_282, %c20_283] : memref<88x512xf32, #tpu.memory_space<vmem>>, vector<1x256xf32>
    %370 = arith.mulf %368, %369 : vector<1x256xf32>
    %371 = arith.addf %367, %370 : vector<1x256xf32>
    %c54 = arith.constant 54 : index
    %c0_284 = arith.constant 0 : index
    %372 = vector.load %arg3[%c54, %c0_284] : memref<81x256xf32, #tpu.memory_space<vmem>>, vector<1x256xf32>
    %c54_285 = arith.constant 54 : index
    %c28_286 = arith.constant 28 : index
    %373 = vector.load %arg14[%c54_285, %c28_286] : memref<88x512xf32, #tpu.memory_space<vmem>>, vector<1x256xf32>
    %374 = arith.mulf %372, %373 : vector<1x256xf32>
    %375 = arith.addf %371, %374 : vector<1x256xf32>
    %c55 = arith.constant 55 : index
    %c0_287 = arith.constant 0 : index
    %376 = vector.load %arg3[%c55, %c0_287] : memref<81x256xf32, #tpu.memory_space<vmem>>, vector<1x256xf32>
    %c55_288 = arith.constant 55 : index
    %c29_289 = arith.constant 29 : index
    %377 = vector.load %arg14[%c55_288, %c29_289] : memref<88x512xf32, #tpu.memory_space<vmem>>, vector<1x256xf32>
    %378 = arith.mulf %376, %377 : vector<1x256xf32>
    %379 = arith.addf %375, %378 : vector<1x256xf32>
    %c56 = arith.constant 56 : index
    %c0_290 = arith.constant 0 : index
    %380 = vector.load %arg3[%c56, %c0_290] : memref<81x256xf32, #tpu.memory_space<vmem>>, vector<1x256xf32>
    %c56_291 = arith.constant 56 : index
    %c30_292 = arith.constant 30 : index
    %381 = vector.load %arg14[%c56_291, %c30_292] : memref<88x512xf32, #tpu.memory_space<vmem>>, vector<1x256xf32>
    %382 = arith.mulf %380, %381 : vector<1x256xf32>
    %383 = arith.addf %379, %382 : vector<1x256xf32>
    %c57 = arith.constant 57 : index
    %c0_293 = arith.constant 0 : index
    %384 = vector.load %arg3[%c57, %c0_293] : memref<81x256xf32, #tpu.memory_space<vmem>>, vector<1x256xf32>
    %c57_294 = arith.constant 57 : index
    %c31_295 = arith.constant 31 : index
    %385 = vector.load %arg14[%c57_294, %c31_295] : memref<88x512xf32, #tpu.memory_space<vmem>>, vector<1x256xf32>
    %386 = arith.mulf %384, %385 : vector<1x256xf32>
    %387 = arith.addf %383, %386 : vector<1x256xf32>
    %c58 = arith.constant 58 : index
    %c0_296 = arith.constant 0 : index
    %388 = vector.load %arg3[%c58, %c0_296] : memref<81x256xf32, #tpu.memory_space<vmem>>, vector<1x256xf32>
    %c58_297 = arith.constant 58 : index
    %c32_298 = arith.constant 32 : index
    %389 = vector.load %arg14[%c58_297, %c32_298] : memref<88x512xf32, #tpu.memory_space<vmem>>, vector<1x256xf32>
    %390 = arith.mulf %388, %389 : vector<1x256xf32>
    %391 = arith.addf %387, %390 : vector<1x256xf32>
    %c59 = arith.constant 59 : index
    %c0_299 = arith.constant 0 : index
    %392 = vector.load %arg3[%c59, %c0_299] : memref<81x256xf32, #tpu.memory_space<vmem>>, vector<1x256xf32>
    %c59_300 = arith.constant 59 : index
    %c33_301 = arith.constant 33 : index
    %393 = vector.load %arg14[%c59_300, %c33_301] : memref<88x512xf32, #tpu.memory_space<vmem>>, vector<1x256xf32>
    %394 = arith.mulf %392, %393 : vector<1x256xf32>
    %395 = arith.addf %391, %394 : vector<1x256xf32>
    %c60 = arith.constant 60 : index
    %c0_302 = arith.constant 0 : index
    %396 = vector.load %arg3[%c60, %c0_302] : memref<81x256xf32, #tpu.memory_space<vmem>>, vector<1x256xf32>
    %c60_303 = arith.constant 60 : index
    %c34_304 = arith.constant 34 : index
    %397 = vector.load %arg14[%c60_303, %c34_304] : memref<88x512xf32, #tpu.memory_space<vmem>>, vector<1x256xf32>
    %398 = arith.mulf %396, %397 : vector<1x256xf32>
    %399 = arith.addf %395, %398 : vector<1x256xf32>
    %c61 = arith.constant 61 : index
    %c0_305 = arith.constant 0 : index
    %400 = vector.load %arg3[%c61, %c0_305] : memref<81x256xf32, #tpu.memory_space<vmem>>, vector<1x256xf32>
    %c61_306 = arith.constant 61 : index
    %c35_307 = arith.constant 35 : index
    %401 = vector.load %arg14[%c61_306, %c35_307] : memref<88x512xf32, #tpu.memory_space<vmem>>, vector<1x256xf32>
    %402 = arith.mulf %400, %401 : vector<1x256xf32>
    %403 = arith.addf %399, %402 : vector<1x256xf32>
    %c62 = arith.constant 62 : index
    %c0_308 = arith.constant 0 : index
    %404 = vector.load %arg3[%c62, %c0_308] : memref<81x256xf32, #tpu.memory_space<vmem>>, vector<1x256xf32>
    %c62_309 = arith.constant 62 : index
    %c36_310 = arith.constant 36 : index
    %405 = vector.load %arg14[%c62_309, %c36_310] : memref<88x512xf32, #tpu.memory_space<vmem>>, vector<1x256xf32>
    %406 = arith.mulf %404, %405 : vector<1x256xf32>
    %407 = arith.addf %403, %406 : vector<1x256xf32>
    %c63 = arith.constant 63 : index
    %c0_311 = arith.constant 0 : index
    %408 = vector.load %arg3[%c63, %c0_311] : memref<81x256xf32, #tpu.memory_space<vmem>>, vector<1x256xf32>
    %c63_312 = arith.constant 63 : index
    %c44_313 = arith.constant 44 : index
    %409 = vector.load %arg14[%c63_312, %c44_313] : memref<88x512xf32, #tpu.memory_space<vmem>>, vector<1x256xf32>
    %410 = arith.mulf %408, %409 : vector<1x256xf32>
    %411 = arith.addf %407, %410 : vector<1x256xf32>
    %c64 = arith.constant 64 : index
    %c0_314 = arith.constant 0 : index
    %412 = vector.load %arg3[%c64, %c0_314] : memref<81x256xf32, #tpu.memory_space<vmem>>, vector<1x256xf32>
    %c64_315 = arith.constant 64 : index
    %c45_316 = arith.constant 45 : index
    %413 = vector.load %arg14[%c64_315, %c45_316] : memref<88x512xf32, #tpu.memory_space<vmem>>, vector<1x256xf32>
    %414 = arith.mulf %412, %413 : vector<1x256xf32>
    %415 = arith.addf %411, %414 : vector<1x256xf32>
    %c65 = arith.constant 65 : index
    %c0_317 = arith.constant 0 : index
    %416 = vector.load %arg3[%c65, %c0_317] : memref<81x256xf32, #tpu.memory_space<vmem>>, vector<1x256xf32>
    %c65_318 = arith.constant 65 : index
    %c46_319 = arith.constant 46 : index
    %417 = vector.load %arg14[%c65_318, %c46_319] : memref<88x512xf32, #tpu.memory_space<vmem>>, vector<1x256xf32>
    %418 = arith.mulf %416, %417 : vector<1x256xf32>
    %419 = arith.addf %415, %418 : vector<1x256xf32>
    %c66 = arith.constant 66 : index
    %c0_320 = arith.constant 0 : index
    %420 = vector.load %arg3[%c66, %c0_320] : memref<81x256xf32, #tpu.memory_space<vmem>>, vector<1x256xf32>
    %c66_321 = arith.constant 66 : index
    %c47_322 = arith.constant 47 : index
    %421 = vector.load %arg14[%c66_321, %c47_322] : memref<88x512xf32, #tpu.memory_space<vmem>>, vector<1x256xf32>
    %422 = arith.mulf %420, %421 : vector<1x256xf32>
    %423 = arith.addf %419, %422 : vector<1x256xf32>
    %c67 = arith.constant 67 : index
    %c0_323 = arith.constant 0 : index
    %424 = vector.load %arg3[%c67, %c0_323] : memref<81x256xf32, #tpu.memory_space<vmem>>, vector<1x256xf32>
    %c67_324 = arith.constant 67 : index
    %c48_325 = arith.constant 48 : index
    %425 = vector.load %arg14[%c67_324, %c48_325] : memref<88x512xf32, #tpu.memory_space<vmem>>, vector<1x256xf32>
    %426 = arith.mulf %424, %425 : vector<1x256xf32>
    %427 = arith.addf %423, %426 : vector<1x256xf32>
    %c68 = arith.constant 68 : index
    %c0_326 = arith.constant 0 : index
    %428 = vector.load %arg3[%c68, %c0_326] : memref<81x256xf32, #tpu.memory_space<vmem>>, vector<1x256xf32>
    %c68_327 = arith.constant 68 : index
    %c49_328 = arith.constant 49 : index
    %429 = vector.load %arg14[%c68_327, %c49_328] : memref<88x512xf32, #tpu.memory_space<vmem>>, vector<1x256xf32>
    %430 = arith.mulf %428, %429 : vector<1x256xf32>
    %431 = arith.addf %427, %430 : vector<1x256xf32>
    %c69 = arith.constant 69 : index
    %c0_329 = arith.constant 0 : index
    %432 = vector.load %arg3[%c69, %c0_329] : memref<81x256xf32, #tpu.memory_space<vmem>>, vector<1x256xf32>
    %c69_330 = arith.constant 69 : index
    %c50_331 = arith.constant 50 : index
    %433 = vector.load %arg14[%c69_330, %c50_331] : memref<88x512xf32, #tpu.memory_space<vmem>>, vector<1x256xf32>
    %434 = arith.mulf %432, %433 : vector<1x256xf32>
    %435 = arith.addf %431, %434 : vector<1x256xf32>
    %c70 = arith.constant 70 : index
    %c0_332 = arith.constant 0 : index
    %436 = vector.load %arg3[%c70, %c0_332] : memref<81x256xf32, #tpu.memory_space<vmem>>, vector<1x256xf32>
    %c70_333 = arith.constant 70 : index
    %c51_334 = arith.constant 51 : index
    %437 = vector.load %arg14[%c70_333, %c51_334] : memref<88x512xf32, #tpu.memory_space<vmem>>, vector<1x256xf32>
    %438 = arith.mulf %436, %437 : vector<1x256xf32>
    %439 = arith.addf %435, %438 : vector<1x256xf32>
    %c71 = arith.constant 71 : index
    %c0_335 = arith.constant 0 : index
    %440 = vector.load %arg3[%c71, %c0_335] : memref<81x256xf32, #tpu.memory_space<vmem>>, vector<1x256xf32>
    %c71_336 = arith.constant 71 : index
    %c52_337 = arith.constant 52 : index
    %441 = vector.load %arg14[%c71_336, %c52_337] : memref<88x512xf32, #tpu.memory_space<vmem>>, vector<1x256xf32>
    %442 = arith.mulf %440, %441 : vector<1x256xf32>
    %443 = arith.addf %439, %442 : vector<1x256xf32>
    %c72 = arith.constant 72 : index
    %c0_338 = arith.constant 0 : index
    %444 = vector.load %arg3[%c72, %c0_338] : memref<81x256xf32, #tpu.memory_space<vmem>>, vector<1x256xf32>
    %c72_339 = arith.constant 72 : index
    %c60_340 = arith.constant 60 : index
    %445 = vector.load %arg14[%c72_339, %c60_340] : memref<88x512xf32, #tpu.memory_space<vmem>>, vector<1x256xf32>
    %446 = arith.mulf %444, %445 : vector<1x256xf32>
    %447 = arith.addf %443, %446 : vector<1x256xf32>
    %c73 = arith.constant 73 : index
    %c0_341 = arith.constant 0 : index
    %448 = vector.load %arg3[%c73, %c0_341] : memref<81x256xf32, #tpu.memory_space<vmem>>, vector<1x256xf32>
    %c73_342 = arith.constant 73 : index
    %c61_343 = arith.constant 61 : index
    %449 = vector.load %arg14[%c73_342, %c61_343] : memref<88x512xf32, #tpu.memory_space<vmem>>, vector<1x256xf32>
    %450 = arith.mulf %448, %449 : vector<1x256xf32>
    %451 = arith.addf %447, %450 : vector<1x256xf32>
    %c74 = arith.constant 74 : index
    %c0_344 = arith.constant 0 : index
    %452 = vector.load %arg3[%c74, %c0_344] : memref<81x256xf32, #tpu.memory_space<vmem>>, vector<1x256xf32>
    %c74_345 = arith.constant 74 : index
    %c62_346 = arith.constant 62 : index
    %453 = vector.load %arg14[%c74_345, %c62_346] : memref<88x512xf32, #tpu.memory_space<vmem>>, vector<1x256xf32>
    %454 = arith.mulf %452, %453 : vector<1x256xf32>
    %455 = arith.addf %451, %454 : vector<1x256xf32>
    %c75 = arith.constant 75 : index
    %c0_347 = arith.constant 0 : index
    %456 = vector.load %arg3[%c75, %c0_347] : memref<81x256xf32, #tpu.memory_space<vmem>>, vector<1x256xf32>
    %c75_348 = arith.constant 75 : index
    %c63_349 = arith.constant 63 : index
    %457 = vector.load %arg14[%c75_348, %c63_349] : memref<88x512xf32, #tpu.memory_space<vmem>>, vector<1x256xf32>
    %458 = arith.mulf %456, %457 : vector<1x256xf32>
    %459 = arith.addf %455, %458 : vector<1x256xf32>
    %c76 = arith.constant 76 : index
    %c0_350 = arith.constant 0 : index
    %460 = vector.load %arg3[%c76, %c0_350] : memref<81x256xf32, #tpu.memory_space<vmem>>, vector<1x256xf32>
    %c76_351 = arith.constant 76 : index
    %c64_352 = arith.constant 64 : index
    %461 = vector.load %arg14[%c76_351, %c64_352] : memref<88x512xf32, #tpu.memory_space<vmem>>, vector<1x256xf32>
    %462 = arith.mulf %460, %461 : vector<1x256xf32>
    %463 = arith.addf %459, %462 : vector<1x256xf32>
    %c77 = arith.constant 77 : index
    %c0_353 = arith.constant 0 : index
    %464 = vector.load %arg3[%c77, %c0_353] : memref<81x256xf32, #tpu.memory_space<vmem>>, vector<1x256xf32>
    %c77_354 = arith.constant 77 : index
    %c65_355 = arith.constant 65 : index
    %465 = vector.load %arg14[%c77_354, %c65_355] : memref<88x512xf32, #tpu.memory_space<vmem>>, vector<1x256xf32>
    %466 = arith.mulf %464, %465 : vector<1x256xf32>
    %467 = arith.addf %463, %466 : vector<1x256xf32>
    %c78 = arith.constant 78 : index
    %c0_356 = arith.constant 0 : index
    %468 = vector.load %arg3[%c78, %c0_356] : memref<81x256xf32, #tpu.memory_space<vmem>>, vector<1x256xf32>
    %c78_357 = arith.constant 78 : index
    %c66_358 = arith.constant 66 : index
    %469 = vector.load %arg14[%c78_357, %c66_358] : memref<88x512xf32, #tpu.memory_space<vmem>>, vector<1x256xf32>
    %470 = arith.mulf %468, %469 : vector<1x256xf32>
    %471 = arith.addf %467, %470 : vector<1x256xf32>
    %c79 = arith.constant 79 : index
    %c0_359 = arith.constant 0 : index
    %472 = vector.load %arg3[%c79, %c0_359] : memref<81x256xf32, #tpu.memory_space<vmem>>, vector<1x256xf32>
    %c79_360 = arith.constant 79 : index
    %c67_361 = arith.constant 67 : index
    %473 = vector.load %arg14[%c79_360, %c67_361] : memref<88x512xf32, #tpu.memory_space<vmem>>, vector<1x256xf32>
    %474 = arith.mulf %472, %473 : vector<1x256xf32>
    %475 = arith.addf %471, %474 : vector<1x256xf32>
    %c80 = arith.constant 80 : index
    %c0_362 = arith.constant 0 : index
    %476 = vector.load %arg3[%c80, %c0_362] : memref<81x256xf32, #tpu.memory_space<vmem>>, vector<1x256xf32>
    %c80_363 = arith.constant 80 : index
    %c68_364 = arith.constant 68 : index
    %477 = vector.load %arg14[%c80_363, %c68_364] : memref<88x512xf32, #tpu.memory_space<vmem>>, vector<1x256xf32>
    %478 = arith.mulf %476, %477 : vector<1x256xf32>
    %479 = arith.addf %475, %478 : vector<1x256xf32>
    %480 = vector.shape_cast %479 : vector<1x256xf32> to vector<1x1x256xf32>
    %c0_365 = arith.constant 0 : index
    %c0_366 = arith.constant 0 : index
    %c0_367 = arith.constant 0 : index
    %481 = vector.load %arg11[%c0_365, %c0_366, %c0_367] : memref<1x1x256xf32, #tpu.memory_space<vmem>>, vector<1x1x256xf32>
    tpu.vector_store %arg11[%c0_365, %c0_366, %c0_367], %480 {strides = array<i32>} : memref<1x1x256xf32, #tpu.memory_space<vmem>>, vector<1x1x256xf32>,
    return
  }
  func.func @transform_0(%arg0: i32) -> (i32, i32, i32) {
    %c0_i32 = arith.constant 0 : i32
    %c0_i32_0 = arith.constant 0 : i32
    %c0_i32_1 = arith.constant 0 : i32
    return %arg0, %c0_i32, %c0_i32_0 : i32, i32, i32
  }
  func.func @transform_1(%arg0: i32) -> (i32, i32, i32) {
    %c0_i32 = arith.constant 0 : i32
    %c0_i32_0 = arith.constant 0 : i32
    %c0_i32_1 = arith.constant 0 : i32
    return %arg0, %c0_i32, %c0_i32_0 : i32, i32, i32
  }
  func.func @transform_2(%arg0: i32) -> (i32, i32) {
    %c0_i32 = arith.constant 0 : i32
    %c0_i32_0 = arith.constant 0 : i32
    %c0_i32_1 = arith.constant 0 : i32
    return %c0_i32, %c0_i32_0 : i32, i32
  }
  func.func @transform_3(%arg0: i32) -> (i32, i32) {
    %c0_i32 = arith.constant 0 : i32
    %c0_i32_0 = arith.constant 0 : i32
    %c0_i32_1 = arith.constant 0 : i32
    return %c0_i32, %c0_i32_0 : i32, i32
  }
  func.func @transform_4(%arg0: i32) -> (i32, i32) {
    %c0_i32 = arith.constant 0 : i32
    %c0_i32_0 = arith.constant 0 : i32
    %c0_i32_1 = arith.constant 0 : i32
    return %c0_i32, %c0_i32_0 : i32, i32
  }
  func.func @transform_5(%arg0: i32) -> (i32, i32, i32) {
    %c0_i32 = arith.constant 0 : i32
    %c0_i32_0 = arith.constant 0 : i32
    %c0_i32_1 = arith.constant 0 : i32
    %c0_i32_2 = arith.constant 0 : i32
    return %c0_i32, %c0_i32_0, %c0_i32_1 : i32, i32, i32
  }
  func.func @transform_6(%arg0: i32) -> (i32, i32) {
    %c0_i32 = arith.constant 0 : i32
    %c0_i32_0 = arith.constant 0 : i32
    %c0_i32_1 = arith.constant 0 : i32
    return %c0_i32, %c0_i32_0 : i32, i32
  }
  func.func @transform_7(%arg0: i32) -> (i32, i32, i32) {
    %c0_i32 = arith.constant 0 : i32
    %c0_i32_0 = arith.constant 0 : i32
    %c0_i32_1 = arith.constant 0 : i32
    %c0_i32_2 = arith.constant 0 : i32
    return %c0_i32, %c0_i32_0, %c0_i32_1 : i32, i32, i32
  }
  func.func @transform_8(%arg0: i32) -> (i32, i32) {
    %c0_i32 = arith.constant 0 : i32
    %c0_i32_0 = arith.constant 0 : i32
    %c0_i32_1 = arith.constant 0 : i32
    return %c0_i32, %c0_i32_0 : i32, i32
  }
  func.func @transform_9(%arg0: i32) -> (i32, i32) {
    %c0_i32 = arith.constant 0 : i32
    %c0_i32_0 = arith.constant 0 : i32
    %c0_i32_1 = arith.constant 0 : i32
    return %c0_i32, %c0_i32_0 : i32, i32
  }
  func.func @transform_10(%arg0: i32) -> (i32, i32, i32) {
    %c0_i32 = arith.constant 0 : i32
    %c0_i32_0 = arith.constant 0 : i32
    %c0_i32_1 = arith.constant 0 : i32
    return %arg0, %c0_i32, %c0_i32_0 : i32, i32, i32
  }
}

</mosaic_0001>

<bundles_post_ra>
// kernel: rescnn_forward.1
= control target key start
LH: loop header
LB: loop body
LE: loop exit
PB: predicated region body
PF: predicated region fallthrough
CT: control target
= control target key end

     0   :  { %s15160_s13 = smov 0   ;;  %s18680_s0 = inlined_call_operand.vmem [shape: bf16[2,256,384], index: 0, kind: input, shape index: {}]   ;;  %s18681_s1 = inlined_call_operand.vmem [shape: f32[2,1,256], index: 1, kind: input, shape index: {}]   ;;  %s18682_s2 = inlined_call_operand.vmem [shape: f32[81,256], index: 2, kind: input, shape index: {}]   ;;  %s18683_s3 = inlined_call_operand.vmem [shape: bf16[384,256], index: 3, kind: input, shape index: {}]   ;;  %s18684_s4 = inlined_call_operand.vmem [shape: f32[1,256], index: 4, kind: input, shape index: {}]   ;;  %s18685_s5 = inlined_call_operand.vmem [shape: bf16[9,256,128], index: 5, kind: input, shape index: {}]   ;;  %s18686_s6 = inlined_call_operand.vmem [shape: f32[1,128], index: 6, kind: input, shape index: {}]   ;;  %s18687_s7 = inlined_call_operand.vmem [shape: bf16[9,128,64], index: 7, kind: input, shape index: {}]   ;;  %s18688_s8 = inlined_call_operand.vmem [shape: f32[1,64], index: 8, kind: input, shape index: {}]   ;;  %s18689_s9 = inlined_call_operand.vmem [shape: bf16[88,64], index: 9, kind: input, shape index: {}]   ;;  %s18690_s10 = inlined_call_operand.vmem [shape: f32[2,1,256], index: 10, kind: output, shape index: {}]  }
   0x1 LB: > { %s11639_s14 = sadd.s32 4294967295, %s15029_s13   ;;  %p11643_p0 = scmp.ge.s32.totalorder %s15029_s13, 1  ;;  %s15029_s13 = sphi %s15160_s13, %s20_s13  }
   0x2   : > { %p321_p1 = scmp.lt.s32.totalorder %s15029_s13, 3 }
   0x4   : > { %p322_p2 = pnand %p11643_p0, %p321_p1 }
   0x6   : > { %325 = sbr.rel (%p322_p2) target bundleno = 2602 (0xa2a), region = 60 }
   0xd   : > { %v14613_v0 = vld [vmem:[%s18683_s3 + $0x4] ss:$8 sps:$4 sm:$0xff]   ;;  %v14615_v1 = vld [vmem:[%s18683_s3] ss:$8 sps:$4 sm:$0xff]   ;;  %v15031_v2 = vmov 0   ;;  %p362_p3 = scmp.lt.s32.totalorder %s11639_s14, 1 }
   0xe   : > { %1221 = vmatprep.mubr.bf16.mxu0 %v15031_v2  ;;  %996 = vmatprep.subr.bf16.mxu1 %v14613_v0  ;;  %v14616_v3 = vld [vmem:[%s18683_s3 + $0x14] ss:$8 sps:$4 sm:$0xff]   ;;  %v14618_v4 = vld [vmem:[%s18683_s3 + $0x10] ss:$8 sps:$4 sm:$0xff]   ;;  %v14619_v5 = vld [vmem:[%s18683_s3 + $0x24] ss:$8 sps:$4 sm:$0xff]  }
   0xf   : > { %997 = vmatpush1.bf16.msra.mxu1 %v14615_v1  ;;  %v14621_v6 = vld [vmem:[%s18683_s3 + $0x20] ss:$8 sps:$4 sm:$0xff]   ;;  %v14622_v7 = vld [vmem:[%s18683_s3 + $0x34] ss:$8 sps:$4 sm:$0xff]   ;;  %v14624_v8 = vld [vmem:[%s18683_s3 + $0x30] ss:$8 sps:$4 sm:$0xff]  }
  0x10   : > { %998 = vmatprep.subr.bf16.mxu1 %v14616_v3  ;;  %v14625_v9 = vld [vmem:[%s18683_s3 + $0x44] ss:$8 sps:$4 sm:$0xff]   ;;  %v15204_v11 = vld [vmem:[%s18683_s3 + $0x100] ss:$8 sps:$4 sm:$0xff]   ;;  %v15214_v13 = vld [vmem:[%s18683_s3 + $0x114] ss:$8 sps:$4 sm:$0xff]  }
  0x11   : > { %v15199_v10 = vld [vmem:[%s18683_s3 + $0x104] ss:$8 sps:$4 sm:$0xff]   ;;  %v14627_v12 = vld [vmem:[%s18683_s3 + $0x40] ss:$8 sps:$4 sm:$0xff]   ;;  %v15219_v14 = vld [vmem:[%s18683_s3 + $0x110] ss:$8 sps:$4 sm:$0xff]  }
  0x12   : > { %1189 = vmatprep.subr.bf16.mxu0 %v15199_v10  ;;  %v14628_v15 = vld [vmem:[%s18683_s3 + $0x54] ss:$8 sps:$4 sm:$0xff]   ;;  %v14630_v16 = vld [vmem:[%s18683_s3 + $0x50] ss:$8 sps:$4 sm:$0xff]   ;;  %v15233_v17 = vld [vmem:[%s18683_s3 + $0x124] ss:$8 sps:$4 sm:$0xff]  }
  0x13   : > { %999 = vmatpush1.bf16.msra.mxu1 %v14618_v4  ;;  %1190 = vmatpush1.bf16.msra.mxu0 %v15204_v11  ;;  %v14631_v18 = vld [vmem:[%s18683_s3 + $0x64] ss:$8 sps:$4 sm:$0xff]   ;;  %v15242_v19 = vld [vmem:[%s18683_s3 + $0x120] ss:$8 sps:$4 sm:$0xff]   ;;  %v15248_v20 = vld [vmem:[%s18683_s3 + $0x134] ss:$8 sps:$4 sm:$0xff]  }
  0x14   : > { %1000 = vmatprep.subr.bf16.mxu1 %v14619_v5  ;;  %1191 = vmatprep.subr.bf16.mxu0 %v15214_v13  ;;  %s18914_s14 = smov (!%p362_p3, %s11639_s14), 1  ;;  %v14633_v21 = vld [vmem:[%s18683_s3 + $0x60] ss:$8 sps:$4 sm:$0xff]   ;;  %v14634_v22 = vld [vmem:[%s18683_s3 + $0x74] ss:$8 sps:$4 sm:$0xff]   ;;  %vm1847_vm0 = vcmask 1040384  }
  0x15   : > { %v15264_v23 = vld [vmem:[%s18683_s3 + $0x130] ss:$8 sps:$4 sm:$0xff]   ;;  %v15270_v24 = vld [vmem:[%s18683_s3 + $0x144] ss:$8 sps:$4 sm:$0xff]   ;;  %s14531_s27 = smul.u32 384, %s18914_s14  ;;  %vm2939_vm1 = vcmask 1046528  }
  0x16   : > { %v14636_v25 = vld [vmem:[%s18683_s3 + $0x70] ss:$8 sps:$4 sm:$0xff]   ;;  %v14637_v26 = vld [vmem:[%s18683_s3 + $0x84] ss:$8 sps:$4 sm:$0xff]   ;;  %v15283_v27 = vld [vmem:[%s18683_s3 + $0x140] ss:$8 sps:$4 sm:$0xff]  }
  0x17   : > { %1001 = vmatpush1.bf16.msra.mxu1 %v14621_v6  ;;  %1192 = vmatpush1.bf16.msra.mxu0 %v15219_v14  ;;  %v15289_v28 = vld [vmem:[%s18683_s3 + $0x154] ss:$8 sps:$4 sm:$0xff]   ;;  %s15294_s20 = scalar_lea.vmem %s18680_s0, %s14531_s27  ;;  %v14639_v29 = vld [vmem:[%s18683_s3 + $0x80] ss:$8 sps:$4 sm:$0xff]   ;;  %v15306_v31 = vld [vmem:[%s18683_s3 + $0x150] ss:$8 sps:$4 sm:$0xff]  }
  0x18   : > { %1002 = vmatprep.subr.bf16.mxu1 %v14622_v7  ;;  %1193 = vmatprep.subr.bf16.mxu0 %v15233_v17  ;;  %v14643_v30 = vld [vmem:[%s18683_s3 + $0x94] ss:$8 sps:$4 sm:$0xff]   ;;  %v15312_v32 = vld [vmem:[%s18683_s3 + $0x164] ss:$8 sps:$4 sm:$0xff]   ;;  %v14645_v34 = vld [vmem:[%s18683_s3 + $0x90] ss:$8 sps:$4 sm:$0xff]  }
  0x19   : > { %v14686_v33 = vld [vmem:[%s15294_s20 + $0x4] ss:$12 sps:$4 sm:$0xff]   ;;  %v15325_v36 = vld [vmem:[%s18683_s3 + $0x160] ss:$8 sps:$4 sm:$0xff]   ;;  %v15331_v37 = vld [vmem:[%s18683_s3 + $0x174] ss:$8 sps:$4 sm:$0xff]  }
  0x1a   : > { %1028 = vmatprep.mubr.bf16.mxu1 %v14686_v33  ;;  %v14649_v35 = vld [vmem:[%s18683_s3 + $0xa4] ss:$8 sps:$4 sm:$0xff]   ;;  %v14651_v38 = vld [vmem:[%s18683_s3 + $0xa0] ss:$8 sps:$4 sm:$0xff]   ;;  %v15340_v39 = vld [vmem:[%s18683_s3 + $0x170] ss:$8 sps:$4 sm:$0xff]  }
  0x1b   : > { %1003 = vmatpush1.bf16.msra.mxu1 %v14624_v8  ;;  %1194 = vmatpush1.bf16.msra.mxu0 %v15242_v19  ;;  %v14655_v40 = vld [vmem:[%s18683_s3 + $0xb4] ss:$8 sps:$4 sm:$0xff]   ;;  %v14657_v42 = vld [vmem:[%s18683_s3 + $0xb0] ss:$8 sps:$4 sm:$0xff]   ;;  %v14661_v43 = vld [vmem:[%s18683_s3 + $0xc4] ss:$8 sps:$4 sm:$0xff]  }
  0x1c   : > { %1004 = vmatprep.subr.bf16.mxu1 %v14625_v9  ;;  %1195 = vmatprep.subr.bf16.mxu0 %v15248_v20  ;;  %v14688_v41 = vld [vmem:[%s15294_s20 + $0x8] ss:$12 sps:$4 sm:$0xff]   ;;  %v14692_v46 = vld [vmem:[%s15294_s20 + $0x20] ss:$12 sps:$4 sm:$0xff]   ;;  %v14669_v47 = vld [vmem:[%s18683_s3 + $0xd0] ss:$8 sps:$4 sm:$0xff]  }
  0x1d   : > { %v14663_v44 = vld [vmem:[%s18683_s3 + $0xc0] ss:$8 sps:$4 sm:$0xff]   ;;  %v14667_v45 = vld [vmem:[%s18683_s3 + $0xd4] ss:$8 sps:$4 sm:$0xff]   ;;  %v14673_v48 = vld [vmem:[%s18683_s3 + $0xe4] ss:$8 sps:$4 sm:$0xff]  }
  0x1e   : > { %v14675_v49 = vld [vmem:[%s18683_s3 + $0xe0] ss:$8 sps:$4 sm:$0xff]   ;;  %v14679_v50 = vld [vmem:[%s18683_s3 + $0xf4] ss:$8 sps:$4 sm:$0xff]   ;;  %v14696_v51 = vld [vmem:[%s15294_s20 + $0x38] ss:$12 sps:$4 sm:$0xff]  }
  0x1f   : > { %1005 = vmatpush1.bf16.msra.mxu1 %v14627_v12  ;;  %1196 = vmatpush1.bf16.msra.mxu0 %v15264_v23  ;;  %v14681_v52 = vld [vmem:[%s18683_s3 + $0xf0] ss:$8 sps:$4 sm:$0xff]   ;;  %v14684_v53 = vld [vmem:[%s15294_s20] ss:$12 sps:$4 sm:$0xff]   ;;  %v14689_v54 = vld [vmem:[%s15294_s20 + $0x1c] ss:$12 sps:$4 sm:$0xff]  }
  0x20   : > { %1006 = vmatprep.subr.bf16.mxu1 %v14628_v15  ;;  %1197 = vmatprep.subr.bf16.mxu0 %v15270_v24  ;;  %v14700_v55 = vld [vmem:[%s15294_s20 + $0x50] ss:$12 sps:$4 sm:$0xff]   ;;  %v14691_v56 = vld [vmem:[%s15294_s20 + $0x18] ss:$12 sps:$4 sm:$0xff]   ;;  %v14693_v57 = vld [vmem:[%s15294_s20 + $0x34] ss:$12 sps:$4 sm:$0xff]  }
  0x21   : > { %v14704_v58 = vld [vmem:[%s15294_s20 + $0x68] ss:$12 sps:$4 sm:$0xff]   ;;  %v14695_v59 = vld [vmem:[%s15294_s20 + $0x30] ss:$12 sps:$4 sm:$0xff]   ;;  %v14697_v60 = vld [vmem:[%s15294_s20 + $0x4c] ss:$12 sps:$4 sm:$0xff]  }
  0x22   : > { %v14708_v61 = vld [vmem:[%s15294_s20 + $0x80] ss:$12 sps:$4 sm:$0xff]   ;;  %v14699_v62 = vld [vmem:[%s15294_s20 + $0x48] ss:$12 sps:$4 sm:$0xff]   ;;  %v14701_v63 = vld [vmem:[%s15294_s20 + $0x64] ss:$12 sps:$4 sm:$0xff]  }
  0x23   : > { %1007 = vmatpush1.bf16.msra.mxu1 %v14630_v16  ;;  %1198 = vmatpush1.bf16.msra.mxu0 %v15283_v27  ;;  %v14712_v0 = vld [vmem:[%s15294_s20 + $0x98] ss:$12 sps:$4 sm:$0xff]   ;;  %v14703_v1 = vld [vmem:[%s15294_s20 + $0x60] ss:$12 sps:$4 sm:$0xff]   ;;  %v14705_v3 = vld [vmem:[%s15294_s20 + $0x7c] ss:$12 sps:$4 sm:$0xff]  }
  0x24   : > { %1008 = vmatprep.subr.bf16.mxu1 %v14631_v18  ;;  %1199 = vmatprep.subr.bf16.mxu0 %v15289_v28  ;;  %v14716_v4 = vld [vmem:[%s15294_s20 + $0xb0] ss:$12 sps:$4 sm:$0xff]   ;;  %v14707_v5 = vld [vmem:[%s15294_s20 + $0x78] ss:$12 sps:$4 sm:$0xff]   ;;  %v14709_v6 = vld [vmem:[%s15294_s20 + $0x94] ss:$12 sps:$4 sm:$0xff]  }
  0x25   : > { %v14720_v7 = vld [vmem:[%s15294_s20 + $0xc8] ss:$12 sps:$4 sm:$0xff]   ;;  %v14711_v8 = vld [vmem:[%s15294_s20 + $0x90] ss:$12 sps:$4 sm:$0xff]   ;;  %v14713_v9 = vld [vmem:[%s15294_s20 + $0xac] ss:$12 sps:$4 sm:$0xff]  }
  0x26   : > { %v14757_v12 = vld [vmem:[%s18685_s5 + $0x180] sm:$0xff]   ;;  %v14761_v16 = vld [vmem:[%s18685_s5 + $0x188] sm:$0xff]   ;;  %vm10331_vm2 = vcmask 523264   ;;  %s15034_s30 = smov 68   ;;  %s15035_s11 = smov 66   ;;  %vm10541_vm3 = vcmask 556032  }
  0x27   : > { %1009 = vmatpush1.bf16.msra.mxu1 %v14633_v21  ;;  %1200 = vmatpush1.bf16.msra.mxu0 %v15306_v31  ;;  %v14717_v15 = vld [vmem:[%s15294_s20 + $0xc4] ss:$12 sps:$4 sm:$0xff]   ;;  %v14721_v18 = vld [vmem:[%s15294_s20 + $0xdc] ss:$12 sps:$4 sm:$0xff]   ;;  %s15036_s12 = smov 67   ;;  %s15037_s15 = smov 65  }
  0x28   : > { %1010 = vmatprep.subr.bf16.mxu1 %v14634_v22  ;;  %1201 = vmatprep.subr.bf16.mxu0 %v15312_v32  ;;  %v14726_v21 = vld [vmem:[%s15294_s20 + $0xf0] ss:$12 sps:$4 sm:$0xff]   ;;  %v14727_v22 = vld [vmem:[%s15294_s20 + $0x10c] ss:$12 sps:$4 sm:$0xff]   ;;  %s15038_s16 = smov 64   ;;  %s15039_s17 = smov 63  }
  0x29   : > { %v14733_v33 = vld [vmem:[%s15294_s20 + $0x13c] ss:$12 sps:$4 sm:$0xff]   ;;  %s15040_s18 = smov 62   ;;  %s15041_s19 = smov 61   ;;  %vm10567_vm4 = vcmask 539648   ;;  %vm10554_vm5 = vcmask 547840  }
  0x2a   : > { %s18705_s21 = smov 60   ;;  %s15043_s22 = smov 52   ;;  %vm10580_vm6 = vcmask 531456   ;;  %vm10605_vm7 = vcmask 515072   ;;  %vm10618_vm8 = vcmask 506880   ;;  %vm10631_vm9 = vcmask 498688  }
  0x2b   : > { %1011 = vmatpush1.bf16.msra.mxu1 %v14636_v25  ;;  %1202 = vmatpush1.bf16.msra.mxu0 %v15325_v36  ;;  %v15455_v25 = vld [vmem:[%s18685_s5 + $0x190] sm:$0xff]   ;;  %s15044_s23 = smov 51   ;;  %s15045_s24 = smov 50   ;;  %vm10644_vm10 = vcmask 490496   ;;  %vm10657_vm11 = vcmask 424960   ;;  %vm10670_vm12 = vcmask 416768  }
  0x2c   : > { %1012 = vmatprep.subr.bf16.mxu1 %v14637_v26  ;;  %1203 = vmatprep.subr.bf16.mxu0 %v15331_v37  ;;  %v15032_v26 = vmov 0.0   ;;  %s15047_s25 = smov 48   ;;  %s15048_s26 = smov 47   ;;  %vm10683_vm13 = vcmask 408576   ;;  %vm10696_vm14 = vcmask 400384   ;;  %vm10709_vm15 = vcmask 392192  }
  0x2d   : > { %1446 = vst [vmem:[#allocation2] sm:$0xff] %v15032_v26  ;;  %1447 = vst [vmem:[#allocation2 + $0x8] sm:$0xff] %v15032_v26  ;;  %s15049_s27 = smov 46   ;;  %s15050_s28 = smov 45  }
  0x2e   : > { %1448 = vst [vmem:[#allocation2 + $0x10] sm:$0xff] %v15032_v26  ;;  %1449 = vst [vmem:[#allocation2 + $0x18] sm:$0xff] %v15032_v26  ;;  %s15051_s29 = smov 44  }
  0x2f   : > { %1013 = vmatpush1.bf16.msra.mxu1 %v14639_v29  ;;  %1204 = vmatpush1.bf16.msra.mxu0 %v15340_v39  ;;  %1450 = vst [vmem:[#allocation2 + $0x20] sm:$0xff] %v15032_v26  ;;  %1451 = vst [vmem:[#allocation2 + $0x28] sm:$0xff] %v15032_v26  ;;  %v14769_v29 = vld [vmem:[%s18685_s5 + $0x198] sm:$0xff]  }
  0x30   : > { %1014 = vmatprep.subr.bf16.mxu1 %v14643_v30  ;;  %1452 = vst [vmem:[#allocation2 + $0x30] sm:$0xff] %v15032_v26  ;;  %1453 = vst [vmem:[#allocation2 + $0x38] sm:$0xff] %v15032_v26  ;;  %v14771_v30 = vld [vmem:[%s18685_s5 + $0x1e0] sm:$0xff]  }
  0x31   : > { %1454 = vst [vmem:[#allocation2 + $0x40] sm:$0xff] %v15032_v26  ;;  %1455 = vst [vmem:[#allocation2 + $0x48] sm:$0xff] %v15032_v26 }
  0x32   : > { %1222 = vmatmul.mubr.bf16.vlgmr.msra.gmra.mrb[0].mxu0 %v14688_v41  ;;  %1460 = vst [vmem:[#allocation2 + $0x70] sm:$0xff] %v15032_v26  ;;  %1461 = vst [vmem:[#allocation2 + $0x78] sm:$0xff] %v15032_v26  ;;  %v14780_v41 = vld [vmem:[%s18685_s5 + $0x1b8] sm:$0xff]  }
  0x33   : > { %1015 = vmatpush1.bf16.msra.mxu1 %v14645_v34  ;;  %1231 = vmatprep.mubr.bf16.mxu0 %v15031_v2  ;;  %1462 = vst [vmem:[#allocation2 + $0x80] sm:$0xff] %v15032_v26  ;;  %1463 = vst [vmem:[#allocation2 + $0x88] sm:$0xff] %v15032_v26  ;;  %v14775_v34 = vld [vmem:[%s18685_s5 + $0x1e8] sm:$0xff]  }
  0x34   : > { %1016 = vmatprep.subr.bf16.mxu1 %v14649_v35  ;;  %1468 = vst [vmem:[#allocation2 + $0xb0] sm:$0xff] %v15032_v26  ;;  %1469 = vst [vmem:[#allocation2 + $0xb8] sm:$0xff] %v15032_v26  ;;  %v14776_v35 = vld [vmem:[%s18685_s5 + $0x1a8] sm:$0xff]  }
  0x35   : > { %1470 = vst [vmem:[#allocation2 + $0xc0] sm:$0xff] %v15032_v26  ;;  %1471 = vst [vmem:[#allocation2 + $0xc8] sm:$0xff] %v15032_v26 }
  0x36   : > { %1476 = vst [vmem:[#allocation2 + $0xf0] sm:$0xff] %v15032_v26  ;;  %1477 = vst [vmem:[#allocation2 + $0xf8] sm:$0xff] %v15032_v26 }
  0x37   : > { %1017 = vmatpush1.bf16.msra.mxu1 %v14651_v38  ;;  %1478 = vst [vmem:[#allocation2 + $0x100] sm:$0xff] %v15032_v26  ;;  %1479 = vst [vmem:[#allocation2 + $0x108] sm:$0xff] %v15032_v26  ;;  %v14735_v38 = vld [vmem:[%s15294_s20 + $0x138] ss:$12 sps:$4 sm:$0xff]  }
  0x38   : > { %1018 = vmatprep.subr.bf16.mxu1 %v14655_v40  ;;  %1484 = vst [vmem:[#allocation2 + $0x130] sm:$0xff] %v15032_v26  ;;  %1485 = vst [vmem:[#allocation2 + $0x138] sm:$0xff] %v15032_v26  ;;  %v14779_v40 = vld [vmem:[%s18685_s5 + $0x1f8] sm:$0xff]  }
  0x39   : > { %1486 = vst [vmem:[#allocation2 + $0x140] sm:$0xff] %v15032_v26  ;;  %1487 = vst [vmem:[#allocation2 + $0x148] sm:$0xff] %v15032_v26 }
  0x3a   : > { %1232 = vmatmul.mubr.bf16.gmra.mrb[4].mxu0 %v14692_v46  ;;  %1492 = vst [vmem:[#allocation2 + $0x170] sm:$0xff] %v15032_v26  ;;  %1493 = vst [vmem:[#allocation2 + $0x178] sm:$0xff] %v15032_v26  ;;  %v14750_v46 = vld [vmem:[%s18685_s5 + $0x80] sm:$0xff]  }
  0x3b   : > { %1019 = vmatpush1.bf16.msra.mxu1 %v14657_v42  ;;  %1241 = vmatprep.mubr.bf16.mxu0 %v15031_v2  ;;  %1494 = vst [vmem:[#allocation2 + $0x180] sm:$0xff] %v15032_v26  ;;  %1495 = vst [vmem:[#allocation2 + $0x188] sm:$0xff] %v15032_v26  ;;  %v14738_v42 = vld [vmem:[%s15294_s20 + $0x150] ss:$12 sps:$4 sm:$0xff]  }
  0x3c   : > { %1020 = vmatprep.subr.bf16.mxu1 %v14661_v43  ;;  %1500 = vst [vmem:[#allocation2 + $0x1b0] sm:$0xff] %v15032_v26  ;;  %1501 = vst [vmem:[#allocation2 + $0x1b8] sm:$0xff] %v15032_v26  ;;  %v14739_v43 = vld [vmem:[%s15294_s20 + $0x16c] ss:$12 sps:$4 sm:$0xff]  }
  0x3d   : > { %1502 = vst [vmem:[#allocation2 + $0x1c0] sm:$0xff] %v15032_v26  ;;  %1503 = vst [vmem:[#allocation2 + $0x1c8] sm:$0xff] %v15032_v26 }
  0x3e   : > { %1508 = vst [vmem:[#allocation2 + $0x1f0] sm:$0xff] %v15032_v26  ;;  %1509 = vst [vmem:[#allocation2 + $0x1f8] sm:$0xff] %v15032_v26 }
  0x3f   : > { %1021 = vmatpush1.bf16.msra.mxu1 %v14663_v44  ;;  %1510 = vst [vmem:[#allocation2 + $0x200] sm:$0xff] %v15032_v26  ;;  %1511 = vst [vmem:[#allocation2 + $0x208] sm:$0xff] %v15032_v26  ;;  %v14741_v44 = vld [vmem:[%s15294_s20 + $0x168] ss:$12 sps:$4 sm:$0xff]  }
  0x40   : > { %1022 = vmatprep.subr.bf16.mxu1 %v14667_v45  ;;  %1516 = vst [vmem:[#allocation2 + $0x230] sm:$0xff] %v15032_v26  ;;  %1517 = vst [vmem:[#allocation2 + $0x238] sm:$0xff] %v15032_v26  ;;  %v14742_v45 = vld [vmem:[%s15294_s20 + $0xe0] ss:$12 sps:$4 sm:$0xff]  }
  0x41   : > { %1518 = vst [vmem:[#allocation2 + $0x240] sm:$0xff] %v15032_v26  ;;  %1519 = vst [vmem:[#allocation2 + $0x248] sm:$0xff] %v15032_v26 }
  0x42   : > { %1242 = vmatmul.mubr.bf16.gmra.mrb[8].mxu0 %v14696_v51  ;;  %1524 = vst [vmem:[#allocation2 + $0x270] sm:$0xff] %v15032_v26  ;;  %1525 = vst [vmem:[#allocation2 + $0x278] sm:$0xff] %v15032_v26  ;;  %v14754_v51 = vld [vmem:[%s18685_s5 + $0x90] sm:$0xff]  }
  0x43   : > { %1023 = vmatpush1.bf16.msra.mxu1 %v14669_v47  ;;  %1251 = vmatprep.mubr.bf16.mxu0 %v15031_v2  ;;  %1526 = vst [vmem:[#allocation2 + $0x280] sm:$0xff] %v15032_v26  ;;  %1527 = vst [vmem:[#allocation2 + $0x288] sm:$0xff] %v15032_v26  ;;  %v14751_v47 = vld [vmem:[%s18685_s5 + $0xc8] sm:$0xff]  }
  0x44   : > { %1024 = vmatprep.subr.bf16.mxu1 %v14673_v48  ;;  %1532 = vst [vmem:[#allocation2 + $0x2b0] sm:$0xff] %v15032_v26  ;;  %1533 = vst [vmem:[#allocation2 + $0x2b8] sm:$0xff] %v15032_v26  ;;  %v14752_v48 = vld [vmem:[%s18685_s5 + $0x88] sm:$0xff]  }
  0x45   : > { %1534 = vst [vmem:[#allocation2 + $0x2c0] sm:$0xff] %v15032_v26  ;;  %1535 = vst [vmem:[#allocation2 + $0x2c8] sm:$0xff] %v15032_v26 }
  0x46   : > { %1540 = vst [vmem:[#allocation2 + $0x2f0] sm:$0xff] %v15032_v26  ;;  %1541 = vst [vmem:[#allocation2 + $0x2f8] sm:$0xff] %v15032_v26 }
  0x47   : > { %1025 = vmatpush1.bf16.msra.mxu1 %v14675_v49  ;;  %1542 = vst [vmem:[#allocation2 + $0x300] sm:$0xff] %v15032_v26  ;;  %1543 = vst [vmem:[#allocation2 + $0x308] sm:$0xff] %v15032_v26  ;;  %v14753_v49 = vld [vmem:[%s18685_s5 + $0xd0] sm:$0xff]  }
  0x48   : > { %1026 = vmatprep.subr.bf16.mxu1 %v14679_v50  ;;  %1548 = vst [vmem:[#allocation2 + $0x330] sm:$0xff] %v15032_v26  ;;  %1549 = vst [vmem:[#allocation2 + $0x338] sm:$0xff] %v15032_v26  ;;  %v14743_v50 = vld [vmem:[%s15294_s20 + $0xf8] ss:$12 sps:$4 sm:$0xff]  }
  0x49   : > { %1550 = vst [vmem:[#allocation2 + $0x340] sm:$0xff] %v15032_v26  ;;  %1551 = vst [vmem:[#allocation2 + $0x348] sm:$0xff] %v15032_v26 }
  0x4a   : > { %1252 = vmatmul.mubr.bf16.gmra.mrb[12].mxu0 %v14700_v55  ;;  %1556 = vst [vmem:[#allocation2 + $0x370] sm:$0xff] %v15032_v26  ;;  %1557 = vst [vmem:[#allocation2 + $0x378] sm:$0xff] %v15032_v26  ;;  %v14744_v55 = vld [vmem:[%s15294_s20 + $0x110] ss:$12 sps:$4 sm:$0xff]  }
  0x4b   : > { %1027 = vmatpush1.bf16.msra.mxu1 %v14681_v52  ;;  %1261 = vmatprep.mubr.bf16.mxu0 %v15031_v2  ;;  %1558 = vst [vmem:[#allocation2 + $0x380] sm:$0xff] %v15032_v26  ;;  %1559 = vst [vmem:[#allocation2 + $0x388] sm:$0xff] %v15032_v26  ;;  %v14756_v52 = vld [vmem:[%s18685_s5 + $0xd8] sm:$0xff]  }
  0x4c   : > { %14123 = vmatprep.subr.bf16.mxu1 %v15199_v10  ;;  %v14749_v10 = vld [vmem:[%s18685_s5 + $0xc0] sm:$0xff]   ;;  %1564 = vst [vmem:[#allocation2 + $0x3b0] sm:$0xff] %v15032_v26  ;;  %1565 = vst [vmem:[#allocation2 + $0x3b8] sm:$0xff] %v15032_v26 }
  0x4d   : > { %1566 = vst [vmem:[#allocation2 + $0x3c0] sm:$0xff] %v15032_v26  ;;  %1567 = vst [vmem:[#allocation2 + $0x3c8] sm:$0xff] %v15032_v26 }
  0x4e   : > { %1029 = vmatmul.mubr.bf16.vlgmr.msra.gmra.mrb[0].mxu1 %v14684_v53  ;;  %1572 = vst [vmem:[#allocation2 + $0x3f0] sm:$0xff] %v15032_v26  ;;  %1573 = vst [vmem:[#allocation2 + $0x3f8] sm:$0xff] %v15032_v26  ;;  %v14758_v53 = vld [vmem:[%s18685_s5 + $0x98] sm:$0xff]  }
  0x4f   : > { %1038 = vmatprep.mubr.bf16.mxu1 %v14689_v54  ;;  %14131 = vmatpush1.bf16.msra.mxu1 %v15204_v11  ;;  %v14755_v11 = vld [vmem:[%s18685_s5 + $0x1c0] sm:$0xff]   ;;  %1574 = vst [vmem:[#allocation2 + $0x400] sm:$0xff] %v15032_v26  ;;  %1575 = vst [vmem:[#allocation2 + $0x408] sm:$0xff] %v15032_v26 }
  0x50   : > { %14124 = vmatprep.subr.bf16.mxu1 %v15214_v13  ;;  %v14759_v13 = vld [vmem:[%s18685_s5 + $0x1c8] sm:$0xff]   ;;  %12775 = vmatprep.subr.bf16.mxu0 %v14755_v11  ;;  %1580 = vst [vmem:[#allocation2 + $0x430] sm:$0xff] %v15032_v26  ;;  %1581 = vst [vmem:[#allocation2 + $0x438] sm:$0xff] %v15032_v26  ;;  %v14760_v54 = vld [vmem:[%s18685_s5 + $0xe0] sm:$0xff]  }
  0x51   : > { %12776 = vmatpush3.bf16.msra.mxu0 %v14757_v12  ;;  %1582 = vst [vmem:[#allocation2 + $0x440] sm:$0xff] %v15032_v26  ;;  %1583 = vst [vmem:[#allocation2 + $0x448] sm:$0xff] %v15032_v26 }
  0x52   : > { %1262 = vmatmul.mubr.bf16.gmra.mrb[16].mxu0 %v14704_v58  ;;  %12777 = vmatprep.subr.bf16.mxu0 %v14759_v13  ;;  %1584 = vst [vmem:[#allocation2 + $0x450] sm:$0xff] %v15032_v26  ;;  %1585 = vst [vmem:[#allocation2 + $0x458] sm:$0xff] %v15032_v26  ;;  %v14766_v58 = vld [vmem:[%s18685_s5 + $0xa8] sm:$0xff]  }
  0x53   : > { %14132 = vmatpush1.bf16.msra.mxu1 %v15219_v14  ;;  %1271 = vmatprep.mubr.bf16.mxu0 %v15031_v2  ;;  %v14715_v14 = vld [vmem:[%s15294_s20 + $0xa8] ss:$12 sps:$4 sm:$0xff]   ;;  %1586 = vst [vmem:[#allocation2 + $0x460] sm:$0xff] %v15032_v26  ;;  %1587 = vst [vmem:[#allocation2 + $0x468] sm:$0xff] %v15032_v26 }
  0x54   : > { %14125 = vmatprep.subr.bf16.mxu1 %v15233_v17  ;;  %v14719_v17 = vld [vmem:[%s15294_s20 + $0xc0] ss:$12 sps:$4 sm:$0xff]   ;;  %1588 = vst [vmem:[#allocation2 + $0x470] sm:$0xff] %v15032_v26  ;;  %1589 = vst [vmem:[#allocation2 + $0x478] sm:$0xff] %v15032_v26 }
  0x55   : > { %12778 = vmatpush3.bf16.msra.mxu0 %v14761_v16  ;;  %7442 = vst [vmem:[#allocation3] sm:$0xff] %v15032_v26  ;;  %7443 = vst [vmem:[#allocation3 + $0x8] sm:$0xff] %v15032_v26 }
  0x56   : > { %1039 = vmatmul.mubr.bf16.gmra.mrb[4].mxu1 %v14691_v56  ;;  %7444 = vst [vmem:[#allocation3 + $0x10] sm:$0xff] %v15032_v26  ;;  %7445 = vst [vmem:[#allocation3 + $0x18] sm:$0xff] %v15032_v26  ;;  %v14762_v56 = vld [vmem:[%s18685_s5 + $0xa0] sm:$0xff]  }
  0x57   : > { %1048 = vmatprep.mubr.bf16.mxu1 %v14693_v57  ;;  %14133 = vmatpush1.bf16.msra.mxu1 %v15242_v19  ;;  %v14723_v19 = vld [vmem:[%s15294_s20 + $0xd8] ss:$12 sps:$4 sm:$0xff]   ;;  %7446 = vst [vmem:[#allocation3 + $0x20] sm:$0xff] %v15032_v26  ;;  %7449 = vst [vmem:[#allocation3 + $0x38] sm:$0xff] %v15032_v26  ;;  %v14764_v57 = vld [vmem:[%s18685_s5 + $0xe8] sm:$0xff]  }
  0x58   : > { %14126 = vmatprep.subr.bf16.mxu1 %v15248_v20  ;;  %v14724_v20 = vld [vmem:[%s15294_s20 + $0xf4] ss:$12 sps:$4 sm:$0xff]   ;;  %7450 = vst [vmem:[#allocation3 + $0x40] sm:$0xff] %v15032_v26  ;;  %7453 = vst [vmem:[#allocation3 + $0x58] sm:$0xff] %v15032_v26 }
  0x59   : > { %7454 = vst [vmem:[#allocation3 + $0x60] sm:$0xff] %v15032_v26  ;;  %7457 = vst [vmem:[#allocation3 + $0x78] sm:$0xff] %v15032_v26 }
  0x5a   : > { %1272 = vmatmul.mubr.bf16.gmra.mrb[20].mxu0 %v14708_v61  ;;  %7458 = vst [vmem:[#allocation3 + $0x80] sm:$0xff] %v15032_v26  ;;  %7461 = vst [vmem:[#allocation3 + $0x98] sm:$0xff] %v15032_v26  ;;  %v14770_v61 = vld [vmem:[%s18685_s5 + $0xb0] sm:$0xff]  }
  0x5b   : > { %14134 = vmatpush1.bf16.msra.mxu1 %v15264_v23  ;;  %1281 = vmatprep.mubr.bf16.mxu0 %v15031_v2  ;;  %v15447_v23 = vld [vmem:[%s18685_s5 + $0x1d0] sm:$0xff]   ;;  %7462 = vst [vmem:[#allocation3 + $0xa0] sm:$0xff] %v15032_v26  ;;  %7465 = vst [vmem:[#allocation3 + $0xb8] sm:$0xff] %v15032_v26 }
  0x5c   : > { %14127 = vmatprep.subr.bf16.mxu1 %v15270_v24  ;;  %v15450_v24 = vld [vmem:[%s15294_s20 + $0x108] ss:$12 sps:$4 sm:$0xff]   ;;  %7466 = vst [vmem:[#allocation3 + $0xc0] sm:$0xff] %v15032_v26  ;;  %7469 = vst [vmem:[#allocation3 + $0xd8] sm:$0xff] %v15032_v26  ;;  %12779 = vmatprep.subr.bf16.mxu0 %v15447_v23 }
  0x5d   : > { %7470 = vst [vmem:[#allocation3 + $0xe0] sm:$0xff] %v15032_v26  ;;  %7473 = vst [vmem:[#allocation3 + $0xf8] sm:$0xff] %v15032_v26  ;;  %12780 = vmatpush3.bf16.msra.mxu0 %v15455_v25 }
  0x5e   : > { %1049 = vmatmul.mubr.bf16.gmra.mrb[8].mxu1 %v14695_v59  ;;  %7474 = vst [vmem:[#allocation3 + $0x100] sm:$0xff] %v15032_v26  ;;  %7477 = vst [vmem:[#allocation3 + $0x118] sm:$0xff] %v15032_v26  ;;  %v14768_v59 = vld [vmem:[%s18685_s5 + $0xf0] sm:$0xff]  }
  0x5f   : > { %1058 = vmatprep.mubr.bf16.mxu1 %v14697_v60  ;;  %14135 = vmatpush1.bf16.msra.mxu1 %v15283_v27  ;;  %7478 = vst [vmem:[#allocation3 + $0x120] sm:$0xff] %v15032_v26  ;;  %7481 = vst [vmem:[#allocation3 + $0x138] sm:$0xff] %v15032_v26  ;;  %v14730_v27 = vld [vmem:[%s15294_s20 + $0x124] ss:$12 sps:$4 sm:$0xff]   ;;  %v14745_v60 = vld [vmem:[%s15294_s20 + $0x128] ss:$12 sps:$4 sm:$0xff]  }
  0x60   : > { %14128 = vmatprep.subr.bf16.mxu1 %v15289_v28  ;;  %7482 = vst [vmem:[#allocation3 + $0x140] sm:$0xff] %v15032_v26  ;;  %7485 = vst [vmem:[#allocation3 + $0x158] sm:$0xff] %v15032_v26  ;;  %v14767_v28 = vld [vmem:[%s18685_s5 + $0x1d8] sm:$0xff]  }
  0x61   : > { %7486 = vst [vmem:[#allocation3 + $0x160] sm:$0xff] %v15032_v26  ;;  %7489 = vst [vmem:[#allocation3 + $0x178] sm:$0xff] %v15032_v26  ;;  %12781 = vmatprep.subr.bf16.mxu0 %v14767_v28 }
  0x62   : > { %1282 = vmatmul.mubr.bf16.gmra.mrb[24].mxu0 %v14712_v0  ;;  %7490 = vst [vmem:[#allocation3 + $0x180] sm:$0xff] %v15032_v26  ;;  %7493 = vst [vmem:[#allocation3 + $0x198] sm:$0xff] %v15032_v26  ;;  %v14746_v0 = vld [vmem:[%s15294_s20 + $0x140] ss:$12 sps:$4 sm:$0xff]  }
  0x63   : > { %14136 = vmatpush1.bf16.msra.mxu1 %v15306_v31  ;;  %1291 = vmatprep.mubr.bf16.mxu0 %v15031_v2  ;;  %7494 = vst [vmem:[#allocation3 + $0x1a0] sm:$0xff] %v15032_v26  ;;  %7497 = vst [vmem:[#allocation3 + $0x1b8] sm:$0xff] %v15032_v26  ;;  %v14732_v31 = vld [vmem:[%s15294_s20 + $0x120] ss:$12 sps:$4 sm:$0xff]  }
  0x64   : > { %14129 = vmatprep.subr.bf16.mxu1 %v15312_v32  ;;  %7498 = vst [vmem:[#allocation3 + $0x1c0] sm:$0xff] %v15032_v26  ;;  %7501 = vst [vmem:[#allocation3 + $0x1d8] sm:$0xff] %v15032_v26  ;;  %12782 = vmatpush3.bf16.msra.mxu0 %v14769_v29  ;;  %v14773_v32 = vld [vmem:[%s18685_s5 + $0x1a0] sm:$0xff]  }
  0x65   : > { %7502 = vst [vmem:[#allocation3 + $0x1e0] sm:$0xff] %v15032_v26  ;;  %7505 = vst [vmem:[#allocation3 + $0x1f8] sm:$0xff] %v15032_v26  ;;  %12783 = vmatprep.subr.bf16.mxu0 %v14771_v30 }
  0x66   : > { %1059 = vmatmul.mubr.bf16.gmra.mrb[12].mxu1 %v14699_v62  ;;  %7506 = vst [vmem:[#allocation3 + $0x200] sm:$0xff] %v15032_v26  ;;  %7509 = vst [vmem:[#allocation3 + $0x218] sm:$0xff] %v15032_v26  ;;  %v14772_v62 = vld [vmem:[%s18685_s5 + $0xf8] sm:$0xff]  }
  0x67   : > { %1068 = vmatprep.mubr.bf16.mxu1 %v14701_v63  ;;  %14137 = vmatpush1.bf16.msra.mxu1 %v15325_v36  ;;  %7510 = vst [vmem:[#allocation3 + $0x220] sm:$0xff] %v15032_v26  ;;  %7511 = vst [vmem:[#allocation3 + $0x228] sm:$0xff] %v15032_v26  ;;  %v14777_v36 = vld [vmem:[%s18685_s5 + $0x1f0] sm:$0xff]   ;;  %v14774_v63 = vld [vmem:[%s18685_s5 + $0xb8] sm:$0xff]  }
  0x68   : > { %14130 = vmatprep.subr.bf16.mxu1 %v15331_v37  ;;  %7512 = vst [vmem:[#allocation3 + $0x230] sm:$0xff] %v15032_v26  ;;  %7513 = vst [vmem:[#allocation3 + $0x238] sm:$0xff] %v15032_v26  ;;  %12784 = vmatpush3.bf16.msra.mxu0 %v14773_v32  ;;  %v14778_v37 = vld [vmem:[%s18685_s5 + $0x1b0] sm:$0xff]  }
  0x69   : > { %12785 = vmatprep.subr.bf16.mxu0 %v14775_v34 }
  0x6a   : > { %1292 = vmatmul.mubr.bf16.gmra.mrb[28].mxu0 %v14716_v4  ;;  %v15033_v4 = vmov 0.0|0.0  }
  0x6b   : > { %14138 = vmatpush1.bf16.msra.mxu1 %v15340_v39  ;;  %1301 = vmatprep.mubr.bf16.mxu0 %v15031_v2  ;;  %v14736_v39 = vld [vmem:[%s15294_s20 + $0x154] ss:$12 sps:$4 sm:$0xff]  }
  0x6c   : > { %12439 = vmatprep.subr.bf16.mxu1 %v14749_v10  ;;  %12786 = vmatpush3.bf16.msra.mxu0 %v14776_v35 }
  0x6d   : > { %12787 = vmatprep.subr.bf16.mxu0 %v14777_v36 }
  0x6e   : > { %1069 = vmatmul.mubr.bf16.gmra.mrb[16].mxu1 %v14703_v1  ;;  %v14747_v1 = vld [vmem:[%s15294_s20 + $0x158] ss:$12 sps:$4 sm:$0xff]  }
  0x6f   : > { %1078 = vmatprep.mubr.bf16.mxu1 %v14705_v3  ;;  %v14748_v3 = vld [vmem:[%s15294_s20 + $0x170] ss:$12 sps:$4 sm:$0xff]   ;;  %s15046_s20 = smov 49  }
  0x70   : > { %12788 = vmatpush3.bf16.msra.mxu0 %v14778_v37 }
  0x71   : > { %12789 = vmatprep.subr.bf16.mxu0 %v14779_v40 }
  0x72   : > { %1302 = vmatmul.mubr.bf16.gmra.mrb[32].mxu0 %v14720_v7 }
  0x74   : > { %12790 = vmatpush3.bf16.msra.mxu0 %v14780_v41 }
  0x76   : > { %1079 = vmatmul.mubr.bf16.gmra.mrb[20].mxu1 %v14707_v5 }
  0x77   : > { %1088 = vmatprep.mubr.bf16.mxu1 %v14709_v6 }
  0x7e   : > { %1089 = vmatmul.mubr.bf16.gmra.mrb[24].mxu1 %v14711_v8 }
  0x7f   : > { %1098 = vmatprep.mubr.bf16.mxu1 %v14713_v9  ;;  %v18691_v9 = vlaneseq }
  0x81   : > { %v491_v11 = vshrl.u32 %v18691_v9, 7 }
  0x83   : > { %v496_v16 = vsub.s32 1, %v491_v11 }
  0x86   : > { %1099 = vmatmul.mubr.bf16.gmra.mrb[28].mxu1 %v14715_v14 }
  0x87   : > { %1108 = vmatprep.mubr.bf16.mxu1 %v14717_v15  ;;  %v492_v15 = vsub.s32 0, %v491_v11 }
  0x8e   : > { %1109 = vmatmul.mubr.bf16.gmra.mrb[32].mxu1 %v14719_v17 }
  0x8f   : > { %1118 = vmatprep.mubr.bf16.mxu1 %v14721_v18 }
  0x96   : > { %1119 = vmatmul.mubr.bf16.gmra.mrb[36].mxu1 %v14723_v19 }
  0x97   : > { %1128 = vmatprep.mubr.bf16.mxu1 %v14724_v20 }
  0x9e   : > { %1129 = vmatmul.mubr.bf16.gmra.mrb[40].mxu1 %v14726_v21 }
  0x9f   : > { %1138 = vmatprep.mubr.bf16.mxu1 %v14727_v22 }
  0xa6   : > { %1139 = vmatmul.mubr.bf16.gmra.mrb[44].mxu1 %v15450_v24 }
  0xa7   : > { %1148 = vmatprep.mubr.bf16.mxu1 %v14730_v27 }
  0xae   : > { %1149 = vmatmul.mubr.bf16.gmra.mrb[48].mxu1 %v14732_v31 }
  0xaf   : > { %1158 = vmatprep.mubr.bf16.mxu1 %v14733_v33 }
  0xb6   : > { %1159 = vmatmul.mubr.bf16.gmra.mrb[52].mxu1 %v14735_v38 }
  0xb7   : > { %1168 = vmatprep.mubr.bf16.mxu1 %v14736_v39 }
  0xbe   : > { %1169 = vmatmul.mubr.bf16.gmra.mrb[56].mxu1 %v14738_v42 }
  0xbf   : > { %1178 = vmatprep.mubr.bf16.mxu1 %v14739_v43 }
  0xc6   : > { %1179 = vmatmul.mubr.bf16.gmra.mrb[60].mxu1 %v14741_v44  ;;  %v14781_v44 = vld [vmem:[%s18685_s5 + $0x40] sm:$0xff]  }
  0xc7   : > { %1311 = vmatprep.mubr.bf16.mxu1 %v15031_v2 }
  0xce   : > { %1312 = vmatmul.mubr.bf16.vlgmr.msra.gmra.mrb[36].mxu1 %v14742_v45  ;;  %v14782_v45 = vld [vmem:[%s18685_s5] sm:$0xff]  }
  0xcf   : > { %1321 = vmatprep.mubr.bf16.mxu1 %v15031_v2  ;;  %12440 = vmatpush3.bf16.msra.mxu1 %v14750_v46 }
  0xd0   : > { %12441 = vmatprep.subr.bf16.mxu1 %v14751_v47 }
  0xd3   : > { %12442 = vmatpush3.bf16.msra.mxu1 %v14752_v48 }
  0xd4   : > { %12443 = vmatprep.subr.bf16.mxu1 %v14753_v49 }
  0xd6   : > { %1322 = vmatmul.mubr.bf16.gmra.mrb[40].mxu1 %v14743_v50 }
  0xd7   : > { %1331 = vmatprep.mubr.bf16.mxu1 %v15031_v2  ;;  %12444 = vmatpush3.bf16.msra.mxu1 %v14754_v51 }
  0xd8   : > { %12445 = vmatprep.subr.bf16.mxu1 %v14756_v52 }
  0xdb   : > { %12446 = vmatpush3.bf16.msra.mxu1 %v14758_v53 }
  0xdc   : > { %12447 = vmatprep.subr.bf16.mxu1 %v14760_v54 }
  0xde   : > { %1332 = vmatmul.mubr.bf16.gmra.mrb[44].mxu1 %v14744_v55 }
  0xdf   : > { %1341 = vmatprep.mubr.bf16.mxu1 %v15031_v2  ;;  %12448 = vmatpush3.bf16.msra.mxu1 %v14762_v56 }
  0xe0   : > { %12449 = vmatprep.subr.bf16.mxu1 %v14764_v57  ;;  %v3518_v57 = vld [vmem:[#allocation2 + $0x40] sm:$0x80] }
  0xe3   : > { %12450 = vmatpush3.bf16.msra.mxu1 %v14766_v58 }
  0xe4   : > { %12451 = vmatprep.subr.bf16.mxu1 %v14768_v59 }
  0xe6   : > { %1342 = vmatmul.mubr.bf16.gmra.mrb[48].mxu1 %v14745_v60 }
  0xe7   : > { %1351 = vmatprep.mubr.bf16.mxu1 %v15031_v2  ;;  %12452 = vmatpush3.bf16.msra.mxu1 %v14770_v61  ;;  %v3519_v61 = vld [vmem:[#allocation2 + $0x48] sm:$0x80] }
  0xe8   : > { %12453 = vmatprep.subr.bf16.mxu1 %v14772_v62 }
  0xeb   : > { %12454 = vmatpush3.bf16.msra.mxu1 %v14774_v63 }
  0xec   : > { %12551 = vmatprep.subr.bf16.mxu1 %v14781_v44 }
  0xee   : > { %1352 = vmatmul.mubr.bf16.gmra.mrb[52].mxu1 %v14746_v0 }
  0xef   : > { %1361 = vmatprep.mubr.bf16.mxu1 %v15031_v2 }
  0xf6   : > { %1362 = vmatmul.mubr.bf16.gmra.mrb[56].mxu1 %v14747_v1 }
  0xf7   : > { %1371 = vmatprep.mubr.bf16.mxu1 %v15031_v2  ;;  %v488_v2 = vld [vmem:[%s18684_s4] sm:$0x3] }
  0xf8   : > { %v15683_v18 = vrot.slane %v488_v2, %v492_v15  ;;  %v15687_v20 = vrot.slane %v488_v2, %v496_v16 }
  0xfe   : > { %1372 = vmatmul.mubr.bf16.gmra.mrb[60].mxu1 %v14748_v3 }
  0xff   : > { %2361 = vmatprep.mubr.bf16.mxu1 %v15033_v4 }
 0x105   : > { %v1223_v5 = vpop.f32.mrb[0].mxu0 }
 0x106   : > { %2362 = vmatmul.mubr.bf16.vlgmr.msra.gmra.mrb[64].mxu1 %v15033_v4  ;;  %v1225_v6 = vpop.f32.mrb[1].mxu0  ;;  %v3710_v4 = vrot.slane %v3518_v57, 7 }
 0x107   : > { %v1227_v7 = vpop.f32.mrb[2].mxu0  ;;  %12552 = vmatpush3.bf16.msra.mxu1 %v14782_v45 }
 0x108   : > { %v1229_v8 = vpop.f32.mrb[3].mxu0 }
 0x10d   : > { %v1233_v10 = vpop.f32.mrb[4].mxu0 }
 0x10e   : > { %v1235_v12 = vpop.f32.mrb[5].mxu0 }
 0x10f   : > { %v1237_v13 = vpop.f32.mrb[6].mxu0 }
 0x110   : > { %v1239_v14 = vpop.f32.mrb[7].mxu0 }
 0x115   : > { %v15681_v17 = vpop.f32.mrb[8].mxu0 }
 0x116   : > { %v15685_v19 = vpop.f32.mrb[9].mxu0 }
 0x117   : > { %v15689_v21 = vpop.f32.mrb[10].mxu0 }
 0x118   : > { %v15691_v22 = vpop.f32.mrb[11].mxu0 }
 0x11d   : > { %v15697_v33 = vpop.f32.mrb[12].mxu0 }
 0x11e   : > { %v15699_v36 = vpop.f32.mrb[13].mxu0 }
 0x11f   : > { %v15701_v39 = vpop.f32.mrb[14].mxu0 }
 0x120   : > { %v15703_v41 = vpop.f32.mrb[15].mxu0 }
 0x121   : > { %v1030_v23 = vpop.f32.mrb[0].mxu1 }
 0x122   : > { %v1031_v24 = vadd.f32 %v1030_v23, %v15683_v18  ;;  %v1032_v25 = vpop.f32.mrb[1].mxu1 }
 0x123   : > { %v1033_v26 = vadd.f32 %v1032_v25, %v15687_v20  ;;  %v1034_v27 = vpop.f32.mrb[2].mxu1 }
 0x124   : > { %v1035_v28 = vadd.f32 %v1034_v27, %v15683_v18  ;;  %v1224_v29 = vadd.f32 %v1223_v5, %v1031_v24  ;;  %v1036_v30 = vpop.f32.mrb[3].mxu1 }
 0x125   : > { %v1037_v31 = vadd.f32 %v1036_v30, %v15687_v20  ;;  %v1226_v32 = vadd.f32 %v1225_v6, %v1033_v26  ;;  %v15717_v58 = vpop.f32.mrb[16].mxu0 }
 0x126   : > { %v1382_v34 = vmax.f32 %v1224_v29, 0.0  ;;  %v1228_v35 = vadd.f32 %v1227_v7, %v1035_v28  ;;  %v15722_v62 = vpop.f32.mrb[17].mxu0 }
 0x127   : > { %v1383_v37 = vmax.f32 %v1226_v32, 0.0  ;;  %v1230_v38 = vadd.f32 %v1229_v8, %v1037_v31  ;;  %v15724_v1 = vpop.f32.mrb[18].mxu0 }
 0x128   : > { %v1384_v40 = vmax.f32 %v1228_v35, 0.0  ;;  %1591 = vst [vmem:[#allocation2 + $0x50] sm:$0xff] %v1382_v34  ;;  %v15727_v5 = vpop.f32.mrb[19].mxu0 }
 0x129   : > { %v1385_v42 = vmax.f32 %v1230_v38, 0.0  ;;  %v1040_v43 = vpop.f32.mrb[4].mxu1  ;;  %1592 = vst [vmem:[#allocation2 + $0x58] sm:$0xff] %v1383_v37  ;;  %v15729_v8 = vrot.slane %v1383_v37, 7  ;;  %v3524_v38 = vld [vmem:[#allocation2 + $0x80] sm:$0x80] }
 0x12a   : > { %v1042_v46 = vpop.f32.mrb[5].mxu1  ;;  %v1041_v47 = vadd.f32 %v1040_v43, %v15683_v18  ;;  %1593 = vst [vmem:[#allocation2 + $0x60] sm:$0xff] %v1384_v40  ;;  %v15712_v48 = vpack.c.bf16 %v1384_v40, %v1382_v34 }
 0x12b   : > { %v1044_v49 = vpop.f32.mrb[6].mxu1  ;;  %1594 = vst [vmem:[#allocation2 + $0x68] sm:$0xff] %v1385_v42  ;;  %v1043_v50 = vadd.f32 %v1042_v46, %v15687_v20  ;;  %v2171_v51 = vpack.c.bf16 %v1385_v42, %v1383_v37  ;;  %v3525_v37 = vld [vmem:[#allocation2 + $0x88] sm:$0x80] }
 0x12c   : > { %v1234_v52 = vadd.f32 %v1233_v10, %v1041_v47  ;;  %v1046_v53 = vpop.f32.mrb[7].mxu1  ;;  %v1045_v54 = vadd.f32 %v1044_v49, %v15683_v18  ;;  %v3713_v10 = vrot.slane %v3519_v61, 7 }
 0x12d   : > { %v1236_v55 = vadd.f32 %v1235_v12, %v1043_v50  ;;  %v1047_v56 = vadd.f32 %v1046_v53, %v15687_v20  ;;  %2369 = vmatprep.mubr.bf16.mxu1 %v2171_v51  ;;  %v3723_v51 = vrot.slane %v3525_v37, 7 }
 0x12e   : > { %v15719_v59 = vmax.f32 %v1234_v52, 0.0  ;;  %v1238_v60 = vadd.f32 %v1237_v13, %v1045_v54  ;;  %2370 = vmatmul.mubr.bf16.gmra.mrb[68].mxu1 %v15712_v48 }
 0x12f   : > { %v1387_v63 = vmax.f32 %v1236_v55, 0.0  ;;  %v1240_v0 = vadd.f32 %v1239_v14, %v1047_v56  ;;  %v15732_v14 = vrot.slane %v1382_v34, 7  ;;  %v3715_v34 = vsel %vm1847_vm0, %v3713_v10, %v15729_v8 }
 0x130   : > { %1595 = vst [vmem:[#allocation2 + $0x90] sm:$0xff] %v15719_v59  ;;  %v1388_v3 = vmax.f32 %v1238_v60, 0.0  ;;  %v15771_v61 = vrot.slane %v15719_v59, 7 }
 0x131   : > { %1596 = vst [vmem:[#allocation2 + $0x98] sm:$0xff] %v1387_v63  ;;  %v1389_v6 = vmax.f32 %v1240_v0, 0.0  ;;  %v1050_v7 = vpop.f32.mrb[8].mxu1  ;;  %v3522_v11 = vld [vmem:[#allocation2 + $0x60] sm:$0x7f]  ;;  %v15764_v55 = vrot.slane %v1387_v63, 7 }
 0x132   : > { %1597 = vst [vmem:[#allocation2 + $0xa0] sm:$0xff] %v1388_v3  ;;  %v1052_v12 = vpop.f32.mrb[9].mxu1  ;;  %v1051_v13 = vadd.f32 %v1050_v7, %v15683_v18  ;;  %v3523_v15 = vld [vmem:[#allocation2 + $0x68] sm:$0x7f]  ;;  %v3716_v2 = vrot.slane %v3522_v11, 7  ;;  %v15735_v16 = vpack.c.bf16 %v1388_v3, %v15719_v59 }
 0x133   : > { %1598 = vst [vmem:[#allocation2 + $0xa8] sm:$0xff] %v1389_v6  ;;  %v1054_v23 = vpop.f32.mrb[10].mxu1  ;;  %v1053_v24 = vadd.f32 %v1052_v12, %v15687_v20  ;;  %v3718_v25 = vrot.slane %v3523_v15, 7  ;;  %v2173_v26 = vpack.c.bf16 %v1389_v6, %v1387_v63  ;;  %v14784_v63 = vld [vmem:[%s18685_s5 + $0x8] sm:$0xff]  }
 0x134   : > { %v1244_v27 = vadd.f32 %v15681_v17, %v1051_v13  ;;  %v1056_v28 = vpop.f32.mrb[11].mxu1  ;;  %v1055_v29 = vadd.f32 %v1054_v23, %v15683_v18  ;;  %v3717_v30 = vsel %vm1847_vm0, %v15732_v14, %v3716_v2  ;;  %v15748_v17 = vpop.f32.mrb[20].mxu0 }
 0x135   : > { %v1246_v31 = vadd.f32 %v15685_v19, %v1053_v24  ;;  %v1057_v32 = vadd.f32 %v1056_v28, %v15687_v20  ;;  %v3719_v35 = vsel %vm1847_vm0, %v15729_v8, %v3718_v25  ;;  %2377 = vmatprep.mubr.bf16.mxu1 %v2173_v26  ;;  %v3712_v19 = vsel %vm1847_vm0, %v3710_v4, %v15732_v14  ;;  %v15756_v44 = vpop.f32.mrb[21].mxu0  ;;  %v3530_v26 = vld [vmem:[#allocation2 + $0xc0] sm:$0x80] }
 0x136   : > { %v15750_v40 = vmax.f32 %v1244_v27, 0.0  ;;  %v1248_v42 = vadd.f32 %v15689_v21, %v1055_v29  ;;  %v3935_v43 = vpack.c.bf16 %v3719_v35, %v3715_v34  ;;  %2378 = vmatmul.mubr.bf16.gmra.mrb[72].mxu1 %v15735_v16  ;;  %v3934_v47 = vpack.c.bf16 %v3717_v30, %v3712_v19  ;;  %v15759_v49 = vpop.f32.mrb[22].mxu0  ;;  %v3531_v30 = vld [vmem:[#allocation2 + $0xc8] sm:$0x80] }
 0x137   : > { %v1391_v45 = vmax.f32 %v1246_v31, 0.0  ;;  %v1250_v46 = vadd.f32 %v15691_v22, %v1057_v32  ;;  %v3720_v21 = vrot.slane %v3524_v38, 7  ;;  %v15762_v52 = vpop.f32.mrb[23].mxu0  ;;  %v14783_v22 = vld [vmem:[%s18685_s5 + $0x48] sm:$0xff]   ;;  %v3725_v24 = vsel %vm1847_vm0, %v3723_v51, %v15764_v55 }
 0x138   : > { %1599 = vst [vmem:[#allocation2 + $0xd0] sm:$0xff] %v15750_v40  ;;  %v1392_v50 = vmax.f32 %v1248_v42, 0.0  ;;  %4127 = vmatprep.mubr.bf16.mxu0 %v3935_v43  ;;  %12553 = vmatprep.subr.bf16.mxu1 %v14783_v22 }
 0x139   : > { %1600 = vst [vmem:[#allocation2 + $0xd8] sm:$0xff] %v1391_v45  ;;  %v1393_v53 = vmax.f32 %v1250_v46, 0.0  ;;  %v1060_v54 = vpop.f32.mrb[12].mxu1  ;;  %4128 = vmatmul.mubr.bf16.vlgmr.msra.gmra.mrb[36].mxu0 %v3934_v47  ;;  %v3528_v56 = vld [vmem:[#allocation2 + $0xa0] sm:$0x7f]  ;;  %12554 = vmatpush3.bf16.msra.mxu1 %v14784_v63  ;;  %v15806_v46 = vrot.slane %v1391_v45, 7 }
 0x13a   : > { %1601 = vst [vmem:[#allocation2 + $0xe0] sm:$0xff] %v1392_v50  ;;  %v1062_v57 = vpop.f32.mrb[13].mxu1  ;;  %v1061_v60 = vadd.f32 %v1060_v54, %v15683_v18  ;;  %v3529_v0 = vld [vmem:[#allocation2 + $0xa8] sm:$0x7f]  ;;  %v3726_v3 = vrot.slane %v3528_v56, 7  ;;  %v15774_v4 = vpack.c.bf16 %v1392_v50, %v15750_v40  ;;  %v3733_v47 = vrot.slane %v3531_v30, 7 }
 0x13b   : > { %1602 = vst [vmem:[#allocation2 + $0xe8] sm:$0xff] %v1393_v53  ;;  %v1064_v6 = vpop.f32.mrb[14].mxu1  ;;  %v1063_v7 = vadd.f32 %v1062_v57, %v15687_v20  ;;  %v3728_v10 = vrot.slane %v3529_v0, 7  ;;  %v2175_v11 = vpack.c.bf16 %v1393_v53, %v1391_v45 }
 0x13c   : > { %v1254_v12 = vadd.f32 %v15697_v33, %v1061_v60  ;;  %v1066_v59 = vpop.f32.mrb[15].mxu1  ;;  %v1065_v13 = vadd.f32 %v1064_v6, %v15683_v18  ;;  %v3727_v15 = vsel %vm1847_vm0, %v15771_v61, %v3726_v3  ;;  %v15790_v33 = vpop.f32.mrb[24].mxu0 }
 0x13d   : > { %v1256_v2 = vadd.f32 %v15699_v36, %v1063_v7  ;;  %v1067_v23 = vadd.f32 %v1066_v59, %v15687_v20  ;;  %v3729_v25 = vsel %vm1847_vm0, %v15764_v55, %v3728_v10  ;;  %2385 = vmatprep.mubr.bf16.mxu1 %v2175_v11  ;;  %v3722_v36 = vsel %vm1847_vm0, %v3720_v21, %v15771_v61  ;;  %v15798_v31 = vpop.f32.mrb[25].mxu0 }
 0x13e   : > { %v15792_v27 = vmax.f32 %v1254_v12, 0.0  ;;  %v1258_v28 = vadd.f32 %v15701_v39, %v1065_v13  ;;  %v3937_v29 = vpack.c.bf16 %v3729_v25, %v3725_v24  ;;  %2386 = vmatmul.mubr.bf16.gmra.mrb[76].mxu1 %v15774_v4  ;;  %v3936_v35 = vpack.c.bf16 %v3727_v15, %v3722_v36  ;;  %v15801_v37 = vpop.f32.mrb[26].mxu0  ;;  %v3536_v12 = vld [vmem:[#allocation2 + $0x100] sm:$0x80]  ;;  %v14785_v24 = vld [vmem:[%s18685_s5 + $0x50] sm:$0xff]  }
 0x13f   : > { %v1395_v32 = vmax.f32 %v1256_v2, 0.0  ;;  %v1260_v34 = vadd.f32 %v15703_v41, %v1067_v23  ;;  %v3730_v39 = vrot.slane %v3530_v26, 7  ;;  %v15804_v42 = vpop.f32.mrb[27].mxu0  ;;  %v15810_v21 = vrot.slane %v15750_v40, 7  ;;  %v3537_v2 = vld [vmem:[#allocation2 + $0x108] sm:$0x80]  ;;  %12555 = vmatprep.subr.bf16.mxu1 %v14785_v24 }
 0x140   : > { %1603 = vst [vmem:[#allocation2 + $0x110] sm:$0xff] %v15792_v27  ;;  %v1396_v38 = vmax.f32 %v1258_v28, 0.0  ;;  %4135 = vmatprep.mubr.bf16.mxu0 %v3937_v29  ;;  %v3735_v10 = vsel %vm1847_vm0, %v3733_v47, %v15806_v46  ;;  %v15826_v59 = vpop.f32.mrb[28].mxu0  ;;  %v3740_v30 = vrot.slane %v3536_v12, 7  ;;  %v14792_v24 = vld [vmem:[%s18685_s5 + $0x60] sm:$0xff]  }
 0x141   : > { %1604 = vst [vmem:[#allocation2 + $0x118] sm:$0xff] %v1395_v32  ;;  %v1397_v43 = vmax.f32 %v1260_v34, 0.0  ;;  %v1070_v19 = vpop.f32.mrb[16].mxu1  ;;  %4136 = vmatmul.mubr.bf16.gmra.mrb[40].mxu0 %v3936_v35  ;;  %v3534_v50 = vld [vmem:[#allocation2 + $0xe0] sm:$0x7f]  ;;  %v15834_v23 = vpop.f32.mrb[29].mxu0 }
 0x142   : > { %1605 = vst [vmem:[#allocation2 + $0x120] sm:$0xff] %v1396_v38  ;;  %v1072_v41 = vpop.f32.mrb[17].mxu1  ;;  %v1071_v51 = vadd.f32 %v1070_v19, %v15683_v18  ;;  %v3535_v53 = vld [vmem:[#allocation2 + $0xe8] sm:$0x7f]  ;;  %v3736_v54 = vrot.slane %v3534_v50, 7  ;;  %v15813_v56 = vpack.c.bf16 %v1396_v38, %v15792_v27  ;;  %v15842_v29 = vpop.f32.mrb[30].mxu0 }
 0x143   : > { %1606 = vst [vmem:[#allocation2 + $0x128] sm:$0xff] %v1397_v43  ;;  %v1074_v22 = vpop.f32.mrb[18].mxu1  ;;  %v1073_v57 = vadd.f32 %v1072_v41, %v15687_v20  ;;  %v3738_v45 = vrot.slane %v3535_v53, 7  ;;  %v2177_v60 = vpack.c.bf16 %v1397_v43, %v1395_v32  ;;  %v15848_v34 = vpop.f32.mrb[31].mxu0  ;;  %v15855_v50 = vrot.slane %v15792_v27, 7  ;;  %v14790_v27 = vld [vmem:[%s18685_s5 + $0x18] sm:$0xff]  }
 0x144   : > { %18706 = vst [vmem:[#allocation5_spill] sm:$0xff] %v15813_v56  ;;  %v1264_v0 = vadd.f32 %v15717_v58, %v1071_v51  ;;  %v1076_v3 = vpop.f32.mrb[19].mxu1  ;;  %v1075_v63 = vadd.f32 %v1074_v22, %v15683_v18  ;;  %v3737_v40 = vsel %vm1847_vm0, %v15810_v21, %v3736_v54 }
 0x145   : > { %v1266_v6 = vadd.f32 %v15722_v62, %v1073_v57  ;;  %v1077_v7 = vadd.f32 %v1076_v3, %v15687_v20  ;;  %v3739_v11 = vsel %vm1847_vm0, %v15806_v46, %v3738_v45  ;;  %2393 = vmatprep.mubr.bf16.mxu1 %v2177_v60  ;;  %v3732_v62 = vsel %vm1847_vm0, %v3730_v39, %v15810_v21  ;;  %v15880_v12 = vpop.f32.mrb[32].mxu0 }
 0x146   : > { %v15828_v58 = vmax.f32 %v1264_v0, 0.0  ;;  %v1268_v13 = vadd.f32 %v15724_v1, %v1075_v63  ;;  %v3939_v15 = vpack.c.bf16 %v3739_v11, %v3735_v10  ;;  %2394 = vmatmul.mubr.bf16.gmra.mrb[80].mxu1 %v15813_v56  ;;  %v3938_v28 = vpack.c.bf16 %v3737_v40, %v3732_v62  ;;  %v14786_v1 = vld [vmem:[%s18685_s5 + $0x10] sm:$0xff]   ;;  %v3543_v11 = vld [vmem:[#allocation2 + $0x148] sm:$0x80] }
 0x147   : > { %v15839_v25 = vmax.f32 %v1266_v6, 0.0  ;;  %v1270_v26 = vadd.f32 %v15727_v5, %v1077_v7  ;;  %v15851_v5 = vrot.slane %v1395_v32, 7  ;;  %v3743_v39 = vrot.slane %v3537_v2, 7  ;;  %12556 = vmatpush3.bf16.msra.mxu1 %v14786_v1  ;;  %v14788_v32 = vld [vmem:[%s18685_s5 + $0x58] sm:$0xff]   ;;  %v15888_v2 = vpop.f32.mrb[33].mxu0 }
 0x148   : > { %1607 = vst [vmem:[#allocation2 + $0x150] sm:$0xff] %v15828_v58  ;;  %v1400_v36 = vmax.f32 %v1268_v13, 0.0  ;;  %4143 = vmatprep.mubr.bf16.mxu0 %v3939_v15  ;;  %12557 = vmatprep.subr.bf16.mxu1 %v14788_v32 }
 0x149   : > { %1608 = vst [vmem:[#allocation2 + $0x158] sm:$0xff] %v15839_v25  ;;  %v1401_v35 = vmax.f32 %v1270_v26, 0.0  ;;  %v1080_v38 = vpop.f32.mrb[20].mxu1  ;;  %4144 = vmatmul.mubr.bf16.gmra.mrb[44].mxu0 %v3938_v28  ;;  %v3540_v43 = vld [vmem:[#allocation2 + $0x120] sm:$0x7f]  ;;  %v3745_v7 = vsel %vm1847_vm0, %v3743_v39, %v15851_v5 }
 0x14a   : > { %1609 = vst [vmem:[#allocation2 + $0x160] sm:$0xff] %v1400_v36  ;;  %v1082_v19 = vpop.f32.mrb[21].mxu1  ;;  %v1081_v47 = vadd.f32 %v1080_v38, %v15683_v18  ;;  %v3541_v41 = vld [vmem:[#allocation2 + $0x128] sm:$0x7f]  ;;  %v3746_v51 = vrot.slane %v3540_v43, 7  ;;  %v15858_v53 = vpack.c.bf16 %v1400_v36, %v15828_v58  ;;  %v15896_v36 = vpop.f32.mrb[34].mxu0 }
 0x14b   : > { %1610 = vst [vmem:[#allocation2 + $0x168] sm:$0xff] %v1401_v35  ;;  %v1084_v54 = vpop.f32.mrb[22].mxu1  ;;  %v1083_v22 = vadd.f32 %v1082_v19, %v15687_v20  ;;  %v3748_v57 = vrot.slane %v3541_v41, 7  ;;  %v2179_v45 = vpack.c.bf16 %v1401_v35, %v15839_v25  ;;  %12558 = vmatpush3.bf16.msra.mxu1 %v14790_v27  ;;  %v15903_v35 = vrot.slane %v15828_v58, 7  ;;  %v15906_v43 = vpop.f32.mrb[35].mxu0  ;;  %v14787_v58 = vld [vmem:[%s18685_s5 + $0x2c0] sm:$0xff]  }
 0x14c   : > { %18707 = vst [vmem:[#allocation6_spill] sm:$0xff] %v15858_v53  ;;  %v1274_v60 = vadd.f32 %v15748_v17, %v1081_v47  ;;  %v1086_v0 = vpop.f32.mrb[23].mxu1  ;;  %v1085_v3 = vadd.f32 %v1084_v54, %v15683_v18  ;;  %v3747_v63 = vsel %vm1847_vm0, %v15855_v50, %v3746_v51  ;;  %v15878_v17 = vld [vmem:[#allocation2 + $0x140] sm:$0x80]  ;;  %v3753_v38 = vrot.slane %v3543_v11, 7  ;;  %12559 = vmatprep.subr.bf16.mxu1 %v14792_v24  ;;  %v14791_v24 = vld [vmem:[%s18685_s5 + $0x2c8] sm:$0xff]  }
 0x14d   : > { %v1276_v40 = vadd.f32 %v15756_v44, %v1083_v22  ;;  %v1087_v6 = vadd.f32 %v1086_v0, %v15687_v20  ;;  %v3749_v10 = vsel %vm1847_vm0, %v15851_v5, %v3748_v57  ;;  %2401 = vmatprep.mubr.bf16.mxu1 %v2179_v45  ;;  %v3742_v44 = vsel %vm1847_vm0, %v3740_v30, %v15855_v50  ;;  %v14789_v45 = vld [vmem:[%s18685_s5 + $0x280] sm:$0xff]  }
 0x14e   : > { %v15882_v13 = vmax.f32 %v1274_v60, 0.0  ;;  %v1278_v15 = vadd.f32 %v15759_v49, %v1085_v3  ;;  %v3941_v62 = vpack.c.bf16 %v3749_v10, %v3745_v7  ;;  %2402 = vmatmul.mubr.bf16.gmra.mrb[84].mxu1 %v15858_v53  ;;  %v3940_v1 = vpack.c.bf16 %v3747_v63, %v3742_v44  ;;  %v14794_v49 = vld [vmem:[%s18685_s5 + $0x20] sm:$0xff]   ;;  %12999 = vmatprep.subr.bf16.mxu0 %v14787_v58  ;;  %v14798_v63 = vld [vmem:[%s18685_s5 + $0x28] sm:$0xff]  }
 0x14f   : > { %v15893_v26 = vmax.f32 %v1276_v40, 0.0  ;;  %v1280_v28 = vadd.f32 %v15762_v52, %v1087_v6  ;;  %v3750_v39 = vrot.slane %v15878_v17, 7  ;;  %v15910_v47 = vrot.slane %v15839_v25, 7  ;;  %v14796_v25 = vld [vmem:[%s18685_s5 + $0x68] sm:$0xff]   ;;  %12560 = vmatpush3.bf16.msra.mxu1 %v14794_v49  ;;  %13000 = vmatpush3.bf16.msra.mxu0 %v14789_v45  ;;  %v15940_v44 = vld [vmem:[#allocation2 + $0x180] sm:$0x80] }
 0x150   : > { %1611 = vst [vmem:[#allocation2 + $0x190] sm:$0xff] %v15882_v13  ;;  %v1404_v30 = vmax.f32 %v1278_v15, 0.0  ;;  %4151 = vmatprep.mubr.bf16.mxu0 %v3941_v62  ;;  %12561 = vmatprep.subr.bf16.mxu1 %v14796_v25  ;;  %v15965_v58 = vrot.slane %v15882_v13, 7  ;;  %v14795_v25 = vld [vmem:[%s18685_s5 + $0x2d0] sm:$0xff]  }
 0x151   : > { %1612 = vst [vmem:[#allocation2 + $0x198] sm:$0xff] %v15893_v26  ;;  %v1405_v52 = vmax.f32 %v1280_v28, 0.0  ;;  %v1090_v19 = vpop.f32.mrb[24].mxu1  ;;  %4152 = vmatmul.mubr.bf16.gmra.mrb[48].mxu0 %v3940_v1  ;;  %v3546_v41 = vld [vmem:[#allocation2 + $0x160] sm:$0x7f]  ;;  %v3755_v15 = vsel %vm1847_vm0, %v3753_v38, %v15910_v47  ;;  %v3752_v49 = vsel %vm1847_vm0, %v3750_v39, %v15903_v35  ;;  %v14800_v38 = vld [vmem:[%s18685_s5 + $0x70] sm:$0xff]   ;;  %13001 = vmatprep.subr.bf16.mxu0 %v14791_v24 }
 0x152   : > { %1613 = vst [vmem:[#allocation2 + $0x1a0] sm:$0xff] %v1404_v30  ;;  %v1092_v51 = vpop.f32.mrb[25].mxu1  ;;  %v1091_v32 = vadd.f32 %v1090_v19, %v15683_v18  ;;  %v3547_v54 = vld [vmem:[#allocation2 + $0x168] sm:$0x7f]  ;;  %v3756_v22 = vrot.slane %v3546_v41, 7  ;;  %v15917_v57 = vpack.c.bf16 %v1404_v30, %v15882_v13 }
 0x153   : > { %1614 = vst [vmem:[#allocation2 + $0x1a8] sm:$0xff] %v1405_v52  ;;  %v1094_v27 = vpop.f32.mrb[26].mxu1  ;;  %v1093_v60 = vadd.f32 %v1092_v51, %v15687_v20  ;;  %v3758_v0 = vrot.slane %v3547_v54, 7  ;;  %v2181_v3 = vpack.c.bf16 %v1405_v52, %v15893_v26  ;;  %v14793_v30 = vld [vmem:[%s18685_s5 + $0x288] sm:$0xff]   ;;  %12562 = vmatpush3.bf16.msra.mxu1 %v14798_v63  ;;  %v14799_v63 = vld [vmem:[%s18685_s5 + $0x2d8] sm:$0xff]  }
 0x154   : > { %18708 = vst [vmem:[#allocation7_spill] sm:$0xff] %v15917_v57  ;;  %v1284_v40 = vadd.f32 %v15790_v33, %v1091_v32  ;;  %v1096_v6 = vpop.f32.mrb[27].mxu1  ;;  %v1095_v7 = vadd.f32 %v1094_v27, %v15683_v18  ;;  %v3757_v10 = vsel %vm1847_vm0, %v15903_v35, %v3756_v22  ;;  %v3549_v33 = vld [vmem:[#allocation2 + $0x188] sm:$0x80]  ;;  %v3760_v32 = vrot.slane %v15940_v44, 7  ;;  %13002 = vmatpush3.bf16.msra.mxu0 %v14793_v30  ;;  %v14801_v44 = vld [vmem:[%s18685_s5 + $0x298] sm:$0xff]  }
 0x155   : > { %v1286_v11 = vadd.f32 %v15798_v31, %v1093_v60  ;;  %v1097_v17 = vadd.f32 %v1096_v6, %v15687_v20  ;;  %v3759_v62 = vsel %vm1847_vm0, %v15910_v47, %v3758_v0  ;;  %2409 = vmatprep.mubr.bf16.mxu1 %v2181_v3  ;;  %v3942_v41 = vpack.c.bf16 %v3757_v10, %v3752_v49  ;;  %v3554_v49 = vld [vmem:[#allocation2 + $0x1c0] sm:$0x80] }
 0x156   : > { %v15945_v28 = vmax.f32 %v1284_v40, 0.0  ;;  %v1288_v31 = vadd.f32 %v15801_v37, %v1095_v7  ;;  %v3943_v1 = vpack.c.bf16 %v3759_v62, %v3755_v15  ;;  %2410 = vmatmul.mubr.bf16.gmra.mrb[88].mxu1 %v15917_v57  ;;  %v14802_v37 = vld [vmem:[%s18685_s5 + $0x30] sm:$0xff]   ;;  %v3763_v51 = vrot.slane %v3549_v33, 7  ;;  %12563 = vmatprep.subr.bf16.mxu1 %v14800_v38 }
 0x157   : > { %v15957_v52 = vmax.f32 %v1286_v11, 0.0  ;;  %v1290_v19 = vadd.f32 %v15804_v42, %v1097_v17  ;;  %v15970_v22 = vrot.slane %v15893_v26, 7  ;;  %v14797_v26 = vld [vmem:[%s18685_s5 + $0x290] sm:$0xff]   ;;  %13003 = vmatprep.subr.bf16.mxu0 %v14795_v25  ;;  %12564 = vmatpush3.bf16.msra.mxu1 %v14802_v37  ;;  %v14804_v11 = vld [vmem:[%s18685_s5 + $0x78] sm:$0xff]  }
 0x158   : > { %1615 = vst [vmem:[#allocation2 + $0x1d0] sm:$0xff] %v15945_v28  ;;  %v1408_v39 = vmax.f32 %v1288_v31, 0.0  ;;  %4159 = vmatprep.mubr.bf16.mxu0 %v3943_v1  ;;  %13004 = vmatpush3.bf16.msra.mxu0 %v14797_v26  ;;  %v14806_v37 = vld [vmem:[%s18685_s5 + $0x38] sm:$0xff]  }
 0x159   : > { %1616 = vst [vmem:[#allocation2 + $0x1d8] sm:$0xff] %v15957_v52  ;;  %v1409_v42 = vmax.f32 %v1290_v19, 0.0  ;;  %v1100_v54 = vpop.f32.mrb[28].mxu1  ;;  %4160 = vmatmul.mubr.bf16.gmra.mrb[52].mxu0 %v3942_v41  ;;  %v3552_v45 = vld [vmem:[#allocation2 + $0x1a0] sm:$0x7f]  ;;  %v3765_v1 = vsel %vm1847_vm0, %v3763_v51, %v15970_v22  ;;  %v3762_v41 = vsel %vm1847_vm0, %v3760_v32, %v15965_v58  ;;  %13005 = vmatprep.subr.bf16.mxu0 %v14799_v63  ;;  %v16028_v63 = vrot.slane %v15945_v28, 7 }
 0x15a   : > { %1617 = vst [vmem:[#allocation2 + $0x1e0] sm:$0xff] %v1408_v39  ;;  %v1102_v13 = vpop.f32.mrb[29].mxu1  ;;  %v1101_v27 = vadd.f32 %v1100_v54, %v15683_v18  ;;  %v3553_v60 = vld [vmem:[#allocation2 + $0x1a8] sm:$0x7f]  ;;  %v3766_v0 = vrot.slane %v3552_v45, 7  ;;  %v15977_v3 = vpack.c.bf16 %v1408_v39, %v15945_v28  ;;  %12565 = vmatprep.subr.bf16.mxu1 %v14804_v11  ;;  %v3770_v54 = vrot.slane %v3554_v49, 7 }
 0x15b   : > { %1618 = vst [vmem:[#allocation2 + $0x1e8] sm:$0xff] %v1409_v42  ;;  %v1104_v40 = vpop.f32.mrb[30].mxu1  ;;  %v1103_v6 = vadd.f32 %v1102_v13, %v15687_v20  ;;  %v3768_v7 = vrot.slane %v3553_v60, 7  ;;  %v2183_v10 = vpack.c.bf16 %v1409_v42, %v15957_v52  ;;  %v14805_v45 = vld [vmem:[%s18685_s5 + $0x2a0] sm:$0xff]   ;;  %v16024_v13 = vrot.slane %v15957_v52, 7  ;;  %12566 = vmatpush3.bf16.msra.mxu1 %v14806_v37  ;;  %v14807_v52 = vld [vmem:[%s18685_s5 + $0x2e8] sm:$0xff]  }
 0x15c   : > { %18709 = vst [vmem:[#allocation8_spill] sm:$0xff] %v15977_v3  ;;  %v1294_v17 = vadd.f32 %v15826_v59, %v1101_v27  ;;  %v1106_v15 = vpop.f32.mrb[31].mxu1  ;;  %v1105_v62 = vadd.f32 %v1104_v40, %v15683_v18  ;;  %v3767_v33 = vsel %vm1847_vm0, %v15965_v58, %v3766_v0  ;;  %13006 = vmatpush3.bf16.msra.mxu0 %v14801_v44 }
 0x15d   : > { %v1296_v24 = vadd.f32 %v15834_v23, %v1103_v6  ;;  %v1107_v31 = vadd.f32 %v1106_v15, %v15687_v20  ;;  %v3769_v59 = vsel %vm1847_vm0, %v15970_v22, %v3768_v7  ;;  %2417 = vmatprep.mubr.bf16.mxu1 %v2183_v10  ;;  %v3555_v23 = vld [vmem:[#allocation2 + $0x1c8] sm:$0x80]  ;;  %v3944_v42 = vpack.c.bf16 %v3767_v33, %v3762_v41 }
 0x15e   : > { %v16003_v30 = vmax.f32 %v1294_v17, 0.0  ;;  %v1298_v38 = vadd.f32 %v15842_v29, %v1105_v62  ;;  %v3945_v19 = vpack.c.bf16 %v3769_v59, %v3765_v1  ;;  %2418 = vmatmul.mubr.bf16.gmra.mrb[92].mxu1 %v15977_v3  ;;  %v14803_v29 = vld [vmem:[%s18685_s5 + $0x2e0] sm:$0xff]   ;;  %v3773_v27 = vrot.slane %v3555_v23, 7  ;;  %v3561_v23 = vld [vmem:[#allocation2 + $0x208] sm:$0x80] }
 0x15f   : > { %v16012_v39 = vmax.f32 %v1296_v24, 0.0  ;;  %v1300_v51 = vadd.f32 %v15848_v34, %v1107_v31  ;;  %13007 = vmatprep.subr.bf16.mxu0 %v14803_v29  ;;  %v14808_v24 = vld [vmem:[%s18685_s5 + $0x2a8] sm:$0xff]   ;;  %v3772_v41 = vsel %vm1847_vm0, %v3770_v54, %v16028_v63  ;;  %v14809_v29 = vld [vmem:[%s18685_s5 + $0x2f0] sm:$0xff]  }
 0x160   : > { %1619 = vst [vmem:[#allocation2 + $0x210] sm:$0xff] %v16003_v30  ;;  %v1412_v32 = vmax.f32 %v1298_v38, 0.0  ;;  %4167 = vmatprep.mubr.bf16.mxu0 %v3945_v19  ;;  %13008 = vmatpush3.bf16.msra.mxu0 %v14805_v45  ;;  %v3775_v59 = vsel %vm1847_vm0, %v3773_v27, %v16024_v13  ;;  %v16069_v27 = vrot.slane %v16003_v30, 7 }
 0x161   : > { %1620 = vst [vmem:[#allocation2 + $0x218] sm:$0xff] %v16012_v39  ;;  %v1413_v25 = vmax.f32 %v1300_v51, 0.0  ;;  %v1110_v34 = vpop.f32.mrb[32].mxu1  ;;  %4168 = vmatmul.mubr.bf16.gmra.mrb[56].mxu0 %v3944_v42  ;;  %v3558_v60 = vld [vmem:[#allocation2 + $0x1e0] sm:$0x7f]  ;;  %13009 = vmatprep.subr.bf16.mxu0 %v14807_v52  ;;  %v16063_v45 = vrot.slane %v16012_v39, 7 }
 0x162   : > { %1621 = vst [vmem:[#allocation2 + $0x220] sm:$0xff] %v1412_v32  ;;  %v1112_v0 = vpop.f32.mrb[33].mxu1  ;;  %v1111_v26 = vadd.f32 %v1110_v34, %v15683_v18  ;;  %v3559_v40 = vld [vmem:[#allocation2 + $0x1e8] sm:$0x7f]  ;;  %v3776_v6 = vrot.slane %v3558_v60, 7  ;;  %v16031_v7 = vpack.c.bf16 %v1412_v32, %v16003_v30  ;;  %v14811_v34 = vld [vmem:[%s18685_s5 + $0x2f8] sm:$0xff]  }
 0x163   : > { %1622 = vst [vmem:[#allocation2 + $0x228] sm:$0xff] %v1413_v25  ;;  %v1114_v10 = vpop.f32.mrb[34].mxu1  ;;  %v1113_v11 = vadd.f32 %v1112_v0, %v15687_v20  ;;  %v3778_v17 = vrot.slane %v3559_v40, 7  ;;  %v2185_v15 = vpack.c.bf16 %v1413_v25, %v16012_v39  ;;  %v3560_v42 = vld [vmem:[#allocation2 + $0x200] sm:$0x80] }
 0x164   : > { %18710 = vst [vmem:[#allocation9_spill] sm:$0xff] %v16031_v7  ;;  %v1304_v28 = vadd.f32 %v15880_v12, %v1111_v26  ;;  %v1116_v62 = vpop.f32.mrb[35].mxu1  ;;  %v1115_v33 = vadd.f32 %v1114_v10, %v15683_v18  ;;  %v3777_v44 = vsel %vm1847_vm0, %v16028_v63, %v3776_v6  ;;  %13010 = vmatpush3.bf16.msra.mxu0 %v14808_v24  ;;  %v3780_v0 = vrot.slane %v3560_v42, 7  ;;  %v14812_v10 = vld [vmem:[%s18685_s5 + $0x2b8] sm:$0xff]  }
 0x165   : > { %v1306_v31 = vadd.f32 %v15888_v2, %v1113_v11  ;;  %v1117_v1 = vadd.f32 %v1116_v62, %v15687_v20  ;;  %v3779_v12 = vsel %vm1847_vm0, %v16024_v13, %v3778_v17  ;;  %2425 = vmatprep.mubr.bf16.mxu1 %v2185_v15  ;;  %v3946_v51 = vpack.c.bf16 %v3777_v44, %v3772_v41 }
 0x166   : > { %v1414_v49 = vmax.f32 %v1304_v28, 0.0  ;;  %v1308_v38 = vadd.f32 %v15896_v36, %v1115_v33  ;;  %v3947_v19 = vpack.c.bf16 %v3779_v12, %v3775_v59  ;;  %2426 = vmatmul.mubr.bf16.gmra.mrb[96].mxu1 %v16031_v7  ;;  %v14810_v36 = vld [vmem:[%s18685_s5 + $0x2b0] sm:$0xff]   ;;  %13011 = vmatprep.subr.bf16.mxu0 %v14809_v29  ;;  %v3782_v15 = vsel %vm1847_vm0, %v3780_v0, %v16069_v27  ;;  %v3567_v28 = vld [vmem:[#allocation2 + $0x248] sm:$0x80]  ;;  %v3566_v33 = vld [vmem:[#allocation2 + $0x240] sm:$0x80] }
 0x167   : > { %v1415_v2 = vmax.f32 %v1306_v31, 0.0  ;;  %v1310_v37 = vadd.f32 %v15906_v43, %v1117_v1  ;;  %v3783_v43 = vrot.slane %v3561_v23, 7  ;;  %v3793_v24 = vrot.slane %v3567_v28, 7 }
 0x168   : > { %1623 = vst [vmem:[#allocation2 + $0x250] sm:$0xff] %v1414_v49  ;;  %v1416_v32 = vmax.f32 %v1308_v38, 0.0  ;;  %4175 = vmatprep.mubr.bf16.mxu0 %v3947_v19  ;;  %13012 = vmatpush3.bf16.msra.mxu0 %v14810_v36  ;;  %v16087_v1 = vrot.slane %v1414_v49, 7  ;;  %v3790_v12 = vrot.slane %v3566_v33, 7 }
 0x169   : > { %1624 = vst [vmem:[#allocation2 + $0x258] sm:$0xff] %v1415_v2  ;;  %v1417_v54 = vmax.f32 %v1310_v37, 0.0  ;;  %4176 = vmatmul.mubr.bf16.gmra.mrb[60].mxu0 %v3946_v51  ;;  %v3564_v25 = vld [vmem:[#allocation2 + $0x220] sm:$0x7f]  ;;  %v3785_v30 = vsel %vm1847_vm0, %v3783_v43, %v16063_v45  ;;  %13013 = vmatprep.subr.bf16.mxu0 %v14811_v34  ;;  %v16085_v44 = vrot.slane %v1415_v2, 7 }
 0x16a   : > { %1625 = vst [vmem:[#allocation2 + $0x260] sm:$0xff] %v1416_v32  ;;  %v3565_v60 = vld [vmem:[#allocation2 + $0x228] sm:$0x7f]  ;;  %v3786_v26 = vrot.slane %v3564_v25, 7  ;;  %v16071_v40 = vpack.c.bf16 %v1416_v32, %v1414_v49  ;;  %v14813_v49 = vld [vmem:[%s18685_s5 + $0x140] sm:$0xff]  }
 0x16b   : > { %1626 = vst [vmem:[#allocation2 + $0x268] sm:$0xff] %v1417_v54  ;;  %v3788_v6 = vrot.slane %v3565_v60, 7  ;;  %v2187_v39 = vpack.c.bf16 %v1417_v54, %v1415_v2  ;;  %v3795_v23 = vsel %vm1847_vm0, %v3793_v24, %v16085_v44  ;;  %v3792_v2 = vsel %vm1847_vm0, %v3790_v12, %v16087_v1  ;;  %12663 = vmatprep.subr.bf16.mxu1 %v14813_v49 }
 0x16c   : > { %18711 = vst [vmem:[#allocation10_spill] sm:$0xff] %v16071_v40  ;;  %v3787_v52 = vsel %vm1847_vm0, %v16069_v27, %v3786_v26  ;;  %13014 = vmatpush3.bf16.msra.mxu0 %v14812_v10 }
 0x16d   : > { %v3789_v11 = vsel %vm1847_vm0, %v16063_v45, %v3788_v6  ;;  %2433 = vmatprep.mubr.bf16.mxu1 %v2187_v39  ;;  %v3948_v62 = vpack.c.bf16 %v3787_v52, %v3782_v15 }
 0x16e   : > { %v3949_v17 = vpack.c.bf16 %v3789_v11, %v3785_v30  ;;  %2434 = vmatmul.mubr.bf16.gmra.mrb[100].mxu1 %v16071_v40 }
 0x170   : > { %4183 = vmatprep.mubr.bf16.mxu0 %v3949_v17 }
 0x171   : > { %4184 = vmatmul.mubr.bf16.gmra.mrb[64].mxu0 %v3948_v62  ;;  %v3570_v31 = vld [vmem:[#allocation2 + $0x260] sm:$0x7f] }
 0x172   : > { %v3571_v59 = vld [vmem:[#allocation2 + $0x268] sm:$0x7f]  ;;  %v3796_v38 = vrot.slane %v3570_v31, 7  ;;  %v3573_v31 = vld [vmem:[#allocation2 + $0x288] sm:$0x80] }
 0x173   : > { %v3798_v19 = vrot.slane %v3571_v59, 7 }
 0x174   : > { %v3797_v41 = vsel %vm1847_vm0, %v16087_v1, %v3796_v38  ;;  %v3572_v38 = vld [vmem:[#allocation2 + $0x280] sm:$0x80] }
 0x175   : > { %v3799_v37 = vsel %vm1847_vm0, %v16085_v44, %v3798_v19  ;;  %v3950_v42 = vpack.c.bf16 %v3797_v41, %v3792_v2  ;;  %v3800_v49 = vrot.slane %v3572_v38, 7 }
 0x176   : > { %v3951_v51 = vpack.c.bf16 %v3799_v37, %v3795_v23  ;;  %v3803_v37 = vrot.slane %v3573_v31, 7 }
 0x178   : > { %4191 = vmatprep.mubr.bf16.mxu0 %v3951_v51 }
 0x179   : > { %4192 = vmatmul.mubr.bf16.gmra.mrb[68].mxu0 %v3950_v42 }
 0x1a1   : > { %v1313_v29 = vpop.f32.mrb[36].mxu1 }
 0x1a2   : > { %v14211_v32 = vadd.f32 %v1313_v29, %v15683_v18  ;;  %v1315_v36 = vpop.f32.mrb[37].mxu1 }
 0x1a3   : > { %v14212_v54 = vadd.f32 %v1315_v36, %v15687_v20  ;;  %v1317_v43 = vpop.f32.mrb[38].mxu1 }
 0x1a4   : > { %v1418_v25 = vmax.f32 %v14211_v32, 0.0  ;;  %v14213_v34 = vadd.f32 %v1317_v43, %v15683_v18  ;;  %v1319_v60 = vpop.f32.mrb[39].mxu1 }
 0x1a5   : > { %v1419_v0 = vmax.f32 %v14212_v54, 0.0  ;;  %v14214_v26 = vadd.f32 %v1319_v60, %v15687_v20 }
 0x1a6   : > { %1627 = vst [vmem:[#allocation2 + $0x290] sm:$0xff] %v1418_v25  ;;  %v1420_v6 = vmax.f32 %v14213_v34, 0.0  ;;  %v16113_v2 = vrot.slane %v1418_v25, 7 }
 0x1a7   : > { %1628 = vst [vmem:[#allocation2 + $0x298] sm:$0xff] %v1419_v0  ;;  %v1421_v39 = vmax.f32 %v14214_v26, 0.0  ;;  %v16111_v23 = vrot.slane %v1419_v0, 7 }
 0x1a8   : > { %1629 = vst [vmem:[#allocation2 + $0x2a0] sm:$0xff] %v1420_v6  ;;  %v16104_v52 = vpack.c.bf16 %v1420_v6, %v1418_v25 }
 0x1a9   : > { %1630 = vst [vmem:[#allocation2 + $0x2a8] sm:$0xff] %v1421_v39  ;;  %v1323_v10 = vpop.f32.mrb[40].mxu1  ;;  %v2189_v30 = vpack.c.bf16 %v1421_v39, %v1419_v0  ;;  %v3805_v25 = vsel %vm1847_vm0, %v3803_v37, %v16111_v23 }
 0x1aa   : > { %18712 = vst [vmem:[#allocation11_spill] sm:$0xff] %v16104_v52  ;;  %v14215_v11 = vadd.f32 %v1323_v10, %v15683_v18  ;;  %v1325_v17 = vpop.f32.mrb[41].mxu1 }
 0x1ab   : > { %v14216_v15 = vadd.f32 %v1325_v17, %v15687_v20  ;;  %v1327_v28 = vpop.f32.mrb[42].mxu1  ;;  %2441 = vmatprep.mubr.bf16.mxu1 %v2189_v30 }
 0x1ac   : > { %v1422_v62 = vmax.f32 %v14215_v11, 0.0  ;;  %v14217_v33 = vadd.f32 %v1327_v28, %v15683_v18  ;;  %v1329_v24 = vpop.f32.mrb[43].mxu1  ;;  %2442 = vmatmul.mubr.bf16.gmra.mrb[104].mxu1 %v16104_v52  ;;  %v3579_v28 = vld [vmem:[#allocation2 + $0x2c8] sm:$0x80] }
 0x1ad   : > { %v1423_v59 = vmax.f32 %v14216_v15, 0.0  ;;  %v14218_v12 = vadd.f32 %v1329_v24, %v15687_v20  ;;  %v3802_v15 = vsel %vm1847_vm0, %v3800_v49, %v16113_v2  ;;  %v3813_v37 = vrot.slane %v3579_v28, 7 }
 0x1ae   : > { %1631 = vst [vmem:[#allocation2 + $0x2d0] sm:$0xff] %v1422_v62  ;;  %v1424_v19 = vmax.f32 %v14217_v33, 0.0 }
 0x1af   : > { %1632 = vst [vmem:[#allocation2 + $0x2d8] sm:$0xff] %v1423_v59  ;;  %v1425_v41 = vmax.f32 %v14218_v12, 0.0  ;;  %v3576_v51 = vld [vmem:[#allocation2 + $0x2a0] sm:$0x7f]  ;;  %v3578_v12 = vld [vmem:[#allocation2 + $0x2c0] sm:$0x80] }
 0x1b0   : > { %1633 = vst [vmem:[#allocation2 + $0x2e0] sm:$0xff] %v1424_v19  ;;  %v3577_v42 = vld [vmem:[#allocation2 + $0x2a8] sm:$0x7f]  ;;  %v3806_v29 = vrot.slane %v3576_v51, 7  ;;  %v16115_v32 = vpack.c.bf16 %v1424_v19, %v1422_v62 }
 0x1b1   : > { %1634 = vst [vmem:[#allocation2 + $0x2e8] sm:$0xff] %v1425_v41  ;;  %v1333_v36 = vpop.f32.mrb[44].mxu1  ;;  %v3808_v54 = vrot.slane %v3577_v42, 7  ;;  %v2191_v43 = vpack.c.bf16 %v1425_v41, %v1423_v59  ;;  %v16130_v41 = vrot.slane %v1423_v59, 7  ;;  %v16132_v42 = vrot.slane %v1422_v62, 7 }
 0x1b2   : > { %18713 = vst [vmem:[#allocation12_spill] sm:$0xff] %v16115_v32  ;;  %v14219_v34 = vadd.f32 %v1333_v36, %v15683_v18  ;;  %v1335_v60 = vpop.f32.mrb[45].mxu1  ;;  %v3807_v0 = vsel %vm1847_vm0, %v16113_v2, %v3806_v29  ;;  %v3810_v29 = vrot.slane %v3578_v12, 7 }
 0x1b3   : > { %v14220_v26 = vadd.f32 %v1335_v60, %v15687_v20  ;;  %v1337_v6 = vpop.f32.mrb[46].mxu1  ;;  %v3809_v39 = vsel %vm1847_vm0, %v16111_v23, %v3808_v54  ;;  %2449 = vmatprep.mubr.bf16.mxu1 %v2191_v43  ;;  %v3952_v31 = vpack.c.bf16 %v3807_v0, %v3802_v15  ;;  %v3815_v62 = vsel %vm1847_vm0, %v3813_v37, %v16130_v41 }
 0x1b4   : > { %v1426_v10 = vmax.f32 %v14219_v34, 0.0  ;;  %v14221_v30 = vadd.f32 %v1337_v6, %v15683_v18  ;;  %v1339_v11 = vpop.f32.mrb[47].mxu1  ;;  %v3953_v17 = vpack.c.bf16 %v3809_v39, %v3805_v25  ;;  %2450 = vmatmul.mubr.bf16.gmra.mrb[108].mxu1 %v16115_v32  ;;  %v3812_v28 = vsel %vm1847_vm0, %v3810_v29, %v16132_v42 }
 0x1b5   : > { %v1427_v33 = vmax.f32 %v14220_v26, 0.0  ;;  %v14222_v24 = vadd.f32 %v1339_v11, %v15687_v20 }
 0x1b6   : > { %1635 = vst [vmem:[#allocation2 + $0x310] sm:$0xff] %v1426_v10  ;;  %v1428_v38 = vmax.f32 %v14221_v30, 0.0  ;;  %4199 = vmatprep.mubr.bf16.mxu0 %v3953_v17  ;;  %v16151_v29 = vrot.slane %v1426_v10, 7 }
 0x1b7   : > { %1636 = vst [vmem:[#allocation2 + $0x318] sm:$0xff] %v1427_v33  ;;  %v1429_v19 = vmax.f32 %v14222_v24, 0.0  ;;  %4200 = vmatmul.mubr.bf16.gmra.mrb[72].mxu0 %v3952_v31  ;;  %v3582_v51 = vld [vmem:[#allocation2 + $0x2e0] sm:$0x7f]  ;;  %v3585_v24 = vld [vmem:[#allocation2 + $0x308] sm:$0x80] }
 0x1b8   : > { %1637 = vst [vmem:[#allocation2 + $0x320] sm:$0xff] %v1428_v38  ;;  %v3583_v49 = vld [vmem:[#allocation2 + $0x2e8] sm:$0x7f]  ;;  %v3816_v36 = vrot.slane %v3582_v51, 7  ;;  %v16134_v54 = vpack.c.bf16 %v1428_v38, %v1426_v10 }
 0x1b9   : > { %1638 = vst [vmem:[#allocation2 + $0x328] sm:$0xff] %v1429_v19  ;;  %v1343_v43 = vpop.f32.mrb[48].mxu1  ;;  %v3818_v34 = vrot.slane %v3583_v49, 7  ;;  %v2193_v60 = vpack.c.bf16 %v1429_v19, %v1427_v33  ;;  %v3584_v19 = vld [vmem:[#allocation2 + $0x300] sm:$0x80]  ;;  %v16149_v49 = vrot.slane %v1427_v33, 7 }
 0x1ba   : > { %18714 = vst [vmem:[#allocation13_spill] sm:$0xff] %v16134_v54  ;;  %v14223_v0 = vadd.f32 %v1343_v43, %v15683_v18  ;;  %v1345_v26 = vpop.f32.mrb[49].mxu1  ;;  %v3817_v59 = vsel %vm1847_vm0, %v16132_v42, %v3816_v36  ;;  %v3823_v36 = vrot.slane %v3585_v24, 7 }
 0x1bb   : > { %v14224_v6 = vadd.f32 %v1345_v26, %v15687_v20  ;;  %v1347_v25 = vpop.f32.mrb[50].mxu1  ;;  %v3819_v39 = vsel %vm1847_vm0, %v16130_v41, %v3818_v34  ;;  %2457 = vmatprep.mubr.bf16.mxu1 %v2193_v60  ;;  %v3954_v38 = vpack.c.bf16 %v3817_v59, %v3812_v28  ;;  %v3820_v60 = vrot.slane %v3584_v19, 7  ;;  %v3591_v28 = vld [vmem:[#allocation2 + $0x348] sm:$0x80] }
 0x1bc   : > { %v1430_v30 = vmax.f32 %v14223_v0, 0.0  ;;  %v14225_v11 = vadd.f32 %v1347_v25, %v15683_v18  ;;  %v1349_v17 = vpop.f32.mrb[51].mxu1  ;;  %v3955_v15 = vpack.c.bf16 %v3819_v39, %v3815_v62  ;;  %2458 = vmatmul.mubr.bf16.gmra.mrb[112].mxu1 %v16134_v54  ;;  %v3825_v10 = vsel %vm1847_vm0, %v3823_v36, %v16149_v49 }
 0x1bd   : > { %v1431_v31 = vmax.f32 %v14224_v6, 0.0  ;;  %v14226_v12 = vadd.f32 %v1349_v17, %v15687_v20 }
 0x1be   : > { %1639 = vst [vmem:[#allocation2 + $0x350] sm:$0xff] %v1430_v30  ;;  %v1432_v37 = vmax.f32 %v14225_v11, 0.0  ;;  %4207 = vmatprep.mubr.bf16.mxu0 %v3955_v15 }
 0x1bf   : > { %1640 = vst [vmem:[#allocation2 + $0x358] sm:$0xff] %v1431_v31  ;;  %v1433_v51 = vmax.f32 %v14226_v12, 0.0  ;;  %4208 = vmatmul.mubr.bf16.gmra.mrb[76].mxu0 %v3954_v38  ;;  %v3588_v43 = vld [vmem:[#allocation2 + $0x320] sm:$0x7f] }
 0x1c0   : > { %1641 = vst [vmem:[#allocation2 + $0x360] sm:$0xff] %v1432_v37  ;;  %v3589_v34 = vld [vmem:[#allocation2 + $0x328] sm:$0x7f]  ;;  %v3826_v0 = vrot.slane %v3588_v43, 7  ;;  %v16153_v26 = vpack.c.bf16 %v1432_v37, %v1430_v30  ;;  %v3822_v37 = vsel %vm1847_vm0, %v3820_v60, %v16151_v29 }
 0x1c1   : > { %1642 = vst [vmem:[#allocation2 + $0x368] sm:$0xff] %v1433_v51  ;;  %v1353_v59 = vpop.f32.mrb[52].mxu1  ;;  %v3828_v6 = vrot.slane %v3589_v34, 7  ;;  %v2195_v25 = vpack.c.bf16 %v1433_v51, %v1431_v31  ;;  %v3590_v34 = vld [vmem:[#allocation2 + $0x340] sm:$0x80] }
 0x1c2   : > { %18715 = vst [vmem:[#allocation14_spill] sm:$0xff] %v16153_v26  ;;  %v14227_v62 = vadd.f32 %v1353_v59, %v15683_v18  ;;  %v1355_v39 = vpop.f32.mrb[53].mxu1  ;;  %v3827_v33 = vsel %vm1847_vm0, %v16151_v29, %v3826_v0  ;;  %v3833_v59 = vrot.slane %v3591_v28, 7  ;;  %v1660_v60 = vld [vmem:[#allocation2 + $0x28] sm:$0x7f] }
 0x1c3   : > { %v14228_v11 = vadd.f32 %v1355_v39, %v15687_v20  ;;  %v1357_v17 = vpop.f32.mrb[54].mxu1  ;;  %v3829_v15 = vsel %vm1847_vm0, %v16149_v49, %v3828_v6  ;;  %2465 = vmatprep.mubr.bf16.mxu1 %v2195_v25  ;;  %v3956_v36 = vpack.c.bf16 %v3827_v33, %v3822_v37  ;;  %v1656_v6 = vld [vmem:[#allocation2 + $0x8] sm:$0x80]  ;;  %v1856_v9 = vrot.slane %v1660_v60, 7 }
 0x1c4   : > { %v16163_v24 = vmax.f32 %v14227_v62, 0.0  ;;  %v14229_v12 = vadd.f32 %v1357_v17, %v15683_v18  ;;  %v1359_v38 = vpop.f32.mrb[55].mxu1  ;;  %v3957_v19 = vpack.c.bf16 %v3829_v15, %v3825_v10  ;;  %2466 = vmatmul.mubr.bf16.gmra.mrb[116].mxu1 %v16153_v26  ;;  %v16171_v62 = vrot.slane %v1431_v31, 7  ;;  %v3597_v60 = vld [vmem:[#allocation2 + $0x388] sm:$0x80] }
 0x1c5   : > { %v1435_v51 = vmax.f32 %v14228_v11, 0.0  ;;  %v14230_v43 = vadd.f32 %v1359_v38, %v15687_v20  ;;  %v16173_v17 = vrot.slane %v1430_v30, 7  ;;  %v3830_v10 = vrot.slane %v3590_v34, 7 }
 0x1c6   : > { %1643 = vst [vmem:[#allocation2 + $0x390] sm:$0xff] %v16163_v24  ;;  %v1436_v0 = vmax.f32 %v14229_v12, 0.0  ;;  %4215 = vmatprep.mubr.bf16.mxu0 %v3957_v19  ;;  %v14971_v12 = vld [vmem:[#allocation2] sm:$0xff] }
 0x1c7   : > { %1644 = vst [vmem:[#allocation2 + $0x398] sm:$0xff] %v1435_v51  ;;  %v1437_v25 = vmax.f32 %v14230_v43, 0.0  ;;  %4216 = vmatmul.mubr.bf16.gmra.mrb[80].mxu0 %v3956_v36  ;;  %v3594_v39 = vld [vmem:[#allocation2 + $0x360] sm:$0x7f]  ;;  %v16178_v38 = vrot.slane %v14971_v12, 7  ;;  %v1851_v36 = vrot.slane %v1656_v6, 7  ;;  %v3832_v6 = vsel %vm1847_vm0, %v3830_v10, %v16173_v17 }
 0x1c8   : > { %1645 = vst [vmem:[#allocation2 + $0x3a0] sm:$0xff] %v1436_v0  ;;  %v3595_v11 = vld [vmem:[#allocation2 + $0x368] sm:$0x7f]  ;;  %v3836_v33 = vrot.slane %v3594_v39, 7  ;;  %v16176_v15 = vpack.c.bf16 %v1436_v0, %v16163_v24  ;;  %v3835_v0 = vsel %vm1847_vm0, %v3833_v59, %v16171_v62 }
 0x1c9   : > { %1646 = vst [vmem:[#allocation2 + $0x3a8] sm:$0xff] %v1437_v25  ;;  %v1363_v28 = vpop.f32.mrb[56].mxu1  ;;  %v3838_v19 = vrot.slane %v3595_v11, 7  ;;  %v2197_v37 = vpack.c.bf16 %v1437_v25, %v1435_v51  ;;  %v1857_v10 = vsel %vm1847_vm0, %v16178_v38, %v1856_v9 }
 0x1ca   : > { %18716 = vst [vmem:[#allocation15_spill] sm:$0xff] %v16176_v15  ;;  %v14231_v31 = vadd.f32 %v1363_v28, %v15683_v18  ;;  %v1365_v43 = vpop.f32.mrb[57].mxu1  ;;  %v3837_v30 = vsel %vm1847_vm0, %v16173_v17, %v3836_v33  ;;  %v1655_v33 = vld [vmem:[#allocation2] sm:$0x80] }
 0x1cb   : > { %v14232_v34 = vadd.f32 %v1365_v43, %v15687_v20  ;;  %v1367_v39 = vpop.f32.mrb[58].mxu1  ;;  %v3839_v12 = vsel %vm1847_vm0, %v16171_v62, %v3838_v19  ;;  %2473 = vmatprep.mubr.bf16.mxu1 %v2197_v37  ;;  %v3958_v54 = vpack.c.bf16 %v3837_v30, %v3832_v6  ;;  %v3596_v19 = vld [vmem:[#allocation2 + $0x380] sm:$0x80]  ;;  %v16197_v37 = vld [vmem:[#allocation2 + $0x48] sm:$0x80]  ;;  %v16205_v30 = vrot.slane %v1435_v51, 7 }
 0x1cc   : > { %v16188_v11 = vmax.f32 %v14231_v31, 0.0  ;;  %v14233_v25 = vadd.f32 %v1367_v39, %v15683_v18  ;;  %v1369_v28 = vpop.f32.mrb[59].mxu1  ;;  %v3959_v26 = vpack.c.bf16 %v3839_v12, %v3835_v0  ;;  %2474 = vmatmul.mubr.bf16.gmra.mrb[120].mxu1 %v16176_v15  ;;  %v1853_v39 = vsel %vm1847_vm0, %v1851_v36, %v16178_v38  ;;  %v1659_v0 = vld [vmem:[#allocation2 + $0x20] sm:$0x7f]  ;;  %v1666_v12 = vld [vmem:[#allocation2 + $0x68] sm:$0x7f] }
 0x1cd   : > { %v16194_v43 = vmax.f32 %v14232_v34, 0.0  ;;  %v14234_v59 = vadd.f32 %v1369_v28, %v15687_v20  ;;  %v3843_v28 = vrot.slane %v3597_v60, 7  ;;  %v1848_v15 = vrot.slane %v1655_v33, 7 }
 0x1ce   : > { %1647 = vst [vmem:[#allocation2 + $0x3d0] sm:$0xff] %v16188_v11  ;;  %v1440_v31 = vmax.f32 %v14233_v25, 0.0  ;;  %4223 = vmatprep.mubr.bf16.mxu0 %v3959_v26  ;;  %v16208_v26 = vrot.slane %v16163_v24, 7  ;;  %v3840_v36 = vrot.slane %v3596_v19, 7  ;;  %v2073_v33 = vpack.c.bf16 %v1857_v10, %v1853_v39 }
 0x1cf   : > { %1648 = vst [vmem:[#allocation2 + $0x3d8] sm:$0xff] %v16194_v43  ;;  %v1441_v34 = vmax.f32 %v14234_v59, 0.0  ;;  %4224 = vmatmul.mubr.bf16.gmra.mrb[84].mxu0 %v3958_v54  ;;  %v3600_v6 = vld [vmem:[#allocation2 + $0x3a0] sm:$0x7f]  ;;  %v1854_v52 = vrot.slane %v1659_v0, 7  ;;  %v1850_v10 = vsel %vm1847_vm0, %v1848_v15, %v16178_v38 }
 0x1d0   : > { %1649 = vst [vmem:[#allocation2 + $0x3e0] sm:$0xff] %v1440_v31  ;;  %v3601_v25 = vld [vmem:[#allocation2 + $0x3a8] sm:$0x7f]  ;;  %v3846_v32 = vrot.slane %v3600_v6, 7  ;;  %v16211_v9 = vpack.c.bf16 %v1440_v31, %v16188_v11  ;;  %v14819_v59 = vld [vmem:[%s18685_s5 + $0x3c0] sm:$0xff]   ;;  %v1861_v31 = vrot.slane %v16197_v37, 7 }
 0x1d1   : > { %1650 = vst [vmem:[#allocation2 + $0x3e8] sm:$0xff] %v1441_v34  ;;  %v1373_v54 = vpop.f32.mrb[60].mxu1  ;;  %v3848_v51 = vrot.slane %v3601_v25, 7  ;;  %v2199_v60 = vpack.c.bf16 %v1441_v34, %v16194_v43  ;;  %v1866_v6 = vrot.slane %v1666_v12, 7  ;;  %13223 = vmatprep.subr.bf16.mxu0 %v14819_v59  ;;  %v3845_v25 = vsel %vm1847_vm0, %v3843_v28, %v16205_v30  ;;  %v3603_v34 = vld [vmem:[#allocation2 + $0x3c8] sm:$0x80] }
 0x1d2   : > { %18717 = vst [vmem:[#allocation16_spill] sm:$0xff] %v16211_v9  ;;  %v14235_v24 = vadd.f32 %v1373_v54, %v15683_v18  ;;  %v1375_v40 = vpop.f32.mrb[61].mxu1  ;;  %v3847_v19 = vsel %vm1847_vm0, %v16208_v26, %v3846_v32  ;;  %v3602_v28 = vld [vmem:[#allocation2 + $0x3c0] sm:$0x80]  ;;  %v1855_v15 = vsel %vm1847_vm0, %v16178_v38, %v1854_v52  ;;  %v16249_v52 = vrot.slane %v16188_v11, 7 }
 0x1d3   : > { %v16222_v7 = vadd.f32 %v1375_v40, %v15687_v20  ;;  %v1377_v3 = vpop.f32.mrb[62].mxu1  ;;  %v3849_v39 = vsel %vm1847_vm0, %v16205_v30, %v3848_v51  ;;  %2481 = vmatprep.mubr.bf16.mxu1 %v2199_v60  ;;  %v3842_v40 = vsel %vm1847_vm0, %v3840_v36, %v16208_v26  ;;  %v16246_v60 = vrot.slane %v16194_v43, 7  ;;  %v14814_v11 = vld [vmem:[%s18685_s5 + $0x100] sm:$0xff]  }
 0x1d4   : > { %v16230_v0 = vmax.f32 %v14235_v24, 0.0  ;;  %v14237_v32 = vadd.f32 %v1377_v3, %v15683_v18  ;;  %v1379_v37 = vpop.f32.mrb[63].mxu1  ;;  %v3961_v12 = vpack.c.bf16 %v3849_v39, %v3845_v25  ;;  %2482 = vmatmul.mubr.bf16.gmra.mrb[124].mxu1 %v16211_v9  ;;  %v3960_v51 = vpack.c.bf16 %v3847_v19, %v3842_v40  ;;  %v1661_v39 = vld [vmem:[#allocation2 + $0x40] sm:$0x80] }
 0x1d5   : > { %v18700_v59 = vmax.f32 %v16222_v7, 0.0  ;;  %v14238_v54 = vadd.f32 %v1379_v37, %v15687_v20  ;;  %2618 = vmatprep.mubr.bf16.mxu1 %v2073_v33  ;;  %v1867_v3 = vsel %vm1847_vm0, %v15729_v8, %v1866_v6  ;;  %v3853_v20 = vrot.slane %v3603_v34, 7 }
 0x1d6   : > { %1651 = vst [vmem:[#allocation2 + $0x410] sm:$0xff] %v16230_v0  ;;  %v1444_v18 = vmax.f32 %v14237_v32, 0.0  ;;  %4231 = vmatprep.mubr.bf16.mxu0 %v3961_v12  ;;  %v3850_v24 = vrot.slane %v3602_v28, 7  ;;  %v2072_v25 = vpack.c.bf16 %v1855_v15, %v1850_v10  ;;  %v1665_v32 = vld [vmem:[#allocation2 + $0x60] sm:$0x7f]  ;;  %v1863_v43 = vsel %vm1847_vm0, %v1861_v31, %v15729_v8  ;;  %v14815_v15 = vld [vmem:[%s18685_s5 + $0x148] sm:$0xff]  }
 0x1d7   : > { %1652 = vst [vmem:[#allocation2 + $0x418] sm:$0xff] %v18700_v59  ;;  %v1445_v36 = vmax.f32 %v14238_v54, 0.0  ;;  %4232 = vmatmul.mubr.bf16.gmra.mrb[88].mxu0 %v3960_v51  ;;  %v3606_v33 = vld [vmem:[#allocation2 + $0x3e0] sm:$0x7f]  ;;  %v1672_v12 = vld [vmem:[#allocation2 + $0xa8] sm:$0x7f]  ;;  %v2075_v10 = vpack.c.bf16 %v1867_v3, %v1863_v43  ;;  %v3855_v8 = vsel %vm1847_vm0, %v3853_v20, %v16246_v60 }
 0x1d8   : > { %1653 = vst [vmem:[#allocation2 + $0x420] sm:$0xff] %v1444_v18  ;;  %v3607_v38 = vld [vmem:[#allocation2 + $0x3e8] sm:$0x7f]  ;;  %v3856_v19 = vrot.slane %v3606_v33, 7  ;;  %v16252_v6 = vpack.c.bf16 %v1444_v18, %v16230_v0  ;;  %v4679_v28 = vld [vmem:[#allocation2 + $0x78] sm:$0x1]  ;;  %v3852_v43 = vsel %vm1847_vm0, %v3850_v24, %v16249_v52 }
 0x1d9   : > { %1654 = vst [vmem:[#allocation2 + $0x428] sm:$0xff] %v1445_v36  ;;  %v3858_v37 = vrot.slane %v3607_v38, 7  ;;  %v12455_v40 = vpop.f32.mrb[64].mxu1  ;;  %v1668_v54 = vld [vmem:[#allocation2 + $0x88] sm:$0x80]  ;;  %v1864_v33 = vrot.slane %v1665_v32, 7 }
 0x1da   : > { %18718 = vst [vmem:[#allocation17_spill] sm:$0xff] %v16252_v6  ;;  %v3857_v34 = vsel %vm1847_vm0, %v16249_v52, %v3856_v19  ;;  %v12456_v51 = vpop.f32.mrb[65].mxu1  ;;  %v4675_v18 = vld [vmem:[#allocation2 + $0x58] sm:$0xfe]  ;;  %v4677_v36 = vld [vmem:[#allocation2 + $0x68] sm:$0xff]  ;;  %v1876_v6 = vrot.slane %v1672_v12, 7 }
 0x1db   : > { %v3859_v31 = vsel %vm1847_vm0, %v16246_v60, %v3858_v37  ;;  %v16268_v38 = vadd.f32 %v12456_v51, %v12455_v40  ;;  %v12458_v19 = vpop.f32.mrb[66].mxu1  ;;  %v3609_v59 = vld [vmem:[#allocation2 + $0x408] sm:$0x80]  ;;  %v3962_v57 = vpack.c.bf16 %v3857_v34, %v3852_v43  ;;  %v3608_v20 = vld [vmem:[#allocation2 + $0x400] sm:$0x80]  ;;  %v1858_v53 = vrot.slane %v1661_v39, 7 }
 0x1dc   : > { %v3963_v3 = vpack.c.bf16 %v3859_v31, %v3855_v8  ;;  %2619 = vmatmul.mubr.bf16.vlgmr.msra.gmra.mrb[128].mxu1 %v2072_v25  ;;  %v12459_v9 = vpop.f32.mrb[67].mxu1  ;;  %v1871_v56 = vrot.slane %v1668_v54, 7  ;;  %v14816_v32 = vld [vmem:[%s18685_s5 + $0x108] sm:$0xff]   ;;  %v4869_v40 = vrot.slane %v4675_v18, 1  ;;  %v4870_v24 = vrot.slane %v4677_v36, 1  ;;  %v14817_v12 = vld [vmem:[%s18685_s5 + $0x150] sm:$0xff]  }
 0x1dd   : > { %2626 = vmatprep.mubr.bf16.mxu1 %v2075_v10  ;;  %v16272_v37 = vadd.f32 %v12459_v9, %v12458_v19  ;;  %12664 = vmatpush3.bf16.msra.mxu1 %v14814_v11  ;;  %v4874_v25 = vrot.slane %v4679_v28, 1  ;;  %v3863_v39 = vrot.slane %v3609_v59, 7  ;;  %v18719_v9 = vmax.f32 %v16222_v7, 0.0  ;;  %v1671_v54 = vld [vmem:[#allocation2 + $0xa0] sm:$0x7f]  ;;  %v14818_v36 = vld [vmem:[%s18685_s5 + $0x110] sm:$0xff]  }
 0x1de   : > { %4239 = vmatprep.mubr.bf16.mxu0 %v3963_v3  ;;  %12665 = vmatprep.subr.bf16.mxu1 %v14815_v15  ;;  %v1865_v10 = vsel %vm1847_vm0, %v15732_v14, %v1864_v33  ;;  %v3860_v8 = vrot.slane %v3608_v20, 7  ;;  %v3861_v31 = vrot.slane %v16230_v0, 7  ;;  %v1877_v15 = vsel %vm1847_vm0, %v15764_v55, %v1876_v6  ;;  %v1678_v59 = vld [vmem:[#allocation2 + $0xe8] sm:$0x7f]  ;;  %v1667_v3 = vld [vmem:[#allocation2 + $0x80] sm:$0x80] }
 0x1df   : > { %4240 = vmatmul.mubr.bf16.gmra.mrb[92].mxu0 %v3962_v57  ;;  %v3864_v34 = vrot.slane %v18719_v9, 7  ;;  %v3612_v11 = vld [vmem:[#allocation2 + $0x420] sm:$0x7f]  ;;  %v1860_v57 = vsel %vm1847_vm0, %v1858_v53, %v15732_v14  ;;  %v1873_v7 = vsel %vm1847_vm0, %v1871_v56, %v15764_v55  ;;  %v4871_v0 = vsel %vm2939_vm1, %v4869_v40, %v4870_v24  ;;  %v14820_v14 = vld [vmem:[%s18685_s5 + $0x158] sm:$0xff]   ;;  %v4678_v20 = vld [vmem:[#allocation2 + $0x70] sm:$0x1] }
 0x1e0   : > { %v3613_v51 = vld [vmem:[#allocation2 + $0x428] sm:$0x7f]  ;;  %v3866_v28 = vrot.slane %v3612_v11, 7  ;;  %v4875_v19 = vsel %vm2939_vm1, %v4870_v24, %v4874_v25  ;;  %v2074_v6 = vpack.c.bf16 %v1865_v10, %v1860_v57  ;;  %v2077_v53 = vpack.c.bf16 %v1877_v15, %v1873_v7  ;;  %v4676_v43 = vld [vmem:[#allocation2 + $0x60] sm:$0xff]  ;;  %v1674_v9 = vld [vmem:[#allocation2 + $0xc8] sm:$0x80] }
 0x1e1   : > { %v3868_v18 = vrot.slane %v3613_v51, 7  ;;  %12666 = vmatpush3.bf16.msra.mxu1 %v14816_v32  ;;  %v3865_v55 = vsel %vm1847_vm0, %v3863_v39, %v3864_v34  ;;  %v1874_v32 = vrot.slane %v1671_v54, 7  ;;  %v3862_v40 = vsel %vm1847_vm0, %v3860_v8, %v3861_v31  ;;  %v4683_v24 = vld [vmem:[#allocation2 + $0xa8] sm:$0xff]  ;;  %v4685_v25 = vld [vmem:[#allocation2 + $0xb8] sm:$0x1]  ;;  %v14824_v8 = vld [vmem:[%s18685_s5 + $0x160] sm:$0xff]  }
 0x1e2   : > { %v3867_v33 = vsel %vm1847_vm0, %v3861_v31, %v3866_v28  ;;  %12667 = vmatprep.subr.bf16.mxu1 %v14817_v12  ;;  %v1886_v12 = vrot.slane %v1678_v59, 7  ;;  %v4674_v51 = vld [vmem:[#allocation2 + $0x50] sm:$0xfe]  ;;  %v1868_v28 = vrot.slane %v1667_v3, 7  ;;  %v14822_v39 = vld [vmem:[%s18685_s5 + $0x118] sm:$0xff]   ;;  %v4867_v54 = vrot.slane %v4676_v43, 1 }
 0x1e3   : > { %v3869_v56 = vsel %vm1847_vm0, %v3864_v34, %v3868_v18  ;;  %v3964_v10 = vpack.c.bf16 %v3867_v33, %v3862_v40  ;;  %v5091_v34 = vpack.c.bf16 %v4875_v19, %v4871_v0  ;;  %v4872_v15 = vrot.slane %v4678_v20, 1  ;;  %v4681_v18 = vld [vmem:[#allocation2 + $0x98] sm:$0xfe]  ;;  %v1677_v0 = vld [vmem:[#allocation2 + $0xe0] sm:$0x7f] }
 0x1e4   : > { %v3965_v11 = vpack.c.bf16 %v3869_v56, %v3865_v55  ;;  %2627 = vmatmul.mubr.bf16.gmra.mrb[132].mxu1 %v2074_v6  ;;  %v1881_v57 = vrot.slane %v1674_v9, 7  ;;  %v4880_v31 = vrot.slane %v4683_v24, 1  ;;  %v4884_v7 = vrot.slane %v4685_v25, 1  ;;  %v1684_v3 = vld [vmem:[#allocation2 + $0x128] sm:$0x7f]  ;;  %v4682_v40 = vld [vmem:[#allocation2 + $0xa0] sm:$0xff] }
 0x1e5   : > { %2634 = vmatprep.mubr.bf16.mxu1 %v2077_v53  ;;  %12668 = vmatpush3.bf16.msra.mxu1 %v14818_v36  ;;  %v1875_v59 = vsel %vm1847_vm0, %v15771_v61, %v1874_v32  ;;  %v4866_v36 = vrot.slane %v4674_v51, 1  ;;  %v1887_v33 = vsel %vm1847_vm0, %v15806_v46, %v1886_v12  ;;  %v4879_v19 = vrot.slane %v4681_v18, 1  ;;  %v1673_v20 = vld [vmem:[#allocation2 + $0xc0] sm:$0x80]  ;;  %v4684_v24 = vld [vmem:[#allocation2 + $0xb0] sm:$0x1] }
 0x1e6   : > { %4247 = vmatprep.mubr.bf16.mxu0 %v3965_v11  ;;  %12669 = vmatprep.subr.bf16.mxu1 %v14820_v14  ;;  %v1870_v6 = vsel %vm1847_vm0, %v1868_v28, %v15771_v61  ;;  %v14826_v14 = vld [vmem:[%s18685_s5 + $0x120] sm:$0xff]   ;;  %v4873_v56 = vsel %vm2939_vm1, %v4867_v54, %v4872_v15  ;;  %v1883_v43 = vsel %vm1847_vm0, %v1881_v57, %v15806_v46  ;;  %v14828_v61 = vld [vmem:[%s18685_s5 + $0x168] sm:$0xff]   ;;  %v1884_v25 = vrot.slane %v1677_v0, 7  ;;  %v4691_v51 = vld [vmem:[#allocation2 + $0xf8] sm:$0x1] }
 0x1e7   : > { %4248 = vmatmul.mubr.bf16.gmra.mrb[96].mxu0 %v3964_v10  ;;  %v4868_v55 = vsel %vm2939_vm1, %v4866_v36, %v4867_v54  ;;  %v2076_v53 = vpack.c.bf16 %v1875_v59, %v1870_v6  ;;  %v4881_v32 = vsel %vm2939_vm1, %v4879_v19, %v4880_v31  ;;  %v4885_v9 = vsel %vm2939_vm1, %v4880_v31, %v4884_v7  ;;  %v1680_v12 = vld [vmem:[#allocation2 + $0x108] sm:$0x80]  ;;  %v14821_v46 = vld [vmem:[%s18685_s5 + $0x380] sm:$0xff]   ;;  %v4687_v7 = vld [vmem:[#allocation2 + $0xd8] sm:$0xfe] }
 0x1e8   : > { %5283 = vmatprep.mubr.bf16.mxu0 %v5091_v34  ;;  %v2079_v11 = vpack.c.bf16 %v1887_v33, %v1883_v43  ;;  %v4689_v10 = vld [vmem:[#allocation2 + $0xe8] sm:$0xff]  ;;  %v1896_v28 = vrot.slane %v1684_v3, 7  ;;  %v4680_v34 = vld [vmem:[#allocation2 + $0x90] sm:$0xfe]  ;;  %v1878_v54 = vrot.slane %v1673_v20, 7  ;;  %v5093_v57 = vpack.c.bf16 %v4885_v9, %v4881_v32 }
 0x1e9   : > { %12670 = vmatpush3.bf16.msra.mxu1 %v14822_v39  ;;  %v5090_v39 = vpack.c.bf16 %v4873_v56, %v4868_v55  ;;  %v14823_v15 = vld [vmem:[%s18685_s5 + $0x3c8] sm:$0xff]   ;;  %v4882_v31 = vrot.slane %v4684_v24, 1  ;;  %v1891_v59 = vrot.slane %v1680_v12, 7  ;;  %v14832_v36 = vld [vmem:[%s18685_s5 + $0x170] sm:$0xff]   ;;  %v4890_v33 = vrot.slane %v4689_v10, 1 }
 0x1ea   : > { %12671 = vmatprep.subr.bf16.mxu1 %v14824_v8  ;;  %v14830_v18 = vld [vmem:[%s18685_s5 + $0x128] sm:$0xff]   ;;  %v4877_v8 = vrot.slane %v4682_v40, 1  ;;  %v4894_v0 = vrot.slane %v4691_v51, 1  ;;  %v1885_v19 = vsel %vm1847_vm0, %v15810_v21, %v1884_v25  ;;  %v4876_v6 = vrot.slane %v4680_v34, 1  ;;  %v14827_v20 = vld [vmem:[%s18685_s5 + $0x3d0] sm:$0xff]   ;;  %v4688_v51 = vld [vmem:[#allocation2 + $0xe0] sm:$0xff] }
 0x1eb   : > { %v1897_v3 = vsel %vm1847_vm0, %v15851_v5, %v1896_v28  ;;  %v14825_v55 = vld [vmem:[%s18685_s5 + $0x388] sm:$0xff]   ;;  %v4889_v56 = vrot.slane %v4687_v7, 1  ;;  %v4690_v40 = vld [vmem:[#allocation2 + $0xf0] sm:$0x1]  ;;  %v1679_v24 = vld [vmem:[#allocation2 + $0x100] sm:$0x80] }
 0x1ec   : > { %2635 = vmatmul.mubr.bf16.gmra.mrb[136].mxu1 %v2076_v53  ;;  %v1880_v53 = vsel %vm1847_vm0, %v1878_v54, %v15810_v21  ;;  %v1690_v43 = vld [vmem:[#allocation2 + $0x168] sm:$0x7f]  ;;  %v4883_v32 = vsel %vm2939_vm1, %v4877_v8, %v4882_v31  ;;  %v14834_v21 = vld [vmem:[%s18685_s5 + $0x130] sm:$0xff]   ;;  %v4895_v12 = vsel %vm2939_vm1, %v4890_v33, %v4894_v0  ;;  %v4697_v34 = vld [vmem:[#allocation2 + $0x138] sm:$0x1] }
 0x1ed   : > { %2642 = vmatprep.mubr.bf16.mxu1 %v2079_v11  ;;  %12672 = vmatpush3.bf16.msra.mxu1 %v14826_v14  ;;  %v1683_v14 = vld [vmem:[#allocation2 + $0x120] sm:$0x7f]  ;;  %v2078_v9 = vpack.c.bf16 %v1885_v19, %v1880_v53  ;;  %v1893_v11 = vsel %vm1847_vm0, %v1891_v59, %v15851_v5  ;;  %v4891_v25 = vsel %vm2939_vm1, %v4889_v56, %v4890_v33  ;;  %v4695_v5 = vld [vmem:[#allocation2 + $0x128] sm:$0xff]  ;;  %v1906_v54 = vrot.slane %v1690_v43, 7  ;;  %v14831_v31 = vld [vmem:[%s18685_s5 + $0x3d8] sm:$0xff]  }
 0x1ee   : > { %12673 = vmatprep.subr.bf16.mxu1 %v14828_v61  ;;  %v4878_v61 = vsel %vm2939_vm1, %v4876_v6, %v4877_v8  ;;  %v2081_v10 = vpack.c.bf16 %v1897_v3, %v1893_v11  ;;  %v1894_v28 = vrot.slane %v1683_v14, 7  ;;  %v1888_v8 = vrot.slane %v1679_v24, 7  ;;  %v4693_v33 = vld [vmem:[#allocation2 + $0x118] sm:$0xfe]  ;;  %v1689_v53 = vld [vmem:[#allocation2 + $0x160] sm:$0x7f] }
 0x1ef   : > { %5284 = vmatmul.mubr.bf16.vlgmr.msra.gmra.mrb[100].mxu0 %v5090_v39  ;;  %v14836_v39 = vld [vmem:[%s18685_s5 + $0x178] sm:$0xff]   ;;  %v5095_v7 = vpack.c.bf16 %v4895_v12, %v4891_v25  ;;  %v4887_v59 = vrot.slane %v4688_v51, 1  ;;  %v4900_v6 = vrot.slane %v4695_v5, 1  ;;  %v4904_v3 = vrot.slane %v4697_v34, 1  ;;  %v14835_v11 = vld [vmem:[%s18685_s5 + $0x3e0] sm:$0xff]  }
 0x1f0   : > { %5291 = vmatprep.mubr.bf16.mxu0 %v5093_v57  ;;  %13224 = vmatpush3.bf16.msra.mxu0 %v14821_v46  ;;  %v1686_v46 = vld [vmem:[#allocation2 + $0x148] sm:$0x80]  ;;  %v4686_v57 = vld [vmem:[#allocation2 + $0xd0] sm:$0xfe]  ;;  %v14838_v19 = vld [vmem:[%s18685_s5 + $0x138] sm:$0xff]   ;;  %v1895_v14 = vsel %vm1847_vm0, %v15855_v50, %v1894_v28  ;;  %v1907_v56 = vsel %vm1847_vm0, %v15910_v47, %v1906_v54  ;;  %v1904_v5 = vrot.slane %v1689_v53, 7 }
 0x1f1   : > { %13225 = vmatprep.subr.bf16.mxu0 %v14823_v15  ;;  %12674 = vmatpush3.bf16.msra.mxu1 %v14830_v18  ;;  %v14829_v15 = vld [vmem:[%s18685_s5 + $0x390] sm:$0xff]   ;;  %v5092_v18 = vpack.c.bf16 %v4883_v32, %v4878_v61  ;;  %v1901_v0 = vrot.slane %v1686_v46, 7  ;;  %v14833_v43 = vld [vmem:[%s18685_s5 + $0x398] sm:$0xff]   ;;  %v1890_v61 = vsel %vm1847_vm0, %v1888_v8, %v15855_v50  ;;  %v1685_v32 = vld [vmem:[#allocation2 + $0x140] sm:$0x80]  ;;  %v4905_v50 = vsel %vm2939_vm1, %v4900_v6, %v4904_v3 }
 0x1f2   : > { %12675 = vmatprep.subr.bf16.mxu1 %v14832_v36  ;;  %v4892_v36 = vrot.slane %v4690_v40, 1  ;;  %v1692_v12 = vld [vmem:[#allocation2 + $0x188] sm:$0x80]  ;;  %v4694_v28 = vld [vmem:[#allocation2 + $0x120] sm:$0xff]  ;;  %v4696_v46 = vld [vmem:[#allocation2 + $0x130] sm:$0x1] }
 0x1f3   : > { %v1903_v25 = vsel %vm1847_vm0, %v1901_v0, %v15910_v47  ;;  %v4703_v34 = vld [vmem:[#allocation2 + $0x178] sm:$0x1]  ;;  %v1898_v54 = vrot.slane %v1685_v32, 7  ;;  %v14837_v47 = vld [vmem:[%s18685_s5 + $0x3a0] sm:$0xff]   ;;  %v4699_v8 = vld [vmem:[#allocation2 + $0x158] sm:$0xfe] }
 0x1f4   : > { %2643 = vmatmul.mubr.bf16.gmra.mrb[140].mxu1 %v2078_v9  ;;  %13226 = vmatpush3.bf16.msra.mxu0 %v14825_v55  ;;  %v4886_v55 = vrot.slane %v4686_v57, 1  ;;  %v1696_v9 = vld [vmem:[#allocation2 + $0x1a8] sm:$0x7f]  ;;  %v4893_v24 = vsel %vm2939_vm1, %v4887_v59, %v4892_v36  ;;  %v2083_v51 = vpack.c.bf16 %v1907_v56, %v1903_v25  ;;  %v4692_v57 = vld [vmem:[#allocation2 + $0x110] sm:$0xfe]  ;;  %v4897_v36 = vrot.slane %v4694_v28, 1 }
 0x1f5   : > { %2650 = vmatprep.mubr.bf16.mxu1 %v2081_v10  ;;  %13227 = vmatprep.subr.bf16.mxu0 %v14827_v20  ;;  %v4899_v20 = vrot.slane %v4693_v33, 1  ;;  %v4902_v33 = vrot.slane %v4696_v46, 1  ;;  %v4896_v3 = vrot.slane %v4692_v57, 1  ;;  %v1695_v56 = vld [vmem:[#allocation2 + $0x1a0] sm:$0x7f]  ;;  %v14840_v53 = vld [vmem:[%s18685_s5 + $0x3a8] sm:$0xff]  }
 0x1f6   : > { %12676 = vmatpush3.bf16.msra.mxu1 %v14834_v21  ;;  %v4888_v40 = vsel %vm2939_vm1, %v4886_v55, %v4887_v59  ;;  %v2080_v21 = vpack.c.bf16 %v1895_v14, %v1890_v61  ;;  %v4909_v14 = vrot.slane %v4699_v8, 1  ;;  %v1691_v32 = vld [vmem:[#allocation2 + $0x180] sm:$0x80]  ;;  %v4702_v46 = vld [vmem:[#allocation2 + $0x170] sm:$0x1] }
 0x1f7   : > { %5292 = vmatmul.mubr.bf16.gmra.mrb[104].mxu0 %v5092_v18  ;;  %12677 = vmatprep.subr.bf16.mxu1 %v14836_v39  ;;  %v4901_v10 = vsel %vm2939_vm1, %v4899_v20, %v4900_v6  ;;  %v4701_v39 = vld [vmem:[#allocation2 + $0x168] sm:$0xff]  ;;  %v5094_v18 = vpack.c.bf16 %v4893_v24, %v4888_v40  ;;  %v1905_v6 = vsel %vm1847_vm0, %v15903_v35, %v1904_v5  ;;  %v4700_v28 = vld [vmem:[#allocation2 + $0x160] sm:$0xff]  ;;  %v1914_v5 = vrot.slane %v1695_v56, 7 }
 0x1f8   : > { %5299 = vmatprep.mubr.bf16.mxu0 %v5095_v7  ;;  %13228 = vmatpush3.bf16.msra.mxu0 %v14829_v15  ;;  %v1916_v15 = vrot.slane %v1696_v9, 7  ;;  %v14839_v7 = vld [vmem:[%s18685_s5 + $0x3e8] sm:$0xff]   ;;  %v5097_v59 = vpack.c.bf16 %v4905_v50, %v4901_v10  ;;  %v4910_v0 = vrot.slane %v4701_v39, 1  ;;  %v1900_v20 = vsel %vm1847_vm0, %v1898_v54, %v15903_v35  ;;  %v4709_v54 = vld [vmem:[#allocation2 + $0x1b8] sm:$0x1] }
 0x1f9   : > { %13229 = vmatprep.subr.bf16.mxu0 %v14831_v31  ;;  %v1911_v31 = vrot.slane %v1692_v12, 7  ;;  %v1702_v9 = vld [vmem:[#allocation2 + $0x1e8] sm:$0x7f]  ;;  %v4898_v40 = vsel %vm2939_vm1, %v4896_v3, %v4897_v36  ;;  %v4903_v24 = vsel %vm2939_vm1, %v4897_v36, %v4902_v33  ;;  %v2082_v12 = vpack.c.bf16 %v1905_v6, %v1900_v20  ;;  %v1698_v10 = vld [vmem:[#allocation2 + $0x1c8] sm:$0x80]  ;;  %v14843_v36 = vld [vmem:[%s18685_s5 + $0x3f8] sm:$0xff]  }
 0x1fa   : > { %12678 = vmatpush3.bf16.msra.mxu1 %v14838_v19  ;;  %v4914_v19 = vrot.slane %v4703_v34, 1  ;;  %v1917_v55 = vsel %vm1847_vm0, %v15970_v22, %v1916_v15  ;;  %v4707_v39 = vld [vmem:[#allocation2 + $0x1a8] sm:$0xff]  ;;  %v1908_v15 = vrot.slane %v1691_v32, 7  ;;  %v5096_v57 = vpack.c.bf16 %v4903_v24, %v4898_v40  ;;  %v16424_v3 = vld [vmem:[#allocation2 + $0x1c0] sm:$0x80] }
 0x1fb   : > { %v1913_v61 = vsel %vm1847_vm0, %v1911_v31, %v15970_v22  ;;  %v4698_v31 = vld [vmem:[#allocation2 + $0x150] sm:$0xfe]  ;;  %v4920_v6 = vrot.slane %v4707_v39, 1  ;;  %v1701_v20 = vld [vmem:[#allocation2 + $0x1e0] sm:$0x7f]  ;;  %v1918_v24 = vrot.slane %v16424_v3, 7 }
 0x1fc   : > { %2651 = vmatmul.mubr.bf16.gmra.mrb[144].mxu1 %v2080_v21  ;;  %13230 = vmatpush3.bf16.msra.mxu0 %v14833_v43  ;;  %v4911_v21 = vsel %vm2939_vm1, %v4909_v14, %v4910_v0  ;;  %v4915_v35 = vsel %vm2939_vm1, %v4910_v0, %v4914_v19  ;;  %v4907_v0 = vrot.slane %v4700_v28, 1  ;;  %v4912_v19 = vrot.slane %v4702_v46, 1  ;;  %v4708_v40 = vld [vmem:[#allocation2 + $0x1b0] sm:$0x1]  ;;  %v4706_v39 = vld [vmem:[#allocation2 + $0x1a0] sm:$0xff] }
 0x1fd   : > { %2658 = vmatprep.mubr.bf16.mxu1 %v2083_v51  ;;  %13231 = vmatprep.subr.bf16.mxu0 %v14835_v11  ;;  %v14841_v11 = vld [vmem:[%s18685_s5 + $0x3f0] sm:$0xff]   ;;  %v2085_v51 = vpack.c.bf16 %v1917_v55, %v1913_v61  ;;  %v5099_v33 = vpack.c.bf16 %v4915_v35, %v4911_v21  ;;  %v4924_v14 = vrot.slane %v4709_v54, 1  ;;  %v1915_v55 = vsel %vm1847_vm0, %v15965_v58, %v1914_v5  ;;  %v14844_v61 = vld [vmem:[%s18685_s5 + $0x3b8] sm:$0xff]   ;;  %v1708_v21 = vld [vmem:[#allocation2 + $0x228] sm:$0x7f] }
 0x1fe   : > { %v4906_v56 = vrot.slane %v4698_v31, 1  ;;  %v4713_v5 = vld [vmem:[#allocation2 + $0x1e8] sm:$0xff] }
 0x1ff   : > { %5300 = vmatmul.mubr.bf16.gmra.mrb[108].mxu0 %v5094_v18  ;;  %v14842_v18 = vld [vmem:[%s18685_s5 + $0x3b0] sm:$0xff]   ;;  %v4925_v28 = vsel %vm2939_vm1, %v4920_v6, %v4924_v14  ;;  %v4917_v14 = vrot.slane %v4706_v39, 1 }
 0x200   : > { %5307 = vmatprep.mubr.bf16.mxu0 %v5097_v59  ;;  %13232 = vmatpush3.bf16.msra.mxu0 %v14837_v47  ;;  %v1926_v47 = vrot.slane %v1702_v9, 7  ;;  %v1921_v59 = vrot.slane %v1698_v10, 7  ;;  %v1910_v9 = vsel %vm1847_vm0, %v1908_v15, %v15965_v58  ;;  %v4714_v39 = vld [vmem:[#allocation2 + $0x1f0] sm:$0x1] }
 0x201   : > { %v12461_v43 = vpop.f32.mrb[68].mxu1  ;;  %13233 = vmatprep.subr.bf16.mxu0 %v14839_v7  ;;  %v4705_v7 = vld [vmem:[#allocation2 + $0x198] sm:$0xfe] }
 0x202   : > { %v12462_v25 = vpop.f32.mrb[69].mxu1 }
 0x203   : > { %v16414_v50 = vadd.f32 %v12462_v25, %v12461_v43  ;;  %v12464_v22 = vpop.f32.mrb[70].mxu1  ;;  %v1927_v43 = vsel %vm1847_vm0, %v16024_v13, %v1926_v47  ;;  %v4908_v25 = vsel %vm2939_vm1, %v4906_v56, %v4907_v0  ;;  %v4922_v47 = vrot.slane %v4708_v40, 1 }
 0x204   : > { %v12465_v34 = vpop.f32.mrb[71].mxu1  ;;  %2659 = vmatmul.mubr.bf16.gmra.mrb[148].mxu1 %v2082_v12  ;;  %13234 = vmatpush3.bf16.msra.mxu0 %v14840_v53  ;;  %v4919_v53 = vrot.slane %v4705_v7, 1  ;;  %v4913_v12 = vsel %vm2939_vm1, %v4907_v0, %v4912_v19 }
 0x205   : > { %v16419_v8 = vadd.f32 %v12465_v34, %v12464_v22  ;;  %2666 = vmatprep.mubr.bf16.mxu1 %v2085_v51  ;;  %13235 = vmatprep.subr.bf16.mxu0 %v14841_v11  ;;  %v1923_v11 = vsel %vm1847_vm0, %v1921_v59, %v16024_v13  ;;  %v2084_v22 = vpack.c.bf16 %v1915_v55, %v1910_v9  ;;  %v1704_v51 = vld [vmem:[#allocation2 + $0x208] sm:$0x80]  ;;  %v1924_v34 = vrot.slane %v1701_v20, 7 }
 0x206   : > { %v4921_v10 = vsel %vm2939_vm1, %v4919_v53, %v4920_v6  ;;  %v2087_v13 = vpack.c.bf16 %v1927_v43, %v1923_v11  ;;  %v5098_v7 = vpack.c.bf16 %v4913_v12, %v4908_v25  ;;  %v1931_v0 = vrot.slane %v1704_v51, 7  ;;  %v1707_v11 = vld [vmem:[#allocation2 + $0x220] sm:$0x7f]  ;;  %v1703_v12 = vld [vmem:[#allocation2 + $0x200] sm:$0x80] }
 0x207   : > { %5308 = vmatmul.mubr.bf16.gmra.mrb[112].mxu0 %v5096_v57  ;;  %v1936_v57 = vrot.slane %v1708_v21, 7  ;;  %v5101_v3 = vpack.c.bf16 %v4925_v28, %v4921_v10  ;;  %v4930_v55 = vrot.slane %v4713_v5, 1  ;;  %v1925_v43 = vsel %vm1847_vm0, %v16028_v63, %v1924_v34  ;;  %v1714_v10 = vld [vmem:[#allocation2 + $0x268] sm:$0x7f]  ;;  %v1710_v5 = vld [vmem:[#allocation2 + $0x248] sm:$0x80] }
 0x208   : > { %5315 = vmatprep.mubr.bf16.mxu0 %v5099_v33  ;;  %13236 = vmatpush3.bf16.msra.mxu0 %v14842_v18  ;;  %v4715_v18 = vld [vmem:[#allocation2 + $0x1f8] sm:$0x1]  ;;  %v4711_v33 = vld [vmem:[#allocation2 + $0x1d8] sm:$0xfe]  ;;  %v1920_v21 = vsel %vm1847_vm0, %v1918_v24, %v16028_v63  ;;  %v1933_v25 = vsel %vm1847_vm0, %v1931_v0, %v16063_v45 }
 0x209   : > { %v12467_v32 = vpop.f32.mrb[72].mxu1  ;;  %13237 = vmatprep.subr.bf16.mxu0 %v14843_v36  ;;  %v4704_v36 = vld [vmem:[#allocation2 + $0x190] sm:$0xfe]  ;;  %v4934_v53 = vrot.slane %v4715_v18, 1  ;;  %v1937_v9 = vsel %vm1847_vm0, %v16063_v45, %v1936_v57  ;;  %v4719_v45 = vld [vmem:[#allocation2 + $0x228] sm:$0xff]  ;;  %v1934_v18 = vrot.slane %v1707_v11, 7 }
 0x20a   : > { %v12468_v35 = vpop.f32.mrb[73].mxu1  ;;  %v2089_v24 = vpack.c.bf16 %v1937_v9, %v1933_v25 }
 0x20b   : > { %v16442_v58 = vadd.f32 %v12468_v35, %v12467_v32  ;;  %v12470_v46 = vpop.f32.mrb[74].mxu1  ;;  %v4929_v32 = vrot.slane %v4711_v33, 1  ;;  %v4935_v34 = vsel %vm2939_vm1, %v4930_v55, %v4934_v53 }
 0x20c   : > { %v12791_v54 = vpop.f32.mrb[36].mxu0  ;;  %v12471_v15 = vpop.f32.mrb[75].mxu1  ;;  %2667 = vmatmul.mubr.bf16.gmra.mrb[152].mxu1 %v2084_v22  ;;  %13238 = vmatpush3.bf16.msra.mxu0 %v14844_v61  ;;  %v4916_v61 = vrot.slane %v4704_v36, 1  ;;  %v4923_v22 = vsel %vm2939_vm1, %v4917_v14, %v4922_v47  ;;  %v4710_v47 = vld [vmem:[#allocation2 + $0x1d0] sm:$0xfe]  ;;  %v1946_v36 = vrot.slane %v1714_v10, 7 }
 0x20d   : > { %v12792_v31 = vpop.f32.mrb[37].mxu0  ;;  %v16444_v59 = vadd.f32 %v12471_v15, %v12470_v46  ;;  %2674 = vmatprep.mubr.bf16.mxu1 %v2087_v13  ;;  %v4931_v51 = vsel %vm2939_vm1, %v4929_v32, %v4930_v55  ;;  %v2086_v46 = vpack.c.bf16 %v1925_v43, %v1920_v21  ;;  %v4712_v13 = vld [vmem:[#allocation2 + $0x1e0] sm:$0xff]  ;;  %v4721_v15 = vld [vmem:[#allocation2 + $0x238] sm:$0x1]  ;;  %v4717_v55 = vld [vmem:[#allocation2 + $0x218] sm:$0xfe]  ;;  %v1935_v21 = vsel %vm1847_vm0, %v16069_v27, %v1934_v18 }
 0x20e   : > { %v16446_v19 = vadd.f32 %v12792_v31, %v12791_v54  ;;  %v12794_v6 = vpop.f32.mrb[38].mxu0  ;;  %v4918_v35 = vsel %vm2939_vm1, %v4916_v61, %v4917_v14  ;;  %v4932_v14 = vrot.slane %v4714_v39, 1  ;;  %v5103_v43 = vpack.c.bf16 %v4935_v34, %v4931_v51  ;;  %v4727_v18 = vld [vmem:[#allocation2 + $0x278] sm:$0x1] }
 0x20f   : > { %v12795_v56 = vpop.f32.mrb[39].mxu0  ;;  %5316 = vmatmul.mubr.bf16.gmra.mrb[116].mxu0 %v5098_v7  ;;  %v1928_v7 = vrot.slane %v1703_v12, 7  ;;  %v5100_v0 = vpack.c.bf16 %v4923_v22, %v4918_v35  ;;  %v4940_v61 = vrot.slane %v4719_v45, 1  ;;  %v1941_v32 = vrot.slane %v1710_v5, 7  ;;  %v1713_v35 = vld [vmem:[#allocation2 + $0x260] sm:$0x7f] }
 0x210   : > { %18720 = vst [vmem:[#allocation18_spill] sm:$0xff] %v16446_v19  ;;  %v16450_v20 = vadd.f32 %v12795_v56, %v12794_v6  ;;  %5323 = vmatprep.mubr.bf16.mxu0 %v5101_v3  ;;  %v4927_v3 = vrot.slane %v4712_v13, 1  ;;  %v4926_v11 = vrot.slane %v4710_v47, 1  ;;  %v4939_v12 = vrot.slane %v4717_v55, 1  ;;  %v1720_v13 = vld [vmem:[#allocation2 + $0x2a8] sm:$0x7f] }
 0x211   : > { %v12473_v40 = vpop.f32.mrb[76].mxu1  ;;  %v1947_v10 = vsel %vm1847_vm0, %v16085_v44, %v1946_v36  ;;  %v4718_v45 = vld [vmem:[#allocation2 + $0x220] sm:$0xff]  ;;  %v1944_v36 = vrot.slane %v1713_v35, 7 }
 0x212   : > { %18721 = vst [vmem:[#allocation19_spill] sm:$0xff] %v16450_v20  ;;  %v12474_v28 = vpop.f32.mrb[77].mxu1  ;;  %v4928_v22 = vsel %vm2939_vm1, %v4926_v11, %v4927_v3  ;;  %v4933_v39 = vsel %vm2939_vm1, %v4927_v3, %v4932_v14  ;;  %v4941_v5 = vsel %vm2939_vm1, %v4939_v12, %v4940_v61  ;;  %v4716_v14 = vld [vmem:[#allocation2 + $0x210] sm:$0xfe]  ;;  %v4723_v11 = vld [vmem:[#allocation2 + $0x258] sm:$0xfe] }
 0x213   : > { %v16462_v54 = vadd.f32 %v12474_v28, %v12473_v40  ;;  %v12476_v63 = vpop.f32.mrb[78].mxu1  ;;  %v4944_v40 = vrot.slane %v4721_v15, 1  ;;  %v1930_v28 = vsel %vm1847_vm0, %v1928_v7, %v16069_v27  ;;  %v4720_v15 = vld [vmem:[#allocation2 + $0x230] sm:$0x1]  ;;  %v4725_v7 = vld [vmem:[#allocation2 + $0x268] sm:$0xff] }
 0x214   : > { %v12797_v57 = vpop.f32.mrb[40].mxu0  ;;  %v12477_v31 = vpop.f32.mrb[79].mxu1  ;;  %2675 = vmatmul.mubr.bf16.gmra.mrb[156].mxu1 %v2086_v46  ;;  %v1709_v46 = vld [vmem:[#allocation2 + $0x240] sm:$0x80] }
 0x215   : > { %v12798_v33 = vpop.f32.mrb[41].mxu0  ;;  %v16464_v6 = vadd.f32 %v12477_v31, %v12476_v63  ;;  %2682 = vmatprep.mubr.bf16.mxu1 %v2089_v24  ;;  %v2088_v63 = vpack.c.bf16 %v1935_v21, %v1930_v28  ;;  %v1943_v24 = vsel %vm1847_vm0, %v1941_v32, %v16085_v44  ;;  %v1938_v55 = vrot.slane %v1709_v46, 7 }
 0x216   : > { %v16466_v56 = vadd.f32 %v12798_v33, %v12797_v57  ;;  %v12800_v53 = vpop.f32.mrb[42].mxu0  ;;  %v4945_v57 = vsel %vm2939_vm1, %v4940_v61, %v4944_v40  ;;  %v2091_v27 = vpack.c.bf16 %v1947_v10, %v1943_v24  ;;  %v1716_v33 = vld [vmem:[#allocation2 + $0x288] sm:$0x80]  ;;  %v5102_v44 = vpack.c.bf16 %v4933_v39, %v4928_v22  ;;  %v1719_v24 = vld [vmem:[#allocation2 + $0x2a0] sm:$0x7f] }
 0x217   : > { %v12801_v9 = vpop.f32.mrb[43].mxu0  ;;  %5324 = vmatmul.mubr.bf16.gmra.mrb[120].mxu0 %v5100_v0  ;;  %v4942_v61 = vrot.slane %v4720_v15, 1  ;;  %v5105_v12 = vpack.c.bf16 %v4945_v57, %v4941_v5  ;;  %v4950_v10 = vrot.slane %v4725_v7, 1  ;;  %v1951_v35 = vrot.slane %v1716_v33, 7 }
 0x218   : > { %18722 = vst [vmem:[#allocation20_spill] sm:$0xff] %v16466_v56  ;;  %v16470_v25 = vadd.f32 %v12801_v9, %v12800_v53  ;;  %5331 = vmatprep.mubr.bf16.mxu0 %v5103_v43  ;;  %v1956_v53 = vrot.slane %v1720_v13, 7  ;;  %v4937_v9 = vrot.slane %v4718_v45, 1  ;;  %v4936_v46 = vrot.slane %v4716_v14, 1  ;;  %v1715_v14 = vld [vmem:[#allocation2 + $0x280] sm:$0x80] }
 0x219   : > { %v12479_v51 = vpop.f32.mrb[80].mxu1  ;;  %v4954_v13 = vrot.slane %v4727_v18, 1  ;;  %v1945_v22 = vsel %vm1847_vm0, %v16087_v1, %v1944_v36  ;;  %v1940_v15 = vsel %vm1847_vm0, %v1938_v55, %v16087_v1  ;;  %v1726_v18 = vld [vmem:[#allocation2 + $0x2e8] sm:$0x7f]  ;;  %v1953_v33 = vsel %vm1847_vm0, %v1951_v35, %v16111_v23 }
 0x21a   : > { %18723 = vst [vmem:[#allocation21_spill] sm:$0xff] %v16470_v25  ;;  %v12480_v34 = vpop.f32.mrb[81].mxu1  ;;  %v4938_v5 = vsel %vm2939_vm1, %v4936_v46, %v4937_v9  ;;  %v2090_v36 = vpack.c.bf16 %v1945_v22, %v1940_v15  ;;  %v1948_v22 = vrot.slane %v1715_v14, 7  ;;  %v1725_v14 = vld [vmem:[#allocation2 + $0x2e0] sm:$0x7f] }
 0x21b   : > { %v16482_v31 = vadd.f32 %v12480_v34, %v12479_v51  ;;  %v12482_v47 = vpop.f32.mrb[82].mxu1  ;;  %v16488_v51 = vld [vmem:[#allocation2 + $0x270] sm:$0x1]  ;;  %v4949_v34 = vrot.slane %v4723_v11, 1  ;;  %v1954_v11 = vrot.slane %v1719_v24, 7 }
 0x21c   : > { %v12803_v0 = vpop.f32.mrb[44].mxu0  ;;  %v12483_v3 = vpop.f32.mrb[83].mxu1  ;;  %2683 = vmatmul.mubr.bf16.gmra.mrb[160].mxu1 %v2088_v63  ;;  %v1957_v63 = vsel %vm1847_vm0, %v16111_v23, %v1956_v53  ;;  %v4952_v57 = vrot.slane %v16488_v51, 1  ;;  %v4955_v53 = vsel %vm2939_vm1, %v4950_v10, %v4954_v13  ;;  %v1966_v51 = vrot.slane %v1726_v18, 7  ;;  %v14845_v23 = vld [vmem:[%s18685_s5 + $0x240] sm:$0xff]  }
 0x21d   : > { %v12804_v43 = vpop.f32.mrb[45].mxu0  ;;  %v16484_v32 = vadd.f32 %v12483_v3, %v12482_v47  ;;  %2690 = vmatprep.mubr.bf16.mxu1 %v2091_v27  ;;  %v4943_v47 = vsel %vm2939_vm1, %v4937_v9, %v4942_v61  ;;  %v4951_v27 = vsel %vm2939_vm1, %v4949_v34, %v4950_v10  ;;  %v4733_v3 = vld [vmem:[#allocation2 + $0x2b8] sm:$0x1]  ;;  %v2093_v55 = vpack.c.bf16 %v1957_v63, %v1953_v33  ;;  %v4729_v13 = vld [vmem:[#allocation2 + $0x298] sm:$0xfe] }
 0x21e   : > { %v16486_v40 = vadd.f32 %v12804_v43, %v12803_v0  ;;  %v12806_v21 = vpop.f32.mrb[46].mxu0  ;;  %v4724_v0 = vld [vmem:[#allocation2 + $0x260] sm:$0xff]  ;;  %v5107_v24 = vpack.c.bf16 %v4955_v53, %v4951_v27  ;;  %12887 = vmatprep.subr.bf16.mxu1 %v14845_v23  ;;  %v4959_v33 = vrot.slane %v4729_v13, 1 }
 0x21f   : > { %v12807_v28 = vpop.f32.mrb[47].mxu0  ;;  %5332 = vmatmul.mubr.bf16.gmra.mrb[124].mxu0 %v5102_v44  ;;  %v4731_v44 = vld [vmem:[#allocation2 + $0x2a8] sm:$0xff]  ;;  %v4947_v10 = vrot.slane %v4724_v0, 1  ;;  %v1967_v0 = vsel %vm1847_vm0, %v16130_v41, %v1966_v51  ;;  %v4739_v51 = vld [vmem:[#allocation2 + $0x2f8] sm:$0x1] }
 0x220   : > { %18724 = vst [vmem:[#allocation22_spill] sm:$0xff] %v16486_v40  ;;  %v16492_v39 = vadd.f32 %v12807_v28, %v12806_v21  ;;  %5339 = vmatprep.mubr.bf16.mxu0 %v5105_v12  ;;  %v1722_v21 = vld [vmem:[#allocation2 + $0x2c8] sm:$0x80]  ;;  %v4722_v12 = vld [vmem:[#allocation2 + $0x250] sm:$0xfe]  ;;  %v5104_v28 = vpack.c.bf16 %v4943_v47, %v4938_v5  ;;  %v1955_v5 = vsel %vm1847_vm0, %v16113_v2, %v1954_v11 }
 0x221   : > { %v12485_v45 = vpop.f32.mrb[84].mxu1  ;;  %v1961_v15 = vrot.slane %v1722_v21, 7  ;;  %v1721_v23 = vld [vmem:[#allocation2 + $0x2c0] sm:$0x80] }
 0x222   : > { %18725 = vst [vmem:[#allocation23_spill] sm:$0xff] %v16492_v39  ;;  %v12486_v7 = vpop.f32.mrb[85].mxu1 }
 0x223   : > { %v16505_v43 = vadd.f32 %v12486_v7, %v12485_v45  ;;  %v12488_v1 = vpop.f32.mrb[86].mxu1  ;;  %v4960_v45 = vrot.slane %v4731_v44, 1  ;;  %v4946_v7 = vrot.slane %v4722_v12, 1  ;;  %v1732_v44 = vld [vmem:[#allocation2 + $0x328] sm:$0x7f]  ;;  %v4730_v12 = vld [vmem:[#allocation2 + $0x2a0] sm:$0xff] }
 0x224   : > { %v12809_v9 = vpop.f32.mrb[48].mxu0  ;;  %v12489_v61 = vpop.f32.mrb[87].mxu1  ;;  %2691 = vmatmul.mubr.bf16.gmra.mrb[164].mxu1 %v2090_v36  ;;  %v4964_v36 = vrot.slane %v4733_v3, 1  ;;  %v4953_v3 = vsel %vm2939_vm1, %v4947_v10, %v4952_v57 }
 0x225   : > { %v12810_v35 = vpop.f32.mrb[49].mxu0  ;;  %v16510_v46 = vadd.f32 %v12489_v61, %v12488_v1  ;;  %2698 = vmatprep.mubr.bf16.mxu1 %v2093_v55  ;;  %v4948_v27 = vsel %vm2939_vm1, %v4946_v7, %v4947_v10  ;;  %v1950_v1 = vsel %vm1847_vm0, %v1948_v22, %v16113_v2  ;;  %v4732_v55 = vld [vmem:[#allocation2 + $0x2b0] sm:$0x1]  ;;  %v4961_v11 = vsel %vm2939_vm1, %v4959_v33, %v4960_v45  ;;  %v4737_v22 = vld [vmem:[#allocation2 + $0x2e8] sm:$0xff] }
 0x226   : > { %v16512_v34 = vadd.f32 %v12810_v35, %v12809_v9  ;;  %v12812_v63 = vpop.f32.mrb[50].mxu0  ;;  %v2092_v9 = vpack.c.bf16 %v1955_v5, %v1950_v1  ;;  %v1963_v61 = vsel %vm1847_vm0, %v1961_v15, %v16130_v41  ;;  %v4965_v35 = vsel %vm2939_vm1, %v4960_v45, %v4964_v36  ;;  %v4735_v45 = vld [vmem:[#allocation2 + $0x2d8] sm:$0xfe] }
 0x227   : > { %v12813_v18 = vpop.f32.mrb[51].mxu0  ;;  %5340 = vmatmul.mubr.bf16.gmra.mrb[128].mxu0 %v5104_v28  ;;  %v2095_v2 = vpack.c.bf16 %v1967_v0, %v1963_v61  ;;  %v4962_v7 = vrot.slane %v4732_v55, 1  ;;  %v1976_v5 = vrot.slane %v1732_v44, 7  ;;  %v5106_v41 = vpack.c.bf16 %v4953_v3, %v4948_v27 }
 0x228   : > { %18726 = vst [vmem:[#allocation24_spill] sm:$0xff] %v16512_v34  ;;  %v16516_v47 = vadd.f32 %v12813_v18, %v12812_v63  ;;  %5347 = vmatprep.mubr.bf16.mxu0 %v5107_v24  ;;  %v1964_v63 = vrot.slane %v1725_v14, 7  ;;  %v1728_v24 = vld [vmem:[#allocation2 + $0x308] sm:$0x80]  ;;  %v4728_v18 = vld [vmem:[#allocation2 + $0x290] sm:$0xfe] }
 0x229   : > { %v12491_v53 = vpop.f32.mrb[88].mxu1  ;;  %v4957_v1 = vrot.slane %v4730_v12, 1  ;;  %v1958_v36 = vrot.slane %v1721_v23, 7  ;;  %v4970_v14 = vrot.slane %v4737_v22, 1  ;;  %v1971_v61 = vrot.slane %v1728_v24, 7 }
 0x22a   : > { %18727 = vst [vmem:[#allocation25_spill] sm:$0xff] %v16516_v47  ;;  %v12492_v21 = vpop.f32.mrb[89].mxu1  ;;  %v4974_v34 = vrot.slane %v4739_v51, 1  ;;  %v1965_v55 = vsel %vm1847_vm0, %v16132_v42, %v1964_v63  ;;  %v4969_v44 = vrot.slane %v4735_v45, 1  ;;  %v1977_v3 = vsel %vm1847_vm0, %v16149_v49, %v1976_v5  ;;  %v1731_v12 = vld [vmem:[#allocation2 + $0x320] sm:$0x7f] }
 0x22b   : > { %v16528_v28 = vadd.f32 %v12492_v21, %v12491_v53  ;;  %v12494_v13 = vpop.f32.mrb[90].mxu1  ;;  %v5109_v21 = vpack.c.bf16 %v4965_v35, %v4961_v11  ;;  %v1960_v35 = vsel %vm1847_vm0, %v1958_v36, %v16132_v42  ;;  %v4963_v51 = vsel %vm2939_vm1, %v4957_v1, %v4962_v7  ;;  %v4743_v45 = vld [vmem:[#allocation2 + $0x328] sm:$0xff] }
 0x22c   : > { %v12815_v57 = vpop.f32.mrb[52].mxu0  ;;  %v12495_v10 = vpop.f32.mrb[91].mxu1  ;;  %2699 = vmatmul.mubr.bf16.gmra.mrb[168].mxu1 %v2092_v9  ;;  %v4956_v9 = vrot.slane %v4728_v18, 1  ;;  %v4971_v22 = vsel %vm2939_vm1, %v4969_v44, %v4970_v14  ;;  %v2094_v63 = vpack.c.bf16 %v1965_v55, %v1960_v35  ;;  %v1973_v24 = vsel %vm1847_vm0, %v1971_v61, %v16149_v49  ;;  %v1727_v18 = vld [vmem:[#allocation2 + $0x300] sm:$0x80] }
 0x22d   : > { %v12816_v33 = vpop.f32.mrb[53].mxu0  ;;  %v16530_v15 = vadd.f32 %v12495_v10, %v12494_v13  ;;  %2706 = vmatprep.mubr.bf16.mxu1 %v2095_v2  ;;  %v4738_v13 = vld [vmem:[#allocation2 + $0x2f0] sm:$0x1]  ;;  %v1738_v2 = vld [vmem:[#allocation2 + $0x368] sm:$0x7f]  ;;  %v4975_v5 = vsel %vm2939_vm1, %v4970_v14, %v4974_v34  ;;  %v2097_v42 = vpack.c.bf16 %v1977_v3, %v1973_v24  ;;  %v1974_v36 = vrot.slane %v1731_v12, 7 }
 0x22e   : > { %v16532_v53 = vadd.f32 %v12816_v33, %v12815_v57  ;;  %v12818_v0 = vpop.f32.mrb[54].mxu0  ;;  %v4958_v23 = vsel %vm2939_vm1, %v4956_v9, %v4957_v1  ;;  %v4736_v57 = vld [vmem:[#allocation2 + $0x2e0] sm:$0xff]  ;;  %v4745_v10 = vld [vmem:[#allocation2 + $0x338] sm:$0x1]  ;;  %v4972_v9 = vrot.slane %v4738_v13, 1  ;;  %v1986_v55 = vrot.slane %v1738_v2, 7 }
 0x22f   : > { %v12819_v47 = vpop.f32.mrb[55].mxu0  ;;  %5348 = vmatmul.mubr.bf16.gmra.mrb[132].mxu0 %v5106_v41  ;;  %v5108_v49 = vpack.c.bf16 %v4963_v51, %v4958_v23  ;;  %v4967_v35 = vrot.slane %v4736_v57, 1  ;;  %v4741_v34 = vld [vmem:[#allocation2 + $0x318] sm:$0xfe]  ;;  %v1968_v14 = vrot.slane %v1727_v18, 7  ;;  %v4980_v12 = vrot.slane %v4743_v45, 1 }
 0x230   : > { %18728 = vst [vmem:[#allocation26_spill] sm:$0xff] %v16532_v53  ;;  %v16536_v27 = vadd.f32 %v12819_v47, %v12818_v0  ;;  %5355 = vmatprep.mubr.bf16.mxu0 %v5109_v21  ;;  %v1734_v0 = vld [vmem:[#allocation2 + $0x348] sm:$0x80]  ;;  %v4734_v21 = vld [vmem:[#allocation2 + $0x2d0] sm:$0xfe]  ;;  %v4984_v53 = vrot.slane %v4745_v10, 1  ;;  %v1975_v13 = vsel %vm1847_vm0, %v16151_v29, %v1974_v36  ;;  %v1987_v51 = vsel %vm1847_vm0, %v16171_v62, %v1986_v55 }
 0x231   : > { %v12497_v11 = vpop.f32.mrb[92].mxu1  ;;  %v1981_v24 = vrot.slane %v1734_v0, 7  ;;  %v4979_v2 = vrot.slane %v4741_v34, 1  ;;  %v1737_v57 = vld [vmem:[#allocation2 + $0x360] sm:$0x7f]  ;;  %v4973_v10 = vsel %vm2939_vm1, %v4967_v35, %v4972_v9 }
 0x232   : > { %18729 = vst [vmem:[#allocation27_spill] sm:$0xff] %v16536_v27  ;;  %v12498_v47 = vpop.f32.mrb[93].mxu1  ;;  %v4985_v55 = vsel %vm2939_vm1, %v4980_v12, %v4984_v53  ;;  %v4751_v34 = vld [vmem:[#allocation2 + $0x378] sm:$0x1] }
 0x233   : > { %v16548_v33 = vadd.f32 %v12498_v47, %v12497_v11  ;;  %v12500_v41 = vpop.f32.mrb[94].mxu1  ;;  %v5111_v47 = vpack.c.bf16 %v4975_v5, %v4971_v22  ;;  %v1970_v5 = vsel %vm1847_vm0, %v1968_v14, %v16151_v29  ;;  %v4981_v45 = vsel %vm2939_vm1, %v4979_v2, %v4980_v12 }
 0x234   : > { %v12821_v7 = vpop.f32.mrb[56].mxu0  ;;  %v12501_v1 = vpop.f32.mrb[95].mxu1  ;;  %2707 = vmatmul.mubr.bf16.gmra.mrb[172].mxu1 %v2094_v63  ;;  %v4966_v63 = vrot.slane %v4734_v21, 1  ;;  %v2096_v36 = vpack.c.bf16 %v1975_v13, %v1970_v5  ;;  %v1983_v0 = vsel %vm1847_vm0, %v1981_v24, %v16171_v62  ;;  %v1740_v21 = vld [vmem:[#allocation2 + $0x388] sm:$0x80]  ;;  %v1984_v14 = vrot.slane %v1737_v57, 7 }
 0x235   : > { %v12822_v44 = vpop.f32.mrb[57].mxu0  ;;  %v16550_v61 = vadd.f32 %v12501_v1, %v12500_v41  ;;  %2714 = vmatprep.mubr.bf16.mxu1 %v2097_v42  ;;  %v1733_v41 = vld [vmem:[#allocation2 + $0x340] sm:$0x80]  ;;  %v1744_v42 = vld [vmem:[#allocation2 + $0x3a8] sm:$0x7f]  ;;  %v2099_v29 = vpack.c.bf16 %v1987_v51, %v1983_v0  ;;  %v4994_v40 = vrot.slane %v4751_v34, 1 }
 0x236   : > { %v16552_v11 = vadd.f32 %v12822_v44, %v12821_v7  ;;  %v12824_v3 = vpop.f32.mrb[58].mxu0  ;;  %v4968_v18 = vsel %vm2939_vm1, %v4966_v63, %v4967_v35  ;;  %v4742_v7 = vld [vmem:[#allocation2 + $0x320] sm:$0xff]  ;;  %v4744_v1 = vld [vmem:[#allocation2 + $0x330] sm:$0x1]  ;;  %v4749_v63 = vld [vmem:[#allocation2 + $0x368] sm:$0xff]  ;;  %v1996_v13 = vrot.slane %v1744_v42, 7 }
 0x237   : > { %v12825_v27 = vpop.f32.mrb[59].mxu0  ;;  %5356 = vmatmul.mubr.bf16.gmra.mrb[136].mxu0 %v5108_v49  ;;  %v16572_v62 = vld [vmem:[#allocation2 + $0x380] sm:$0x80]  ;;  %v5110_v2 = vpack.c.bf16 %v4973_v10, %v4968_v18  ;;  %v4977_v53 = vrot.slane %v4742_v7, 1  ;;  %v1978_v12 = vrot.slane %v1733_v41, 7  ;;  %v4982_v0 = vrot.slane %v4744_v1, 1 }
 0x238   : > { %18730 = vst [vmem:[#allocation28_spill] sm:$0xff] %v16552_v11  ;;  %v16556_v23 = vadd.f32 %v12825_v27, %v12824_v3  ;;  %5363 = vmatprep.mubr.bf16.mxu0 %v5111_v47  ;;  %v16570_v3 = vld [vmem:[#allocation2 + $0x370] sm:$0x1]  ;;  %v4740_v47 = vld [vmem:[#allocation2 + $0x310] sm:$0xfe]  ;;  %v4990_v39 = vrot.slane %v4749_v63, 1  ;;  %v1985_v18 = vsel %vm1847_vm0, %v16173_v17, %v1984_v14  ;;  %v1997_v41 = vsel %vm1847_vm0, %v16205_v30, %v1996_v13 }
 0x239   : > { %v12503_v22 = vpop.f32.mrb[96].mxu1  ;;  %v16576_v51 = vld [vmem:[#allocation2 + $0x3b8] sm:$0x1]  ;;  %v4976_v42 = vrot.slane %v4740_v47, 1  ;;  %v1743_v10 = vld [vmem:[#allocation2 + $0x3a0] sm:$0x7f] }
 0x23a   : > { %18731 = vst [vmem:[#allocation29_spill] sm:$0xff] %v16556_v23  ;;  %v12504_v27 = vpop.f32.mrb[97].mxu1  ;;  %v1991_v23 = vrot.slane %v1740_v21, 7  ;;  %v5004_v1 = vrot.slane %v16576_v51, 1  ;;  %v4748_v34 = vld [vmem:[#allocation2 + $0x360] sm:$0xff]  ;;  %v1988_v14 = vrot.slane %v16572_v62, 7  ;;  %v4995_v51 = vsel %vm2939_vm1, %v4990_v39, %v4994_v40 }
 0x23b   : > { %v16568_v44 = vadd.f32 %v12504_v27, %v12503_v22  ;;  %v12506_v49 = vpop.f32.mrb[98].mxu1  ;;  %v5113_v27 = vpack.c.bf16 %v4985_v55, %v4981_v45  ;;  %v4992_v45 = vrot.slane %v16570_v3, 1  ;;  %v4978_v21 = vsel %vm2939_vm1, %v4976_v42, %v4977_v53  ;;  %v4755_v63 = vld [vmem:[#allocation2 + $0x3a8] sm:$0xff]  ;;  %v4746_v62 = vld [vmem:[#allocation2 + $0x350] sm:$0xfe] }
 0x23c   : > { %v12827_v9 = vpop.f32.mrb[60].mxu0  ;;  %v12507_v35 = vpop.f32.mrb[99].mxu1  ;;  %2715 = vmatmul.mubr.bf16.gmra.mrb[176].mxu1 %v2096_v36  ;;  %v4747_v36 = vld [vmem:[#allocation2 + $0x358] sm:$0xfe]  ;;  %v1993_v3 = vsel %vm1847_vm0, %v1991_v23, %v16205_v30  ;;  %v1994_v13 = vrot.slane %v1743_v10, 7  ;;  %v5000_v10 = vrot.slane %v4755_v63, 1 }
 0x23d   : > { %v12828_v24 = vpop.f32.mrb[61].mxu0  ;;  %v16574_v5 = vadd.f32 %v12507_v35, %v12506_v49  ;;  %2722 = vmatprep.mubr.bf16.mxu1 %v2099_v29  ;;  %v4989_v55 = vrot.slane %v4747_v36, 1  ;;  %v1980_v29 = vsel %vm1847_vm0, %v1978_v12, %v16173_v17  ;;  %v2101_v12 = vpack.c.bf16 %v1997_v41, %v1993_v3 }
 0x23e   : > { %v16578_v57 = vadd.f32 %v12828_v24, %v12827_v9  ;;  %v12830_v22 = vpop.f32.mrb[62].mxu0  ;;  %v4983_v9 = vsel %vm2939_vm1, %v4977_v53, %v4982_v0  ;;  %v2098_v47 = vpack.c.bf16 %v1985_v18, %v1980_v29  ;;  %v1746_v24 = vld [vmem:[#allocation2 + $0x3c8] sm:$0x80]  ;;  %v4987_v53 = vrot.slane %v4748_v34, 1  ;;  %v4753_v0 = vld [vmem:[#allocation2 + $0x398] sm:$0xfe] }
 0x23f   : > { %v12831_v11 = vpop.f32.mrb[63].mxu0  ;;  %5364 = vmatmul.mubr.bf16.gmra.mrb[140].mxu0 %v5110_v2  ;;  %v4991_v2 = vsel %vm2939_vm1, %v4989_v55, %v4990_v39  ;;  %v5112_v30 = vpack.c.bf16 %v4983_v9, %v4978_v21  ;;  %v2001_v55 = vrot.slane %v1746_v24, 7  ;;  %v1995_v41 = vsel %vm1847_vm0, %v16208_v26, %v1994_v13  ;;  %v1749_v24 = vld [vmem:[#allocation2 + $0x3e0] sm:$0x7f] }
 0x240   : > { %18732 = vst [vmem:[#allocation30_spill] sm:$0xff] %v16578_v57  ;;  %v16582_v7 = vadd.f32 %v12831_v11, %v12830_v22  ;;  %5371 = vmatprep.mubr.bf16.mxu0 %v5113_v27  ;;  %v1750_v11 = vld [vmem:[#allocation2 + $0x3e8] sm:$0x7f]  ;;  %v5115_v39 = vpack.c.bf16 %v4995_v51, %v4991_v2  ;;  %v4999_v34 = vrot.slane %v4753_v0, 1  ;;  %v1990_v9 = vsel %vm1847_vm0, %v1988_v14, %v16208_v26  ;;  %v14972_v0 = vld [vmem:[#allocation2] sm:$0xff] }
 0x241   : > { %v12509_v49 = vpop.f32.mrb[100].mxu1  ;;  %v2006_v42 = vrot.slane %v1750_v11, 7  ;;  %v2752_v11 = vld [vmem:[#allocation2 + $0x38] sm:$0x1]  ;;  %v4993_v2 = vsel %vm2939_vm1, %v4987_v53, %v4992_v45  ;;  %v5005_v51 = vsel %vm2939_vm1, %v5000_v10, %v5004_v1 }
 0x242   : > { %18733 = vst [vmem:[#allocation31_spill] sm:$0xff] %v16582_v7  ;;  %v12510_v35 = vpop.f32.mrb[101].mxu1  ;;  %v5001_v13 = vsel %vm2939_vm1, %v4999_v34, %v5000_v10  ;;  %v2948_v26 = vrot.slane %v2752_v11, 1 }
 0x243   : > { %v16597_v22 = vadd.f32 %v12510_v35, %v12509_v49  ;;  %v12512_v17 = vpop.f32.mrb[102].mxu1  ;;  %v4986_v49 = vrot.slane %v4746_v62, 1  ;;  %v2007_v63 = vsel %vm1847_vm0, %v16246_v60, %v2006_v42  ;;  %v2003_v62 = vsel %vm1847_vm0, %v2001_v55, %v16246_v60 }
 0x244   : > { %v12833_v27 = vpop.f32.mrb[64].mxu0  ;;  %v12513_v36 = vpop.f32.mrb[103].mxu1  ;;  %2723 = vmatmul.mubr.bf16.gmra.mrb[180].mxu1 %v2098_v47  ;;  %v2748_v47 = vld [vmem:[#allocation2 + $0x18] sm:$0xfe]  ;;  %v2103_v14 = vpack.c.bf16 %v2007_v63, %v2003_v62  ;;  %v2004_v42 = vrot.slane %v1749_v24, 7  ;;  %v5117_v10 = vpack.c.bf16 %v5005_v51, %v5001_v13 }
 0x245   : > { %v12834_v18 = vpop.f32.mrb[65].mxu0  ;;  %v16599_v23 = vadd.f32 %v12513_v36, %v12512_v17  ;;  %2730 = vmatprep.mubr.bf16.mxu1 %v2101_v12  ;;  %v4988_v21 = vsel %vm2939_vm1, %v4986_v49, %v4987_v53  ;;  %v2100_v17 = vpack.c.bf16 %v1995_v41, %v1990_v9  ;;  %v4756_v12 = vld [vmem:[#allocation2 + $0x3b0] sm:$0x1]  ;;  %v2943_v36 = vrot.slane %v2748_v47, 1  ;;  %v4761_v53 = vld [vmem:[#allocation2 + $0x3e8] sm:$0xff] }
 0x246   : > { %v16601_v29 = vadd.f32 %v12834_v18, %v12833_v27  ;;  %v12836_v40 = vpop.f32.mrb[66].mxu0  ;;  %v1745_v27 = vld [vmem:[#allocation2 + $0x3c0] sm:$0x80]  ;;  %v2944_v18 = vrot.slane %v14972_v0, 1  ;;  %v5002_v45 = vrot.slane %v4756_v12, 1  ;;  %v5114_v1 = vpack.c.bf16 %v4993_v2, %v4988_v21 }
 0x247   : > { %v12837_v35 = vpop.f32.mrb[67].mxu0  ;;  %5372 = vmatmul.mubr.bf16.gmra.mrb[144].mxu0 %v5112_v30  ;;  %v4754_v30 = vld [vmem:[#allocation2 + $0x3a0] sm:$0xff]  ;;  %v4752_v41 = vld [vmem:[#allocation2 + $0x390] sm:$0xfe]  ;;  %v1998_v60 = vrot.slane %v1745_v27, 7  ;;  %v5010_v12 = vrot.slane %v4761_v53, 1  ;;  %v2005_v21 = vsel %vm1847_vm0, %v16249_v52, %v2004_v42 }
 0x248   : > { %18734 = vst [vmem:[#allocation32_spill] sm:$0xff] %v16601_v29  ;;  %v16605_v3 = vadd.f32 %v12837_v35, %v12836_v40  ;;  %5379 = vmatprep.mubr.bf16.mxu0 %v5115_v39  ;;  %v4763_v39 = vld [vmem:[#allocation2 + $0x3f8] sm:$0x1]  ;;  %v4759_v35 = vld [vmem:[#allocation2 + $0x3d8] sm:$0xfe]  ;;  %v4997_v47 = vrot.slane %v4754_v30, 1  ;;  %v2945_v11 = vsel %vm2939_vm1, %v2943_v36, %v2944_v18  ;;  %v2949_v9 = vsel %vm2939_vm1, %v2944_v18, %v2948_v26 }
 0x249   : > { %v2747_v63 = vld [vmem:[#allocation2 + $0x10] sm:$0xfe]  ;;  %v2751_v24 = vld [vmem:[#allocation2 + $0x30] sm:$0x1]  ;;  %v5014_v62 = vrot.slane %v4763_v39, 1  ;;  %v4996_v13 = vrot.slane %v4752_v41, 1  ;;  %v2000_v27 = vsel %vm1847_vm0, %v1998_v60, %v16249_v52  ;;  %v3165_v36 = vpack.c.bf16 %v2949_v9, %v2945_v11 }
 0x24a   : > { %18735 = vst [vmem:[#allocation33_spill] sm:$0xff] %v16605_v3  ;;  %v5009_v51 = vrot.slane %v4759_v35, 1  ;;  %v2940_v0 = vrot.slane %v2747_v63, 1  ;;  %v2946_v26 = vrot.slane %v2751_v24, 1  ;;  %v2758_v30 = vld [vmem:[#allocation2 + $0x78] sm:$0x1]  ;;  %v5003_v53 = vsel %vm2939_vm1, %v4997_v47, %v5002_v45 }
 0x24b   : > { %v2102_v39 = vpack.c.bf16 %v2005_v21, %v2000_v27  ;;  %v2754_v41 = vld [vmem:[#allocation2 + $0x58] sm:$0xfe]  ;;  %v4767_v35 = vld [vmem:[#allocation2 + $0x428] sm:$0xff]  ;;  %v4769_v52 = vld [vmem:[#allocation2 + $0x438] sm:$0x1] }
 0x24c   : > { %v12839_v40 = vpop.f32.mrb[68].mxu0  ;;  %2731 = vmatmul.mubr.bf16.gmra.mrb[184].mxu1 %v2100_v17  ;;  %v5011_v42 = vsel %vm2939_vm1, %v5009_v51, %v5010_v12  ;;  %v4758_v9 = vld [vmem:[#allocation2 + $0x3d0] sm:$0xfe]  ;;  %v2942_v63 = vsel %vm2939_vm1, %v2940_v0, %v2944_v18  ;;  %v2947_v45 = vsel %vm2939_vm1, %v2944_v18, %v2946_v26  ;;  %v4765_v21 = vld [vmem:[#allocation2 + $0x418] sm:$0xfe]  ;;  %v14846_v26 = vld [vmem:[%s18685_s5 + $0x200] sm:$0xff]  }
 0x24d   : > { %v12840_v49 = vpop.f32.mrb[69].mxu0  ;;  %2738 = vmatprep.mubr.bf16.mxu1 %v2103_v14  ;;  %v2756_v14 = vld [vmem:[#allocation2 + $0x68] sm:$0xff]  ;;  %v2757_v51 = vld [vmem:[#allocation2 + $0x70] sm:$0x1]  ;;  %v5006_v27 = vrot.slane %v4758_v9, 1  ;;  %v5019_v0 = vrot.slane %v4765_v21, 1 }
 0x24e   : > { %v16617_v55 = vadd.f32 %v12840_v49, %v12839_v40  ;;  %v12842_v34 = vpop.f32.mrb[70].mxu0  ;;  %v4998_v40 = vsel %vm2939_vm1, %v4996_v13, %v4997_v47  ;;  %v5015_v49 = vsel %vm2939_vm1, %v5010_v12, %v5014_v62  ;;  %v2954_v60 = vrot.slane %v2756_v14, 1  ;;  %v2764_v18 = vld [vmem:[#allocation2 + $0xb8] sm:$0x1]  ;;  %v2760_v9 = vld [vmem:[#allocation2 + $0x98] sm:$0xfe] }
 0x24f   : > { %v12843_v17 = vpop.f32.mrb[71].mxu0  ;;  %5380 = vmatmul.mubr.bf16.gmra.mrb[148].mxu0 %v5114_v1  ;;  %v4760_v1 = vld [vmem:[#allocation2 + $0x3e0] sm:$0xff]  ;;  %v5116_v11 = vpack.c.bf16 %v5003_v53, %v4998_v40  ;;  %v5119_v47 = vpack.c.bf16 %v5015_v49, %v5011_v42  ;;  %v2953_v12 = vrot.slane %v2754_v41, 1  ;;  %v5020_v62 = vrot.slane %v4767_v35, 1  ;;  %v16635_v53 = vld [vmem:[#allocation2 + $0xa8] sm:$0xff] }
 0x250   : > { %18736 = vst [vmem:[#allocation34_spill] sm:$0xff] %v16617_v55  ;;  %v16623_v2 = vadd.f32 %v12843_v17, %v12842_v34  ;;  %5387 = vmatprep.mubr.bf16.mxu0 %v5117_v10  ;;  %v4762_v10 = vld [vmem:[#allocation2 + $0x3f0] sm:$0x1]  ;;  %v2958_v34 = vrot.slane %v2758_v30, 1  ;;  %v5007_v24 = vrot.slane %v4760_v1, 1  ;;  %v5024_v13 = vrot.slane %v4769_v52, 1 }
 0x251   : > { %v5012_v17 = vrot.slane %v4762_v10, 1  ;;  %v3164_v14 = vpack.c.bf16 %v2947_v45, %v2942_v63  ;;  %v2955_v30 = vsel %vm2939_vm1, %v2953_v12, %v2954_v60  ;;  %v2755_v40 = vld [vmem:[#allocation2 + $0x60] sm:$0xff]  ;;  %v2753_v49 = vld [vmem:[#allocation2 + $0x50] sm:$0xfe]  ;;  %v2956_v1 = vrot.slane %v2757_v51, 1  ;;  %v14847_v10 = vld [vmem:[%s18685_s5 + $0x248] sm:$0xff]  }
 0x252   : > { %18737 = vst [vmem:[#allocation35_spill] sm:$0xff] %v16623_v2  ;;  %v5021_v41 = vsel %vm2939_vm1, %v5019_v0, %v5020_v62  ;;  %v5025_v35 = vsel %vm2939_vm1, %v5020_v62, %v5024_v13  ;;  %v2964_v63 = vrot.slane %v16635_v53, 1  ;;  %v2968_v45 = vrot.slane %v2764_v18, 1  ;;  %v14848_v21 = vld [vmem:[%s18685_s5 + $0x208] sm:$0xff]   ;;  %v16658_v18 = vld [vmem:[#allocation2 + $0xa0] sm:$0xff] }
 0x253   : > { %v5013_v42 = vsel %vm2939_vm1, %v5007_v24, %v5012_v17  ;;  %v2950_v17 = vrot.slane %v2753_v49, 1  ;;  %v5121_v12 = vpack.c.bf16 %v5025_v35, %v5021_v41  ;;  %v2963_v51 = vrot.slane %v2760_v9, 1  ;;  %v14850_v49 = vld [vmem:[%s18685_s5 + $0x210] sm:$0xff]   ;;  %v2766_v9 = vld [vmem:[#allocation2 + $0xd8] sm:$0xfe] }
 0x254   : > { %2739 = vmatmul.mubr.bf16.gmra.mrb[188].mxu1 %v2102_v39  ;;  %v5008_v39 = vsel %vm2939_vm1, %v5006_v27, %v5007_v24  ;;  %v4764_v24 = vld [vmem:[#allocation2 + $0x410] sm:$0xfe]  ;;  %v2969_v0 = vsel %vm2939_vm1, %v2964_v63, %v2968_v45 }
 0x255   : > { %3357 = vmatprep.mubr.bf16.mxu1 %v3165_v36  ;;  %v2959_v36 = vsel %vm2939_vm1, %v2954_v60, %v2958_v34  ;;  %v4766_v60 = vld [vmem:[#allocation2 + $0x420] sm:$0xff]  ;;  %v4768_v34 = vld [vmem:[#allocation2 + $0x430] sm:$0x1]  ;;  %v2759_v35 = vld [vmem:[#allocation2 + $0x90] sm:$0xfe] }
 0x256   : > { %v3167_v52 = vpack.c.bf16 %v2959_v36, %v2955_v30  ;;  %v5017_v62 = vrot.slane %v4766_v60, 1  ;;  %v5022_v13 = vrot.slane %v4768_v34, 1  ;;  %v14849_v27 = vld [vmem:[%s18685_s5 + $0x250] sm:$0xff]   ;;  %v5016_v36 = vrot.slane %v4764_v24, 1  ;;  %v5448_v24 = vld [vmem:[#allocation2 + $0x98] sm:$0xff] }
 0x257   : > { %5388 = vmatmul.mubr.bf16.gmra.mrb[152].mxu0 %v5116_v11  ;;  %v2951_v11 = vrot.slane %v2755_v40, 1  ;;  %v2965_v40 = vsel %vm2939_vm1, %v2963_v51, %v2964_v63  ;;  %v2961_v34 = vrot.slane %v16658_v18, 1 }
 0x258   : > { %5395 = vmatprep.mubr.bf16.mxu0 %v5119_v47  ;;  %v5118_v47 = vpack.c.bf16 %v5013_v42, %v5008_v39  ;;  %v16660_v39 = vld [vmem:[#allocation2 + $0xe8] sm:$0xff]  ;;  %v2770_v42 = vld [vmem:[#allocation2 + $0xf8] sm:$0x1]  ;;  %v3169_v60 = vpack.c.bf16 %v2969_v0, %v2965_v40  ;;  %v6217_v40 = vld [vmem:[#allocation2 + $0xe0] sm:$0xff] }
 0x259   : > { %v2957_v30 = vsel %vm2939_vm1, %v2951_v11, %v2956_v1  ;;  %v5023_v1 = vsel %vm2939_vm1, %v5017_v62, %v5022_v13  ;;  %v2974_v63 = vrot.slane %v16660_v39, 1  ;;  %v2978_v45 = vrot.slane %v2770_v42, 1  ;;  %v14853_v13 = vld [vmem:[%s18685_s5 + $0x260] sm:$0xff]   ;;  %v16683_v0 = vld [vmem:[#allocation2 + $0x128] sm:$0xff] }
 0x25c   : > { %3358 = vmatmul.mubr.bf16.vlgmr.msra.gmra.mrb[192].mxu1 %v3164_v14  ;;  %v2952_v14 = vsel %vm2939_vm1, %v2950_v17, %v2951_v11  ;;  %v2960_v17 = vrot.slane %v2759_v35, 1 }
 0x25d   : > { %3365 = vmatprep.mubr.bf16.mxu1 %v3167_v52  ;;  %12888 = vmatpush3.bf16.msra.mxu1 %v14846_v26  ;;  %v2763_v26 = vld [vmem:[#allocation2 + $0xb0] sm:$0x1]  ;;  %v3166_v41 = vpack.c.bf16 %v2957_v30, %v2952_v14  ;;  %v14851_v52 = vld [vmem:[%s18685_s5 + $0x258] sm:$0xff]  }
 0x25e   : > { %12889 = vmatprep.subr.bf16.mxu1 %v14847_v10  ;;  %v5018_v10 = vsel %vm2939_vm1, %v5016_v36, %v5017_v62  ;;  %v2966_v11 = vrot.slane %v2763_v26, 1  ;;  %v2973_v62 = vrot.slane %v2766_v9, 1  ;;  %v2962_v51 = vsel %vm2939_vm1, %v2960_v17, %v2961_v34  ;;  %v2769_v14 = vld [vmem:[#allocation2 + $0xf0] sm:$0x1]  ;;  %v14854_v26 = vld [vmem:[%s18685_s5 + $0x220] sm:$0xff]  }
 0x25f   : > { %5396 = vmatmul.mubr.bf16.gmra.mrb[156].mxu0 %v5118_v47  ;;  %v5120_v47 = vpack.c.bf16 %v5023_v1, %v5018_v10  ;;  %v2979_v36 = vsel %vm2939_vm1, %v2974_v63, %v2978_v45  ;;  %v2976_v10 = vrot.slane %v2769_v14, 1  ;;  %v2772_v1 = vld [vmem:[#allocation2 + $0x118] sm:$0xfe]  ;;  %v6222_v14 = vld [vmem:[#allocation2 + $0x168] sm:$0xff] }
 0x260   : > { %5403 = vmatprep.mubr.bf16.mxu0 %v5121_v12  ;;  %v6248_v12 = vpack.c.bf16 %v16635_v53, %v5448_v24  ;;  %v2975_v30 = vsel %vm2939_vm1, %v2973_v62, %v2974_v63  ;;  %v2776_v53 = vld [vmem:[#allocation2 + $0x138] sm:$0x1]  ;;  %v14856_v24 = vld [vmem:[%s18685_s5 + $0x228] sm:$0xff]  }
 0x261   : > { %12890 = vmatpush3.bf16.msra.mxu1 %v14848_v21  ;;  %v14852_v21 = vld [vmem:[%s18685_s5 + $0x218] sm:$0xff]   ;;  %v3171_v35 = vpack.c.bf16 %v2979_v36, %v2975_v30 }
 0x262   : > { %12891 = vmatprep.subr.bf16.mxu1 %v14849_v27  ;;  %v2967_v27 = vsel %vm2939_vm1, %v2961_v34, %v2966_v11  ;;  %v2988_v34 = vrot.slane %v2776_v53, 1  ;;  %v5447_v11 = vld [vmem:[#allocation2 + $0x90] sm:$0xff]  ;;  %v5454_v63 = vld [vmem:[#allocation2 + $0xd8] sm:$0xff] }
 0x263   : > { %v3168_v42 = vpack.c.bf16 %v2967_v27, %v2962_v51  ;;  %v6247_v9 = vpack.c.bf16 %v16658_v18, %v5447_v11  ;;  %v6250_v17 = vpack.c.bf16 %v16660_v39, %v5454_v63  ;;  %v2775_v51 = vld [vmem:[#allocation2 + $0x130] sm:$0x1]  ;;  %v6219_v27 = vld [vmem:[#allocation2 + $0x120] sm:$0xff]  ;;  %v2782_v30 = vld [vmem:[#allocation2 + $0x178] sm:$0x1] }
 0x264   : > { %3366 = vmatmul.mubr.bf16.gmra.mrb[196].mxu1 %v3166_v41  ;;  %v14855_v41 = vld [vmem:[%s18685_s5 + $0x268] sm:$0xff]   ;;  %v14858_v39 = vld [vmem:[%s18685_s5 + $0x230] sm:$0xff]   ;;  %v14860_v63 = vld [vmem:[%s18685_s5 + $0x238] sm:$0xff]  }
 0x265   : > { %3373 = vmatprep.mubr.bf16.mxu1 %v3169_v60  ;;  %12892 = vmatpush3.bf16.msra.mxu1 %v14850_v49  ;;  %v2765_v49 = vld [vmem:[#allocation2 + $0xd0] sm:$0xfe]  ;;  %v2984_v60 = vrot.slane %v16683_v0, 1 }
 0x266   : > { %12893 = vmatprep.subr.bf16.mxu1 %v14851_v52  ;;  %v2971_v52 = vrot.slane %v6217_v40, 1  ;;  %v2970_v45 = vrot.slane %v2765_v49, 1  ;;  %v14859_v49 = vld [vmem:[%s18685_s5 + $0x278] sm:$0xff]  }
 0x267   : > { %5404 = vmatmul.mubr.bf16.gmra.mrb[160].mxu0 %v5120_v47  ;;  %v2983_v47 = vrot.slane %v2772_v1, 1  ;;  %v2986_v1 = vrot.slane %v2775_v51, 1 }
 0x268   : > { %6440 = vmatprep.mubr.bf16.mxu0 %v6248_v12  ;;  %v2972_v12 = vsel %vm2939_vm1, %v2970_v45, %v2971_v52  ;;  %v2977_v18 = vsel %vm2939_vm1, %v2971_v52, %v2976_v10  ;;  %v2981_v10 = vrot.slane %v6219_v27, 1  ;;  %v5453_v52 = vld [vmem:[#allocation2 + $0xd0] sm:$0xff] }
 0x269   : > { %12894 = vmatpush3.bf16.msra.mxu1 %v14852_v21  ;;  %v14857_v21 = vld [vmem:[%s18685_s5 + $0x270] sm:$0xff]   ;;  %v2985_v62 = vsel %vm2939_vm1, %v2983_v47, %v2984_v60  ;;  %v3170_v36 = vpack.c.bf16 %v2977_v18, %v2972_v12  ;;  %v6224_v12 = vld [vmem:[#allocation2 + $0x1a8] sm:$0xff] }
 0x26a   : > { %12895 = vmatprep.subr.bf16.mxu1 %v14853_v13  ;;  %v2989_v13 = vsel %vm2939_vm1, %v2984_v60, %v2988_v34  ;;  %v6249_v60 = vpack.c.bf16 %v6217_v40, %v5453_v52  ;;  %v5460_v34 = vld [vmem:[#allocation2 + $0x118] sm:$0xff]  ;;  %v2781_v18 = vld [vmem:[#allocation2 + $0x170] sm:$0x1] }
 0x26b   : > { %v3173_v53 = vpack.c.bf16 %v2989_v13, %v2985_v62  ;;  %v6252_v45 = vpack.c.bf16 %v16683_v0, %v5460_v34  ;;  %v2788_v62 = vld [vmem:[#allocation2 + $0x1b8] sm:$0x1]  ;;  %v2784_v0 = vld [vmem:[#allocation2 + $0x198] sm:$0xfe] }
 0x26c   : > { %3374 = vmatmul.mubr.bf16.gmra.mrb[200].mxu1 %v3168_v42  ;;  %v2778_v42 = vld [vmem:[#allocation2 + $0x158] sm:$0xfe] }
 0x26d   : > { %3381 = vmatprep.mubr.bf16.mxu1 %v3171_v35  ;;  %12896 = vmatpush3.bf16.msra.mxu1 %v14854_v26  ;;  %v2771_v26 = vld [vmem:[#allocation2 + $0x110] sm:$0xfe]  ;;  %v2998_v35 = vrot.slane %v2782_v30, 1 }
 0x26e   : > { %12897 = vmatprep.subr.bf16.mxu1 %v14855_v41  ;;  %v2994_v41 = vrot.slane %v6222_v14, 1  ;;  %v2980_v11 = vrot.slane %v2771_v26, 1  ;;  %v2777_v30 = vld [vmem:[#allocation2 + $0x150] sm:$0xfe]  ;;  %v3008_v26 = vrot.slane %v2788_v62, 1 }
 0x26f   : > { %6441 = vmatmul.mubr.bf16.vlgmr.msra.gmra.mrb[164].mxu0 %v6247_v9  ;;  %v2993_v9 = vrot.slane %v2778_v42, 1  ;;  %v5459_v42 = vld [vmem:[#allocation2 + $0x110] sm:$0xff] }
 0x270   : > { %6448 = vmatprep.mubr.bf16.mxu0 %v6250_v17  ;;  %v2982_v47 = vsel %vm2939_vm1, %v2980_v11, %v2981_v10  ;;  %v2999_v40 = vsel %vm2939_vm1, %v2994_v41, %v2998_v35 }
 0x271   : > { %12898 = vmatpush3.bf16.msra.mxu1 %v14856_v24  ;;  %v2987_v24 = vsel %vm2939_vm1, %v2981_v10, %v2986_v1  ;;  %v2995_v17 = vsel %vm2939_vm1, %v2993_v9, %v2994_v41  ;;  %v5466_v10 = vld [vmem:[#allocation2 + $0x158] sm:$0xff]  ;;  %v2990_v1 = vrot.slane %v2777_v30, 1  ;;  %v3003_v41 = vrot.slane %v2784_v0, 1 }
 0x272   : > { %12899 = vmatprep.subr.bf16.mxu1 %v14857_v21  ;;  %v6221_v21 = vld [vmem:[#allocation2 + $0x160] sm:$0xff]  ;;  %v3172_v13 = vpack.c.bf16 %v2987_v24, %v2982_v47  ;;  %v3175_v51 = vpack.c.bf16 %v2999_v40, %v2995_v17  ;;  %v6254_v35 = vpack.c.bf16 %v6222_v14, %v5466_v10  ;;  %v2787_v47 = vld [vmem:[#allocation2 + $0x1b0] sm:$0x1]  ;;  %v2794_v24 = vld [vmem:[#allocation2 + $0x1f8] sm:$0x1] }
 0x273   : > { %v2790_v30 = vld [vmem:[#allocation2 + $0x1d8] sm:$0xfe] }
 0x274   : > { %3382 = vmatmul.mubr.bf16.gmra.mrb[204].mxu1 %v3170_v36  ;;  %v2996_v36 = vrot.slane %v2781_v18, 1 }
 0x275   : > { %3389 = vmatprep.mubr.bf16.mxu1 %v3173_v53  ;;  %12900 = vmatpush3.bf16.msra.mxu1 %v14858_v39  ;;  %v2991_v39 = vrot.slane %v6221_v21, 1  ;;  %v3004_v53 = vrot.slane %v6224_v12, 1 }
 0x276   : > { %12901 = vmatprep.subr.bf16.mxu1 %v14859_v49  ;;  %v6251_v49 = vpack.c.bf16 %v6219_v27, %v5459_v42  ;;  %v16724_v27 = vld [vmem:[#allocation2 + $0x1e8] sm:$0xff] }
 0x277   : > { %6449 = vmatmul.mubr.bf16.gmra.mrb[168].mxu0 %v6249_v60  ;;  %v2992_v60 = vsel %vm2939_vm1, %v2990_v1, %v2991_v39  ;;  %v2997_v34 = vsel %vm2939_vm1, %v2991_v39, %v2996_v36  ;;  %v3005_v11 = vsel %vm2939_vm1, %v3003_v41, %v3004_v53  ;;  %v3009_v9 = vsel %vm2939_vm1, %v3004_v53, %v3008_v26  ;;  %v5465_v26 = vld [vmem:[#allocation2 + $0x150] sm:$0xff] }
 0x278   : > { %6456 = vmatprep.mubr.bf16.mxu0 %v6252_v45  ;;  %v3174_v18 = vpack.c.bf16 %v2997_v34, %v2992_v60  ;;  %v3177_v62 = vpack.c.bf16 %v3009_v9, %v3005_v11  ;;  %v3006_v39 = vrot.slane %v2787_v47, 1  ;;  %v3014_v36 = vrot.slane %v16724_v27, 1  ;;  %v16736_v9 = vld [vmem:[#allocation2 + $0x1e0] sm:$0xff]  ;;  %v2793_v47 = vld [vmem:[#allocation2 + $0x1f0] sm:$0x1] }
 0x279   : > { %12902 = vmatpush3.bf16.msra.mxu1 %v14860_v63  ;;  %v16722_v63 = vld [vmem:[#allocation2 + $0x1a0] sm:$0xff]  ;;  %v3018_v53 = vrot.slane %v2794_v24, 1  ;;  %v6253_v42 = vpack.c.bf16 %v6221_v21, %v5465_v26  ;;  %v3013_v1 = vrot.slane %v2790_v30, 1  ;;  %v16738_v21 = vld [vmem:[#allocation2 + $0x228] sm:$0xff]  ;;  %v2800_v24 = vld [vmem:[#allocation2 + $0x238] sm:$0x1] }
 0x27a   : > { %v3011_v30 = vrot.slane %v16736_v9, 1  ;;  %v3016_v26 = vrot.slane %v2793_v47, 1 }
 0x27b   : > { %v3015_v34 = vsel %vm2939_vm1, %v3013_v1, %v3014_v36  ;;  %v3019_v11 = vsel %vm2939_vm1, %v3014_v36, %v3018_v53 }
 0x27c   : > { %3390 = vmatmul.mubr.bf16.gmra.mrb[208].mxu1 %v3172_v13  ;;  %v2783_v13 = vld [vmem:[#allocation2 + $0x190] sm:$0xfe] }
 0x27d   : > { %3397 = vmatprep.mubr.bf16.mxu1 %v3175_v51  ;;  %v3001_v51 = vrot.slane %v16722_v63, 1  ;;  %v3000_v10 = vrot.slane %v2783_v13, 1 }
 0x27f   : > { %6457 = vmatmul.mubr.bf16.gmra.mrb[172].mxu0 %v6251_v49  ;;  %v12515_v52 = vpop.f32.mrb[104].mxu1  ;;  %v5472_v49 = vld [vmem:[#allocation2 + $0x198] sm:$0xff]  ;;  %v3007_v60 = vsel %vm2939_vm1, %v3001_v51, %v3006_v39 }
 0x280   : > { %6464 = vmatprep.mubr.bf16.mxu0 %v6254_v35  ;;  %v12516_v45 = vpop.f32.mrb[105].mxu1  ;;  %v6256_v41 = vpack.c.bf16 %v6224_v12, %v5472_v49  ;;  %v2796_v39 = vld [vmem:[#allocation2 + $0x218] sm:$0xfe]  ;;  %v3028_v49 = vrot.slane %v2800_v24, 1 }
 0x281   : > { %v16726_v17 = vadd.f32 %v12516_v45, %v12515_v52  ;;  %v12518_v14 = vpop.f32.mrb[106].mxu1  ;;  %v3002_v52 = vsel %vm2939_vm1, %v3000_v10, %v3001_v51  ;;  %v3179_v51 = vpack.c.bf16 %v3019_v11, %v3015_v34  ;;  %v3023_v34 = vrot.slane %v2796_v39, 1  ;;  %v2806_v39 = vld [vmem:[#allocation2 + $0x278] sm:$0x1] }
 0x282   : > { %v12519_v40 = vpop.f32.mrb[107].mxu1  ;;  %v3176_v13 = vpack.c.bf16 %v3007_v60, %v3002_v52  ;;  %v5478_v52 = vld [vmem:[#allocation2 + $0x1d8] sm:$0xff] }
 0x283   : > { %v16729_v0 = vadd.f32 %v12519_v40, %v12518_v14  ;;  %v2789_v40 = vld [vmem:[#allocation2 + $0x1d0] sm:$0xfe] }
 0x284   : > { %3398 = vmatmul.mubr.bf16.gmra.mrb[212].mxu1 %v3174_v18  ;;  %v3010_v60 = vrot.slane %v2789_v40, 1  ;;  %v16758_v40 = vld [vmem:[#allocation2 + $0x268] sm:$0xff] }
 0x285   : > { %3405 = vmatprep.mubr.bf16.mxu1 %v3177_v62 }
 0x286   : > { %v3012_v24 = vsel %vm2939_vm1, %v3010_v60, %v3011_v30  ;;  %v2802_v60 = vld [vmem:[#allocation2 + $0x258] sm:$0xfe] }
 0x287   : > { %6465 = vmatmul.mubr.bf16.gmra.mrb[176].mxu0 %v6253_v42  ;;  %v12521_v35 = vpop.f32.mrb[108].mxu1  ;;  %v3024_v42 = vrot.slane %v16738_v21, 1 }
 0x288   : > { %6472 = vmatprep.mubr.bf16.mxu0 %v6256_v41  ;;  %v12522_v45 = vpop.f32.mrb[109].mxu1  ;;  %v5471_v41 = vld [vmem:[#allocation2 + $0x190] sm:$0xff] }
 0x289   : > { %v16740_v14 = vadd.f32 %v12522_v45, %v12521_v35  ;;  %v12524_v12 = vpop.f32.mrb[110].mxu1  ;;  %v6255_v45 = vpack.c.bf16 %v16722_v63, %v5471_v41  ;;  %v2795_v41 = vld [vmem:[#allocation2 + $0x210] sm:$0xfe] }
 0x28a   : > { %v12845_v18 = vpop.f32.mrb[72].mxu0  ;;  %v12525_v62 = vpop.f32.mrb[111].mxu1 }
 0x28b   : > { %v12846_v36 = vpop.f32.mrb[73].mxu0  ;;  %v16743_v53 = vadd.f32 %v12525_v62, %v12524_v12  ;;  %v6258_v12 = vpack.c.bf16 %v16724_v27, %v5478_v52  ;;  %v3025_v62 = vsel %vm2939_vm1, %v3023_v34, %v3024_v42 }
 0x28c   : > { %v16746_v10 = vadd.f32 %v12846_v36, %v12845_v18  ;;  %v12848_v1 = vpop.f32.mrb[74].mxu0  ;;  %3406 = vmatmul.mubr.bf16.gmra.mrb[216].mxu1 %v3176_v13  ;;  %v3017_v18 = vsel %vm2939_vm1, %v3011_v30, %v3016_v26  ;;  %v3029_v13 = vsel %vm2939_vm1, %v3024_v42, %v3028_v49  ;;  %v16756_v36 = vld [vmem:[#allocation2 + $0x220] sm:$0xff] }
 0x28d   : > { %v12849_v35 = vpop.f32.mrb[75].mxu0  ;;  %3413 = vmatprep.mubr.bf16.mxu1 %v3179_v51  ;;  %v2799_v51 = vld [vmem:[#allocation2 + $0x230] sm:$0x1]  ;;  %v3178_v52 = vpack.c.bf16 %v3017_v18, %v3012_v24  ;;  %v3181_v30 = vpack.c.bf16 %v3029_v13, %v3025_v62  ;;  %v3021_v26 = vrot.slane %v16756_v36, 1  ;;  %v5484_v24 = vld [vmem:[#allocation2 + $0x218] sm:$0xff]  ;;  %v3020_v18 = vrot.slane %v2795_v41, 1 }
 0x28e   : > { %18738 = vst [vmem:[#allocation36_spill] sm:$0xff] %v16746_v10  ;;  %v16749_v11 = vadd.f32 %v12849_v35, %v12848_v1  ;;  %v3026_v34 = vrot.slane %v2799_v51, 1  ;;  %v3033_v62 = vrot.slane %v2802_v60, 1  ;;  %v16778_v41 = vld [vmem:[#allocation2 + $0x2a8] sm:$0xff] }
 0x28f   : > { %6473 = vmatmul.mubr.bf16.gmra.mrb[180].mxu0 %v6255_v45  ;;  %v12527_v47 = vpop.f32.mrb[112].mxu1 }
 0x290   : > { %18739 = vst [vmem:[#allocation37_spill] sm:$0xff] %v16749_v11  ;;  %6480 = vmatprep.mubr.bf16.mxu0 %v6258_v12  ;;  %v12528_v63 = vpop.f32.mrb[113].mxu1  ;;  %v3034_v12 = vrot.slane %v16758_v40, 1  ;;  %v3038_v11 = vrot.slane %v2806_v39, 1  ;;  %v3022_v39 = vsel %vm2939_vm1, %v3020_v18, %v3021_v26  ;;  %v2808_v18 = vld [vmem:[#allocation2 + $0x298] sm:$0xfe] }
 0x291   : > { %v16760_v1 = vadd.f32 %v12528_v63, %v12527_v47  ;;  %v12530_v27 = vpop.f32.mrb[114].mxu1  ;;  %v5477_v63 = vld [vmem:[#allocation2 + $0x1d0] sm:$0xff] }
 0x292   : > { %v12851_v35 = vpop.f32.mrb[76].mxu0  ;;  %v12531_v45 = vpop.f32.mrb[115].mxu1  ;;  %v6257_v55 = vpack.c.bf16 %v16736_v9, %v5477_v63 }
 0x293   : > { %v12852_v42 = vpop.f32.mrb[77].mxu0  ;;  %v16763_v49 = vadd.f32 %v12531_v45, %v12530_v27  ;;  %v6260_v27 = vpack.c.bf16 %v16738_v21, %v5484_v24  ;;  %v3035_v45 = vsel %vm2939_vm1, %v3033_v62, %v3034_v12  ;;  %v2801_v21 = vld [vmem:[#allocation2 + $0x250] sm:$0xfe] }
 0x294   : > { %v16766_v10 = vadd.f32 %v12852_v42, %v12851_v35  ;;  %v12854_v47 = vpop.f32.mrb[78].mxu0  ;;  %3414 = vmatmul.mubr.bf16.gmra.mrb[220].mxu1 %v3178_v52  ;;  %v3027_v35 = vsel %vm2939_vm1, %v3021_v26, %v3026_v34  ;;  %v3039_v52 = vsel %vm2939_vm1, %v3034_v12, %v3038_v11  ;;  %v16776_v42 = vld [vmem:[#allocation2 + $0x260] sm:$0xff] }
 0x295   : > { %v12855_v2 = vpop.f32.mrb[79].mxu0  ;;  %3421 = vmatprep.mubr.bf16.mxu1 %v3181_v30  ;;  %v2812_v30 = vld [vmem:[#allocation2 + $0x2b8] sm:$0x1]  ;;  %v3180_v24 = vpack.c.bf16 %v3027_v35, %v3022_v39  ;;  %v3183_v26 = vpack.c.bf16 %v3039_v52, %v3035_v45  ;;  %v3031_v34 = vrot.slane %v16776_v42, 1  ;;  %v3030_v35 = vrot.slane %v2801_v21, 1  ;;  %v16798_v21 = vld [vmem:[#allocation2 + $0x2e8] sm:$0xff] }
 0x296   : > { %18740 = vst [vmem:[#allocation38_spill] sm:$0xff] %v16766_v10  ;;  %v16769_v13 = vadd.f32 %v12855_v2, %v12854_v47  ;;  %v2805_v2 = vld [vmem:[#allocation2 + $0x270] sm:$0x1]  ;;  %v5490_v39 = vld [vmem:[#allocation2 + $0x258] sm:$0xff]  ;;  %v3043_v45 = vrot.slane %v2808_v18, 1 }
 0x297   : > { %6481 = vmatmul.mubr.bf16.gmra.mrb[184].mxu0 %v6257_v55  ;;  %v12533_v51 = vpop.f32.mrb[116].mxu1  ;;  %v3036_v62 = vrot.slane %v2805_v2, 1 }
 0x298   : > { %18741 = vst [vmem:[#allocation39_spill] sm:$0xff] %v16769_v13  ;;  %6488 = vmatprep.mubr.bf16.mxu0 %v6260_v27  ;;  %v12534_v9 = vpop.f32.mrb[117].mxu1  ;;  %v3044_v27 = vrot.slane %v16778_v41, 1  ;;  %v3048_v13 = vrot.slane %v2812_v30, 1  ;;  %v3032_v30 = vsel %vm2939_vm1, %v3030_v35, %v3031_v34  ;;  %v2814_v35 = vld [vmem:[#allocation2 + $0x2d8] sm:$0xfe] }
 0x299   : > { %v16780_v60 = vadd.f32 %v12534_v9, %v12533_v51  ;;  %v12536_v55 = vpop.f32.mrb[118].mxu1  ;;  %v5483_v9 = vld [vmem:[#allocation2 + $0x210] sm:$0xff] }
 0x29a   : > { %v12857_v47 = vpop.f32.mrb[80].mxu0  ;;  %v12537_v63 = vpop.f32.mrb[119].mxu1  ;;  %v6259_v29 = vpack.c.bf16 %v16756_v36, %v5483_v9 }
 0x29b   : > { %v12858_v11 = vpop.f32.mrb[81].mxu0  ;;  %v16783_v12 = vadd.f32 %v12537_v63, %v12536_v55  ;;  %v6262_v55 = vpack.c.bf16 %v16758_v40, %v5490_v39  ;;  %v3045_v63 = vsel %vm2939_vm1, %v3043_v45, %v3044_v27  ;;  %v2807_v40 = vld [vmem:[#allocation2 + $0x290] sm:$0xfe] }
 0x29c   : > { %v16786_v10 = vadd.f32 %v12858_v11, %v12857_v47  ;;  %v12860_v51 = vpop.f32.mrb[82].mxu0  ;;  %3422 = vmatmul.mubr.bf16.gmra.mrb[224].mxu1 %v3180_v24  ;;  %v3037_v47 = vsel %vm2939_vm1, %v3031_v34, %v3036_v62  ;;  %v3049_v24 = vsel %vm2939_vm1, %v3044_v27, %v3048_v13  ;;  %v16796_v11 = vld [vmem:[#allocation2 + $0x2a0] sm:$0xff] }
 0x29d   : > { %v12861_v3 = vpop.f32.mrb[83].mxu0  ;;  %3429 = vmatprep.mubr.bf16.mxu1 %v3183_v26  ;;  %v2818_v26 = vld [vmem:[#allocation2 + $0x2f8] sm:$0x1]  ;;  %v3182_v39 = vpack.c.bf16 %v3037_v47, %v3032_v30  ;;  %v3185_v34 = vpack.c.bf16 %v3049_v24, %v3045_v63  ;;  %v3041_v62 = vrot.slane %v16796_v11, 1  ;;  %v14861_v30 = vld [vmem:[%s18685_s5 + $0x340] sm:$0xff]  }
 0x29e   : > { %18742 = vst [vmem:[#allocation40_spill] sm:$0xff] %v16786_v10  ;;  %v16789_v52 = vadd.f32 %v12861_v3, %v12860_v51  ;;  %v2811_v3 = vld [vmem:[#allocation2 + $0x2b0] sm:$0x1]  ;;  %v5496_v24 = vld [vmem:[#allocation2 + $0x298] sm:$0xff]  ;;  %13111 = vmatprep.subr.bf16.mxu1 %v14861_v30  ;;  %v2813_v30 = vld [vmem:[#allocation2 + $0x2d0] sm:$0xfe] }
 0x29f   : > { %6489 = vmatmul.mubr.bf16.gmra.mrb[188].mxu0 %v6259_v29  ;;  %v12539_v2 = vpop.f32.mrb[120].mxu1  ;;  %v3046_v45 = vrot.slane %v2811_v3, 1 }
 0x2a0   : > { %18743 = vst [vmem:[#allocation41_spill] sm:$0xff] %v16789_v52  ;;  %6496 = vmatprep.mubr.bf16.mxu0 %v6262_v55  ;;  %v12540_v36 = vpop.f32.mrb[121].mxu1  ;;  %v3054_v55 = vrot.slane %v16798_v21, 1  ;;  %v3058_v52 = vrot.slane %v2818_v26, 1  ;;  %v6264_v26 = vpack.c.bf16 %v16778_v41, %v5496_v24 }
 0x2a1   : > { %v16800_v18 = vadd.f32 %v12540_v36, %v12539_v2  ;;  %v12542_v29 = vpop.f32.mrb[122].mxu1  ;;  %v5489_v36 = vld [vmem:[#allocation2 + $0x250] sm:$0xff] }
 0x2a2   : > { %v12863_v51 = vpop.f32.mrb[84].mxu0  ;;  %v12543_v9 = vpop.f32.mrb[123].mxu1  ;;  %v6261_v63 = vpack.c.bf16 %v16776_v42, %v5489_v36  ;;  %v3059_v7 = vsel %vm2939_vm1, %v3054_v55, %v3058_v52  ;;  %v16819_v42 = vld [vmem:[#allocation2 + $0x2e0] sm:$0xff] }
 0x2a3   : > { %v12864_v13 = vpop.f32.mrb[85].mxu0  ;;  %v16803_v27 = vadd.f32 %v12543_v9, %v12542_v29  ;;  %v3040_v29 = vrot.slane %v2807_v40, 1  ;;  %v3053_v9 = vrot.slane %v2814_v35, 1  ;;  %v2817_v35 = vld [vmem:[#allocation2 + $0x2f0] sm:$0x1] }
 0x2a4   : > { %v16806_v10 = vadd.f32 %v12864_v13, %v12863_v51  ;;  %v12866_v2 = vpop.f32.mrb[86].mxu0  ;;  %3430 = vmatmul.mubr.bf16.gmra.mrb[228].mxu1 %v3182_v39  ;;  %v3047_v13 = vsel %vm2939_vm1, %v3041_v62, %v3046_v45  ;;  %v3051_v45 = vrot.slane %v16819_v42, 1 }
 0x2a5   : > { %v12867_v47 = vpop.f32.mrb[87].mxu0  ;;  %3437 = vmatprep.mubr.bf16.mxu1 %v3185_v34  ;;  %v3042_v39 = vsel %vm2939_vm1, %v3040_v29, %v3041_v62  ;;  %v16821_v34 = vld [vmem:[#allocation2 + $0x328] sm:$0xff]  ;;  %v2820_v29 = vld [vmem:[#allocation2 + $0x318] sm:$0xfe] }
 0x2a6   : > { %18744 = vst [vmem:[#allocation42_spill] sm:$0xff] %v16806_v10  ;;  %v16812_v3 = vadd.f32 %v12867_v47, %v12866_v2  ;;  %v3055_v10 = vsel %vm2939_vm1, %v3053_v9, %v3054_v55  ;;  %v2824_v2 = vld [vmem:[#allocation2 + $0x338] sm:$0x1]  ;;  %v3184_v24 = vpack.c.bf16 %v3047_v13, %v3042_v39  ;;  %v3056_v9 = vrot.slane %v2817_v35, 1 }
 0x2a7   : > { %6497 = vmatmul.mubr.bf16.gmra.mrb[192].mxu0 %v6261_v63  ;;  %v12545_v51 = vpop.f32.mrb[124].mxu1  ;;  %v3187_v62 = vpack.c.bf16 %v3059_v7, %v3055_v10  ;;  %v5502_v39 = vld [vmem:[#allocation2 + $0x2d8] sm:$0xff]  ;;  %v3050_v7 = vrot.slane %v2813_v30, 1  ;;  %v3063_v10 = vrot.slane %v2820_v29, 1 }
 0x2a8   : > { %18745 = vst [vmem:[#allocation43_spill] sm:$0xff] %v16812_v3  ;;  %6504 = vmatprep.mubr.bf16.mxu0 %v6264_v26  ;;  %v12546_v40 = vpop.f32.mrb[125].mxu1  ;;  %v3064_v26 = vrot.slane %v16821_v34, 1  ;;  %v3068_v3 = vrot.slane %v2824_v2, 1 }
 0x2a9   : > { %v16823_v41 = vadd.f32 %v12546_v40, %v12545_v51  ;;  %v12548_v36 = vpop.f32.mrb[126].mxu1  ;;  %v5495_v40 = vld [vmem:[#allocation2 + $0x290] sm:$0xff]  ;;  %v3052_v2 = vsel %vm2939_vm1, %v3050_v7, %v3051_v45 }
 0x2aa   : > { %v12869_v47 = vpop.f32.mrb[88].mxu0  ;;  %v12549_v63 = vpop.f32.mrb[127].mxu1  ;;  %v6263_v56 = vpack.c.bf16 %v16796_v11, %v5495_v40  ;;  %v2823_v11 = vld [vmem:[#allocation2 + $0x330] sm:$0x1] }
 0x2ab   : > { %v12870_v52 = vpop.f32.mrb[89].mxu0  ;;  %v16826_v55 = vadd.f32 %v12549_v63, %v12548_v36  ;;  %v6266_v36 = vpack.c.bf16 %v16798_v21, %v5502_v39  ;;  %v3065_v63 = vsel %vm2939_vm1, %v3063_v10, %v3064_v26  ;;  %v2826_v10 = vld [vmem:[#allocation2 + $0x358] sm:$0xfe] }
 0x2ac   : > { %v16829_v57 = vadd.f32 %v12870_v52, %v12869_v47  ;;  %v12872_v51 = vpop.f32.mrb[90].mxu0  ;;  %3438 = vmatmul.mubr.bf16.gmra.mrb[232].mxu1 %v3184_v24  ;;  %v3057_v47 = vsel %vm2939_vm1, %v3051_v45, %v3056_v9  ;;  %v3069_v24 = vsel %vm2939_vm1, %v3064_v26, %v3068_v3  ;;  %v16839_v52 = vld [vmem:[#allocation2 + $0x320] sm:$0xff]  ;;  %v3066_v9 = vrot.slane %v2823_v11, 1 }
 0x2ad   : > { %v12873_v25 = vpop.f32.mrb[91].mxu0  ;;  %3445 = vmatprep.mubr.bf16.mxu1 %v3187_v62  ;;  %v16841_v62 = vld [vmem:[#allocation2 + $0x368] sm:$0xff]  ;;  %v3186_v39 = vpack.c.bf16 %v3057_v47, %v3052_v2  ;;  %v3189_v7 = vpack.c.bf16 %v3069_v24, %v3065_v63  ;;  %v3061_v45 = vrot.slane %v16839_v52, 1  ;;  %v5508_v47 = vld [vmem:[#allocation2 + $0x318] sm:$0xff] }
 0x2ae   : > { %18746 = vst [vmem:[#allocation44_spill] sm:$0xff] %v16829_v57  ;;  %v16832_v13 = vadd.f32 %v12873_v25, %v12872_v51  ;;  %v2830_v25 = vld [vmem:[#allocation2 + $0x378] sm:$0x1] }
 0x2af   : > { %6505 = vmatmul.mubr.bf16.gmra.mrb[196].mxu0 %v6263_v56  ;;  %v12567_v35 = vpop.f32.mrb[128].mxu1  ;;  %v2819_v56 = vld [vmem:[#allocation2 + $0x310] sm:$0xfe]  ;;  %v3078_v57 = vrot.slane %v2830_v25, 1 }
 0x2b0   : > { %18747 = vst [vmem:[#allocation45_spill] sm:$0xff] %v16832_v13  ;;  %6512 = vmatprep.mubr.bf16.mxu0 %v6266_v36  ;;  %v12568_v30 = vpop.f32.mrb[129].mxu1  ;;  %v3074_v13 = vrot.slane %v16841_v62, 1  ;;  %v3060_v24 = vrot.slane %v2819_v56, 1 }
 0x2b1   : > { %v12569_v29 = vadd.f32 %v12568_v30, %v12567_v35  ;;  %v12570_v21 = vpop.f32.mrb[130].mxu1  ;;  %v5501_v30 = vld [vmem:[#allocation2 + $0x2d0] sm:$0xff] }
 0x2b2   : > { %v12875_v51 = vpop.f32.mrb[92].mxu0  ;;  %v12571_v40 = vpop.f32.mrb[131].mxu1  ;;  %v6265_v2 = vpack.c.bf16 %v16819_v42, %v5501_v30  ;;  %v3079_v42 = vsel %vm2939_vm1, %v3074_v13, %v3078_v57 }
 0x2b3   : > { %v12876_v3 = vpop.f32.mrb[93].mxu0  ;;  %v16845_v26 = vadd.f32 %v12569_v29, %v16268_v38  ;;  %v12572_v36 = vadd.f32 %v12571_v40, %v12570_v21  ;;  %v3073_v38 = vrot.slane %v2826_v10, 1  ;;  %v6268_v29 = vpack.c.bf16 %v16821_v34, %v5508_v47 }
 0x2b4   : > { %v16848_v20 = vadd.f32 %v12876_v3, %v12875_v51  ;;  %v12878_v35 = vpop.f32.mrb[94].mxu0  ;;  %3446 = vmatmul.mubr.bf16.gmra.mrb[236].mxu1 %v3186_v39  ;;  %v3062_v21 = vsel %vm2939_vm1, %v3060_v24, %v3061_v45  ;;  %v3067_v51 = vsel %vm2939_vm1, %v3061_v45, %v3066_v9  ;;  %v16861_v39 = vld [vmem:[#allocation2 + $0x360] sm:$0xff]  ;;  %v2832_v24 = vld [vmem:[#allocation2 + $0x398] sm:$0xfe] }
 0x2b5   : > { %v12879_v19 = vpop.f32.mrb[95].mxu0  ;;  %v16852_v63 = vadd.f32 %v12572_v36, %v16272_v37  ;;  %3453 = vmatprep.mubr.bf16.mxu1 %v3189_v7  ;;  %v3075_v40 = vsel %vm2939_vm1, %v3073_v38, %v3074_v13  ;;  %v2829_v37 = vld [vmem:[#allocation2 + $0x370] sm:$0x1]  ;;  %v16863_v7 = vld [vmem:[#allocation2 + $0x3a8] sm:$0xff]  ;;  %v2825_v36 = vld [vmem:[#allocation2 + $0x350] sm:$0xfe] }
 0x2b6   : > { %18748 = vst [vmem:[#allocation46_spill] sm:$0xff] %v16848_v20  ;;  %v16854_v11 = vadd.f32 %v12879_v19, %v12878_v35  ;;  %v2836_v19 = vld [vmem:[#allocation2 + $0x3b8] sm:$0x1]  ;;  %v3191_v47 = vpack.c.bf16 %v3079_v42, %v3075_v40  ;;  %v3071_v45 = vrot.slane %v16861_v39, 1  ;;  %v3076_v9 = vrot.slane %v2829_v37, 1 }
 0x2b7   : > { %18749 = vst [vmem:[#allocation47_spill] sm:$0xff] %v16852_v63  ;;  %6513 = vmatmul.mubr.bf16.gmra.mrb[200].mxu0 %v6265_v2  ;;  %v12573_v25 = vpop.f32.mrb[132].mxu1  ;;  %v3188_v2 = vpack.c.bf16 %v3067_v51, %v3062_v21  ;;  %v5514_v51 = vld [vmem:[#allocation2 + $0x358] sm:$0xff]  ;;  %v3070_v42 = vrot.slane %v2825_v36, 1 }
 0x2b8   : > { %18750 = vst [vmem:[#allocation48_spill] sm:$0xff] %v16854_v11  ;;  %6520 = vmatprep.mubr.bf16.mxu0 %v6268_v29  ;;  %v12574_v56 = vpop.f32.mrb[133].mxu1  ;;  %v3084_v29 = vrot.slane %v16863_v7, 1  ;;  %v3088_v11 = vrot.slane %v2836_v19, 1 }
 0x2b9   : > { %v12575_v10 = vadd.f32 %v12574_v56, %v12573_v25  ;;  %v12576_v3 = vpop.f32.mrb[134].mxu1  ;;  %v5507_v56 = vld [vmem:[#allocation2 + $0x310] sm:$0xff] }
 0x2ba   : > { %v12881_v35 = vpop.f32.mrb[96].mxu0  ;;  %v12577_v30 = vpop.f32.mrb[135].mxu1  ;;  %v6267_v21 = vpack.c.bf16 %v16839_v52, %v5507_v56  ;;  %v3089_v52 = vsel %vm2939_vm1, %v3084_v29, %v3088_v11 }
 0x2bb   : > { %v12882_v57 = vpop.f32.mrb[97].mxu0  ;;  %v16867_v13 = vadd.f32 %v12575_v10, %v16414_v50  ;;  %v12578_v38 = vadd.f32 %v12577_v30, %v12576_v3  ;;  %v3083_v50 = vrot.slane %v2832_v24, 1  ;;  %v6270_v10 = vpack.c.bf16 %v16841_v62, %v5514_v51 }
 0x2bc   : > { %v16870_v20 = vadd.f32 %v12882_v57, %v12881_v35  ;;  %v12884_v25 = vpop.f32.mrb[98].mxu0  ;;  %3454 = vmatmul.mubr.bf16.gmra.mrb[240].mxu1 %v3188_v2  ;;  %v3072_v3 = vsel %vm2939_vm1, %v3070_v42, %v3071_v45  ;;  %v3077_v35 = vsel %vm2939_vm1, %v3071_v45, %v3076_v9  ;;  %v16883_v2 = vld [vmem:[#allocation2 + $0x3a0] sm:$0xff]  ;;  %v2838_v42 = vld [vmem:[#allocation2 + $0x3d8] sm:$0xfe] }
 0x2bd   : > { %v12885_v63 = vpop.f32.mrb[99].mxu0  ;;  %v16874_v40 = vadd.f32 %v12578_v38, %v16419_v8  ;;  %3461 = vmatprep.mubr.bf16.mxu1 %v3191_v47  ;;  %v3085_v30 = vsel %vm2939_vm1, %v3083_v50, %v3084_v29  ;;  %v2835_v8 = vld [vmem:[#allocation2 + $0x3b0] sm:$0x1]  ;;  %v16885_v47 = vld [vmem:[#allocation2 + $0x3e8] sm:$0xff]  ;;  %v2831_v38 = vld [vmem:[#allocation2 + $0x390] sm:$0xfe] }
 0x2be   : > { %18751 = vst [vmem:[#allocation49_spill] sm:$0xff] %v16870_v20  ;;  %v16876_v37 = vadd.f32 %v12885_v63, %v12884_v25  ;;  %v2842_v63 = vld [vmem:[#allocation2 + $0x3f8] sm:$0x1]  ;;  %v3193_v51 = vpack.c.bf16 %v3089_v52, %v3085_v30  ;;  %v3081_v45 = vrot.slane %v16883_v2, 1  ;;  %v3086_v9 = vrot.slane %v2835_v8, 1 }
 0x2bf   : > { %18752 = vst [vmem:[#allocation50_spill] sm:$0xff] %v16874_v40  ;;  %6521 = vmatmul.mubr.bf16.gmra.mrb[204].mxu0 %v6267_v21  ;;  %v12579_v19 = vpop.f32.mrb[136].mxu1  ;;  %v3190_v21 = vpack.c.bf16 %v3077_v35, %v3072_v3  ;;  %v5520_v35 = vld [vmem:[#allocation2 + $0x398] sm:$0xff]  ;;  %v3080_v52 = vrot.slane %v2831_v38, 1 }
 0x2c0   : > { %18753 = vst [vmem:[#allocation51_spill] sm:$0xff] %v16876_v37  ;;  %6528 = vmatprep.mubr.bf16.mxu0 %v6270_v10  ;;  %v12580_v36 = vpop.f32.mrb[137].mxu1  ;;  %v3094_v10 = vrot.slane %v16885_v47, 1  ;;  %v3098_v37 = vrot.slane %v2842_v63, 1 }
 0x2c1   : > { %v12581_v24 = vadd.f32 %v12580_v36, %v12579_v19  ;;  %v12582_v57 = vpop.f32.mrb[138].mxu1  ;;  %v5513_v36 = vld [vmem:[#allocation2 + $0x350] sm:$0xff] }
 0x2c2   : > { %v13015_v25 = vpop.f32.mrb[100].mxu0  ;;  %v12583_v56 = vpop.f32.mrb[139].mxu1  ;;  %v6269_v3 = vpack.c.bf16 %v16861_v39, %v5513_v36  ;;  %v3099_v39 = vsel %vm2939_vm1, %v3094_v10, %v3098_v37  ;;  %v2837_v36 = vld [vmem:[#allocation2 + $0x3d0] sm:$0xfe] }
 0x2c3   : > { %v13016_v11 = vpop.f32.mrb[101].mxu0  ;;  %v16889_v29 = vadd.f32 %v12581_v24, %v16442_v58  ;;  %v12584_v50 = vadd.f32 %v12583_v56, %v12582_v57  ;;  %v3093_v58 = vrot.slane %v2838_v42, 1  ;;  %v6272_v24 = vpack.c.bf16 %v16863_v7, %v5520_v35 }
 0x2c4   : > { %v16892_v20 = vadd.f32 %v13016_v11, %v13015_v25  ;;  %v13018_v19 = vpop.f32.mrb[102].mxu0  ;;  %3462 = vmatmul.mubr.bf16.gmra.mrb[244].mxu1 %v3190_v21  ;;  %v3082_v57 = vsel %vm2939_vm1, %v3080_v52, %v3081_v45  ;;  %v3087_v25 = vsel %vm2939_vm1, %v3081_v45, %v3086_v9  ;;  %v6241_v21 = vld [vmem:[#allocation2 + $0x3e0] sm:$0xff] }
 0x2c5   : > { %v13019_v40 = vpop.f32.mrb[103].mxu0  ;;  %v16896_v30 = vadd.f32 %v12584_v50, %v16444_v59  ;;  %3469 = vmatprep.mubr.bf16.mxu1 %v3193_v51  ;;  %v3095_v56 = vsel %vm2939_vm1, %v3093_v58, %v3094_v10  ;;  %v2841_v51 = vld [vmem:[#allocation2 + $0x3f0] sm:$0x1]  ;;  %v3192_v50 = vpack.c.bf16 %v3087_v25, %v3082_v57  ;;  %v3091_v9 = vrot.slane %v6241_v21, 1 }
 0x2c6   : > { %v16898_v8 = vadd.f32 %v13019_v40, %v13018_v19  ;;  %v3195_v19 = vpack.c.bf16 %v3099_v39, %v3095_v56  ;;  %v3096_v52 = vrot.slane %v2841_v51, 1  ;;  %v5519_v10 = vld [vmem:[#allocation2 + $0x390] sm:$0xff]  ;;  %v3090_v25 = vrot.slane %v2837_v36, 1 }
 0x2c7   : > { %6529 = vmatmul.mubr.bf16.gmra.mrb[208].mxu0 %v6269_v3  ;;  %v12585_v63 = vpop.f32.mrb[140].mxu1 }
 0x2c8   : > { %6536 = vmatprep.mubr.bf16.mxu0 %v6272_v24  ;;  %v12586_v59 = vpop.f32.mrb[141].mxu1  ;;  %v3092_v51 = vsel %vm2939_vm1, %v3090_v25, %v3091_v9 }
 0x2c9   : > { %v12587_v38 = vadd.f32 %v12586_v59, %v12585_v63  ;;  %v12588_v42 = vpop.f32.mrb[142].mxu1  ;;  %v6271_v63 = vpack.c.bf16 %v16883_v2, %v5519_v10  ;;  %v5526_v59 = vld [vmem:[#allocation2 + $0x3d8] sm:$0xff] }
 0x2ca   : > { %v13021_v40 = vpop.f32.mrb[104].mxu0  ;;  %v12589_v11 = vpop.f32.mrb[143].mxu1  ;;  %v14973_v10 = vld [vmem:[#allocation2 + $0x58] sm:$0xff] }
 0x2cb   : > { %v13022_v3 = vpop.f32.mrb[105].mxu0  ;;  %v16906_v35 = vadd.f32 %v12587_v38, %v16462_v54  ;;  %v12590_v45 = vadd.f32 %v12589_v11, %v12588_v42  ;;  %v6274_v54 = vpack.c.bf16 %v16885_v47, %v5526_v59  ;;  %v3097_v38 = vsel %vm2939_vm1, %v3091_v9, %v3096_v52  ;;  %v5525_v52 = vld [vmem:[#allocation2 + $0x3d0] sm:$0xff] }
 0x2cc   : > { %v16908_v58 = vadd.f32 %v13022_v3, %v13021_v40  ;;  %v13024_v37 = vpop.f32.mrb[106].mxu0  ;;  %3470 = vmatmul.mubr.bf16.gmra.mrb[248].mxu1 %v3192_v50  ;;  %v4289_v40 = vld [vmem:[#allocation2 + $0x68] sm:$0xff]  ;;  %v3194_v3 = vpack.c.bf16 %v3097_v38, %v3092_v51  ;;  %v6273_v25 = vpack.c.bf16 %v6241_v21, %v5525_v52  ;;  %v14862_v21 = vld [vmem:[%s18685_s5 + $0x300] sm:$0xff]  }
 0x2cd   : > { %v13025_v24 = vpop.f32.mrb[107].mxu0  ;;  %v16912_v57 = vadd.f32 %v12590_v45, %v16464_v6  ;;  %3477 = vmatprep.mubr.bf16.mxu1 %v3195_v19  ;;  %v16922_v45 = vld [vmem:[#allocation2 + $0x428] sm:$0xff] }
 0x2ce   : > { %v16914_v56 = vadd.f32 %v13025_v24, %v13024_v37  ;;  %v4321_v24 = vpack.c.bf16 %v4289_v40, %v14973_v10  ;;  %v4291_v40 = vld [vmem:[#allocation2 + $0xa8] sm:$0xff] }
 0x2cf   : > { %6537 = vmatmul.mubr.bf16.gmra.mrb[212].mxu0 %v6271_v63  ;;  %v12591_v39 = vpop.f32.mrb[144].mxu1 }
 0x2d0   : > { %6544 = vmatprep.mubr.bf16.mxu0 %v6274_v54  ;;  %v12592_v42 = vpop.f32.mrb[145].mxu1  ;;  %v5532_v54 = vld [vmem:[#allocation2 + $0x418] sm:$0xff] }
 0x2d1   : > { %v12593_v2 = vadd.f32 %v12592_v42, %v12591_v39  ;;  %v12594_v11 = vpop.f32.mrb[146].mxu1 }
 0x2d2   : > { %v13027_v50 = vpop.f32.mrb[108].mxu0  ;;  %v12595_v6 = vpop.f32.mrb[147].mxu1 }
 0x2d3   : > { %v13028_v19 = vpop.f32.mrb[109].mxu0  ;;  %v16920_v36 = vadd.f32 %v12593_v2, %v16482_v31  ;;  %v12596_v37 = vadd.f32 %v12595_v6, %v12594_v11  ;;  %v6276_v31 = vpack.c.bf16 %v16922_v45, %v5532_v54  ;;  %v6243_v6 = vld [vmem:[#allocation2 + $0x420] sm:$0xff] }
 0x2d4   : > { %v16924_v63 = vadd.f32 %v13028_v19, %v13027_v50  ;;  %v13030_v9 = vpop.f32.mrb[110].mxu0  ;;  %3478 = vmatmul.mubr.bf16.gmra.mrb[252].mxu1 %v3194_v3  ;;  %v14863_v3 = vld [vmem:[%s18685_s5 + $0x348] sm:$0xff]  }
 0x2d5   : > { %v13031_v59 = vpop.f32.mrb[111].mxu0  ;;  %v16927_v39 = vadd.f32 %v12596_v37, %v16484_v32  ;;  %4513 = vmatprep.mubr.bf16.mxu1 %v4321_v24  ;;  %v14974_v24 = vld [vmem:[#allocation2 + $0x98] sm:$0xff] }
 0x2d6   : > { %v16929_v51 = vadd.f32 %v13031_v59, %v13030_v9  ;;  %v4323_v9 = vpack.c.bf16 %v4291_v40, %v14974_v24  ;;  %v14865_v40 = vld [vmem:[%s18685_s5 + $0x350] sm:$0xff]   ;;  %v14975_v24 = vld [vmem:[#allocation2 + $0xd8] sm:$0xff] }
 0x2d7   : > { %6545 = vmatmul.mubr.bf16.gmra.mrb[216].mxu0 %v6273_v25  ;;  %v12597_v38 = vpop.f32.mrb[148].mxu1  ;;  %v5531_v25 = vld [vmem:[#allocation2 + $0x410] sm:$0xff] }
 0x2d8   : > { %6552 = vmatprep.mubr.bf16.mxu0 %v6276_v31  ;;  %v12598_v42 = vpop.f32.mrb[149].mxu1  ;;  %v6275_v31 = vpack.c.bf16 %v6243_v6, %v5531_v25 }
 0x2d9   : > { %v12599_v2 = vadd.f32 %v12598_v42, %v12597_v38  ;;  %v12600_v11 = vpop.f32.mrb[150].mxu1 }
 0x2da   : > { %v13033_v50 = vpop.f32.mrb[112].mxu0  ;;  %v12601_v32 = vpop.f32.mrb[151].mxu1 }
 0x2db   : > { %v13034_v19 = vpop.f32.mrb[113].mxu0  ;;  %v16939_v37 = vadd.f32 %v12599_v2, %v16505_v43  ;;  %v12602_v10 = vadd.f32 %v12601_v32, %v12600_v11  ;;  %v14864_v43 = vld [vmem:[%s18685_s5 + $0x308] sm:$0xff]  }
 0x2dc   : > { %v16941_v52 = vadd.f32 %v13034_v19, %v13033_v50  ;;  %v13036_v59 = vpop.f32.mrb[114].mxu0  ;;  %4514 = vmatmul.mubr.bf16.vlgmr.msra.gmra.mrb[0].mxu1 %v15712_v48  ;;  %v4293_v11 = vld [vmem:[#allocation2 + $0xe8] sm:$0xff] }
 0x2dd   : > { %v13037_v54 = vpop.f32.mrb[115].mxu0  ;;  %v16945_v38 = vadd.f32 %v12602_v10, %v16510_v46  ;;  %4521 = vmatprep.mubr.bf16.mxu1 %v4323_v9  ;;  %13112 = vmatpush3.bf16.msra.mxu1 %v14862_v21  ;;  %v14866_v21 = vld [vmem:[%s18685_s5 + $0x310] sm:$0xff]   ;;  %v4325_v9 = vpack.c.bf16 %v4293_v11, %v14975_v24 }
 0x2de   : > { %18754 = vst [vmem:[#allocation52_spill] sm:$0xff] %v16941_v52  ;;  %v16950_v42 = vadd.f32 %v13037_v54, %v13036_v59  ;;  %13113 = vmatprep.subr.bf16.mxu1 %v14863_v3  ;;  %v14867_v3 = vld [vmem:[%s18685_s5 + $0x358] sm:$0xff]  }
 0x2df   : > { %6553 = vmatmul.mubr.bf16.gmra.mrb[220].mxu0 %v6275_v31  ;;  %v12603_v48 = vpop.f32.mrb[152].mxu1  ;;  %v14868_v31 = vld [vmem:[%s18685_s5 + $0x318] sm:$0xff]  }
 0x2e0   : > { %18755 = vst [vmem:[#allocation53_spill] sm:$0xff] %v16950_v42  ;;  %v12604_v2 = vpop.f32.mrb[153].mxu1 }
 0x2e1   : > { %v12605_v50 = vadd.f32 %v12604_v2, %v12603_v48  ;;  %v12606_v46 = vpop.f32.mrb[154].mxu1  ;;  %13114 = vmatpush3.bf16.msra.mxu1 %v14864_v43 }
 0x2e2   : > { %v13039_v6 = vpop.f32.mrb[116].mxu0  ;;  %v12607_v32 = vpop.f32.mrb[155].mxu1  ;;  %13115 = vmatprep.subr.bf16.mxu1 %v14865_v40  ;;  %v14869_v40 = vld [vmem:[%s18685_s5 + $0x360] sm:$0xff]  }
 0x2e3   : > { %v13040_v19 = vpop.f32.mrb[117].mxu0  ;;  %v12608_v10 = vadd.f32 %v12607_v32, %v12606_v46  ;;  %v16973_v48 = vadd.f32 %v12605_v50, %v16528_v28  ;;  %v4295_v46 = vld [vmem:[#allocation2 + $0x128] sm:$0xff]  ;;  %v14870_v32 = vld [vmem:[%s18685_s5 + $0x320] sm:$0xff]  }
 0x2e4   : > { %v16961_v59 = vadd.f32 %v13040_v19, %v13039_v6  ;;  %v13042_v25 = vpop.f32.mrb[118].mxu0  ;;  %4522 = vmatmul.mubr.bf16.gmra.mrb[4].mxu1 %v15735_v16  ;;  %v14871_v28 = vld [vmem:[%s18685_s5 + $0x368] sm:$0xff]  }
 0x2e5   : > { %v13043_v54 = vpop.f32.mrb[119].mxu0  ;;  %4529 = vmatprep.mubr.bf16.mxu1 %v4325_v9  ;;  %13116 = vmatpush3.bf16.msra.mxu1 %v14866_v21  ;;  %v16976_v2 = vadd.f32 %v12608_v10, %v16530_v15  ;;  %v14976_v10 = vld [vmem:[#allocation2 + $0x118] sm:$0xff] }
 0x2e6   : > { %18756 = vst [vmem:[#allocation54_spill] sm:$0xff] %v16961_v59  ;;  %v16967_v43 = vadd.f32 %v13043_v54, %v13042_v25  ;;  %13117 = vmatprep.subr.bf16.mxu1 %v14867_v3  ;;  %v4327_v24 = vpack.c.bf16 %v4295_v46, %v14976_v10 }
 0x2e7   : > { %v12609_v16 = vpop.f32.mrb[156].mxu1 }
 0x2e8   : > { %18757 = vst [vmem:[#allocation55_spill] sm:$0xff] %v16967_v43  ;;  %v12610_v11 = vpop.f32.mrb[157].mxu1 }
 0x2e9   : > { %v12611_v21 = vadd.f32 %v12610_v11, %v12609_v16  ;;  %v12612_v6 = vpop.f32.mrb[158].mxu1  ;;  %13118 = vmatpush3.bf16.msra.mxu1 %v14868_v31  ;;  %v14872_v31 = vld [vmem:[%s18685_s5 + $0x328] sm:$0xff]   ;;  %v14873_v16 = vld [vmem:[%s18685_s5 + $0x370] sm:$0xff]  }
 0x2ea   : > { %v13045_v3 = vpop.f32.mrb[120].mxu0  ;;  %v12613_v19 = vpop.f32.mrb[159].mxu1  ;;  %13119 = vmatprep.subr.bf16.mxu1 %v14869_v40 }
 0x2eb   : > { %v13046_v50 = vpop.f32.mrb[121].mxu0  ;;  %v12614_v15 = vadd.f32 %v12613_v19, %v12612_v6  ;;  %v16996_v11 = vadd.f32 %v12611_v21, %v16548_v33  ;;  %v14875_v33 = vld [vmem:[%s18685_s5 + $0x378] sm:$0xff]  }
 0x2ec   : > { %v16984_v9 = vadd.f32 %v13046_v50, %v13045_v3  ;;  %v13048_v25 = vpop.f32.mrb[122].mxu0  ;;  %4530 = vmatmul.mubr.bf16.gmra.mrb[8].mxu1 %v15774_v4 }
 0x2ed   : > { %v13049_v54 = vpop.f32.mrb[123].mxu0  ;;  %4537 = vmatprep.mubr.bf16.mxu1 %v4327_v24  ;;  %13120 = vmatpush3.bf16.msra.mxu1 %v14870_v32  ;;  %v16999_v46 = vadd.f32 %v12614_v15, %v16550_v61  ;;  %v4297_v32 = vld [vmem:[#allocation2 + $0x168] sm:$0xff]  ;;  %v14977_v15 = vld [vmem:[#allocation2 + $0x158] sm:$0xff] }
 0x2ee   : > { %18758 = vst [vmem:[#allocation56_spill] sm:$0xff] %v16984_v9  ;;  %v16990_v40 = vadd.f32 %v13049_v54, %v13048_v25  ;;  %13121 = vmatprep.subr.bf16.mxu1 %v14871_v28  ;;  %v14874_v28 = vld [vmem:[%s18685_s5 + $0x330] sm:$0xff]   ;;  %v4329_v24 = vpack.c.bf16 %v4297_v32, %v14977_v15  ;;  %v14978_v9 = vld [vmem:[#allocation2 + $0x198] sm:$0xff] }
 0x2ef   : > { %v12615_v4 = vpop.f32.mrb[160].mxu1 }
 0x2f0   : > { %18759 = vst [vmem:[#allocation57_spill] sm:$0xff] %v16990_v40  ;;  %v12616_v6 = vpop.f32.mrb[161].mxu1 }
 0x2f1   : > { %v12617_v3 = vadd.f32 %v12616_v6, %v12615_v4  ;;  %v12618_v19 = vpop.f32.mrb[162].mxu1  ;;  %13122 = vmatpush3.bf16.msra.mxu1 %v14872_v31  ;;  %v18761_v4 = vld [vmem:[#allocation5_spill] sm:$0xff] }
 0x2f2   : > { %v13051_v50 = vpop.f32.mrb[124].mxu0  ;;  %v12619_v10 = vpop.f32.mrb[163].mxu1  ;;  %13123 = vmatprep.subr.bf16.mxu1 %v14873_v16  ;;  %v14876_v16 = vld [vmem:[%s18685_s5 + $0x338] sm:$0xff]  }
 0x2f3   : > { %v13052_v21 = vpop.f32.mrb[125].mxu0  ;;  %v12620_v61 = vadd.f32 %v12619_v10, %v12618_v19  ;;  %v17016_v40 = vadd.f32 %v12617_v3, %v16568_v44  ;;  %v4299_v10 = vld [vmem:[#allocation2 + $0x1a8] sm:$0xff] }
 0x2f4   : > { %v17007_v25 = vadd.f32 %v13052_v21, %v13051_v50  ;;  %v13054_v54 = vpop.f32.mrb[126].mxu0  ;;  %4538 = vmatmul.mubr.bf16.gmra.mrb[12].mxu1 %v18761_v4  ;;  %v18764_v44 = vld [vmem:[#allocation6_spill] sm:$0xff] }
 0x2f5   : > { %v13055_v31 = vpop.f32.mrb[127].mxu0  ;;  %4545 = vmatprep.mubr.bf16.mxu1 %v4329_v24  ;;  %13124 = vmatpush3.bf16.msra.mxu1 %v14874_v28  ;;  %v17019_v32 = vadd.f32 %v12620_v61, %v16574_v5 }
 0x2f6   : > { %18760 = vst [vmem:[#allocation58_spill] sm:$0xff] %v17007_v25  ;;  %v17013_v6 = vadd.f32 %v13055_v31, %v13054_v54  ;;  %13125 = vmatprep.subr.bf16.mxu1 %v14875_v33  ;;  %v4331_v54 = vpack.c.bf16 %v4299_v10, %v14978_v9 }
 0x2f7   : > { %v12621_v19 = vpop.f32.mrb[164].mxu1 }
 0x2f8   : > { %18762 = vst [vmem:[#allocation5_spill] sm:$0xff] %v17013_v6  ;;  %v12622_v50 = vpop.f32.mrb[165].mxu1 }
 0x2f9   : > { %v12623_v21 = vadd.f32 %v12622_v50, %v12621_v19  ;;  %v12624_v15 = vpop.f32.mrb[166].mxu1  ;;  %13126 = vmatpush3.bf16.msra.mxu1 %v14876_v16 }
 0x2fa   : > { %v13057_v28 = vpop.f32.mrb[128].mxu0  ;;  %v12625_v24 = vpop.f32.mrb[167].mxu1 }
 0x2fb   : > { %v13058_v4 = vpop.f32.mrb[129].mxu0  ;;  %v12626_v25 = vadd.f32 %v12625_v24, %v12624_v15  ;;  %v17027_v61 = vadd.f32 %v12623_v21, %v16597_v22  ;;  %v4301_v15 = vld [vmem:[#allocation2 + $0x1e8] sm:$0xff] }
 0x2fc   : > { %v17021_v31 = vadd.f32 %v13058_v4, %v13057_v28  ;;  %v13060_v33 = vpop.f32.mrb[130].mxu0  ;;  %4546 = vmatmul.mubr.bf16.gmra.mrb[16].mxu1 %v18764_v44  ;;  %v14979_v44 = vld [vmem:[#allocation2 + $0x1d8] sm:$0xff] }
 0x2fd   : > { %v13061_v3 = vpop.f32.mrb[131].mxu0  ;;  %4553 = vmatprep.mubr.bf16.mxu1 %v4331_v54  ;;  %v17030_v16 = vadd.f32 %v12626_v25, %v16599_v23  ;;  %v4333_v6 = vpack.c.bf16 %v4301_v15, %v14979_v44 }
 0x2fe   : > { %18763 = vst [vmem:[#allocation59_spill] sm:$0xff] %v17021_v31  ;;  %v17024_v5 = vadd.f32 %v13061_v3, %v13060_v33  ;;  %v18767_v3 = vld [vmem:[#allocation7_spill] sm:$0xff] }
 0x2ff   : > { %v12627_v19 = vpop.f32.mrb[168].mxu1 }
 0x300   : > { %18765 = vst [vmem:[#allocation6_spill] sm:$0xff] %v17024_v5  ;;  %v12628_v50 = vpop.f32.mrb[169].mxu1 }
 0x301   : > { %v12629_v24 = vadd.f32 %v12628_v50, %v12627_v19  ;;  %v12630_v9 = vpop.f32.mrb[170].mxu1 }
 0x302   : > { %v13063_v10 = vpop.f32.mrb[132].mxu0  ;;  %v12631_v28 = vpop.f32.mrb[171].mxu1 }
 0x303   : > { %v13064_v4 = vpop.f32.mrb[133].mxu0  ;;  %v12632_v31 = vadd.f32 %v12631_v28, %v12630_v9  ;;  %v17038_v25 = vadd.f32 %v12629_v24, %v16726_v17  ;;  %v4303_v9 = vld [vmem:[#allocation2 + $0x228] sm:$0xff] }
 0x304   : > { %v17032_v54 = vadd.f32 %v13064_v4, %v13063_v10  ;;  %v13066_v33 = vpop.f32.mrb[134].mxu0  ;;  %4554 = vmatmul.mubr.bf16.gmra.mrb[20].mxu1 %v18767_v3  ;;  %v14980_v3 = vld [vmem:[#allocation2 + $0x218] sm:$0xff] }
 0x305   : > { %v13067_v22 = vpop.f32.mrb[135].mxu0  ;;  %4561 = vmatprep.mubr.bf16.mxu1 %v4333_v6  ;;  %v17041_v21 = vadd.f32 %v12632_v31, %v16729_v0  ;;  %v4335_v5 = vpack.c.bf16 %v4303_v9, %v14980_v3 }
 0x306   : > { %18766 = vst [vmem:[#allocation60_spill] sm:$0xff] %v17032_v54  ;;  %v17035_v23 = vadd.f32 %v13067_v22, %v13066_v33  ;;  %v18770_v22 = vld [vmem:[#allocation8_spill] sm:$0xff] }
 0x307   : > { %v12633_v19 = vpop.f32.mrb[172].mxu1 }
 0x308   : > { %18768 = vst [vmem:[#allocation7_spill] sm:$0xff] %v17035_v23  ;;  %v12634_v50 = vpop.f32.mrb[173].mxu1 }
 0x309   : > { %v12635_v28 = vadd.f32 %v12634_v50, %v12633_v19  ;;  %v12636_v15 = vpop.f32.mrb[174].mxu1 }
 0x30a   : > { %v13069_v10 = vpop.f32.mrb[136].mxu0  ;;  %v12637_v4 = vpop.f32.mrb[175].mxu1 }
 0x30b   : > { %v13070_v44 = vpop.f32.mrb[137].mxu0  ;;  %v12638_v54 = vadd.f32 %v12637_v4, %v12636_v15  ;;  %v17049_v31 = vadd.f32 %v12635_v28, %v16740_v14  ;;  %v4305_v15 = vld [vmem:[#allocation2 + $0x268] sm:$0xff] }
 0x30c   : > { %v17043_v6 = vadd.f32 %v13070_v44, %v13069_v10  ;;  %v13072_v33 = vpop.f32.mrb[138].mxu0  ;;  %4562 = vmatmul.mubr.bf16.gmra.mrb[24].mxu1 %v18770_v22  ;;  %v14981_v22 = vld [vmem:[#allocation2 + $0x258] sm:$0xff] }
 0x30d   : > { %v13073_v17 = vpop.f32.mrb[139].mxu0  ;;  %4569 = vmatprep.mubr.bf16.mxu1 %v4335_v5  ;;  %v17052_v24 = vadd.f32 %v12638_v54, %v16743_v53  ;;  %v4337_v23 = vpack.c.bf16 %v4305_v15, %v14981_v22 }
 0x30e   : > { %18769 = vst [vmem:[#allocation61_spill] sm:$0xff] %v17043_v6  ;;  %v17046_v0 = vadd.f32 %v13073_v17, %v13072_v33  ;;  %v18773_v17 = vld [vmem:[#allocation9_spill] sm:$0xff] }
 0x30f   : > { %v12639_v19 = vpop.f32.mrb[176].mxu1 }
 0x310   : > { %18771 = vst [vmem:[#allocation8_spill] sm:$0xff] %v17046_v0  ;;  %v12640_v50 = vpop.f32.mrb[177].mxu1 }
 0x311   : > { %v12641_v4 = vadd.f32 %v12640_v50, %v12639_v19  ;;  %v12642_v9 = vpop.f32.mrb[178].mxu1 }
 0x312   : > { %v13075_v10 = vpop.f32.mrb[140].mxu0  ;;  %v12643_v44 = vpop.f32.mrb[179].mxu1 }
 0x313   : > { %v13076_v3 = vpop.f32.mrb[141].mxu0  ;;  %v12644_v6 = vadd.f32 %v12643_v44, %v12642_v9  ;;  %v17060_v54 = vadd.f32 %v12641_v4, %v16760_v1  ;;  %v4307_v9 = vld [vmem:[#allocation2 + $0x2a8] sm:$0xff] }
 0x314   : > { %v17054_v5 = vadd.f32 %v13076_v3, %v13075_v10  ;;  %v13078_v33 = vpop.f32.mrb[142].mxu0  ;;  %4570 = vmatmul.mubr.bf16.gmra.mrb[28].mxu1 %v18773_v17  ;;  %v14982_v17 = vld [vmem:[#allocation2 + $0x298] sm:$0xff] }
 0x315   : > { %v13079_v14 = vpop.f32.mrb[143].mxu0  ;;  %4577 = vmatprep.mubr.bf16.mxu1 %v4337_v23  ;;  %v17063_v28 = vadd.f32 %v12644_v6, %v16763_v49  ;;  %v4339_v0 = vpack.c.bf16 %v4307_v9, %v14982_v17 }
 0x316   : > { %18772 = vst [vmem:[#allocation62_spill] sm:$0xff] %v17054_v5  ;;  %v17057_v53 = vadd.f32 %v13079_v14, %v13078_v33  ;;  %v18776_v14 = vld [vmem:[#allocation10_spill] sm:$0xff] }
 0x317   : > { %v12645_v19 = vpop.f32.mrb[180].mxu1 }
 0x318   : > { %18774 = vst [vmem:[#allocation9_spill] sm:$0xff] %v17057_v53  ;;  %v12646_v50 = vpop.f32.mrb[181].mxu1 }
 0x319   : > { %v12647_v44 = vadd.f32 %v12646_v50, %v12645_v19  ;;  %v12648_v15 = vpop.f32.mrb[182].mxu1 }
 0x31a   : > { %v13081_v10 = vpop.f32.mrb[144].mxu0  ;;  %v12649_v3 = vpop.f32.mrb[183].mxu1 }
 0x31b   : > { %v13082_v22 = vpop.f32.mrb[145].mxu0  ;;  %v12650_v5 = vadd.f32 %v12649_v3, %v12648_v15  ;;  %v17071_v6 = vadd.f32 %v12647_v44, %v16780_v60  ;;  %v4309_v15 = vld [vmem:[#allocation2 + $0x2e8] sm:$0xff]  ;;  %v14877_v60 = vld [vmem:[%s18685_s5 + $0x440] sm:$0xff]  }
 0x31c   : > { %v17065_v23 = vadd.f32 %v13082_v22, %v13081_v10  ;;  %v13084_v33 = vpop.f32.mrb[146].mxu0  ;;  %4578 = vmatmul.mubr.bf16.gmra.mrb[32].mxu1 %v18776_v14  ;;  %v14983_v14 = vld [vmem:[#allocation2 + $0x2d8] sm:$0xff]  ;;  %13335 = vmatprep.subr.bf16.mxu1 %v14877_v60 }
 0x31d   : > { %v13085_v1 = vpop.f32.mrb[147].mxu0  ;;  %4585 = vmatprep.mubr.bf16.mxu1 %v4339_v0  ;;  %v17074_v4 = vadd.f32 %v12650_v5, %v16783_v12  ;;  %v4341_v53 = vpack.c.bf16 %v4309_v15, %v14983_v14 }
 0x31e   : > { %18775 = vst [vmem:[#allocation63_spill] sm:$0xff] %v17065_v23  ;;  %v17068_v49 = vadd.f32 %v13085_v1, %v13084_v33  ;;  %v18779_v1 = vld [vmem:[#allocation11_spill] sm:$0xff] }
 0x31f   : > { %v12651_v19 = vpop.f32.mrb[184].mxu1 }
 0x320   : > { %18777 = vst [vmem:[#allocation10_spill] sm:$0xff] %v17068_v49  ;;  %v12652_v50 = vpop.f32.mrb[185].mxu1 }
 0x321   : > { %v12653_v3 = vadd.f32 %v12652_v50, %v12651_v19  ;;  %v12654_v9 = vpop.f32.mrb[186].mxu1 }
 0x322   : > { %v13087_v10 = vpop.f32.mrb[148].mxu0  ;;  %v12655_v22 = vpop.f32.mrb[187].mxu1 }
 0x323   : > { %v13088_v17 = vpop.f32.mrb[149].mxu0  ;;  %v12656_v23 = vadd.f32 %v12655_v22, %v12654_v9  ;;  %v17085_v44 = vadd.f32 %v12653_v3, %v16800_v18 }
 0x324   : > { %v17076_v0 = vadd.f32 %v13088_v17, %v13087_v10  ;;  %v13090_v33 = vpop.f32.mrb[150].mxu0  ;;  %4586 = vmatmul.mubr.bf16.gmra.mrb[36].mxu1 %v18779_v1 }
 0x325   : > { %v13091_v12 = vpop.f32.mrb[151].mxu0  ;;  %4593 = vmatprep.mubr.bf16.mxu1 %v4341_v53  ;;  %v17088_v19 = vadd.f32 %v12656_v23, %v16803_v27 }
 0x326   : > { %18778 = vst [vmem:[#allocation64_spill] sm:$0xff] %v17076_v0  ;;  %v17082_v5 = vadd.f32 %v13091_v12, %v13090_v33  ;;  %v14984_v0 = vld [vmem:[#allocation2 + $0x318] sm:$0xff] }
 0x327   : > { %v12657_v50 = vpop.f32.mrb[188].mxu1  ;;  %v4343_v53 = vpack.c.bf16 %v16821_v34, %v14984_v0  ;;  %v18782_v12 = vld [vmem:[#allocation12_spill] sm:$0xff] }
 0x328   : > { %18780 = vst [vmem:[#allocation11_spill] sm:$0xff] %v17082_v5  ;;  %v12658_v15 = vpop.f32.mrb[189].mxu1 }
 0x329   : > { %v12659_v9 = vadd.f32 %v12658_v15, %v12657_v50  ;;  %v12660_v10 = vpop.f32.mrb[190].mxu1 }
 0x32a   : > { %v13093_v22 = vpop.f32.mrb[152].mxu0  ;;  %v12661_v17 = vpop.f32.mrb[191].mxu1 }
 0x32b   : > { %v13094_v14 = vpop.f32.mrb[153].mxu0  ;;  %v12662_v1 = vadd.f32 %v12661_v17, %v12660_v10  ;;  %v17097_v23 = vadd.f32 %v12659_v9, %v16823_v41  ;;  %v18785_v9 = vld [vmem:[#allocation13_spill] sm:$0xff] }
 0x32c   : > { %v17091_v33 = vadd.f32 %v13094_v14, %v13093_v22  ;;  %v13096_v60 = vpop.f32.mrb[154].mxu0  ;;  %4594 = vmatmul.mubr.bf16.gmra.mrb[40].mxu1 %v18782_v12 }
 0x32d   : > { %v13097_v18 = vpop.f32.mrb[155].mxu0  ;;  %4601 = vmatprep.mubr.bf16.mxu1 %v4343_v53  ;;  %v17100_v3 = vadd.f32 %v12662_v1, %v16826_v55  ;;  %v18786_v1 = vld [vmem:[#allocation47_spill] sm:$0xff] }
 0x32e   : > { %18781 = vst [vmem:[#allocation65_spill] sm:$0xff] %v17091_v33  ;;  %v17094_v27 = vadd.f32 %v13097_v18, %v13096_v60  ;;  %v14985_v33 = vld [vmem:[#allocation2 + $0x358] sm:$0xff] }
 0x32f   : > { %v12679_v50 = vpop.f32.mrb[192].mxu1  ;;  %v4345_v53 = vpack.c.bf16 %v16841_v62, %v14985_v33 }
 0x330   : > { %18783 = vst [vmem:[#allocation12_spill] sm:$0xff] %v17094_v27  ;;  %v12680_v15 = vpop.f32.mrb[193].mxu1 }
 0x331   : > { %v12681_v10 = vadd.f32 %v12680_v15, %v12679_v50  ;;  %v12682_v17 = vpop.f32.mrb[194].mxu1  ;;  %v18788_v15 = vld [vmem:[#allocation18_spill] sm:$0xff] }
 0x332   : > { %v13099_v34 = vpop.f32.mrb[156].mxu0  ;;  %v12683_v0 = vpop.f32.mrb[195].mxu1 }
 0x333   : > { %v13100_v22 = vpop.f32.mrb[157].mxu0  ;;  %v3486_v14 = vadd.f32 %v12681_v10, %v16845_v26  ;;  %v12684_v12 = vadd.f32 %v12683_v0, %v12682_v17  ;;  %v18789_v26 = vld [vmem:[#allocation19_spill] sm:$0xff] }
 0x334   : > { %v17104_v60 = vadd.f32 %v13100_v22, %v13099_v34  ;;  %v13102_v41 = vpop.f32.mrb[158].mxu0  ;;  %4602 = vmatmul.mubr.bf16.gmra.mrb[44].mxu1 %v18785_v9 }
 0x335   : > { %v13103_v55 = vpop.f32.mrb[159].mxu0  ;;  %v3487_v18 = vadd.f32 %v12684_v12, %v18786_v1  ;;  %4609 = vmatprep.mubr.bf16.mxu1 %v4345_v53  ;;  %v17111_v27 = vadd.f32 %v18788_v15, %v3486_v14  ;;  %v14986_v12 = vld [vmem:[#allocation2 + $0x398] sm:$0xff] }
 0x336   : > { %18784 = vst [vmem:[#allocation66_spill] sm:$0xff] %v17104_v60  ;;  %v17108_v50 = vadd.f32 %v13103_v55, %v13102_v41  ;;  %v4347_v53 = vpack.c.bf16 %v16863_v7, %v14986_v12  ;;  %v18791_v55 = vld [vmem:[#allocation14_spill] sm:$0xff] }
 0x337   : > { %v12685_v5 = vpop.f32.mrb[196].mxu1  ;;  %v17114_v10 = vadd.f32 %v18789_v26, %v3487_v18  ;;  %v18792_v18 = vld [vmem:[#allocation50_spill] sm:$0xff] }
 0x338   : > { %18787 = vst [vmem:[#allocation13_spill] sm:$0xff] %v17108_v50  ;;  %v12686_v17 = vpop.f32.mrb[197].mxu1 }
 0x339   : > { %v12687_v62 = vadd.f32 %v12686_v17, %v12685_v5  ;;  %v12688_v33 = vpop.f32.mrb[198].mxu1  ;;  %v18793_v5 = vld [vmem:[#allocation20_spill] sm:$0xff] }
 0x33a   : > { %v13105_v34 = vpop.f32.mrb[160].mxu0  ;;  %v12689_v0 = vpop.f32.mrb[199].mxu1 }
 0x33b   : > { %v13106_v22 = vpop.f32.mrb[161].mxu0  ;;  %v3488_v9 = vadd.f32 %v12687_v62, %v16867_v13  ;;  %v12690_v60 = vadd.f32 %v12689_v0, %v12688_v33  ;;  %v18795_v13 = vld [vmem:[#allocation21_spill] sm:$0xff] }
 0x33c   : > { %v17118_v41 = vadd.f32 %v13106_v22, %v13105_v34  ;;  %v13108_v14 = vpop.f32.mrb[162].mxu0  ;;  %4610 = vmatmul.mubr.bf16.gmra.mrb[48].mxu1 %v18791_v55 }
 0x33d   : > { %v13109_v1 = vpop.f32.mrb[163].mxu0  ;;  %v3489_v15 = vadd.f32 %v12690_v60, %v18792_v18  ;;  %4617 = vmatprep.mubr.bf16.mxu1 %v4347_v53  ;;  %v17123_v26 = vadd.f32 %v18793_v5, %v3488_v9  ;;  %v14987_v60 = vld [vmem:[#allocation2 + $0x3d8] sm:$0xff] }
 0x33e   : > { %18790 = vst [vmem:[#allocation47_spill] sm:$0xff] %v17118_v41  ;;  %v17125_v17 = vadd.f32 %v13109_v1, %v13108_v14  ;;  %v4349_v53 = vpack.c.bf16 %v16885_v47, %v14987_v60  ;;  %v18797_v1 = vld [vmem:[#allocation15_spill] sm:$0xff] }
 0x33f   : > { %v12691_v50 = vpop.f32.mrb[200].mxu1  ;;  %v17128_v62 = vadd.f32 %v18795_v13, %v3489_v15 }
 0x340   : > { %18794 = vst [vmem:[#allocation18_spill] sm:$0xff] %v17125_v17  ;;  %v12692_v33 = vpop.f32.mrb[201].mxu1  ;;  %v14989_v17 = vld [vmem:[#allocation2 + $0x98] sm:$0xff] }
 0x341   : > { %v12693_v7 = vadd.f32 %v12692_v33, %v12691_v50  ;;  %v12694_v34 = vpop.f32.mrb[202].mxu1  ;;  %v18798_v50 = vld [vmem:[#allocation22_spill] sm:$0xff] }
 0x342   : > { %v13239_v0 = vpop.f32.mrb[164].mxu0  ;;  %v12695_v22 = vpop.f32.mrb[203].mxu1 }
 0x343   : > { %v13240_v12 = vpop.f32.mrb[165].mxu0  ;;  %v3490_v55 = vadd.f32 %v12693_v7, %v16889_v29  ;;  %v12696_v41 = vadd.f32 %v12695_v22, %v12694_v34  ;;  %v18800_v29 = vld [vmem:[#allocation23_spill] sm:$0xff]  ;;  %v5450_v22 = vld [vmem:[#allocation2 + $0xa8] sm:$0x7f] }
 0x344   : > { %v17132_v9 = vadd.f32 %v13240_v12, %v13239_v0  ;;  %v13242_v14 = vpop.f32.mrb[166].mxu0  ;;  %4618 = vmatmul.mubr.bf16.gmra.mrb[52].mxu1 %v18797_v1 }
 0x345   : > { %v13243_v18 = vpop.f32.mrb[167].mxu0  ;;  %v3491_v15 = vadd.f32 %v12696_v41, %v16896_v30  ;;  %4625 = vmatprep.mubr.bf16.mxu1 %v4349_v53  ;;  %v17137_v5 = vadd.f32 %v18798_v50, %v3490_v55  ;;  %v14988_v41 = vld [vmem:[#allocation2 + $0x418] sm:$0xff]  ;;  %v5446_v53 = vld [vmem:[#allocation2 + $0x88] sm:$0x80] }
 0x346   : > { %18796 = vst [vmem:[#allocation19_spill] sm:$0xff] %v17132_v9  ;;  %v17139_v13 = vadd.f32 %v13243_v18, %v13242_v14  ;;  %v4351_v55 = vpack.c.bf16 %v16922_v45, %v14988_v41  ;;  %v18802_v50 = vld [vmem:[#allocation16_spill] sm:$0xff] }
 0x347   : > { %v12697_v33 = vpop.f32.mrb[204].mxu1  ;;  %v17142_v7 = vadd.f32 %v18800_v29, %v3491_v15  ;;  %v5645_v15 = vrot.slane %v5450_v22, 7 }
 0x348   : > { %18799 = vst [vmem:[#allocation14_spill] sm:$0xff] %v17139_v13  ;;  %v12698_v34 = vpop.f32.mrb[205].mxu1 }
 0x349   : > { %v12699_v47 = vadd.f32 %v12698_v34, %v12697_v33  ;;  %v12700_v0 = vpop.f32.mrb[206].mxu1  ;;  %v18803_v34 = vld [vmem:[#allocation24_spill] sm:$0xff] }
 0x34a   : > { %v13245_v12 = vpop.f32.mrb[168].mxu0  ;;  %v12701_v60 = vpop.f32.mrb[207].mxu1 }
 0x34b   : > { %v13246_v1 = vpop.f32.mrb[169].mxu0  ;;  %v3492_v9 = vadd.f32 %v12699_v47, %v16906_v35  ;;  %v12702_v30 = vadd.f32 %v12701_v60, %v12700_v0  ;;  %v5641_v35 = vrot.slane %v14989_v17, 7  ;;  %v5640_v0 = vrot.slane %v5446_v53, 7  ;;  %v18805_v60 = vld [vmem:[#allocation25_spill] sm:$0xff] }
 0x34c   : > { %v17146_v14 = vadd.f32 %v13246_v1, %v13245_v12  ;;  %v13248_v18 = vpop.f32.mrb[170].mxu0  ;;  %4626 = vmatmul.mubr.bf16.gmra.mrb[56].mxu1 %v18802_v50  ;;  %v5449_v1 = vld [vmem:[#allocation2 + $0xa0] sm:$0x7f]  ;;  %v5445_v50 = vld [vmem:[#allocation2 + $0x80] sm:$0x80] }
 0x34d   : > { %v13249_v29 = vpop.f32.mrb[171].mxu0  ;;  %v3493_v33 = vadd.f32 %v12702_v30, %v16912_v57  ;;  %4633 = vmatprep.mubr.bf16.mxu1 %v4351_v55  ;;  %v17151_v13 = vadd.f32 %v18803_v34, %v3492_v9  ;;  %v5646_v22 = vsel %vm1847_vm0, %v5641_v35, %v5645_v15  ;;  %v5456_v30 = vld [vmem:[#allocation2 + $0xe8] sm:$0x7f]  ;;  %v5642_v34 = vsel %vm1847_vm0, %v5640_v0, %v5641_v35  ;;  %v18807_v15 = vld [vmem:[#allocation17_spill] sm:$0xff] }
 0x34e   : > { %18801 = vst [vmem:[#allocation50_spill] sm:$0xff] %v17146_v14  ;;  %v17153_v47 = vadd.f32 %v13249_v29, %v13248_v18  ;;  %v5643_v17 = vrot.slane %v5449_v1, 7  ;;  %v18808_v35 = vld [vmem:[#allocation26_spill] sm:$0xff]  ;;  %v14992_v1 = vld [vmem:[#allocation2 + $0xd8] sm:$0xff] }
 0x34f   : > { %v12703_v45 = vpop.f32.mrb[208].mxu1  ;;  %v17156_v12 = vadd.f32 %v18805_v60, %v3493_v33  ;;  %v5452_v33 = vld [vmem:[#allocation2 + $0xc8] sm:$0x80]  ;;  %v5637_v60 = vrot.slane %v5445_v50, 7 }
 0x350   : > { %18804 = vst [vmem:[#allocation20_spill] sm:$0xff] %v17153_v47  ;;  %v12704_v41 = vpop.f32.mrb[209].mxu1  ;;  %v5862_v47 = vpack.c.bf16 %v5646_v22, %v5642_v34  ;;  %v5651_v22 = vrot.slane %v14992_v1, 7 }
 0x351   : > { %v12705_v14 = vadd.f32 %v12704_v41, %v12703_v45  ;;  %v12706_v57 = vpop.f32.mrb[210].mxu1  ;;  %v5655_v45 = vrot.slane %v5456_v30, 7  ;;  %v14990_v41 = vld [vmem:[#allocation2 + $0x90] sm:$0xff] }
 0x352   : > { %v13251_v55 = vpop.f32.mrb[172].mxu0  ;;  %v12707_v9 = vpop.f32.mrb[211].mxu1  ;;  %v5638_v59 = vrot.slane %v14990_v41, 7  ;;  %v5462_v41 = vld [vmem:[#allocation2 + $0x128] sm:$0x7f] }
 0x353   : > { %v13252_v18 = vpop.f32.mrb[173].mxu0  ;;  %v3494_v53 = vadd.f32 %v12705_v14, %v16920_v36  ;;  %v12708_v29 = vadd.f32 %v12707_v9, %v12706_v57  ;;  %v17168_v36 = vld [vmem:[#allocation2] sm:$0xff]  ;;  %v5650_v57 = vrot.slane %v5452_v33, 7  ;;  %v18810_v9 = vld [vmem:[#allocation27_spill] sm:$0xff] }
 0x354   : > { %v17161_v49 = vadd.f32 %v13252_v18, %v13251_v55  ;;  %v13254_v43 = vpop.f32.mrb[174].mxu0  ;;  %4634 = vmatmul.mubr.bf16.gmra.mrb[60].mxu1 %v18807_v15  ;;  %v6278_v14 = vpack.c.bf16 %v17168_v36, %v17168_v36  ;;  %v5644_v30 = vsel %vm1847_vm0, %v5638_v59, %v5643_v17  ;;  %v5656_v18 = vsel %vm1847_vm0, %v5651_v22, %v5655_v45  ;;  %v5451_v17 = vld [vmem:[#allocation2 + $0xc0] sm:$0x80]  ;;  %v14879_v45 = vld [vmem:[%s18685_s5 + $0x448] sm:$0xff]  }
 0x355   : > { %v13255_v42 = vpop.f32.mrb[175].mxu0  ;;  %v3495_v52 = vadd.f32 %v12708_v29, %v16927_v39  ;;  %6054 = vmatprep.mubr.bf16.mxu1 %v5862_v47  ;;  %v17166_v0 = vadd.f32 %v18808_v35, %v3494_v53  ;;  %v5455_v39 = vld [vmem:[#allocation2 + $0xe0] sm:$0x7f]  ;;  %v5639_v53 = vsel %vm1847_vm0, %v5637_v60, %v5638_v59  ;;  %v5652_v35 = vsel %vm1847_vm0, %v5650_v57, %v5651_v22 }
 0x356   : > { %18806 = vst [vmem:[#allocation21_spill] sm:$0xff] %v17161_v49  ;;  %v17172_v50 = vadd.f32 %v13255_v42, %v13254_v43  ;;  %6560 = vmatprep.mubr.bf16.mxu0 %v6278_v14  ;;  %v14878_v42 = vld [vmem:[%s18685_s5 + $0x400] sm:$0xff]   ;;  %v5861_v43 = vpack.c.bf16 %v5644_v30, %v5639_v53  ;;  %v5665_v30 = vrot.slane %v5462_v41, 7  ;;  %v5647_v53 = vrot.slane %v5451_v17, 7  ;;  %v14993_v49 = vld [vmem:[#allocation2 + $0xd0] sm:$0xff] }
 0x357   : > { %v12709_v55 = vpop.f32.mrb[212].mxu1  ;;  %v17176_v34 = vadd.f32 %v18810_v9, %v3495_v52  ;;  %6561 = vmatmul.mubr.bf16.gmra.mrb[224].mxu0 %v6278_v14  ;;  %v5653_v14 = vrot.slane %v5455_v39, 7  ;;  %v5458_v9 = vld [vmem:[#allocation2 + $0x108] sm:$0x80]  ;;  %v18813_v39 = vld [vmem:[#allocation28_spill] sm:$0xff] }
 0x358   : > { %18809 = vst [vmem:[#allocation15_spill] sm:$0xff] %v17172_v50  ;;  %v12710_v47 = vpop.f32.mrb[213].mxu1  ;;  %v5660_v41 = vrot.slane %v5458_v9, 7 }
 0x359   : > { %18811 = vst [vmem:[#allocation22_spill] sm:$0xff] %v17176_v34  ;;  %v12711_v29 = vadd.f32 %v12710_v47, %v12709_v55  ;;  %v12712_v15 = vpop.f32.mrb[214].mxu1  ;;  %v5864_v55 = vpack.c.bf16 %v5656_v18, %v5652_v35  ;;  %v5648_v34 = vrot.slane %v14993_v49, 7  ;;  %v14881_v49 = vld [vmem:[%s18685_s5 + $0x450] sm:$0xff]  }
 0x35a   : > { %v13257_v33 = vpop.f32.mrb[176].mxu0  ;;  %v12713_v52 = vpop.f32.mrb[215].mxu1 }
 0x35b   : > { %v13258_v1 = vpop.f32.mrb[177].mxu0  ;;  %v3496_v59 = vadd.f32 %v12711_v29, %v16939_v37  ;;  %v12714_v60 = vadd.f32 %v12713_v52, %v12712_v15  ;;  %v14880_v37 = vld [vmem:[%s18685_s5 + $0x408] sm:$0xff]   ;;  %v14994_v29 = vld [vmem:[#allocation2 + $0x118] sm:$0xff]  ;;  %v5461_v52 = vld [vmem:[#allocation2 + $0x120] sm:$0x7f] }
 0x35c   : > { %v17188_v47 = vadd.f32 %v13258_v1, %v13257_v33  ;;  %v13260_v50 = vpop.f32.mrb[178].mxu0  ;;  %6055 = vmatmul.mubr.bf16.vlgmr.msra.gmra.mrb[64].mxu1 %v5861_v43  ;;  %v5661_v15 = vrot.slane %v14994_v29, 7  ;;  %v18815_v43 = vld [vmem:[#allocation29_spill] sm:$0xff] }
 0x35d   : > { %v13261_v22 = vpop.f32.mrb[179].mxu0  ;;  %v3497_v57 = vadd.f32 %v12714_v60, %v16945_v38  ;;  %6062 = vmatprep.mubr.bf16.mxu1 %v5864_v55  ;;  %13336 = vmatpush3.bf16.msra.mxu1 %v14878_v42  ;;  %v17195_v18 = vadd.f32 %v18813_v39, %v3496_v59  ;;  %v5654_v38 = vsel %vm1847_vm0, %v5648_v34, %v5653_v14  ;;  %v5468_v55 = vld [vmem:[#allocation2 + $0x168] sm:$0x7f]  ;;  %v5457_v14 = vld [vmem:[#allocation2 + $0x100] sm:$0x80] }
 0x35e   : > { %18812 = vst [vmem:[#allocation23_spill] sm:$0xff] %v17188_v47  ;;  %v17197_v33 = vadd.f32 %v13261_v22, %v13260_v50  ;;  %13337 = vmatprep.subr.bf16.mxu1 %v14879_v45  ;;  %v5666_v1 = vsel %vm1847_vm0, %v5661_v15, %v5665_v30  ;;  %v5649_v59 = vsel %vm1847_vm0, %v5647_v53, %v5648_v34  ;;  %v14882_v45 = vld [vmem:[%s18685_s5 + $0x410] sm:$0xff]   ;;  %v14883_v30 = vld [vmem:[%s18685_s5 + $0x458] sm:$0xff]   ;;  %v5663_v34 = vrot.slane %v5461_v52, 7  ;;  %v18817_v52 = vld [vmem:[#allocation30_spill] sm:$0xff] }
 0x35f   : > { %v12715_v42 = vpop.f32.mrb[216].mxu1  ;;  %v17204_v17 = vadd.f32 %v18815_v43, %v3497_v57  ;;  %v5863_v9 = vpack.c.bf16 %v5654_v38, %v5649_v59  ;;  %v5662_v57 = vsel %vm1847_vm0, %v5660_v41, %v5661_v15  ;;  %v5464_v43 = vld [vmem:[#allocation2 + $0x148] sm:$0x80]  ;;  %v5675_v59 = vrot.slane %v5468_v55, 7  ;;  %v14995_v47 = vld [vmem:[#allocation2 + $0x110] sm:$0xff] }
 0x360   : > { %18814 = vst [vmem:[#allocation16_spill] sm:$0xff] %v17197_v33  ;;  %v12716_v35 = vpop.f32.mrb[217].mxu1  ;;  %v5657_v33 = vrot.slane %v5457_v14, 7  ;;  %v5658_v15 = vrot.slane %v14995_v47, 7  ;;  %v5670_v55 = vrot.slane %v5464_v43, 7  ;;  %v14885_v47 = vld [vmem:[%s18685_s5 + $0x460] sm:$0xff]  }
 0x361   : > { %v12717_v50 = vadd.f32 %v12716_v35, %v12715_v42  ;;  %v12718_v60 = vpop.f32.mrb[218].mxu1  ;;  %13338 = vmatpush3.bf16.msra.mxu1 %v14880_v37  ;;  %v5866_v42 = vpack.c.bf16 %v5666_v1, %v5662_v57  ;;  %v5474_v43 = vld [vmem:[#allocation2 + $0x1a8] sm:$0x7f] }
 0x362   : > { %v13263_v22 = vpop.f32.mrb[180].mxu0  ;;  %v12719_v39 = vpop.f32.mrb[219].mxu1  ;;  %13339 = vmatprep.subr.bf16.mxu1 %v14881_v49 }
 0x363   : > { %v13264_v53 = vpop.f32.mrb[181].mxu0  ;;  %v3498_v29 = vadd.f32 %v12717_v50, %v16973_v48  ;;  %v12720_v37 = vadd.f32 %v12719_v39, %v12718_v60  ;;  %v14884_v48 = vld [vmem:[%s18685_s5 + $0x418] sm:$0xff]   ;;  %v5467_v39 = vld [vmem:[#allocation2 + $0x160] sm:$0x7f] }
 0x364   : > { %v17216_v35 = vadd.f32 %v13264_v53, %v13263_v22  ;;  %v13266_v38 = vpop.f32.mrb[182].mxu0  ;;  %6063 = vmatmul.mubr.bf16.gmra.mrb[68].mxu1 %v5863_v9  ;;  %v14996_v50 = vld [vmem:[#allocation2 + $0x158] sm:$0xff]  ;;  %v18819_v9 = vld [vmem:[#allocation31_spill] sm:$0xff] }
 0x365   : > { %v13267_v41 = vpop.f32.mrb[183].mxu0  ;;  %v3499_v49 = vadd.f32 %v12720_v37, %v16976_v2  ;;  %6070 = vmatprep.mubr.bf16.mxu1 %v5866_v42  ;;  %13340 = vmatpush3.bf16.msra.mxu1 %v14882_v45  ;;  %v17223_v1 = vadd.f32 %v18817_v52, %v3498_v29  ;;  %v5671_v60 = vrot.slane %v14996_v50, 7  ;;  %v5664_v2 = vsel %vm1847_vm0, %v5658_v15, %v5663_v34  ;;  %v5463_v34 = vld [vmem:[#allocation2 + $0x140] sm:$0x80] }
 0x366   : > { %18816 = vst [vmem:[#allocation24_spill] sm:$0xff] %v17216_v35  ;;  %v17225_v22 = vadd.f32 %v13267_v41, %v13266_v38  ;;  %13341 = vmatprep.subr.bf16.mxu1 %v14883_v30  ;;  %v5659_v29 = vsel %vm1847_vm0, %v5657_v33, %v5658_v15  ;;  %v14886_v30 = vld [vmem:[%s18685_s5 + $0x420] sm:$0xff]   ;;  %v5673_v33 = vrot.slane %v5467_v39, 7  ;;  %v14997_v35 = vld [vmem:[#allocation2 + $0x150] sm:$0xff]  ;;  %v18821_v39 = vld [vmem:[#allocation32_spill] sm:$0xff] }
 0x367   : > { %v12721_v45 = vpop.f32.mrb[220].mxu1  ;;  %v17232_v14 = vadd.f32 %v18819_v9, %v3499_v49  ;;  %v5676_v53 = vsel %vm1847_vm0, %v5671_v60, %v5675_v59  ;;  %v5865_v38 = vpack.c.bf16 %v5664_v2, %v5659_v29  ;;  %v5672_v49 = vsel %vm1847_vm0, %v5670_v55, %v5671_v60  ;;  %v14887_v59 = vld [vmem:[%s18685_s5 + $0x468] sm:$0xff]  }
 0x368   : > { %18818 = vst [vmem:[#allocation25_spill] sm:$0xff] %v17225_v22  ;;  %v12722_v57 = vpop.f32.mrb[221].mxu1  ;;  %v5470_v9 = vld [vmem:[#allocation2 + $0x188] sm:$0x80]  ;;  %v5685_v29 = vrot.slane %v5474_v43, 7  ;;  %v5667_v22 = vrot.slane %v5463_v34, 7 }
 0x369   : > { %v12723_v37 = vadd.f32 %v12722_v57, %v12721_v45  ;;  %v12724_v42 = vpop.f32.mrb[222].mxu1  ;;  %13342 = vmatpush3.bf16.msra.mxu1 %v14884_v48  ;;  %v5868_v45 = vpack.c.bf16 %v5676_v53, %v5672_v49  ;;  %v5668_v60 = vrot.slane %v14997_v35, 7  ;;  %v5680_v43 = vrot.slane %v5470_v9, 7  ;;  %v14889_v35 = vld [vmem:[%s18685_s5 + $0x470] sm:$0xff]   ;;  %v5480_v9 = vld [vmem:[#allocation2 + $0x1e8] sm:$0x7f] }
 0x36a   : > { %v13269_v41 = vpop.f32.mrb[184].mxu0  ;;  %v12725_v52 = vpop.f32.mrb[223].mxu1  ;;  %13343 = vmatprep.subr.bf16.mxu1 %v14885_v47 }
 0x36b   : > { %v13270_v15 = vpop.f32.mrb[185].mxu0  ;;  %v3500_v50 = vadd.f32 %v12723_v37, %v16996_v11  ;;  %v12726_v48 = vadd.f32 %v12725_v52, %v12724_v42  ;;  %v14888_v11 = vld [vmem:[%s18685_s5 + $0x428] sm:$0xff]   ;;  %v14998_v37 = vld [vmem:[#allocation2 + $0x198] sm:$0xff]  ;;  %v5473_v52 = vld [vmem:[#allocation2 + $0x1a0] sm:$0x7f] }
 0x36c   : > { %v17244_v57 = vadd.f32 %v13270_v15, %v13269_v41  ;;  %v13272_v2 = vpop.f32.mrb[186].mxu0  ;;  %6071 = vmatmul.mubr.bf16.gmra.mrb[72].mxu1 %v5865_v38  ;;  %v5681_v42 = vrot.slane %v14998_v37, 7  ;;  %v18823_v38 = vld [vmem:[#allocation33_spill] sm:$0xff] }
 0x36d   : > { %v13273_v55 = vpop.f32.mrb[187].mxu0  ;;  %v3501_v47 = vadd.f32 %v12726_v48, %v16999_v46  ;;  %6078 = vmatprep.mubr.bf16.mxu1 %v5868_v45  ;;  %13344 = vmatpush3.bf16.msra.mxu1 %v14886_v30  ;;  %v17251_v53 = vadd.f32 %v18821_v39, %v3500_v50  ;;  %v5674_v46 = vsel %vm1847_vm0, %v5668_v60, %v5673_v33  ;;  %v5469_v33 = vld [vmem:[#allocation2 + $0x180] sm:$0x80] }
 0x36e   : > { %18820 = vst [vmem:[#allocation17_spill] sm:$0xff] %v17244_v57  ;;  %v17253_v41 = vadd.f32 %v13273_v55, %v13272_v2  ;;  %13345 = vmatprep.subr.bf16.mxu1 %v14887_v59  ;;  %v5686_v15 = vsel %vm1847_vm0, %v5681_v42, %v5685_v29  ;;  %v5669_v50 = vsel %vm1847_vm0, %v5667_v22, %v5668_v60  ;;  %v14890_v59 = vld [vmem:[%s18685_s5 + $0x430] sm:$0xff]   ;;  %v14891_v29 = vld [vmem:[%s18685_s5 + $0x478] sm:$0xff]   ;;  %v5683_v22 = vrot.slane %v5473_v52, 7  ;;  %v18825_v52 = vld [vmem:[#allocation34_spill] sm:$0xff] }
 0x36f   : > { %v12727_v30 = vpop.f32.mrb[224].mxu1  ;;  %v17260_v34 = vadd.f32 %v18823_v38, %v3501_v47  ;;  %v5867_v2 = vpack.c.bf16 %v5674_v46, %v5669_v50  ;;  %v5682_v47 = vsel %vm1847_vm0, %v5680_v43, %v5681_v42  ;;  %v5476_v38 = vld [vmem:[#allocation2 + $0x1c8] sm:$0x80]  ;;  %v5695_v50 = vrot.slane %v5480_v9, 7  ;;  %v14999_v57 = vld [vmem:[#allocation2 + $0x190] sm:$0xff] }
 0x370   : > { %18822 = vst [vmem:[#allocation26_spill] sm:$0xff] %v17253_v41  ;;  %v12728_v49 = vpop.f32.mrb[225].mxu1  ;;  %v5677_v41 = vrot.slane %v5469_v33, 7  ;;  %v5678_v42 = vrot.slane %v14999_v57, 7  ;;  %v5690_v9 = vrot.slane %v5476_v38, 7  ;;  %v18827_v33 = vld [vmem:[#allocation35_spill] sm:$0xff] }
 0x371   : > { %v12729_v48 = vadd.f32 %v12728_v49, %v12727_v30  ;;  %v12730_v45 = vpop.f32.mrb[226].mxu1  ;;  %13346 = vmatpush3.bf16.msra.mxu1 %v14888_v11  ;;  %v5870_v30 = vpack.c.bf16 %v5686_v15, %v5682_v47 }
 0x372   : > { %v13275_v55 = vpop.f32.mrb[188].mxu0  ;;  %v12731_v39 = vpop.f32.mrb[227].mxu1  ;;  %13347 = vmatprep.subr.bf16.mxu1 %v14889_v35  ;;  %v5684_v57 = vsel %vm1847_vm0, %v5678_v42, %v5683_v22 }
 0x373   : > { %v13276_v60 = vpop.f32.mrb[189].mxu0  ;;  %v3502_v37 = vadd.f32 %v12729_v48, %v17016_v40  ;;  %v12732_v11 = vadd.f32 %v12731_v39, %v12730_v45  ;;  %v14892_v40 = vld [vmem:[%s18685_s5 + $0x438] sm:$0xff]  }
 0x374   : > { %v17272_v49 = vadd.f32 %v13276_v60, %v13275_v55  ;;  %v13278_v46 = vpop.f32.mrb[190].mxu0  ;;  %6079 = vmatmul.mubr.bf16.gmra.mrb[76].mxu1 %v5867_v2  ;;  %v15000_v48 = vld [vmem:[#allocation2 + $0x1d8] sm:$0xff]  ;;  %v5679_v60 = vsel %vm1847_vm0, %v5677_v41, %v5678_v42 }
 0x375   : > { %v13279_v43 = vpop.f32.mrb[191].mxu0  ;;  %v3503_v35 = vadd.f32 %v12732_v11, %v17019_v32  ;;  %6086 = vmatprep.mubr.bf16.mxu1 %v5870_v30  ;;  %13348 = vmatpush3.bf16.msra.mxu1 %v14890_v59  ;;  %v17279_v15 = vadd.f32 %v18825_v52, %v3502_v37  ;;  %v5691_v45 = vrot.slane %v15000_v48, 7  ;;  %v5479_v59 = vld [vmem:[#allocation2 + $0x1e0] sm:$0x7f]  ;;  %v5486_v30 = vld [vmem:[#allocation2 + $0x228] sm:$0x7f] }
 0x376   : > { %18824 = vst [vmem:[#allocation27_spill] sm:$0xff] %v17272_v49  ;;  %v17281_v55 = vadd.f32 %v13279_v43, %v13278_v46  ;;  %13349 = vmatprep.subr.bf16.mxu1 %v14891_v29  ;;  %v5869_v46 = vpack.c.bf16 %v5684_v57, %v5679_v60  ;;  %v5475_v43 = vld [vmem:[#allocation2 + $0x1c0] sm:$0x80]  ;;  %v5693_v52 = vrot.slane %v5479_v59, 7  ;;  %v5482_v49 = vld [vmem:[#allocation2 + $0x208] sm:$0x80] }
 0x377   : > { %v12733_v2 = vpop.f32.mrb[228].mxu1  ;;  %v17285_v32 = vadd.f32 %v18827_v33, %v3503_v35  ;;  %v5696_v47 = vsel %vm1847_vm0, %v5691_v45, %v5695_v50  ;;  %v5692_v22 = vsel %vm1847_vm0, %v5690_v9, %v5691_v45  ;;  %v5705_v42 = vrot.slane %v5486_v30, 7  ;;  %v18829_v45 = vld [vmem:[#allocation36_spill] sm:$0xff] }
 0x378   : > { %18826 = vst [vmem:[#allocation28_spill] sm:$0xff] %v17281_v55  ;;  %v12734_v39 = vpop.f32.mrb[229].mxu1  ;;  %v5872_v55 = vpack.c.bf16 %v5696_v47, %v5692_v22  ;;  %v15002_v59 = vld [vmem:[#allocation2 + $0x218] sm:$0xff]  ;;  %v5700_v47 = vrot.slane %v5482_v49, 7 }
 0x379   : > { %v12735_v37 = vadd.f32 %v12734_v39, %v12733_v2  ;;  %v12736_v11 = vpop.f32.mrb[230].mxu1  ;;  %13350 = vmatpush3.bf16.msra.mxu1 %v14892_v40  ;;  %v5687_v2 = vrot.slane %v5475_v43, 7  ;;  %v15001_v40 = vld [vmem:[#allocation2 + $0x1d0] sm:$0xff]  ;;  %v5485_v43 = vld [vmem:[#allocation2 + $0x220] sm:$0x7f] }
 0x37a   : > { %v13281_v38 = vpop.f32.mrb[192].mxu0  ;;  %v12737_v29 = vpop.f32.mrb[231].mxu1  ;;  %v5688_v57 = vrot.slane %v15001_v40, 7  ;;  %v5481_v40 = vld [vmem:[#allocation2 + $0x200] sm:$0x80] }
 0x37b   : > { %v13282_v48 = vpop.f32.mrb[193].mxu0  ;;  %v3504_v35 = vadd.f32 %v12735_v37, %v17027_v61  ;;  %v12738_v33 = vadd.f32 %v12737_v29, %v12736_v11  ;;  %v5701_v61 = vrot.slane %v15002_v59, 7 }
 0x37c   : > { %v17291_v50 = vadd.f32 %v13282_v48, %v13281_v38  ;;  %v13284_v41 = vpop.f32.mrb[194].mxu0  ;;  %6087 = vmatmul.mubr.bf16.gmra.mrb[80].mxu1 %v5869_v46  ;;  %v5694_v11 = vsel %vm1847_vm0, %v5688_v57, %v5693_v52  ;;  %v18831_v46 = vld [vmem:[#allocation37_spill] sm:$0xff]  ;;  %v5703_v52 = vrot.slane %v5485_v43, 7  ;;  %v15004_v43 = vld [vmem:[#allocation2 + $0x258] sm:$0xff] }
 0x37d   : > { %v13285_v39 = vpop.f32.mrb[195].mxu0  ;;  %v3505_v60 = vadd.f32 %v12738_v33, %v17030_v16  ;;  %6094 = vmatprep.mubr.bf16.mxu1 %v5872_v55  ;;  %v17295_v9 = vadd.f32 %v18829_v45, %v3504_v35  ;;  %v5706_v22 = vsel %vm1847_vm0, %v5701_v61, %v5705_v42  ;;  %v5689_v16 = vsel %vm1847_vm0, %v5687_v2, %v5688_v57  ;;  %v5492_v35 = vld [vmem:[#allocation2 + $0x268] sm:$0x7f] }
 0x37e   : > { %18828 = vst [vmem:[#allocation29_spill] sm:$0xff] %v17291_v50  ;;  %v17297_v37 = vadd.f32 %v13285_v39, %v13284_v41  ;;  %v5871_v33 = vpack.c.bf16 %v5694_v11, %v5689_v16  ;;  %v5702_v49 = vsel %vm1847_vm0, %v5700_v47, %v5701_v61  ;;  %v5715_v2 = vrot.slane %v5492_v35, 7  ;;  %v18833_v61 = vld [vmem:[#allocation38_spill] sm:$0xff] }
 0x37f   : > { %v12739_v38 = vpop.f32.mrb[232].mxu1  ;;  %v17301_v30 = vadd.f32 %v18831_v46, %v3505_v60  ;;  %v5874_v46 = vpack.c.bf16 %v5706_v22, %v5702_v49  ;;  %v5697_v57 = vrot.slane %v5481_v40, 7  ;;  %v5491_v40 = vld [vmem:[#allocation2 + $0x260] sm:$0x7f] }
 0x380   : > { %18830 = vst [vmem:[#allocation30_spill] sm:$0xff] %v17297_v37  ;;  %v12740_v29 = vpop.f32.mrb[233].mxu1  ;;  %v5488_v37 = vld [vmem:[#allocation2 + $0x248] sm:$0x80] }
 0x381   : > { %v12741_v55 = vadd.f32 %v12740_v29, %v12739_v38  ;;  %v12742_v48 = vpop.f32.mrb[234].mxu1  ;;  %v15003_v38 = vld [vmem:[#allocation2 + $0x210] sm:$0xff]  ;;  %v5710_v22 = vrot.slane %v5488_v37, 7 }
 0x382   : > { %v13287_v41 = vpop.f32.mrb[196].mxu0  ;;  %v12743_v39 = vpop.f32.mrb[235].mxu1  ;;  %v5698_v11 = vrot.slane %v15003_v38, 7  ;;  %v5487_v38 = vld [vmem:[#allocation2 + $0x240] sm:$0x80] }
 0x383   : > { %v13288_v45 = vpop.f32.mrb[197].mxu0  ;;  %v3506_v60 = vadd.f32 %v12741_v55, %v17038_v25  ;;  %v12744_v59 = vadd.f32 %v12743_v39, %v12742_v48  ;;  %v5711_v25 = vrot.slane %v15004_v43, 7 }
 0x384   : > { %v17307_v50 = vadd.f32 %v13288_v45, %v13287_v41  ;;  %v13290_v42 = vpop.f32.mrb[198].mxu0  ;;  %6095 = vmatmul.mubr.bf16.gmra.mrb[84].mxu1 %v5871_v33  ;;  %v5704_v48 = vsel %vm1847_vm0, %v5698_v11, %v5703_v52  ;;  %v18835_v33 = vld [vmem:[#allocation39_spill] sm:$0xff]  ;;  %v5713_v52 = vrot.slane %v5491_v40, 7  ;;  %v15006_v40 = vld [vmem:[#allocation2 + $0x298] sm:$0xff] }
 0x385   : > { %v13291_v29 = vpop.f32.mrb[199].mxu0  ;;  %v3507_v16 = vadd.f32 %v12744_v59, %v17041_v21  ;;  %6102 = vmatprep.mubr.bf16.mxu1 %v5874_v46  ;;  %v17311_v47 = vadd.f32 %v18833_v61, %v3506_v60  ;;  %v5716_v49 = vsel %vm1847_vm0, %v5711_v25, %v5715_v2  ;;  %v5699_v21 = vsel %vm1847_vm0, %v5697_v57, %v5698_v11  ;;  %v5498_v59 = vld [vmem:[#allocation2 + $0x2a8] sm:$0x7f] }
 0x386   : > { %18832 = vst [vmem:[#allocation31_spill] sm:$0xff] %v17307_v50  ;;  %v17313_v55 = vadd.f32 %v13291_v29, %v13290_v42  ;;  %v5873_v46 = vpack.c.bf16 %v5704_v48, %v5699_v21  ;;  %v5712_v37 = vsel %vm1847_vm0, %v5710_v22, %v5711_v25  ;;  %v5725_v57 = vrot.slane %v5498_v59, 7  ;;  %v18837_v25 = vld [vmem:[#allocation40_spill] sm:$0xff] }
 0x387   : > { %v12745_v41 = vpop.f32.mrb[236].mxu1  ;;  %v17317_v35 = vadd.f32 %v18835_v33, %v3507_v16  ;;  %v5876_v33 = vpack.c.bf16 %v5716_v49, %v5712_v37  ;;  %v5707_v11 = vrot.slane %v5487_v38, 7  ;;  %v5497_v38 = vld [vmem:[#allocation2 + $0x2a0] sm:$0x7f] }
 0x388   : > { %18834 = vst [vmem:[#allocation32_spill] sm:$0xff] %v17313_v55  ;;  %v12746_v39 = vpop.f32.mrb[237].mxu1  ;;  %v5494_v55 = vld [vmem:[#allocation2 + $0x288] sm:$0x80] }
 0x389   : > { %v12747_v45 = vadd.f32 %v12746_v39, %v12745_v41  ;;  %v12748_v60 = vpop.f32.mrb[238].mxu1  ;;  %v15005_v41 = vld [vmem:[#allocation2 + $0x250] sm:$0xff]  ;;  %v5720_v49 = vrot.slane %v5494_v55, 7 }
 0x38a   : > { %v13293_v42 = vpop.f32.mrb[200].mxu0  ;;  %v12749_v29 = vpop.f32.mrb[239].mxu1  ;;  %v5708_v48 = vrot.slane %v15005_v41, 7  ;;  %v5493_v41 = vld [vmem:[#allocation2 + $0x280] sm:$0x80] }
 0x38b   : > { %v13294_v61 = vpop.f32.mrb[201].mxu0  ;;  %v3508_v16 = vadd.f32 %v12747_v45, %v17049_v31  ;;  %v12750_v43 = vadd.f32 %v12749_v29, %v12748_v60  ;;  %v5721_v31 = vrot.slane %v15006_v40, 7 }
 0x38c   : > { %v17323_v50 = vadd.f32 %v13294_v61, %v13293_v42  ;;  %v13296_v2 = vpop.f32.mrb[202].mxu0  ;;  %6103 = vmatmul.mubr.bf16.gmra.mrb[88].mxu1 %v5873_v46  ;;  %v5714_v60 = vsel %vm1847_vm0, %v5708_v48, %v5713_v52  ;;  %v18839_v46 = vld [vmem:[#allocation41_spill] sm:$0xff]  ;;  %v5723_v52 = vrot.slane %v5497_v38, 7  ;;  %v15008_v38 = vld [vmem:[#allocation2 + $0x2d8] sm:$0xff] }
 0x38d   : > { %v13297_v39 = vpop.f32.mrb[203].mxu0  ;;  %v3509_v21 = vadd.f32 %v12750_v43, %v17052_v24  ;;  %6110 = vmatprep.mubr.bf16.mxu1 %v5876_v33  ;;  %v17327_v22 = vadd.f32 %v18837_v25, %v3508_v16  ;;  %v5726_v37 = vsel %vm1847_vm0, %v5721_v31, %v5725_v57  ;;  %v5709_v24 = vsel %vm1847_vm0, %v5707_v11, %v5708_v48  ;;  %v5504_v43 = vld [vmem:[#allocation2 + $0x2e8] sm:$0x7f] }
 0x38e   : > { %18836 = vst [vmem:[#allocation33_spill] sm:$0xff] %v17323_v50  ;;  %v17329_v45 = vadd.f32 %v13297_v39, %v13296_v2  ;;  %v5875_v33 = vpack.c.bf16 %v5714_v60, %v5709_v24  ;;  %v5722_v55 = vsel %vm1847_vm0, %v5720_v49, %v5721_v31  ;;  %v5735_v11 = vrot.slane %v5504_v43, 7  ;;  %v18841_v31 = vld [vmem:[#allocation42_spill] sm:$0xff] }
 0x38f   : > { %v12751_v42 = vpop.f32.mrb[240].mxu1  ;;  %v17333_v59 = vadd.f32 %v18839_v46, %v3509_v21  ;;  %v5878_v46 = vpack.c.bf16 %v5726_v37, %v5722_v55  ;;  %v5717_v48 = vrot.slane %v5493_v41, 7  ;;  %v5503_v41 = vld [vmem:[#allocation2 + $0x2e0] sm:$0x7f] }
 0x390   : > { %18838 = vst [vmem:[#allocation34_spill] sm:$0xff] %v17329_v45  ;;  %v12752_v29 = vpop.f32.mrb[241].mxu1  ;;  %v5500_v45 = vld [vmem:[#allocation2 + $0x2c8] sm:$0x80] }
 0x391   : > { %v12753_v61 = vadd.f32 %v12752_v29, %v12751_v42  ;;  %v12754_v16 = vpop.f32.mrb[242].mxu1  ;;  %v15007_v42 = vld [vmem:[#allocation2 + $0x290] sm:$0xff]  ;;  %v5730_v37 = vrot.slane %v5500_v45, 7 }
 0x392   : > { %v13299_v2 = vpop.f32.mrb[204].mxu0  ;;  %v12755_v39 = vpop.f32.mrb[243].mxu1  ;;  %v5718_v60 = vrot.slane %v15007_v42, 7  ;;  %v5499_v42 = vld [vmem:[#allocation2 + $0x2c0] sm:$0x80] }
 0x393   : > { %v13300_v25 = vpop.f32.mrb[205].mxu0  ;;  %v3510_v21 = vadd.f32 %v12753_v61, %v17060_v54  ;;  %v12756_v40 = vadd.f32 %v12755_v39, %v12754_v16  ;;  %v5731_v54 = vrot.slane %v15008_v38, 7 }
 0x394   : > { %v17339_v50 = vadd.f32 %v13300_v25, %v13299_v2  ;;  %v13302_v57 = vpop.f32.mrb[206].mxu0  ;;  %6111 = vmatmul.mubr.bf16.gmra.mrb[92].mxu1 %v5875_v33  ;;  %v5724_v16 = vsel %vm1847_vm0, %v5718_v60, %v5723_v52  ;;  %v18843_v33 = vld [vmem:[#allocation43_spill] sm:$0xff]  ;;  %v5733_v52 = vrot.slane %v5503_v41, 7  ;;  %v15010_v41 = vld [vmem:[#allocation2 + $0x318] sm:$0xff] }
 0x395   : > { %v13303_v29 = vpop.f32.mrb[207].mxu0  ;;  %v3511_v24 = vadd.f32 %v12756_v40, %v17063_v28  ;;  %6118 = vmatprep.mubr.bf16.mxu1 %v5878_v46  ;;  %v17343_v49 = vadd.f32 %v18841_v31, %v3510_v21  ;;  %v5736_v55 = vsel %vm1847_vm0, %v5731_v54, %v5735_v11  ;;  %v5719_v28 = vsel %vm1847_vm0, %v5717_v48, %v5718_v60  ;;  %v5510_v40 = vld [vmem:[#allocation2 + $0x328] sm:$0x7f] }
 0x396   : > { %18840 = vst [vmem:[#allocation35_spill] sm:$0xff] %v17339_v50  ;;  %v17345_v61 = vadd.f32 %v13303_v29, %v13302_v57  ;;  %v5877_v46 = vpack.c.bf16 %v5724_v16, %v5719_v28  ;;  %v5732_v45 = vsel %vm1847_vm0, %v5730_v37, %v5731_v54  ;;  %v5745_v48 = vrot.slane %v5510_v40, 7  ;;  %v18845_v54 = vld [vmem:[#allocation44_spill] sm:$0xff] }
 0x397   : > { %v12757_v2 = vpop.f32.mrb[244].mxu1  ;;  %v17349_v43 = vadd.f32 %v18843_v33, %v3511_v24  ;;  %v5880_v33 = vpack.c.bf16 %v5736_v55, %v5732_v45  ;;  %v5727_v60 = vrot.slane %v5499_v42, 7  ;;  %v5509_v42 = vld [vmem:[#allocation2 + $0x320] sm:$0x7f] }
 0x398   : > { %18842 = vst [vmem:[#allocation36_spill] sm:$0xff] %v17345_v61  ;;  %v12758_v39 = vpop.f32.mrb[245].mxu1  ;;  %v5506_v61 = vld [vmem:[#allocation2 + $0x308] sm:$0x80] }
 0x399   : > { %v12759_v25 = vadd.f32 %v12758_v39, %v12757_v2  ;;  %v12760_v21 = vpop.f32.mrb[246].mxu1  ;;  %v15009_v2 = vld [vmem:[#allocation2 + $0x2d0] sm:$0xff]  ;;  %v5740_v55 = vrot.slane %v5506_v61, 7 }
 0x39a   : > { %v13305_v57 = vpop.f32.mrb[208].mxu0  ;;  %v12761_v29 = vpop.f32.mrb[247].mxu1  ;;  %v5728_v16 = vrot.slane %v15009_v2, 7  ;;  %v5505_v2 = vld [vmem:[#allocation2 + $0x300] sm:$0x80] }
 0x39b   : > { %v13306_v31 = vpop.f32.mrb[209].mxu0  ;;  %v3512_v24 = vadd.f32 %v12759_v25, %v17071_v6  ;;  %v12762_v38 = vadd.f32 %v12761_v29, %v12760_v21  ;;  %v5741_v6 = vrot.slane %v15010_v41, 7 }
 0x39c   : > { %v17355_v50 = vadd.f32 %v13306_v31, %v13305_v57  ;;  %v13308_v11 = vpop.f32.mrb[210].mxu0  ;;  %6119 = vmatmul.mubr.bf16.gmra.mrb[96].mxu1 %v5877_v46  ;;  %v5734_v21 = vsel %vm1847_vm0, %v5728_v16, %v5733_v52  ;;  %v18847_v46 = vld [vmem:[#allocation45_spill] sm:$0xff]  ;;  %v5743_v52 = vrot.slane %v5509_v42, 7  ;;  %v15012_v42 = vld [vmem:[#allocation2 + $0x358] sm:$0xff] }
 0x39d   : > { %v13309_v39 = vpop.f32.mrb[211].mxu0  ;;  %v3513_v28 = vadd.f32 %v12762_v38, %v17074_v4  ;;  %6126 = vmatprep.mubr.bf16.mxu1 %v5880_v33  ;;  %v17359_v37 = vadd.f32 %v18845_v54, %v3512_v24  ;;  %v5746_v45 = vsel %vm1847_vm0, %v5741_v6, %v5745_v48  ;;  %v5729_v4 = vsel %vm1847_vm0, %v5727_v60, %v5728_v16  ;;  %v5516_v38 = vld [vmem:[#allocation2 + $0x368] sm:$0x7f] }
 0x39e   : > { %18844 = vst [vmem:[#allocation37_spill] sm:$0xff] %v17355_v50  ;;  %v17361_v25 = vadd.f32 %v13309_v39, %v13308_v11  ;;  %v5879_v33 = vpack.c.bf16 %v5734_v21, %v5729_v4  ;;  %v5742_v61 = vsel %vm1847_vm0, %v5740_v55, %v5741_v6  ;;  %v5755_v60 = vrot.slane %v5516_v38, 7  ;;  %v18849_v6 = vld [vmem:[#allocation46_spill] sm:$0xff] }
 0x39f   : > { %v12763_v57 = vpop.f32.mrb[248].mxu1  ;;  %v17365_v40 = vadd.f32 %v18847_v46, %v3513_v28  ;;  %v5882_v46 = vpack.c.bf16 %v5746_v45, %v5742_v61  ;;  %v5737_v16 = vrot.slane %v5505_v2, 7  ;;  %v5515_v2 = vld [vmem:[#allocation2 + $0x360] sm:$0x7f] }
 0x3a0   : > { %18846 = vst [vmem:[#allocation38_spill] sm:$0xff] %v17361_v25  ;;  %v12764_v29 = vpop.f32.mrb[249].mxu1  ;;  %v5512_v25 = vld [vmem:[#allocation2 + $0x348] sm:$0x80] }
 0x3a1   : > { %v12765_v31 = vadd.f32 %v12764_v29, %v12763_v57  ;;  %v12766_v24 = vpop.f32.mrb[250].mxu1  ;;  %v15011_v57 = vld [vmem:[#allocation2 + $0x310] sm:$0xff]  ;;  %v5750_v45 = vrot.slane %v5512_v25, 7 }
 0x3a2   : > { %v13311_v11 = vpop.f32.mrb[212].mxu0  ;;  %v12767_v39 = vpop.f32.mrb[251].mxu1  ;;  %v5738_v21 = vrot.slane %v15011_v57, 7  ;;  %v5511_v57 = vld [vmem:[#allocation2 + $0x340] sm:$0x80] }
 0x3a3   : > { %v13312_v54 = vpop.f32.mrb[213].mxu0  ;;  %v3514_v28 = vadd.f32 %v12765_v31, %v17085_v44  ;;  %v12768_v41 = vadd.f32 %v12767_v39, %v12766_v24  ;;  %v5751_v44 = vrot.slane %v15012_v42, 7 }
 0x3a4   : > { %v17371_v50 = vadd.f32 %v13312_v54, %v13311_v11  ;;  %v13314_v48 = vpop.f32.mrb[214].mxu0  ;;  %6127 = vmatmul.mubr.bf16.gmra.mrb[100].mxu1 %v5879_v33  ;;  %v5744_v24 = vsel %vm1847_vm0, %v5738_v21, %v5743_v52  ;;  %v18851_v33 = vld [vmem:[#allocation48_spill] sm:$0xff]  ;;  %v5753_v52 = vrot.slane %v5515_v2, 7 }
 0x3a5   : > { %v13315_v29 = vpop.f32.mrb[215].mxu0  ;;  %v3515_v4 = vadd.f32 %v12768_v41, %v17088_v19  ;;  %6134 = vmatprep.mubr.bf16.mxu1 %v5882_v46  ;;  %v17375_v55 = vadd.f32 %v18849_v6, %v3514_v28  ;;  %v5756_v61 = vsel %vm1847_vm0, %v5751_v44, %v5755_v60  ;;  %v5739_v19 = vsel %vm1847_vm0, %v5737_v16, %v5738_v21  ;;  %v5522_v41 = vld [vmem:[#allocation2 + $0x3a8] sm:$0x7f]  ;;  %v15014_v2 = vld [vmem:[#allocation2 + $0x398] sm:$0xff] }
 0x3a6   : > { %18848 = vst [vmem:[#allocation39_spill] sm:$0xff] %v17371_v50  ;;  %v17377_v31 = vadd.f32 %v13315_v29, %v13314_v48  ;;  %v5881_v46 = vpack.c.bf16 %v5744_v24, %v5739_v19  ;;  %v5752_v25 = vsel %vm1847_vm0, %v5750_v45, %v5751_v44  ;;  %v5765_v16 = vrot.slane %v5522_v41, 7  ;;  %v18853_v44 = vld [vmem:[#allocation49_spill] sm:$0xff] }
 0x3a7   : > { %v12769_v11 = vpop.f32.mrb[252].mxu1  ;;  %v17381_v38 = vadd.f32 %v18851_v33, %v3515_v4  ;;  %v5884_v33 = vpack.c.bf16 %v5756_v61, %v5752_v25  ;;  %v5747_v21 = vrot.slane %v5511_v57, 7  ;;  %v5521_v57 = vld [vmem:[#allocation2 + $0x3a0] sm:$0x7f] }
 0x3a8   : > { %18850 = vst [vmem:[#allocation40_spill] sm:$0xff] %v17377_v31  ;;  %v12770_v39 = vpop.f32.mrb[253].mxu1  ;;  %v5518_v31 = vld [vmem:[#allocation2 + $0x388] sm:$0x80] }
 0x3a9   : > { %v12771_v54 = vadd.f32 %v12770_v39, %v12769_v11  ;;  %v12772_v28 = vpop.f32.mrb[254].mxu1  ;;  %v15013_v11 = vld [vmem:[#allocation2 + $0x350] sm:$0xff]  ;;  %v5760_v61 = vrot.slane %v5518_v31, 7 }
 0x3aa   : > { %v13317_v48 = vpop.f32.mrb[216].mxu0  ;;  %v12773_v29 = vpop.f32.mrb[255].mxu1  ;;  %v5748_v24 = vrot.slane %v15013_v11, 7  ;;  %v5517_v11 = vld [vmem:[#allocation2 + $0x380] sm:$0x80] }
 0x3ab   : > { %v13318_v6 = vpop.f32.mrb[217].mxu0  ;;  %v3516_v4 = vadd.f32 %v12771_v54, %v17097_v23  ;;  %v12774_v42 = vadd.f32 %v12773_v29, %v12772_v28  ;;  %v5761_v23 = vrot.slane %v15014_v2, 7 }
 0x3ac   : > { %v17387_v50 = vadd.f32 %v13318_v6, %v13317_v48  ;;  %v13320_v60 = vpop.f32.mrb[218].mxu0  ;;  %6135 = vmatmul.mubr.bf16.gmra.mrb[104].mxu1 %v5881_v46  ;;  %v5754_v28 = vsel %vm1847_vm0, %v5748_v24, %v5753_v52  ;;  %v18855_v46 = vld [vmem:[#allocation51_spill] sm:$0xff]  ;;  %v5763_v52 = vrot.slane %v5521_v57, 7 }
 0x3ad   : > { %v13321_v39 = vpop.f32.mrb[219].mxu0  ;;  %v3517_v19 = vadd.f32 %v12774_v42, %v17100_v3  ;;  %6142 = vmatprep.mubr.bf16.mxu1 %v5884_v33  ;;  %v17391_v45 = vadd.f32 %v18853_v44, %v3516_v4  ;;  %v5766_v25 = vsel %vm1847_vm0, %v5761_v23, %v5765_v16  ;;  %v5749_v3 = vsel %vm1847_vm0, %v5747_v21, %v5748_v24  ;;  %v5528_v42 = vld [vmem:[#allocation2 + $0x3e8] sm:$0x7f] }
 0x3ae   : > { %18852 = vst [vmem:[#allocation41_spill] sm:$0xff] %v17387_v50  ;;  %v17393_v54 = vadd.f32 %v13321_v39, %v13320_v60  ;;  %v5883_v33 = vpack.c.bf16 %v5754_v28, %v5749_v3  ;;  %v5762_v31 = vsel %vm1847_vm0, %v5760_v61, %v5761_v23  ;;  %v5775_v21 = vrot.slane %v5528_v42, 7  ;;  %v15016_v61 = vld [vmem:[#allocation2 + $0x3d8] sm:$0xff] }
 0x3af   : > { %v12903_v48 = vpop.f32.mrb[0].mxu1  ;;  %v17397_v41 = vadd.f32 %v18855_v46, %v3517_v19  ;;  %v5886_v46 = vpack.c.bf16 %v5766_v25, %v5762_v31  ;;  %v5757_v24 = vrot.slane %v5517_v11, 7 }
 0x3b0   : > { %18854 = vst [vmem:[#allocation42_spill] sm:$0xff] %v17393_v54  ;;  %v12904_v29 = vpop.f32.mrb[1].mxu1  ;;  %v5524_v54 = vld [vmem:[#allocation2 + $0x3c8] sm:$0x80] }
 0x3b1   : > { %v12905_v6 = vadd.f32 %v12904_v29, %v12903_v48  ;;  %v12906_v4 = vpop.f32.mrb[2].mxu1  ;;  %v15015_v48 = vld [vmem:[#allocation2 + $0x390] sm:$0xff]  ;;  %v5770_v25 = vrot.slane %v5524_v54, 7 }
 0x3b2   : > { %v13323_v60 = vpop.f32.mrb[220].mxu0  ;;  %v12907_v39 = vpop.f32.mrb[3].mxu1  ;;  %v5758_v28 = vrot.slane %v15015_v48, 7 }
 0x3b3   : > { %v13324_v44 = vpop.f32.mrb[221].mxu0  ;;  %v4642_v19 = vadd.f32 %v12905_v6, %v17111_v27  ;;  %v12908_v2 = vadd.f32 %v12907_v39, %v12906_v4  ;;  %v5771_v27 = vrot.slane %v15016_v61, 7  ;;  %v5527_v4 = vld [vmem:[#allocation2 + $0x3e0] sm:$0x7f]  ;;  %v5523_v39 = vld [vmem:[#allocation2 + $0x3c0] sm:$0x80] }
 0x3b4   : > { %v17403_v50 = vadd.f32 %v13324_v44, %v13323_v60  ;;  %v13326_v16 = vpop.f32.mrb[222].mxu0  ;;  %6143 = vmatmul.mubr.bf16.gmra.mrb[108].mxu1 %v5883_v33  ;;  %v5764_v6 = vsel %vm1847_vm0, %v5758_v28, %v5763_v52  ;;  %v5534_v44 = vld [vmem:[#allocation2 + $0x428] sm:$0x7f] }
 0x3b5   : > { %v13327_v29 = vpop.f32.mrb[223].mxu0  ;;  %v4643_v3 = vadd.f32 %v12908_v2, %v17114_v10  ;;  %6150 = vmatprep.mubr.bf16.mxu1 %v5886_v46  ;;  %v17407_v23 = vadd.f32 %v16892_v20, %v4642_v19  ;;  %v5776_v60 = vsel %vm1847_vm0, %v5771_v27, %v5775_v21  ;;  %v5759_v10 = vsel %vm1847_vm0, %v5757_v24, %v5758_v28 }
 0x3b6   : > { %v17409_v57 = vadd.f32 %v13327_v29, %v13326_v16  ;;  %v5885_v19 = vpack.c.bf16 %v5764_v6, %v5759_v10  ;;  %v5773_v2 = vrot.slane %v5527_v4, 7  ;;  %v5772_v54 = vsel %vm1847_vm0, %v5770_v25, %v5771_v27  ;;  %v15018_v4 = vld [vmem:[#allocation2 + $0x418] sm:$0xff] }
 0x3b7   : > { %v12909_v33 = vpop.f32.mrb[4].mxu1  ;;  %v17413_v42 = vadd.f32 %v16898_v8, %v4643_v3  ;;  %v5888_v48 = vpack.c.bf16 %v5776_v60, %v5772_v54  ;;  %v5530_v8 = vld [vmem:[#allocation2 + $0x408] sm:$0x80]  ;;  %v5767_v29 = vrot.slane %v5523_v39, 7  ;;  %v15017_v3 = vld [vmem:[#allocation2 + $0x3d0] sm:$0xff]  ;;  %v5785_v21 = vrot.slane %v5534_v44, 7 }
 0x3b8   : > { %v12910_v11 = vpop.f32.mrb[5].mxu1  ;;  %v5768_v61 = vrot.slane %v15017_v3, 7  ;;  %v5781_v27 = vrot.slane %v15018_v4, 7  ;;  %v5780_v25 = vrot.slane %v5530_v8, 7  ;;  %v5533_v39 = vld [vmem:[#allocation2 + $0x420] sm:$0x7f] }
 0x3b9   : > { %v12911_v20 = vadd.f32 %v12910_v11, %v12909_v33  ;;  %v12912_v31 = vpop.f32.mrb[6].mxu1  ;;  %v5536_v33 = vld [vmem:[#allocation2 + $0x448] sm:$0x80]  ;;  %v5540_v11 = vld [vmem:[#allocation2 + $0x468] sm:$0x7f] }
 0x3ba   : > { %v12913_v46 = vpop.f32.mrb[7].mxu1  ;;  %v5774_v6 = vsel %vm1847_vm0, %v5768_v61, %v5773_v2  ;;  %v5769_v10 = vsel %vm1847_vm0, %v5767_v29, %v5768_v61  ;;  %v5790_v54 = vrot.slane %v5536_v33, 7  ;;  %v15019_v61 = vld [vmem:[#allocation2 + $0x410] sm:$0xff] }
 0x3bb   : > { %v4644_v52 = vadd.f32 %v12911_v20, %v17123_v26  ;;  %v12914_v16 = vadd.f32 %v12913_v46, %v12912_v31  ;;  %v5887_v31 = vpack.c.bf16 %v5774_v6, %v5769_v10  ;;  %v5782_v46 = vsel %vm1847_vm0, %v5780_v25, %v5781_v27  ;;  %v5539_v25 = vld [vmem:[#allocation2 + $0x460] sm:$0x7f] }
 0x3bc   : > { %6151 = vmatmul.mubr.bf16.gmra.mrb[112].mxu1 %v5885_v19 }
 0x3bd   : > { %v4645_v24 = vadd.f32 %v12914_v16, %v17128_v62  ;;  %6158 = vmatprep.mubr.bf16.mxu1 %v5888_v48  ;;  %v17421_v28 = vadd.f32 %v16908_v58, %v4644_v52  ;;  %v5786_v62 = vsel %vm1847_vm0, %v5781_v27, %v5785_v21  ;;  %v5529_v58 = vld [vmem:[#allocation2 + $0x400] sm:$0x80]  ;;  %v5791_v52 = vrot.slane %v17168_v36, 7 }
 0x3be   : > { %v5795_v16 = vrot.slane %v5540_v11, 7  ;;  %v5783_v48 = vrot.slane %v5533_v39, 7  ;;  %v5890_v29 = vpack.c.bf16 %v5786_v62, %v5782_v46  ;;  %v5777_v3 = vrot.slane %v5529_v58, 7  ;;  %v5535_v27 = vld [vmem:[#allocation2 + $0x440] sm:$0x80] }
 0x3bf   : > { %v12915_v26 = vpop.f32.mrb[8].mxu1  ;;  %v17425_v60 = vadd.f32 %v16914_v56, %v4645_v24  ;;  %v5778_v24 = vrot.slane %v15019_v61, 7  ;;  %v5792_v4 = vsel %vm1847_vm0, %v5790_v54, %v5791_v52  ;;  %v5793_v62 = vrot.slane %v5539_v25, 7  ;;  %v6606_v58 = vld [vmem:[#allocation2 + $0xb8] sm:$0x1] }
 0x3c0   : > { %v12916_v20 = vpop.f32.mrb[9].mxu1  ;;  %v5796_v36 = vsel %vm1847_vm0, %v5791_v52, %v5795_v16  ;;  %v6602_v54 = vld [vmem:[#allocation2 + $0x98] sm:$0xfe] }
 0x3c1   : > { %v12917_v44 = vadd.f32 %v12916_v20, %v12915_v26  ;;  %v12918_v19 = vpop.f32.mrb[10].mxu1  ;;  %v5779_v11 = vsel %vm1847_vm0, %v5777_v3, %v5778_v24  ;;  %v5892_v20 = vpack.c.bf16 %v5796_v36, %v5792_v4  ;;  %v6796_v61 = vrot.slane %v6602_v54, 1  ;;  %v18858_v54 = vld [vmem:[#allocation22_spill] sm:$0xff] }
 0x3c2   : > { %v12919_v2 = vpop.f32.mrb[11].mxu1 }
 0x3c3   : > { %v4646_v56 = vadd.f32 %v12917_v44, %v17137_v5  ;;  %v12920_v8 = vadd.f32 %v12919_v2, %v12918_v19  ;;  %v5784_v5 = vsel %vm1847_vm0, %v5778_v24, %v5783_v48 }
 0x3c4   : > { %6159 = vmatmul.mubr.bf16.gmra.mrb[116].mxu1 %v5887_v31  ;;  %v6604_v31 = vld [vmem:[#allocation2 + $0xa8] sm:$0xff]  ;;  %v5889_v44 = vpack.c.bf16 %v5784_v5, %v5779_v11 }
 0x3c5   : > { %v4647_v21 = vadd.f32 %v12920_v8, %v17142_v7  ;;  %6166 = vmatprep.mubr.bf16.mxu1 %v5890_v29  ;;  %v17434_v6 = vadd.f32 %v16924_v63, %v4646_v56  ;;  %v5787_v63 = vrot.slane %v5535_v27, 7  ;;  %v6797_v16 = vrot.slane %v6604_v31, 1  ;;  %v18856_v29 = vld [vmem:[#allocation52_spill] sm:$0xff]  ;;  %v6610_v11 = vld [vmem:[#allocation2 + $0xe8] sm:$0xff] }
 0x3c6   : > { %v5794_v8 = vsel %vm1847_vm0, %v5791_v52, %v5793_v62  ;;  %v6608_v31 = vld [vmem:[#allocation2 + $0xd8] sm:$0xfe] }
 0x3c7   : > { %v12921_v26 = vpop.f32.mrb[12].mxu1  ;;  %v17440_v33 = vadd.f32 %v16929_v51, %v4647_v21  ;;  %v6801_v51 = vrot.slane %v6606_v58, 1  ;;  %v5789_v56 = vsel %vm1847_vm0, %v5787_v63, %v5791_v52  ;;  %v18857_v21 = vld [vmem:[#allocation53_spill] sm:$0xff]  ;;  %v6798_v25 = vsel %vm2939_vm1, %v6796_v61, %v6797_v16  ;;  %v6605_v52 = vld [vmem:[#allocation2 + $0xb0] sm:$0x1] }
 0x3c8   : > { %v12922_v10 = vpop.f32.mrb[13].mxu1  ;;  %v5891_v27 = vpack.c.bf16 %v5794_v8, %v5789_v56  ;;  %v6807_v58 = vrot.slane %v6610_v11, 1  ;;  %v6806_v56 = vrot.slane %v6608_v31, 1  ;;  %v18860_v61 = vld [vmem:[#allocation55_spill] sm:$0xff]  ;;  %v6618_v11 = vld [vmem:[#allocation2 + $0x138] sm:$0x1] }
 0x3c9   : > { %v12923_v7 = vadd.f32 %v12922_v10, %v12921_v26  ;;  %v12924_v39 = vpop.f32.mrb[14].mxu1  ;;  %v6612_v10 = vld [vmem:[#allocation2 + $0xf8] sm:$0x1]  ;;  %vm10722_vm0 = vcmask 384000  }
 0x3ca   : > { %v12925_v19 = vpop.f32.mrb[15].mxu1 }
 0x3cb   : > { %v4648_v2 = vadd.f32 %v12923_v7, %v17151_v13  ;;  %v12926_v46 = vadd.f32 %v12925_v19, %v12924_v39  ;;  %v6601_v13 = vld [vmem:[#allocation2 + $0x90] sm:$0xfe]  ;;  %v15020_v19 = vld [vmem:[#allocation2 + $0xa0] sm:$0xff] }
 0x3cc   : > { %6167 = vmatmul.mubr.bf16.gmra.mrb[120].mxu1 %v5889_v44  ;;  %v6793_v39 = vrot.slane %v6601_v13, 1  ;;  %v6811_v44 = vrot.slane %v6612_v10, 1  ;;  %v6808_v13 = vsel %vm2939_vm1, %v6806_v56, %v6807_v58 }
 0x3cd   : > { %v4649_v48 = vadd.f32 %v12926_v46, %v17156_v12  ;;  %6174 = vmatprep.mubr.bf16.mxu1 %v5892_v20  ;;  %v17448_v3 = vadd.f32 %v18856_v29, %v4648_v2  ;;  %v6802_v12 = vsel %vm2939_vm1, %v6797_v16, %v6801_v51  ;;  %v6794_v2 = vrot.slane %v15020_v19, 1  ;;  %v18859_v51 = vld [vmem:[#allocation54_spill] sm:$0xff]  ;;  %v6614_v19 = vld [vmem:[#allocation2 + $0x118] sm:$0xfe] }
 0x3ce   : > { %v7018_v62 = vpack.c.bf16 %v6802_v12, %v6798_v25  ;;  %v6799_v46 = vrot.slane %v6605_v52, 1 }
 0x3cf   : > { %v12927_v24 = vpop.f32.mrb[16].mxu1  ;;  %v17451_v4 = vadd.f32 %v18857_v21, %v4649_v48  ;;  %v6795_v8 = vsel %vm2939_vm1, %v6793_v39, %v6794_v2 }
 0x3d0   : > { %v12928_v36 = vpop.f32.mrb[17].mxu1  ;;  %v6800_v25 = vsel %vm2939_vm1, %v6794_v2, %v6799_v46  ;;  %v18861_v46 = vld [vmem:[#allocation56_spill] sm:$0xff] }
 0x3d1   : > { %v12929_v5 = vadd.f32 %v12928_v36, %v12927_v24  ;;  %v12930_v26 = vpop.f32.mrb[18].mxu1  ;;  %v6812_v36 = vsel %vm2939_vm1, %v6807_v58, %v6811_v44  ;;  %v7017_v52 = vpack.c.bf16 %v6800_v25, %v6795_v8  ;;  %v6821_v58 = vrot.slane %v6618_v11, 1 }
 0x3d2   : > { %v12931_v7 = vpop.f32.mrb[19].mxu1 }
 0x3d3   : > { %v4650_v20 = vadd.f32 %v12929_v5, %v17166_v0  ;;  %v12932_v63 = vadd.f32 %v12931_v7, %v12930_v26  ;;  %v6609_v0 = vld [vmem:[#allocation2 + $0xe0] sm:$0xff]  ;;  %v6616_v26 = vld [vmem:[#allocation2 + $0x128] sm:$0xff]  ;;  %v6607_v7 = vld [vmem:[#allocation2 + $0xd0] sm:$0xfe] }
 0x3d4   : > { %6175 = vmatmul.mubr.bf16.gmra.mrb[124].mxu1 %v5891_v27  ;;  %v6611_v27 = vld [vmem:[#allocation2 + $0xf0] sm:$0x1]  ;;  %v6804_v39 = vrot.slane %v6609_v0, 1  ;;  %v6803_v2 = vrot.slane %v6607_v7, 1  ;;  %v18862_v0 = vld [vmem:[#allocation57_spill] sm:$0xff] }
 0x3d5   : > { %v4651_v16 = vadd.f32 %v12932_v63, %v18858_v54  ;;  %7210 = vmatprep.mubr.bf16.mxu1 %v7018_v62  ;;  %v17458_v48 = vadd.f32 %v18859_v51, %v4650_v20  ;;  %v7020_v62 = vpack.c.bf16 %v6812_v36, %v6808_v13  ;;  %v6809_v31 = vrot.slane %v6611_v27, 1  ;;  %v6617_v36 = vld [vmem:[#allocation2 + $0x130] sm:$0x1] }
 0x3d6   : > { %v6817_v54 = vrot.slane %v6616_v26, 1  ;;  %v6816_v51 = vrot.slane %v6614_v19, 1  ;;  %v6805_v8 = vsel %vm2939_vm1, %v6803_v2, %v6804_v39 }
 0x3d7   : > { %v12933_v29 = vpop.f32.mrb[20].mxu1  ;;  %v17462_v24 = vadd.f32 %v18860_v61, %v4651_v16 }
 0x3d8   : > { %v12934_v21 = vpop.f32.mrb[21].mxu1  ;;  %v6818_v13 = vsel %vm2939_vm1, %v6816_v51, %v6817_v54 }
 0x3d9   : > { %v12935_v12 = vadd.f32 %v12934_v21, %v12933_v29  ;;  %v12936_v5 = vpop.f32.mrb[22].mxu1  ;;  %v6615_v29 = vld [vmem:[#allocation2 + $0x120] sm:$0xff] }
 0x3da   : > { %v12937_v10 = vpop.f32.mrb[23].mxu1 }
 0x3db   : > { %v4652_v20 = vadd.f32 %v12935_v12, %v17195_v18  ;;  %v12938_v63 = vadd.f32 %v12937_v10, %v12936_v5  ;;  %v6810_v18 = vsel %vm2939_vm1, %v6804_v39, %v6809_v31  ;;  %v6622_v12 = vld [vmem:[#allocation2 + $0x168] sm:$0xff]  ;;  %v6624_v5 = vld [vmem:[#allocation2 + $0x178] sm:$0x1]  ;;  %v6613_v10 = vld [vmem:[#allocation2 + $0x110] sm:$0xfe] }
 0x3dc   : > { %7211 = vmatmul.mubr.bf16.vlgmr.msra.gmra.mrb[128].mxu1 %v7017_v52  ;;  %v7019_v11 = vpack.c.bf16 %v6810_v18, %v6805_v8  ;;  %v6814_v52 = vrot.slane %v6615_v29, 1  ;;  %v6827_v31 = vrot.slane %v6622_v12, 1  ;;  %v6831_v19 = vrot.slane %v6624_v5, 1  ;;  %v6621_v8 = vld [vmem:[#allocation2 + $0x160] sm:$0xff] }
 0x3dd   : > { %v4653_v44 = vadd.f32 %v12938_v63, %v17204_v17  ;;  %7218 = vmatprep.mubr.bf16.mxu1 %v7020_v62  ;;  %v17470_v16 = vadd.f32 %v18861_v46, %v4652_v20  ;;  %v6822_v17 = vsel %vm2939_vm1, %v6817_v54, %v6821_v58  ;;  %v6819_v63 = vrot.slane %v6617_v36, 1  ;;  %v6620_v62 = vld [vmem:[#allocation2 + $0x158] sm:$0xfe]  ;;  %v18864_v18 = vld [vmem:[#allocation5_spill] sm:$0xff] }
 0x3de   : > { %v7022_v20 = vpack.c.bf16 %v6822_v17, %v6818_v13  ;;  %v6813_v58 = vrot.slane %v6613_v10, 1  ;;  %v6826_v46 = vrot.slane %v6620_v62, 1  ;;  %v6623_v13 = vld [vmem:[#allocation2 + $0x170] sm:$0x1] }
 0x3df   : > { %v12939_v56 = vpop.f32.mrb[24].mxu1  ;;  %v17475_v61 = vadd.f32 %v18862_v0, %v4653_v44  ;;  %v18863_v44 = vld [vmem:[#allocation58_spill] sm:$0xff] }
 0x3e0   : > { %v12940_v21 = vpop.f32.mrb[25].mxu1 }
 0x3e1   : > { %v12941_v27 = vadd.f32 %v12940_v21, %v12939_v56  ;;  %v12942_v25 = vpop.f32.mrb[26].mxu1  ;;  %v6815_v56 = vsel %vm2939_vm1, %v6813_v58, %v6814_v52  ;;  %v6828_v21 = vsel %vm2939_vm1, %v6826_v46, %v6827_v31 }
 0x3e2   : > { %v12943_v26 = vpop.f32.mrb[27].mxu1 }
 0x3e3   : > { %v4654_v7 = vadd.f32 %v12941_v27, %v17223_v1  ;;  %v12944_v39 = vadd.f32 %v12943_v26, %v12942_v25  ;;  %v6820_v1 = vsel %vm2939_vm1, %v6814_v52, %v6819_v63  ;;  %v6628_v27 = vld [vmem:[#allocation2 + $0x1a8] sm:$0xff]  ;;  %v6630_v25 = vld [vmem:[#allocation2 + $0x1b8] sm:$0x1]  ;;  %v6619_v26 = vld [vmem:[#allocation2 + $0x150] sm:$0xfe] }
 0x3e4   : > { %7219 = vmatmul.mubr.bf16.gmra.mrb[132].mxu1 %v7019_v11  ;;  %v7021_v5 = vpack.c.bf16 %v6820_v1, %v6815_v56  ;;  %v6824_v11 = vrot.slane %v6621_v8, 1  ;;  %v6837_v63 = vrot.slane %v6628_v27, 1  ;;  %v6841_v62 = vrot.slane %v6630_v25, 1  ;;  %v6627_v56 = vld [vmem:[#allocation2 + $0x1a0] sm:$0xff]  ;;  %v18866_v1 = vld [vmem:[#allocation6_spill] sm:$0xff] }
 0x3e5   : > { %v4655_v54 = vadd.f32 %v12944_v39, %v17232_v14  ;;  %7226 = vmatprep.mubr.bf16.mxu1 %v7022_v20  ;;  %v17482_v2 = vadd.f32 %v18863_v44, %v4654_v7  ;;  %v6832_v14 = vsel %vm2939_vm1, %v6827_v31, %v6831_v19  ;;  %v6829_v39 = vrot.slane %v6623_v13, 1  ;;  %v6626_v20 = vld [vmem:[#allocation2 + $0x198] sm:$0xfe] }
 0x3e6   : > { %v7024_v7 = vpack.c.bf16 %v6832_v14, %v6828_v21  ;;  %v6823_v19 = vrot.slane %v6619_v26, 1  ;;  %v6836_v44 = vrot.slane %v6626_v20, 1  ;;  %v6629_v21 = vld [vmem:[#allocation2 + $0x1b0] sm:$0x1] }
 0x3e7   : > { %v12945_v51 = vpop.f32.mrb[28].mxu1  ;;  %v17487_v29 = vadd.f32 %v18864_v18, %v4655_v54  ;;  %v18865_v54 = vld [vmem:[#allocation59_spill] sm:$0xff] }
 0x3e8   : > { %v12946_v0 = vpop.f32.mrb[29].mxu1 }
 0x3e9   : > { %v12947_v17 = vadd.f32 %v12946_v0, %v12945_v51  ;;  %v12948_v36 = vpop.f32.mrb[30].mxu1  ;;  %v6825_v51 = vsel %vm2939_vm1, %v6823_v19, %v6824_v11  ;;  %v6838_v0 = vsel %vm2939_vm1, %v6836_v44, %v6837_v63 }
 0x3ea   : > { %v12949_v12 = vpop.f32.mrb[31].mxu1 }
 0x3eb   : > { %v4656_v10 = vadd.f32 %v12947_v17, %v17251_v53  ;;  %v12950_v52 = vadd.f32 %v12949_v12, %v12948_v36  ;;  %v6830_v53 = vsel %vm2939_vm1, %v6824_v11, %v6829_v39  ;;  %v6634_v17 = vld [vmem:[#allocation2 + $0x1e8] sm:$0xff]  ;;  %v6636_v36 = vld [vmem:[#allocation2 + $0x1f8] sm:$0x1]  ;;  %v6625_v12 = vld [vmem:[#allocation2 + $0x190] sm:$0xfe] }
 0x3ec   : > { %7227 = vmatmul.mubr.bf16.gmra.mrb[136].mxu1 %v7021_v5  ;;  %v7023_v25 = vpack.c.bf16 %v6830_v53, %v6825_v51  ;;  %v6834_v5 = vrot.slane %v6627_v56, 1  ;;  %v6847_v39 = vrot.slane %v6634_v17, 1  ;;  %v6851_v20 = vrot.slane %v6636_v36, 1  ;;  %v6633_v51 = vld [vmem:[#allocation2 + $0x1e0] sm:$0xff]  ;;  %v18868_v53 = vld [vmem:[#allocation7_spill] sm:$0xff] }
 0x3ed   : > { %v4657_v31 = vadd.f32 %v12950_v52, %v17260_v34  ;;  %7234 = vmatprep.mubr.bf16.mxu1 %v7024_v7  ;;  %v17494_v58 = vadd.f32 %v18865_v54, %v4656_v10  ;;  %v6842_v34 = vsel %vm2939_vm1, %v6837_v63, %v6841_v62  ;;  %v6839_v52 = vrot.slane %v6629_v21, 1  ;;  %v6632_v7 = vld [vmem:[#allocation2 + $0x1d8] sm:$0xfe] }
 0x3ee   : > { %v7026_v10 = vpack.c.bf16 %v6842_v34, %v6838_v0  ;;  %v6833_v62 = vrot.slane %v6625_v12, 1  ;;  %v6846_v54 = vrot.slane %v6632_v7, 1  ;;  %v6635_v0 = vld [vmem:[#allocation2 + $0x1f0] sm:$0x1] }
 0x3ef   : > { %v12951_v46 = vpop.f32.mrb[32].mxu1  ;;  %v17499_v8 = vadd.f32 %v18866_v1, %v4657_v31  ;;  %v18867_v31 = vld [vmem:[#allocation60_spill] sm:$0xff] }
 0x3f0   : > { %v12952_v18 = vpop.f32.mrb[33].mxu1 }
 0x3f1   : > { %v12953_v14 = vadd.f32 %v12952_v18, %v12951_v46  ;;  %v12954_v13 = vpop.f32.mrb[34].mxu1  ;;  %v6835_v46 = vsel %vm2939_vm1, %v6833_v62, %v6834_v5  ;;  %v6848_v18 = vsel %vm2939_vm1, %v6846_v54, %v6847_v39 }
 0x3f2   : > { %v12955_v27 = vpop.f32.mrb[35].mxu1 }
 0x3f3   : > { %v4658_v26 = vadd.f32 %v12953_v14, %v17279_v15  ;;  %v12956_v11 = vadd.f32 %v12955_v27, %v12954_v13  ;;  %v6840_v15 = vsel %vm2939_vm1, %v6834_v5, %v6839_v52  ;;  %v6640_v14 = vld [vmem:[#allocation2 + $0x228] sm:$0xff]  ;;  %v6642_v13 = vld [vmem:[#allocation2 + $0x238] sm:$0x1]  ;;  %v6631_v27 = vld [vmem:[#allocation2 + $0x1d0] sm:$0xfe] }
 0x3f4   : > { %7235 = vmatmul.mubr.bf16.gmra.mrb[140].mxu1 %v7023_v25  ;;  %v7025_v36 = vpack.c.bf16 %v6840_v15, %v6835_v46  ;;  %v6844_v25 = vrot.slane %v6633_v51, 1  ;;  %v6857_v52 = vrot.slane %v6640_v14, 1  ;;  %v6861_v7 = vrot.slane %v6642_v13, 1  ;;  %v6639_v46 = vld [vmem:[#allocation2 + $0x220] sm:$0xff]  ;;  %v18870_v15 = vld [vmem:[#allocation8_spill] sm:$0xff] }
 0x3f5   : > { %v4659_v63 = vadd.f32 %v12956_v11, %v17285_v32  ;;  %7242 = vmatprep.mubr.bf16.mxu1 %v7026_v10  ;;  %v17506_v19 = vadd.f32 %v18867_v31, %v4658_v26  ;;  %v6852_v32 = vsel %vm2939_vm1, %v6847_v39, %v6851_v20  ;;  %v6849_v11 = vrot.slane %v6635_v0, 1  ;;  %v6638_v10 = vld [vmem:[#allocation2 + $0x218] sm:$0xfe] }
 0x3f6   : > { %v7028_v26 = vpack.c.bf16 %v6852_v32, %v6848_v18  ;;  %v6843_v20 = vrot.slane %v6631_v27, 1  ;;  %v6856_v31 = vrot.slane %v6638_v10, 1  ;;  %v6641_v18 = vld [vmem:[#allocation2 + $0x230] sm:$0x1] }
 0x3f7   : > { %v12957_v44 = vpop.f32.mrb[36].mxu1  ;;  %v17511_v56 = vadd.f32 %v18868_v53, %v4659_v63  ;;  %v18869_v63 = vld [vmem:[#allocation61_spill] sm:$0xff] }
 0x3f8   : > { %v12958_v1 = vpop.f32.mrb[37].mxu1 }
 0x3f9   : > { %v12959_v34 = vadd.f32 %v12958_v1, %v12957_v44  ;;  %v12960_v21 = vpop.f32.mrb[38].mxu1  ;;  %v6845_v44 = vsel %vm2939_vm1, %v6843_v20, %v6844_v25  ;;  %v6858_v1 = vsel %vm2939_vm1, %v6856_v31, %v6857_v52 }
 0x3fa   : > { %v12961_v17 = vpop.f32.mrb[39].mxu1 }
 0x3fb   : > { %v4660_v12 = vadd.f32 %v12959_v34, %v17295_v9  ;;  %v12962_v5 = vadd.f32 %v12961_v17, %v12960_v21  ;;  %v6850_v9 = vsel %vm2939_vm1, %v6844_v25, %v6849_v11  ;;  %v6646_v34 = vld [vmem:[#allocation2 + $0x268] sm:$0xff]  ;;  %v6648_v21 = vld [vmem:[#allocation2 + $0x278] sm:$0x1]  ;;  %v6637_v17 = vld [vmem:[#allocation2 + $0x210] sm:$0xfe] }
 0x3fc   : > { %7243 = vmatmul.mubr.bf16.gmra.mrb[144].mxu1 %v7025_v36  ;;  %v7027_v13 = vpack.c.bf16 %v6850_v9, %v6845_v44  ;;  %v6854_v36 = vrot.slane %v6639_v46, 1  ;;  %v6867_v11 = vrot.slane %v6646_v34, 1  ;;  %v6871_v10 = vrot.slane %v6648_v21, 1  ;;  %v6645_v44 = vld [vmem:[#allocation2 + $0x260] sm:$0xff] }
 0x3fd   : > { %v4661_v39 = vadd.f32 %v12962_v5, %v17301_v30  ;;  %7250 = vmatprep.mubr.bf16.mxu1 %v7028_v26  ;;  %v17518_v62 = vadd.f32 %v18869_v63, %v4660_v12  ;;  %v6862_v30 = vsel %vm2939_vm1, %v6857_v52, %v6861_v7  ;;  %v6859_v5 = vrot.slane %v6641_v18, 1  ;;  %v6644_v26 = vld [vmem:[#allocation2 + $0x258] sm:$0xfe]  ;;  %v18872_v9 = vld [vmem:[#allocation9_spill] sm:$0xff] }
 0x3fe   : > { %v7030_v12 = vpack.c.bf16 %v6862_v30, %v6858_v1  ;;  %v6853_v7 = vrot.slane %v6637_v17, 1  ;;  %v6866_v63 = vrot.slane %v6644_v26, 1  ;;  %v6647_v1 = vld [vmem:[#allocation2 + $0x270] sm:$0x1] }
 0x3ff   : > { %v12963_v54 = vpop.f32.mrb[40].mxu1  ;;  %v17523_v51 = vadd.f32 %v18870_v15, %v4661_v39  ;;  %v18871_v39 = vld [vmem:[#allocation62_spill] sm:$0xff] }
 0x400   : > { %v12964_v53 = vpop.f32.mrb[41].mxu1 }
 0x401   : > { %v12965_v32 = vadd.f32 %v12964_v53, %v12963_v54  ;;  %v12966_v0 = vpop.f32.mrb[42].mxu1  ;;  %v6855_v54 = vsel %vm2939_vm1, %v6853_v7, %v6854_v36  ;;  %v6868_v53 = vsel %vm2939_vm1, %v6866_v63, %v6867_v11 }
 0x402   : > { %v12967_v14 = vpop.f32.mrb[43].mxu1 }
 0x403   : > { %v4662_v27 = vadd.f32 %v12965_v32, %v17311_v47  ;;  %v12968_v25 = vadd.f32 %v12967_v14, %v12966_v0  ;;  %v6860_v47 = vsel %vm2939_vm1, %v6854_v36, %v6859_v5  ;;  %v6652_v32 = vld [vmem:[#allocation2 + $0x2a8] sm:$0xff]  ;;  %v6654_v0 = vld [vmem:[#allocation2 + $0x2b8] sm:$0x1]  ;;  %v6643_v14 = vld [vmem:[#allocation2 + $0x250] sm:$0xfe] }
 0x404   : > { %7251 = vmatmul.mubr.bf16.gmra.mrb[148].mxu1 %v7027_v13  ;;  %v7029_v21 = vpack.c.bf16 %v6860_v47, %v6855_v54  ;;  %v6864_v13 = vrot.slane %v6645_v44, 1  ;;  %v6877_v5 = vrot.slane %v6652_v32, 1  ;;  %v6881_v26 = vrot.slane %v6654_v0, 1  ;;  %v6651_v54 = vld [vmem:[#allocation2 + $0x2a0] sm:$0xff]  ;;  %v18874_v47 = vld [vmem:[#allocation10_spill] sm:$0xff] }
 0x405   : > { %v4663_v52 = vadd.f32 %v12968_v25, %v17317_v35  ;;  %7258 = vmatprep.mubr.bf16.mxu1 %v7030_v12  ;;  %v17530_v20 = vadd.f32 %v18871_v39, %v4662_v27  ;;  %v6872_v35 = vsel %vm2939_vm1, %v6867_v11, %v6871_v10  ;;  %v6869_v25 = vrot.slane %v6647_v1, 1  ;;  %v6650_v12 = vld [vmem:[#allocation2 + $0x298] sm:$0xfe] }
 0x406   : > { %v7032_v27 = vpack.c.bf16 %v6872_v35, %v6868_v53  ;;  %v6863_v10 = vrot.slane %v6643_v14, 1  ;;  %v6876_v39 = vrot.slane %v6650_v12, 1  ;;  %v6653_v53 = vld [vmem:[#allocation2 + $0x2b0] sm:$0x1] }
 0x407   : > { %v12969_v31 = vpop.f32.mrb[44].mxu1  ;;  %v17535_v46 = vadd.f32 %v18872_v9, %v4663_v52  ;;  %v18873_v52 = vld [vmem:[#allocation63_spill] sm:$0xff] }
 0x408   : > { %v12970_v15 = vpop.f32.mrb[45].mxu1 }
 0x409   : > { %v12971_v30 = vadd.f32 %v12970_v15, %v12969_v31  ;;  %v12972_v18 = vpop.f32.mrb[46].mxu1  ;;  %v6865_v31 = vsel %vm2939_vm1, %v6863_v10, %v6864_v13  ;;  %v6878_v15 = vsel %vm2939_vm1, %v6876_v39, %v6877_v5 }
 0x40a   : > { %v12973_v34 = vpop.f32.mrb[47].mxu1 }
 0x40b   : > { %v4664_v17 = vadd.f32 %v12971_v30, %v17327_v22  ;;  %v12974_v36 = vadd.f32 %v12973_v34, %v12972_v18  ;;  %v6870_v22 = vsel %vm2939_vm1, %v6864_v13, %v6869_v25  ;;  %v6658_v30 = vld [vmem:[#allocation2 + $0x2e8] sm:$0xff]  ;;  %v6660_v18 = vld [vmem:[#allocation2 + $0x2f8] sm:$0x1]  ;;  %v6649_v34 = vld [vmem:[#allocation2 + $0x290] sm:$0xfe] }
 0x40c   : > { %7259 = vmatmul.mubr.bf16.gmra.mrb[152].mxu1 %v7029_v21  ;;  %v7031_v0 = vpack.c.bf16 %v6870_v22, %v6865_v31  ;;  %v6874_v21 = vrot.slane %v6651_v54, 1  ;;  %v6887_v25 = vrot.slane %v6658_v30, 1  ;;  %v6891_v12 = vrot.slane %v6660_v18, 1  ;;  %v6657_v31 = vld [vmem:[#allocation2 + $0x2e0] sm:$0xff]  ;;  %v18876_v22 = vld [vmem:[#allocation11_spill] sm:$0xff] }
 0x40d   : > { %v4665_v11 = vadd.f32 %v12974_v36, %v17333_v59  ;;  %7266 = vmatprep.mubr.bf16.mxu1 %v7032_v27  ;;  %v17542_v7 = vadd.f32 %v18873_v52, %v4664_v17  ;;  %v6882_v59 = vsel %vm2939_vm1, %v6877_v5, %v6881_v26  ;;  %v6879_v36 = vrot.slane %v6653_v53, 1  ;;  %v6656_v27 = vld [vmem:[#allocation2 + $0x2d8] sm:$0xfe] }
 0x40e   : > { %v7034_v17 = vpack.c.bf16 %v6882_v59, %v6878_v15  ;;  %v6873_v26 = vrot.slane %v6649_v34, 1  ;;  %v6886_v52 = vrot.slane %v6656_v27, 1  ;;  %v6659_v15 = vld [vmem:[#allocation2 + $0x2f0] sm:$0x1] }
 0x40f   : > { %v12975_v63 = vpop.f32.mrb[48].mxu1  ;;  %v17547_v44 = vadd.f32 %v18874_v47, %v4665_v11  ;;  %v18875_v11 = vld [vmem:[#allocation64_spill] sm:$0xff] }
 0x410   : > { %v12976_v9 = vpop.f32.mrb[49].mxu1 }
 0x411   : > { %v12977_v35 = vadd.f32 %v12976_v9, %v12975_v63  ;;  %v12978_v1 = vpop.f32.mrb[50].mxu1  ;;  %v6875_v63 = vsel %vm2939_vm1, %v6873_v26, %v6874_v21  ;;  %v6888_v9 = vsel %vm2939_vm1, %v6886_v52, %v6887_v25 }
 0x412   : > { %v12979_v32 = vpop.f32.mrb[51].mxu1 }
 0x413   : > { %v4666_v14 = vadd.f32 %v12977_v35, %v17343_v49  ;;  %v12980_v13 = vadd.f32 %v12979_v32, %v12978_v1  ;;  %v6880_v49 = vsel %vm2939_vm1, %v6874_v21, %v6879_v36  ;;  %v6664_v35 = vld [vmem:[#allocation2 + $0x328] sm:$0xff]  ;;  %v6666_v1 = vld [vmem:[#allocation2 + $0x338] sm:$0x1]  ;;  %v6655_v32 = vld [vmem:[#allocation2 + $0x2d0] sm:$0xfe] }
 0x414   : > { %7267 = vmatmul.mubr.bf16.gmra.mrb[156].mxu1 %v7031_v0  ;;  %v7033_v18 = vpack.c.bf16 %v6880_v49, %v6875_v63  ;;  %v6884_v0 = vrot.slane %v6657_v31, 1  ;;  %v6897_v36 = vrot.slane %v6664_v35, 1  ;;  %v6901_v27 = vrot.slane %v6666_v1, 1  ;;  %v6663_v63 = vld [vmem:[#allocation2 + $0x320] sm:$0xff]  ;;  %v18878_v49 = vld [vmem:[#allocation12_spill] sm:$0xff] }
 0x415   : > { %v4667_v5 = vadd.f32 %v12980_v13, %v17349_v43  ;;  %7274 = vmatprep.mubr.bf16.mxu1 %v7034_v17  ;;  %v17554_v10 = vadd.f32 %v18875_v11, %v4666_v14  ;;  %v6892_v43 = vsel %vm2939_vm1, %v6887_v25, %v6891_v12  ;;  %v6889_v13 = vrot.slane %v6659_v15, 1  ;;  %v6662_v17 = vld [vmem:[#allocation2 + $0x318] sm:$0xfe] }
 0x416   : > { %v7036_v14 = vpack.c.bf16 %v6892_v43, %v6888_v9  ;;  %v6883_v12 = vrot.slane %v6655_v32, 1  ;;  %v6896_v11 = vrot.slane %v6662_v17, 1  ;;  %v6665_v9 = vld [vmem:[#allocation2 + $0x330] sm:$0x1] }
 0x417   : > { %v12981_v39 = vpop.f32.mrb[52].mxu1  ;;  %v17559_v54 = vadd.f32 %v18876_v22, %v4667_v5  ;;  %v18877_v5 = vld [vmem:[#allocation65_spill] sm:$0xff] }
 0x418   : > { %v12982_v47 = vpop.f32.mrb[53].mxu1 }
 0x419   : > { %v12983_v59 = vadd.f32 %v12982_v47, %v12981_v39  ;;  %v12984_v53 = vpop.f32.mrb[54].mxu1  ;;  %v6885_v39 = vsel %vm2939_vm1, %v6883_v12, %v6884_v0  ;;  %v6898_v47 = vsel %vm2939_vm1, %v6896_v11, %v6897_v36 }
 0x41a   : > { %v12985_v30 = vpop.f32.mrb[55].mxu1 }
 0x41b   : > { %v4668_v34 = vadd.f32 %v12983_v59, %v17359_v37  ;;  %v12986_v21 = vadd.f32 %v12985_v30, %v12984_v53  ;;  %v6890_v37 = vsel %vm2939_vm1, %v6884_v0, %v6889_v13  ;;  %v6670_v59 = vld [vmem:[#allocation2 + $0x368] sm:$0xff]  ;;  %v6672_v53 = vld [vmem:[#allocation2 + $0x378] sm:$0x1]  ;;  %v6661_v30 = vld [vmem:[#allocation2 + $0x310] sm:$0xfe] }
 0x41c   : > { %7275 = vmatmul.mubr.bf16.gmra.mrb[160].mxu1 %v7033_v18  ;;  %v7035_v1 = vpack.c.bf16 %v6890_v37, %v6885_v39  ;;  %v6894_v18 = vrot.slane %v6663_v63, 1  ;;  %v6907_v13 = vrot.slane %v6670_v59, 1  ;;  %v6911_v17 = vrot.slane %v6672_v53, 1  ;;  %v6669_v37 = vld [vmem:[#allocation2 + $0x360] sm:$0xff]  ;;  %v6678_v59 = vld [vmem:[#allocation2 + $0x3b8] sm:$0x1] }
 0x41d   : > { %v4669_v25 = vadd.f32 %v12986_v21, %v17365_v40  ;;  %7282 = vmatprep.mubr.bf16.mxu1 %v7036_v14  ;;  %v17566_v26 = vadd.f32 %v18877_v5, %v4668_v34  ;;  %v6902_v40 = vsel %vm2939_vm1, %v6897_v36, %v6901_v27  ;;  %v6899_v21 = vrot.slane %v6665_v9, 1  ;;  %v6668_v14 = vld [vmem:[#allocation2 + $0x358] sm:$0xfe]  ;;  %v14893_v5 = vld [vmem:[%s18687_s7 + $0x40] sm:$0xff]  }
 0x41e   : > { %v7038_v34 = vpack.c.bf16 %v6902_v40, %v6898_v47  ;;  %v6893_v27 = vrot.slane %v6661_v30, 1  ;;  %v6906_v11 = vrot.slane %v6668_v14, 1  ;;  %v18880_v63 = vld [vmem:[#allocation13_spill] sm:$0xff]  ;;  %13691 = vmatprep.subr.bf16.mxu0 %v14893_v5  ;;  %v6912_v47 = vsel %vm2939_vm1, %v6907_v13, %v6911_v17  ;;  %v6671_v40 = vld [vmem:[#allocation2 + $0x370] sm:$0x1] }
 0x41f   : > { %v12987_v52 = vpop.f32.mrb[56].mxu1  ;;  %v17571_v31 = vadd.f32 %v18878_v49, %v4669_v25  ;;  %v18879_v25 = vld [vmem:[#allocation66_spill] sm:$0xff]  ;;  %v6900_v39 = vsel %vm2939_vm1, %v6894_v18, %v6899_v21  ;;  %13692 = vmatpush3.bf16.msra.mxu0 %v14893_v5  ;;  %v6904_v30 = vrot.slane %v6669_v37, 1  ;;  %v6674_v21 = vld [vmem:[#allocation2 + $0x398] sm:$0xfe]  ;;  %v18881_v5 = vld [vmem:[#allocation47_spill] sm:$0xff] }
 0x420   : > { %v12988_v22 = vpop.f32.mrb[57].mxu1 }
 0x421   : > { %v12989_v43 = vadd.f32 %v12988_v22, %v12987_v52  ;;  %v12990_v15 = vpop.f32.mrb[58].mxu1  ;;  %v6895_v52 = vsel %vm2939_vm1, %v6893_v27, %v6894_v18  ;;  %v6908_v22 = vsel %vm2939_vm1, %v6906_v11, %v6907_v13  ;;  %v14894_v13 = vld [vmem:[%s18687_s7 + $0x48] sm:$0xff]  }
 0x422   : > { %v12991_v35 = vpop.f32.mrb[59].mxu1  ;;  %13693 = vmatprep.subr.bf16.mxu0 %v14894_v13 }
 0x423   : > { %v4670_v32 = vadd.f32 %v12989_v43, %v17375_v55  ;;  %v12992_v0 = vadd.f32 %v12991_v35, %v12990_v15  ;;  %v6676_v15 = vld [vmem:[#allocation2 + $0x3a8] sm:$0xff]  ;;  %v7037_v35 = vpack.c.bf16 %v6900_v39, %v6895_v52  ;;  %13694 = vmatpush3.bf16.msra.mxu0 %v14894_v13 }
 0x424   : > { %7283 = vmatmul.mubr.bf16.gmra.mrb[164].mxu1 %v7035_v1  ;;  %v6667_v1 = vld [vmem:[#allocation2 + $0x350] sm:$0xfe]  ;;  %v6917_v17 = vrot.slane %v6676_v15, 1 }
 0x425   : > { %v4671_v36 = vadd.f32 %v12992_v0, %v17381_v38  ;;  %7290 = vmatprep.mubr.bf16.mxu1 %v7038_v34  ;;  %v17578_v12 = vadd.f32 %v18879_v25, %v4670_v32  ;;  %v7040_v0 = vpack.c.bf16 %v6912_v47, %v6908_v22  ;;  %v6909_v34 = vrot.slane %v6671_v40, 1  ;;  %v6675_v22 = vld [vmem:[#allocation2 + $0x3a0] sm:$0xff]  ;;  %v18882_v47 = vld [vmem:[#allocation18_spill] sm:$0xff] }
 0x426   : > { %v6903_v25 = vrot.slane %v6667_v1, 1 }
 0x427   : > { %v12993_v55 = vpop.f32.mrb[60].mxu1  ;;  %v17586_v49 = vadd.f32 %v18880_v63, %v4671_v36  ;;  %v6921_v36 = vrot.slane %v6678_v59, 1 }
 0x428   : > { %v12994_v38 = vpop.f32.mrb[61].mxu1  ;;  %v6905_v63 = vsel %vm2939_vm1, %v6903_v25, %v6904_v30 }
 0x429   : > { %v12995_v9 = vadd.f32 %v12994_v38, %v12993_v55  ;;  %v12996_v43 = vpop.f32.mrb[62].mxu1  ;;  %v6916_v55 = vrot.slane %v6674_v21, 1  ;;  %v6910_v38 = vsel %vm2939_vm1, %v6904_v30, %v6909_v34  ;;  %v6922_v59 = vsel %vm2939_vm1, %v6917_v17, %v6921_v36  ;;  %v6682_v30 = vld [vmem:[#allocation2 + $0x3e8] sm:$0xff]  ;;  %v6673_v21 = vld [vmem:[#allocation2 + $0x390] sm:$0xfe] }
 0x42a   : > { %v12997_v53 = vpop.f32.mrb[63].mxu1  ;;  %v13329_v14 = vpop.f32.mrb[224].mxu0  ;;  %v7039_v34 = vpack.c.bf16 %v6910_v38, %v6905_v63 }
 0x42b   : > { %v4672_v18 = vadd.f32 %v12995_v9, %v17391_v45  ;;  %v12998_v32 = vadd.f32 %v12997_v53, %v12996_v43  ;;  %v13330_v45 = vpop.f32.mrb[225].mxu0  ;;  %v14895_v9 = vld [vmem:[%s18687_s7 + $0x50] sm:$0xff]   ;;  %v6918_v15 = vsel %vm2939_vm1, %v6916_v55, %v6917_v17  ;;  %v6927_v17 = vrot.slane %v6682_v30, 1  ;;  %v14896_v30 = vld [vmem:[%s18687_s7 + $0x58] sm:$0xff]  }
 0x42c   : > { %7291 = vmatmul.mubr.bf16.gmra.mrb[168].mxu1 %v7037_v35  ;;  %v17598_v52 = vadd.f32 %v13330_v45, %v13329_v14  ;;  %v13332_v39 = vpop.f32.mrb[226].mxu0  ;;  %v6677_v53 = vld [vmem:[#allocation2 + $0x3b0] sm:$0x1]  ;;  %13695 = vmatprep.subr.bf16.mxu0 %v14895_v9  ;;  %v6914_v14 = vrot.slane %v6675_v22, 1  ;;  %v7042_v25 = vpack.c.bf16 %v6922_v59, %v6918_v15  ;;  %v6680_v45 = vld [vmem:[#allocation2 + $0x3d8] sm:$0xfe] }
 0x42d   : > { %v4673_v27 = vadd.f32 %v12998_v32, %v17397_v41  ;;  %7298 = vmatprep.mubr.bf16.mxu1 %v7040_v0  ;;  %v17596_v11 = vadd.f32 %v18881_v5, %v4672_v18  ;;  %v13333_v40 = vpop.f32.mrb[227].mxu0  ;;  %v6684_v32 = vld [vmem:[#allocation2 + $0x3f8] sm:$0x1]  ;;  %13696 = vmatpush3.bf16.msra.mxu0 %v14895_v9  ;;  %v6919_v5 = vrot.slane %v6677_v53, 1  ;;  %v6926_v63 = vrot.slane %v6680_v45, 1 }
 0x42e   : > { %v17610_v35 = vadd.f32 %v13333_v40, %v13332_v39  ;;  %v6931_v36 = vrot.slane %v6684_v32, 1  ;;  %v6913_v39 = vrot.slane %v6673_v21, 1  ;;  %v6681_v40 = vld [vmem:[#allocation2 + $0x3e0] sm:$0xff]  ;;  %v6683_v59 = vld [vmem:[#allocation2 + $0x3f0] sm:$0x1]  ;;  %v18884_v32 = vld [vmem:[#allocation14_spill] sm:$0xff]  ;;  %13697 = vmatprep.subr.bf16.mxu0 %v14896_v30 }
 0x42f   : > { %v13127_v37 = vpop.f32.mrb[64].mxu1  ;;  %v17603_v41 = vadd.f32 %v18882_v47, %v4673_v27  ;;  %v6929_v45 = vrot.slane %v6683_v59, 1  ;;  %v6696_v59 = vld [vmem:[#allocation2 + $0x478] sm:$0x1] }
 0x430   : > { %v13128_v43 = vpop.f32.mrb[65].mxu1  ;;  %v6915_v22 = vsel %vm2939_vm1, %v6913_v39, %v6914_v14  ;;  %v6932_v15 = vsel %vm2939_vm1, %v6927_v17, %v6931_v36  ;;  %v14897_v36 = vld [vmem:[%s18687_s7 + $0x60] sm:$0xff]  }
 0x431   : > { %v13129_v1 = vadd.f32 %v13128_v43, %v13127_v37  ;;  %v13130_v18 = vpop.f32.mrb[66].mxu1  ;;  %v18883_v37 = vld [vmem:[#allocation19_spill] sm:$0xff]  ;;  %v6928_v43 = vsel %vm2939_vm1, %v6926_v63, %v6927_v17  ;;  %v6686_v17 = vld [vmem:[#allocation2 + $0x418] sm:$0xfe]  ;;  %13698 = vmatpush3.bf16.msra.mxu0 %v14896_v30 }
 0x432   : > { %v13131_v0 = vpop.f32.mrb[67].mxu1  ;;  %13699 = vmatprep.subr.bf16.mxu0 %v14897_v36 }
 0x433   : > { %v6183_v13 = vadd.f32 %v13129_v1, %v17407_v23  ;;  %v13132_v27 = vadd.f32 %v13131_v0, %v13130_v18  ;;  %v6920_v23 = vsel %vm2939_vm1, %v6914_v14, %v6919_v5  ;;  %v6688_v1 = vld [vmem:[#allocation2 + $0x428] sm:$0xff]  ;;  %v6690_v18 = vld [vmem:[#allocation2 + $0x438] sm:$0x1]  ;;  %v6679_v14 = vld [vmem:[#allocation2 + $0x3d0] sm:$0xfe]  ;;  %v7044_v5 = vpack.c.bf16 %v6932_v15, %v6928_v43 }
 0x434   : > { %7299 = vmatmul.mubr.bf16.gmra.mrb[172].mxu1 %v7039_v34  ;;  %v7041_v21 = vpack.c.bf16 %v6920_v23, %v6915_v22  ;;  %v6937_v39 = vrot.slane %v6688_v1, 1  ;;  %v6923_v63 = vrot.slane %v6679_v14, 1  ;;  %v6936_v22 = vrot.slane %v6686_v17, 1  ;;  %v6687_v23 = vld [vmem:[#allocation2 + $0x420] sm:$0xff]  ;;  %v6692_v15 = vld [vmem:[#allocation2 + $0x458] sm:$0xfe] }
 0x435   : > { %v6184_v55 = vadd.f32 %v13132_v27, %v17413_v42  ;;  %7306 = vmatprep.mubr.bf16.mxu1 %v7042_v25  ;;  %v17615_v47 = vadd.f32 %v18883_v37, %v6183_v13  ;;  %v6924_v13 = vrot.slane %v6681_v40, 1  ;;  %v6941_v37 = vrot.slane %v6690_v18, 1  ;;  %v6689_v1 = vld [vmem:[#allocation2 + $0x430] sm:$0x1]  ;;  %13700 = vmatpush3.bf16.msra.mxu0 %v14897_v36 }
 0x437   : > { %v13133_v38 = vpop.f32.mrb[68].mxu1  ;;  %v17625_v0 = vadd.f32 %v18884_v32, %v6184_v55  ;;  %v6930_v43 = vsel %vm2939_vm1, %v6924_v13, %v6929_v45  ;;  %v6934_v32 = vrot.slane %v6687_v23, 1  ;;  %v15021_v45 = vld [vmem:[#allocation2] sm:$0xff] }
 0x438   : > { %v13134_v9 = vpop.f32.mrb[69].mxu1  ;;  %v6947_v17 = vrot.slane %v15021_v45, 1 }
 0x439   : > { %v13135_v53 = vadd.f32 %v13134_v9, %v13133_v38  ;;  %v13136_v42 = vpop.f32.mrb[70].mxu1  ;;  %v18885_v38 = vld [vmem:[#allocation50_spill] sm:$0xff]  ;;  %v6925_v9 = vsel %vm2939_vm1, %v6923_v63, %v6924_v13  ;;  %v6951_v63 = vrot.slane %v6696_v59, 1  ;;  %v6695_v59 = vld [vmem:[#allocation2 + $0x470] sm:$0x1] }
 0x43a   : > { %v13137_v34 = vpop.f32.mrb[71].mxu1 }
 0x43b   : > { %v6185_v27 = vadd.f32 %v13135_v53, %v17421_v28  ;;  %v13138_v25 = vadd.f32 %v13137_v34, %v13136_v42  ;;  %v6938_v42 = vsel %vm2939_vm1, %v6936_v22, %v6937_v39  ;;  %v14898_v34 = vld [vmem:[%s18687_s7 + $0x68] sm:$0xff]   ;;  %v14899_v22 = vld [vmem:[%s18687_s7 + $0x70] sm:$0xff]  }
 0x43c   : > { %7307 = vmatmul.mubr.bf16.gmra.mrb[176].mxu1 %v7041_v21  ;;  %v18886_v21 = vld [vmem:[#allocation20_spill] sm:$0xff]  ;;  %13701 = vmatprep.subr.bf16.mxu0 %v14898_v34 }
 0x43d   : > { %v6186_v55 = vadd.f32 %v13138_v25, %v17425_v60  ;;  %7314 = vmatprep.mubr.bf16.mxu1 %v7044_v5  ;;  %v17633_v28 = vadd.f32 %v18885_v38, %v6185_v27  ;;  %v6942_v60 = vsel %vm2939_vm1, %v6937_v39, %v6941_v37  ;;  %v7043_v27 = vpack.c.bf16 %v6930_v43, %v6925_v9  ;;  %v6685_v25 = vld [vmem:[#allocation2 + $0x410] sm:$0xfe]  ;;  %v18887_v9 = vld [vmem:[#allocation21_spill] sm:$0xff] }
 0x43e   : > { %v6946_v5 = vrot.slane %v6692_v15, 1  ;;  %v7046_v37 = vpack.c.bf16 %v6942_v60, %v6938_v42  ;;  %v6939_v38 = vrot.slane %v6689_v1, 1  ;;  %13702 = vmatpush3.bf16.msra.mxu0 %v14898_v34  ;;  %v6933_v23 = vrot.slane %v6685_v25, 1 }
 0x43f   : > { %v13139_v40 = vpop.f32.mrb[72].mxu1  ;;  %v17643_v14 = vadd.f32 %v18886_v21, %v6186_v55  ;;  %13703 = vmatprep.subr.bf16.mxu0 %v14899_v22  ;;  %v6952_v15 = vsel %vm2939_vm1, %v6947_v17, %v6951_v63  ;;  %v6949_v21 = vrot.slane %v6695_v59, 1  ;;  %v18890_v59 = vld [vmem:[#allocation16_spill] sm:$0xff] }
 0x440   : > { %v13140_v53 = vpop.f32.mrb[73].mxu1  ;;  %v6935_v42 = vsel %vm2939_vm1, %v6933_v23, %v6934_v32  ;;  %v6940_v60 = vsel %vm2939_vm1, %v6934_v32, %v6939_v38  ;;  %v7643_v32 = vpack.c.bf16 %v15021_v45, %v15021_v45  ;;  %v18889_v23 = vld [vmem:[#allocation23_spill] sm:$0xff] }
 0x441   : > { %v13141_v18 = vadd.f32 %v13140_v53, %v13139_v40  ;;  %v13142_v30 = vpop.f32.mrb[74].mxu1  ;;  %v6691_v40 = vld [vmem:[#allocation2 + $0x450] sm:$0xfe]  ;;  %v7045_v63 = vpack.c.bf16 %v6940_v60, %v6935_v42 }
 0x442   : > { %v13143_v13 = vpop.f32.mrb[75].mxu1  ;;  %13704 = vmatpush3.bf16.msra.mxu0 %v14899_v22  ;;  %v6950_v22 = vsel %vm2939_vm1, %v6947_v17, %v6949_v21  ;;  %13707 = vmatprep.mubr.bf16.mxu0 %v7643_v32  ;;  %v18892_v21 = vld [vmem:[#allocation25_spill] sm:$0xff] }
 0x443   : > { %v6187_v39 = vadd.f32 %v13141_v18, %v17434_v6  ;;  %v13144_v36 = vadd.f32 %v13143_v13, %v13142_v30  ;;  %v6948_v6 = vsel %vm2939_vm1, %v6946_v5, %v6947_v17  ;;  %v6943_v18 = vrot.slane %v6691_v40, 1  ;;  %v14900_v13 = vld [vmem:[%s18687_s7 + $0x78] sm:$0xff]  }
 0x444   : > { %7315 = vmatmul.mubr.bf16.gmra.mrb[180].mxu1 %v7043_v27  ;;  %v7048_v34 = vpack.c.bf16 %v6952_v15, %v6948_v6  ;;  %v18888_v27 = vld [vmem:[#allocation15_spill] sm:$0xff]  ;;  %13705 = vmatprep.subr.bf16.mxu0 %v14900_v13 }
 0x445   : > { %v6188_v55 = vadd.f32 %v13144_v36, %v17440_v33  ;;  %7322 = vmatprep.mubr.bf16.mxu1 %v7046_v37  ;;  %v17651_v43 = vadd.f32 %v18887_v9, %v6187_v39  ;;  %v6945_v37 = vsel %vm2939_vm1, %v6943_v18, %v6947_v17  ;;  %v18891_v17 = vld [vmem:[#allocation24_spill] sm:$0xff]  ;;  %vm10735_vm1 = vcmask 375808  }
 0x446   : > { %13706 = vmatpush3.bf16.msra.mxu0 %v14900_v13  ;;  %v7047_v6 = vpack.c.bf16 %v6950_v22, %v6945_v37  ;;  %v18894_v22 = vld [vmem:[#allocation26_spill] sm:$0xff] }
 0x447   : > { %v13145_v53 = vpop.f32.mrb[76].mxu1  ;;  %v17661_v25 = vadd.f32 %v18888_v27, %v6188_v55 }
 0x448   : > { %v13146_v1 = vpop.f32.mrb[77].mxu1 }
 0x449   : > { %v13147_v33 = vadd.f32 %v13146_v1, %v13145_v53  ;;  %v13148_v30 = vpop.f32.mrb[78].mxu1 }
 0x44a   : > { %v13149_v5 = vpop.f32.mrb[79].mxu1 }
 0x44b   : > { %v6189_v39 = vadd.f32 %v13147_v33, %v17448_v3  ;;  %v13150_v36 = vadd.f32 %v13149_v5, %v13148_v30 }
 0x44c   : > { %7323 = vmatmul.mubr.bf16.gmra.mrb[184].mxu1 %v7045_v63 }
 0x44d   : > { %v6190_v38 = vadd.f32 %v13150_v36, %v17451_v4  ;;  %7330 = vmatprep.mubr.bf16.mxu1 %v7048_v34  ;;  %v17668_v55 = vadd.f32 %v18889_v23, %v6189_v39  ;;  %v18893_v39 = vld [vmem:[#allocation17_spill] sm:$0xff] }
 0x44f   : > { %v13151_v40 = vpop.f32.mrb[80].mxu1  ;;  %v17671_v45 = vadd.f32 %v18890_v59, %v6190_v38 }
 0x450   : > { %v13152_v9 = vpop.f32.mrb[81].mxu1 }
 0x451   : > { %v13153_v3 = vadd.f32 %v13152_v9, %v13151_v40  ;;  %v13154_v15 = vpop.f32.mrb[82].mxu1 }
 0x452   : > { %v13155_v53 = vpop.f32.mrb[83].mxu1 }
 0x453   : > { %v6191_v42 = vadd.f32 %v13153_v3, %v17458_v48  ;;  %v13156_v60 = vadd.f32 %v13155_v53, %v13154_v15 }
 0x454   : > { %7331 = vmatmul.mubr.bf16.gmra.mrb[188].mxu1 %v7047_v6 }
 0x455   : > { %v6192_v4 = vadd.f32 %v13156_v60, %v17462_v24  ;;  %v17676_v1 = vadd.f32 %v18891_v17, %v6191_v42  ;;  %v18896_v60 = vld [vmem:[#allocation28_spill] sm:$0xff] }
 0x457   : > { %v13157_v18 = vpop.f32.mrb[84].mxu1  ;;  %v17679_v13 = vadd.f32 %v18892_v21, %v6192_v4 }
 0x458   : > { %v13158_v33 = vpop.f32.mrb[85].mxu1 }
 0x459   : > { %v13159_v30 = vadd.f32 %v13158_v33, %v13157_v18  ;;  %v13160_v34 = vpop.f32.mrb[86].mxu1 }
 0x45a   : > { %v13161_v27 = vpop.f32.mrb[87].mxu1 }
 0x45b   : > { %v6193_v5 = vadd.f32 %v13159_v30, %v17470_v16  ;;  %v13162_v63 = vadd.f32 %v13161_v27, %v13160_v34  ;;  %v18895_v16 = vld [vmem:[#allocation27_spill] sm:$0xff] }
 0x45d   : > { %v6194_v48 = vadd.f32 %v13162_v63, %v17475_v61  ;;  %v17684_v36 = vadd.f32 %v18893_v39, %v6193_v5  ;;  %v18898_v63 = vld [vmem:[#allocation30_spill] sm:$0xff] }
 0x45f   : > { %v13163_v24 = vpop.f32.mrb[88].mxu1  ;;  %v17687_v23 = vadd.f32 %v18894_v22, %v6194_v48 }
 0x460   : > { %v13164_v32 = vpop.f32.mrb[89].mxu1 }
 0x461   : > { %v13165_v37 = vadd.f32 %v13164_v32, %v13163_v24  ;;  %v13166_v38 = vpop.f32.mrb[90].mxu1 }
 0x462   : > { %v13167_v40 = vpop.f32.mrb[91].mxu1 }
 0x463   : > { %v6195_v9 = vadd.f32 %v13165_v37, %v17482_v2  ;;  %v13168_v6 = vadd.f32 %v13167_v40, %v13166_v38  ;;  %v18897_v2 = vld [vmem:[#allocation29_spill] sm:$0xff] }
 0x465   : > { %v6196_v3 = vadd.f32 %v13168_v6, %v17487_v29  ;;  %v17692_v15 = vadd.f32 %v18895_v16, %v6195_v9  ;;  %v18900_v6 = vld [vmem:[#allocation32_spill] sm:$0xff] }
 0x467   : > { %v13169_v61 = vpop.f32.mrb[92].mxu1  ;;  %v17695_v4 = vadd.f32 %v18896_v60, %v6196_v3 }
 0x468   : > { %v13170_v59 = vpop.f32.mrb[93].mxu1 }
 0x469   : > { %v13171_v53 = vadd.f32 %v13170_v59, %v13169_v61  ;;  %v13172_v42 = vpop.f32.mrb[94].mxu1 }
 0x46a   : > { %v13173_v17 = vpop.f32.mrb[95].mxu1 }
 0x46b   : > { %v6197_v18 = vadd.f32 %v13171_v53, %v17494_v58  ;;  %v13174_v33 = vadd.f32 %v13173_v17, %v13172_v42  ;;  %v18899_v58 = vld [vmem:[#allocation31_spill] sm:$0xff] }
 0x46d   : > { %v6198_v30 = vadd.f32 %v13174_v33, %v17499_v8  ;;  %v17700_v34 = vadd.f32 %v18897_v2, %v6197_v18  ;;  %v18902_v33 = vld [vmem:[#allocation34_spill] sm:$0xff] }
 0x46f   : > { %v13175_v29 = vpop.f32.mrb[96].mxu1  ;;  %v17703_v48 = vadd.f32 %v18898_v63, %v6198_v30 }
 0x470   : > { %v13176_v21 = vpop.f32.mrb[97].mxu1 }
 0x471   : > { %v13177_v27 = vadd.f32 %v13176_v21, %v13175_v29  ;;  %v13178_v5 = vpop.f32.mrb[98].mxu1 }
 0x472   : > { %v13179_v39 = vpop.f32.mrb[99].mxu1 }
 0x473   : > { %v6199_v24 = vadd.f32 %v13177_v27, %v17506_v19  ;;  %v13180_v32 = vadd.f32 %v13179_v39, %v13178_v5  ;;  %v18901_v19 = vld [vmem:[#allocation33_spill] sm:$0xff] }
 0x475   : > { %v6200_v37 = vadd.f32 %v13180_v32, %v17511_v56  ;;  %v17708_v38 = vadd.f32 %v18899_v58, %v6199_v24  ;;  %v18904_v32 = vld [vmem:[#allocation36_spill] sm:$0xff] }
 0x477   : > { %v13181_v8 = vpop.f32.mrb[100].mxu1  ;;  %v17711_v3 = vadd.f32 %v18900_v6, %v6200_v37 }
 0x478   : > { %v13182_v22 = vpop.f32.mrb[101].mxu1 }
 0x479   : > { %v13183_v40 = vadd.f32 %v13182_v22, %v13181_v8  ;;  %v13184_v9 = vpop.f32.mrb[102].mxu1 }
 0x47a   : > { %v13185_v16 = vpop.f32.mrb[103].mxu1 }
 0x47b   : > { %v6201_v61 = vadd.f32 %v13183_v40, %v17518_v62  ;;  %v13186_v59 = vadd.f32 %v13185_v16, %v13184_v9  ;;  %v18903_v62 = vld [vmem:[#allocation35_spill] sm:$0xff] }
 0x47d   : > { %v6202_v53 = vadd.f32 %v13186_v59, %v17523_v51  ;;  %v17716_v42 = vadd.f32 %v18901_v19, %v6201_v61  ;;  %v18906_v59 = vld [vmem:[#allocation38_spill] sm:$0xff] }
 0x47f   : > { %v13187_v56 = vpop.f32.mrb[104].mxu1  ;;  %v17719_v30 = vadd.f32 %v18902_v33, %v6202_v53 }
 0x480   : > { %v13188_v60 = vpop.f32.mrb[105].mxu1 }
 0x481   : > { %v13189_v17 = vadd.f32 %v13188_v60, %v13187_v56  ;;  %v13190_v18 = vpop.f32.mrb[106].mxu1 }
 0x482   : > { %v13191_v2 = vpop.f32.mrb[107].mxu1 }
 0x483   : > { %v6203_v29 = vadd.f32 %v13189_v17, %v17530_v20  ;;  %v13192_v21 = vadd.f32 %v13191_v2, %v13190_v18  ;;  %v18905_v20 = vld [vmem:[#allocation37_spill] sm:$0xff] }
 0x485   : > { %v6204_v27 = vadd.f32 %v13192_v21, %v17535_v46  ;;  %v17724_v5 = vadd.f32 %v18903_v62, %v6203_v29  ;;  %v18908_v21 = vld [vmem:[#allocation40_spill] sm:$0xff] }
 0x487   : > { %v13193_v51 = vpop.f32.mrb[108].mxu1  ;;  %v17727_v37 = vadd.f32 %v18904_v32, %v6204_v27 }
 0x488   : > { %v13194_v63 = vpop.f32.mrb[109].mxu1 }
 0x489   : > { %v13195_v39 = vadd.f32 %v13194_v63, %v13193_v51  ;;  %v13196_v24 = vpop.f32.mrb[110].mxu1 }
 0x48a   : > { %v13197_v58 = vpop.f32.mrb[111].mxu1 }
 0x48b   : > { %v6205_v8 = vadd.f32 %v13195_v39, %v17542_v7  ;;  %v13198_v22 = vadd.f32 %v13197_v58, %v13196_v24  ;;  %v18907_v7 = vld [vmem:[#allocation39_spill] sm:$0xff] }
 0x48d   : > { %v6206_v40 = vadd.f32 %v13198_v22, %v17547_v44  ;;  %v17732_v9 = vadd.f32 %v18905_v20, %v6205_v8  ;;  %v18910_v22 = vld [vmem:[#allocation42_spill] sm:$0xff] }
 0x48f   : > { %v13199_v46 = vpop.f32.mrb[112].mxu1  ;;  %v17735_v53 = vadd.f32 %v18906_v59, %v6206_v40 }
 0x490   : > { %v13200_v6 = vpop.f32.mrb[113].mxu1 }
 0x491   : > { %v13201_v16 = vadd.f32 %v13200_v6, %v13199_v46  ;;  %v13202_v61 = vpop.f32.mrb[114].mxu1 }
 0x492   : > { %v13203_v19 = vpop.f32.mrb[115].mxu1 }
 0x493   : > { %v6207_v56 = vadd.f32 %v13201_v16, %v17554_v10  ;;  %v13204_v60 = vadd.f32 %v13203_v19, %v13202_v61  ;;  %v18909_v10 = vld [vmem:[#allocation41_spill] sm:$0xff] }
 0x495   : > { %v6208_v17 = vadd.f32 %v13204_v60, %v17559_v54  ;;  %v17740_v18 = vadd.f32 %v18907_v7, %v6207_v56 }
 0x497   : > { %v13205_v44 = vpop.f32.mrb[116].mxu1  ;;  %v17743_v27 = vadd.f32 %v18908_v21, %v6208_v17 }
 0x498   : > { %v13206_v33 = vpop.f32.mrb[117].mxu1 }
 0x499   : > { %v13207_v2 = vadd.f32 %v13206_v33, %v13205_v44  ;;  %v13208_v29 = vpop.f32.mrb[118].mxu1 }
 0x49a   : > { %v13209_v62 = vpop.f32.mrb[119].mxu1 }
 0x49b   : > { %v6209_v51 = vadd.f32 %v13207_v2, %v17566_v26  ;;  %v13210_v63 = vadd.f32 %v13209_v62, %v13208_v29  ;;  %v14901_v26 = vld [vmem:[%s18687_s7] sm:$0xff]  }
 0x49c   : > { %13739 = vmatprep.subr.bf16.mxu0 %v14901_v26 }
 0x49d   : > { %v6210_v39 = vadd.f32 %v13210_v63, %v17571_v31  ;;  %v17748_v24 = vadd.f32 %v18909_v10, %v6209_v51 }
 0x49f   : > { %v13211_v54 = vpop.f32.mrb[120].mxu1  ;;  %v17751_v40 = vadd.f32 %v18910_v22, %v6210_v39 }
 0x4a0   : > { %v13212_v32 = vpop.f32.mrb[121].mxu1 }
 0x4a1   : > { %v13213_v58 = vadd.f32 %v13212_v32, %v13211_v54  ;;  %v13214_v8 = vpop.f32.mrb[122].mxu1 }
 0x4a2   : > { %v13215_v20 = vpop.f32.mrb[123].mxu1 }
 0x4a3   : > { %v6211_v46 = vadd.f32 %v13213_v58, %v17578_v12  ;;  %v13216_v6 = vadd.f32 %v13215_v20, %v13214_v8 }
 0x4a5   : > { %v6212_v31 = vadd.f32 %v13216_v6, %v17586_v49  ;;  %v17759_v16 = vadd.f32 %v17403_v50, %v6211_v46  ;;  %v14902_v46 = vld [vmem:[%s18687_s7 + $0x8] sm:$0xff]  }
 0x4a7   : > { %v13217_v61 = vpop.f32.mrb[124].mxu1  ;;  %v17762_v60 = vadd.f32 %v17409_v57, %v6212_v31  ;;  %v17775_v57 = vld [vmem:[%s18686_s6] ss:$0 sm:$0xff] }
 0x4a8   : > { %v13218_v59 = vpop.f32.mrb[125].mxu1 }
 0x4a9   : > { %v13219_v19 = vadd.f32 %v13218_v59, %v13217_v61  ;;  %v13220_v56 = vpop.f32.mrb[126].mxu1 }
 0x4aa   : > { %v13221_v17 = vpop.f32.mrb[127].mxu1 }
 0x4ab   : > { %v6213_v12 = vadd.f32 %v13219_v19, %v17596_v11  ;;  %v13222_v7 = vadd.f32 %v13221_v17, %v13220_v56 }
 0x4ad   : > { %v6214_v44 = vadd.f32 %v13222_v7, %v17603_v41  ;;  %v17767_v33 = vadd.f32 %v17598_v52, %v6213_v12 }
 0x4af   : > { %v17770_v49 = vadd.f32 %v17610_v35, %v6214_v44  ;;  %v13351_v50 = vpop.f32.mrb[128].mxu1 }
 0x4b0   : > { %v13352_v2 = vpop.f32.mrb[129].mxu1 }
 0x4b1   : > { %v13353_v29 = vadd.f32 %v13352_v2, %v13351_v50  ;;  %v13354_v21 = vpop.f32.mrb[130].mxu1  ;;  %v14904_v50 = vld [vmem:[%s18687_s7 + $0x18] sm:$0xff]  }
 0x4b2   : > { %v13355_v62 = vpop.f32.mrb[131].mxu1 }
 0x4b3   : > { %v7339_v11 = vadd.f32 %v13353_v29, %v17615_v47  ;;  %v13356_v51 = vadd.f32 %v13355_v62, %v13354_v21 }
 0x4b5   : > { %v7378_v41 = vadd.f32 %v17775_v57, %v7339_v11  ;;  %v7340_v52 = vadd.f32 %v13356_v51, %v17625_v0 }
 0x4b7   : > { %v7410_v63 = vmax.f32 %v7378_v41, 0.0  ;;  %v7379_v35 = vadd.f32 %v17775_v57, %v7340_v52  ;;  %v13357_v39 = vpop.f32.mrb[132].mxu1 }
 0x4b8   : > { %v13358_v10 = vpop.f32.mrb[133].mxu1 }
 0x4b9   : > { %7515 = vst [vmem:[#allocation3 + $0x28] sm:$0xff] %v7410_v63  ;;  %v7411_v54 = vmax.f32 %v7379_v35, 0.0  ;;  %v13359_v32 = vadd.f32 %v13358_v10, %v13357_v39  ;;  %v13360_v58 = vpop.f32.mrb[134].mxu1 }
 0x4ba   : > { %v13361_v8 = vpop.f32.mrb[135].mxu1 }
 0x4bb   : > { %7516 = vst [vmem:[#allocation3 + $0x30] sm:$0xff] %v7411_v54  ;;  %v7341_v22 = vadd.f32 %v13359_v32, %v17633_v28  ;;  %v13362_v20 = vadd.f32 %v13361_v8, %v13360_v58  ;;  %v7644_v47 = vpack.c.bf16 %v7411_v54, %v7410_v63  ;;  %v14903_v28 = vld [vmem:[%s18687_s7 + $0x10] sm:$0xff]   ;;  %v14906_v54 = vld [vmem:[%s18687_s7 + $0x28] sm:$0xff]  }
 0x4bd   : > { %v7380_v0 = vadd.f32 %v17775_v57, %v7341_v22  ;;  %v7342_v6 = vadd.f32 %v13362_v20, %v17643_v14  ;;  %13708 = vmatmul.mubr.bf16.vlgmr.msra.gmra.mrb[228].mxu0 %v7644_v47 }
 0x4be   : > { %13740 = vmatpush3.bf16.msra.mxu0 %v14901_v26 }
 0x4bf   : > { %v7412_v31 = vmax.f32 %v7380_v0, 0.0  ;;  %v7381_v61 = vadd.f32 %v17775_v57, %v7342_v6  ;;  %v13363_v59 = vpop.f32.mrb[136].mxu1  ;;  %13741 = vmatprep.subr.bf16.mxu0 %v14902_v46 }
 0x4c0   : > { %v13364_v19 = vpop.f32.mrb[137].mxu1 }
 0x4c1   : > { %7517 = vst [vmem:[#allocation3 + $0x48] sm:$0xff] %v7412_v31  ;;  %v7413_v56 = vmax.f32 %v7381_v61, 0.0  ;;  %v13365_v17 = vadd.f32 %v13364_v19, %v13363_v59  ;;  %v13366_v12 = vpop.f32.mrb[138].mxu1 }
 0x4c2   : > { %v13367_v7 = vpop.f32.mrb[139].mxu1  ;;  %13742 = vmatpush3.bf16.msra.mxu0 %v14902_v46 }
 0x4c3   : > { %7518 = vst [vmem:[#allocation3 + $0x50] sm:$0xff] %v7413_v56  ;;  %v7343_v14 = vadd.f32 %v13365_v17, %v17651_v43  ;;  %v13368_v26 = vadd.f32 %v13367_v7, %v13366_v12  ;;  %v7645_v44 = vpack.c.bf16 %v7413_v56, %v7412_v31  ;;  %13743 = vmatprep.subr.bf16.mxu0 %v14903_v28  ;;  %v14905_v43 = vld [vmem:[%s18687_s7 + $0x20] sm:$0xff]  }
 0x4c5   : > { %v7382_v2 = vadd.f32 %v17775_v57, %v7343_v14  ;;  %v7344_v29 = vadd.f32 %v13368_v26, %v17661_v25  ;;  %13711 = vmatprep.mubr.bf16.mxu0 %v7645_v44 }
 0x4c6   : > { %13744 = vmatpush3.bf16.msra.mxu0 %v14903_v28  ;;  %v14908_v28 = vld [vmem:[%s18687_s7 + $0x38] sm:$0xff]  }
 0x4c7   : > { %v7414_v21 = vmax.f32 %v7382_v2, 0.0  ;;  %v7383_v62 = vadd.f32 %v17775_v57, %v7344_v29  ;;  %v13369_v11 = vpop.f32.mrb[140].mxu1  ;;  %13745 = vmatprep.subr.bf16.mxu0 %v14904_v50 }
 0x4c8   : > { %v13370_v51 = vpop.f32.mrb[141].mxu1 }
 0x4c9   : > { %7519 = vst [vmem:[#allocation3 + $0x68] sm:$0xff] %v7414_v21  ;;  %v7415_v41 = vmax.f32 %v7383_v62, 0.0  ;;  %v13371_v52 = vadd.f32 %v13370_v51, %v13369_v11  ;;  %v13372_v63 = vpop.f32.mrb[142].mxu1 }
 0x4ca   : > { %v13373_v35 = vpop.f32.mrb[143].mxu1  ;;  %13746 = vmatpush3.bf16.msra.mxu0 %v14904_v50 }
 0x4cb   : > { %7520 = vst [vmem:[#allocation3 + $0x70] sm:$0xff] %v7415_v41  ;;  %v7345_v25 = vadd.f32 %v13371_v52, %v17668_v55  ;;  %v13374_v39 = vadd.f32 %v13373_v35, %v13372_v63  ;;  %v7646_v10 = vpack.c.bf16 %v7415_v41, %v7414_v21  ;;  %13747 = vmatprep.subr.bf16.mxu0 %v14905_v43  ;;  %v14907_v55 = vld [vmem:[%s18687_s7 + $0x30] sm:$0xff]  }
 0x4cd   : > { %v7384_v32 = vadd.f32 %v17775_v57, %v7345_v25  ;;  %v7346_v58 = vadd.f32 %v13374_v39, %v17671_v45  ;;  %13712 = vmatmul.mubr.bf16.gmra.mrb[232].mxu0 %v7646_v10 }
 0x4ce   : > { %13748 = vmatpush3.bf16.msra.mxu0 %v14905_v43 }
 0x4cf   : > { %v7416_v8 = vmax.f32 %v7384_v32, 0.0  ;;  %v7385_v22 = vadd.f32 %v17775_v57, %v7346_v58  ;;  %v13375_v20 = vpop.f32.mrb[144].mxu1  ;;  %13749 = vmatprep.subr.bf16.mxu0 %v14906_v54 }
 0x4d0   : > { %v13376_v47 = vpop.f32.mrb[145].mxu1 }
 0x4d1   : > { %7521 = vst [vmem:[#allocation3 + $0x88] sm:$0xff] %v7416_v8  ;;  %v7417_v46 = vmax.f32 %v7385_v22, 0.0  ;;  %v13377_v0 = vadd.f32 %v13376_v47, %v13375_v20  ;;  %v13378_v6 = vpop.f32.mrb[146].mxu1 }
 0x4d2   : > { %v13379_v31 = vpop.f32.mrb[147].mxu1  ;;  %13750 = vmatpush3.bf16.msra.mxu0 %v14906_v54 }
 0x4d3   : > { %7522 = vst [vmem:[#allocation3 + $0x90] sm:$0xff] %v7417_v46  ;;  %v7347_v45 = vadd.f32 %v13377_v0, %v17676_v1  ;;  %v13380_v61 = vadd.f32 %v13379_v31, %v13378_v6  ;;  %v7647_v59 = vpack.c.bf16 %v7417_v46, %v7416_v8  ;;  %13751 = vmatprep.subr.bf16.mxu0 %v14907_v55  ;;  %v17821_v1 = vld [vmem:[%s18687_s7 + $0x80] sm:$0xff]  }
 0x4d5   : > { %v7386_v19 = vadd.f32 %v17775_v57, %v7347_v45  ;;  %v7348_v56 = vadd.f32 %v13380_v61, %v17679_v13  ;;  %13715 = vmatprep.mubr.bf16.mxu0 %v7647_v59 }
 0x4d6   : > { %13752 = vmatpush3.bf16.msra.mxu0 %v14907_v55 }
 0x4d7   : > { %v7418_v17 = vmax.f32 %v7386_v19, 0.0  ;;  %v7387_v12 = vadd.f32 %v17775_v57, %v7348_v56  ;;  %v13381_v7 = vpop.f32.mrb[148].mxu1  ;;  %13753 = vmatprep.subr.bf16.mxu0 %v14908_v28 }
 0x4d8   : > { %v13382_v14 = vpop.f32.mrb[149].mxu1 }
 0x4d9   : > { %7523 = vst [vmem:[#allocation3 + $0xa8] sm:$0xff] %v7418_v17  ;;  %v7419_v26 = vmax.f32 %v7387_v12, 0.0  ;;  %v13383_v44 = vadd.f32 %v13382_v14, %v13381_v7  ;;  %v13384_v50 = vpop.f32.mrb[150].mxu1 }
 0x4da   : > { %v13385_v2 = vpop.f32.mrb[151].mxu1  ;;  %13754 = vmatpush3.bf16.msra.mxu0 %v14908_v28 }
 0x4db   : > { %7524 = vst [vmem:[#allocation3 + $0xb0] sm:$0xff] %v7419_v26  ;;  %v7349_v13 = vadd.f32 %v13383_v44, %v17684_v36  ;;  %v13386_v29 = vadd.f32 %v13385_v2, %v13384_v50  ;;  %v7648_v21 = vpack.c.bf16 %v7419_v26, %v7418_v17  ;;  %13787 = vmatprep.subr.bf16.mxu0 %v17821_v1 }
 0x4dd   : > { %v7388_v62 = vadd.f32 %v17775_v57, %v7349_v13  ;;  %v7350_v11 = vadd.f32 %v13386_v29, %v17687_v23  ;;  %13716 = vmatmul.mubr.bf16.gmra.mrb[236].mxu0 %v7648_v21 }
 0x4df   : > { %v7420_v43 = vmax.f32 %v7388_v62, 0.0  ;;  %v7389_v51 = vadd.f32 %v17775_v57, %v7350_v11  ;;  %v13387_v41 = vpop.f32.mrb[152].mxu1 }
 0x4e0   : > { %v13388_v52 = vpop.f32.mrb[153].mxu1 }
 0x4e1   : > { %7525 = vst [vmem:[#allocation3 + $0xc8] sm:$0xff] %v7420_v43  ;;  %v7421_v63 = vmax.f32 %v7389_v51, 0.0  ;;  %v13389_v35 = vadd.f32 %v13388_v52, %v13387_v41  ;;  %v13390_v25 = vpop.f32.mrb[154].mxu1 }
 0x4e2   : > { %v13391_v39 = vpop.f32.mrb[155].mxu1 }
 0x4e3   : > { %7526 = vst [vmem:[#allocation3 + $0xd0] sm:$0xff] %v7421_v63  ;;  %v7351_v36 = vadd.f32 %v13389_v35, %v17692_v15  ;;  %v13392_v10 = vadd.f32 %v13391_v39, %v13390_v25  ;;  %v7649_v54 = vpack.c.bf16 %v7421_v63, %v7420_v43 }
 0x4e5   : > { %v7390_v32 = vadd.f32 %v17775_v57, %v7351_v36  ;;  %v7352_v23 = vadd.f32 %v13392_v10, %v17695_v4  ;;  %13719 = vmatprep.mubr.bf16.mxu0 %v7649_v54 }
 0x4e7   : > { %v7422_v58 = vmax.f32 %v7390_v32, 0.0  ;;  %v7391_v8 = vadd.f32 %v17775_v57, %v7352_v23  ;;  %v13393_v22 = vpop.f32.mrb[156].mxu1 }
 0x4e8   : > { %v13394_v20 = vpop.f32.mrb[157].mxu1 }
 0x4e9   : > { %7527 = vst [vmem:[#allocation3 + $0xe8] sm:$0xff] %v7422_v58  ;;  %v7423_v55 = vmax.f32 %v7391_v8, 0.0  ;;  %v13395_v47 = vadd.f32 %v13394_v20, %v13393_v22  ;;  %v13396_v46 = vpop.f32.mrb[158].mxu1 }
 0x4ea   : > { %v13397_v0 = vpop.f32.mrb[159].mxu1 }
 0x4eb   : > { %7528 = vst [vmem:[#allocation3 + $0xf0] sm:$0xff] %v7423_v55  ;;  %v7353_v15 = vadd.f32 %v13395_v47, %v17700_v34  ;;  %v13398_v6 = vadd.f32 %v13397_v0, %v13396_v46  ;;  %v7650_v31 = vpack.c.bf16 %v7423_v55, %v7422_v58 }
 0x4ed   : > { %v7392_v45 = vadd.f32 %v17775_v57, %v7353_v15  ;;  %v7354_v4 = vadd.f32 %v13398_v6, %v17703_v48  ;;  %13720 = vmatmul.mubr.bf16.gmra.mrb[240].mxu0 %v7650_v31 }
 0x4ef   : > { %v7424_v61 = vmax.f32 %v7392_v45, 0.0  ;;  %v7393_v59 = vadd.f32 %v17775_v57, %v7354_v4  ;;  %v13399_v28 = vpop.f32.mrb[160].mxu1 }
 0x4f0   : > { %v13400_v19 = vpop.f32.mrb[161].mxu1 }
 0x4f1   : > { %7529 = vst [vmem:[#allocation3 + $0x108] sm:$0xff] %v7424_v61  ;;  %v7425_v56 = vmax.f32 %v7393_v59, 0.0  ;;  %v13401_v17 = vadd.f32 %v13400_v19, %v13399_v28  ;;  %v13402_v12 = vpop.f32.mrb[162].mxu1 }
 0x4f2   : > { %v13403_v7 = vpop.f32.mrb[163].mxu1 }
 0x4f3   : > { %7530 = vst [vmem:[#allocation3 + $0x110] sm:$0xff] %v7425_v56  ;;  %v7355_v34 = vadd.f32 %v13401_v17, %v17708_v38  ;;  %v13404_v14 = vadd.f32 %v13403_v7, %v13402_v12  ;;  %v7651_v26 = vpack.c.bf16 %v7425_v56, %v7424_v61 }
 0x4f5   : > { %v7394_v44 = vadd.f32 %v17775_v57, %v7355_v34  ;;  %v7356_v48 = vadd.f32 %v13404_v14, %v17711_v3  ;;  %13723 = vmatprep.mubr.bf16.mxu0 %v7651_v26 }
 0x4f7   : > { %v7426_v50 = vmax.f32 %v7394_v44, 0.0  ;;  %v7395_v2 = vadd.f32 %v17775_v57, %v7356_v48  ;;  %v13405_v13 = vpop.f32.mrb[164].mxu1 }
 0x4f8   : > { %v13406_v29 = vpop.f32.mrb[165].mxu1 }
 0x4f9   : > { %7531 = vst [vmem:[#allocation3 + $0x128] sm:$0xff] %v7426_v50  ;;  %v7427_v21 = vmax.f32 %v7395_v2, 0.0  ;;  %v13407_v62 = vadd.f32 %v13406_v29, %v13405_v13  ;;  %v13408_v11 = vpop.f32.mrb[166].mxu1 }
 0x4fa   : > { %v13409_v43 = vpop.f32.mrb[167].mxu1 }
 0x4fb   : > { %7532 = vst [vmem:[#allocation3 + $0x130] sm:$0xff] %v7427_v21  ;;  %v7357_v38 = vadd.f32 %v13407_v62, %v17716_v42  ;;  %v13410_v51 = vadd.f32 %v13409_v43, %v13408_v11  ;;  %v7652_v41 = vpack.c.bf16 %v7427_v21, %v7426_v50 }
 0x4fd   : > { %v7396_v52 = vadd.f32 %v17775_v57, %v7357_v38  ;;  %v7358_v3 = vadd.f32 %v13410_v51, %v17719_v30  ;;  %13724 = vmatmul.mubr.bf16.gmra.mrb[244].mxu0 %v7652_v41 }
 0x4ff   : > { %v7428_v63 = vmax.f32 %v7396_v52, 0.0  ;;  %v7397_v35 = vadd.f32 %v17775_v57, %v7358_v3  ;;  %v13411_v25 = vpop.f32.mrb[168].mxu1 }
 0x500   : > { %v13412_v39 = vpop.f32.mrb[169].mxu1 }
 0x501   : > { %7533 = vst [vmem:[#allocation3 + $0x148] sm:$0xff] %v7428_v63  ;;  %v7429_v36 = vmax.f32 %v7397_v35, 0.0  ;;  %v13413_v10 = vadd.f32 %v13412_v39, %v13411_v25  ;;  %v13414_v54 = vpop.f32.mrb[170].mxu1 }
 0x502   : > { %v13415_v32 = vpop.f32.mrb[171].mxu1 }
 0x503   : > { %7534 = vst [vmem:[#allocation3 + $0x150] sm:$0xff] %v7429_v36  ;;  %v7359_v42 = vadd.f32 %v13413_v10, %v17724_v5  ;;  %v13416_v23 = vadd.f32 %v13415_v32, %v13414_v54  ;;  %v7653_v58 = vpack.c.bf16 %v7429_v36, %v7428_v63 }
 0x505   : > { %v7398_v8 = vadd.f32 %v17775_v57, %v7359_v42  ;;  %v7360_v30 = vadd.f32 %v13416_v23, %v17727_v37  ;;  %13727 = vmatprep.mubr.bf16.mxu0 %v7653_v58  ;;  %v7547_v58 = vld [vmem:[#allocation3 + $0x7] sm:$0xff] }
 0x507   : > { %v7430_v22 = vmax.f32 %v7398_v8, 0.0  ;;  %v7399_v20 = vadd.f32 %v17775_v57, %v7360_v30  ;;  %v13417_v55 = vpop.f32.mrb[172].mxu1  ;;  %v7548_v8 = vld [vmem:[#allocation3 + $0xf] sm:$0xff] }
 0x508   : > { %v13418_v47 = vpop.f32.mrb[173].mxu1 }
 0x509   : > { %7535 = vst [vmem:[#allocation3 + $0x168] sm:$0xff] %v7430_v22  ;;  %v7431_v46 = vmax.f32 %v7399_v20, 0.0  ;;  %v13419_v0 = vadd.f32 %v13418_v47, %v13417_v55  ;;  %v13420_v15 = vpop.f32.mrb[174].mxu1  ;;  %v7579_v47 = vpack.c.bf16 %v7548_v8, %v7547_v58 }
 0x50a   : > { %v13421_v6 = vpop.f32.mrb[175].mxu1 }
 0x50b   : > { %7536 = vst [vmem:[#allocation3 + $0x170] sm:$0xff] %v7431_v46  ;;  %v7361_v5 = vadd.f32 %v13419_v0, %v17732_v9  ;;  %v13422_v31 = vadd.f32 %v13421_v6, %v13420_v15  ;;  %v17849_v45 = vpack.c.bf16 %v7431_v46, %v7430_v22 }
 0x50d   : > { %v7400_v4 = vadd.f32 %v17775_v57, %v7361_v5  ;;  %v7362_v37 = vadd.f32 %v13422_v31, %v17735_v53  ;;  %13728 = vmatmul.mubr.bf16.gmra.mrb[248].mxu0 %v17849_v45 }
 0x50f   : > { %v7432_v61 = vmax.f32 %v7400_v4, 0.0  ;;  %v7401_v59 = vadd.f32 %v17775_v57, %v7362_v37  ;;  %v13423_v28 = vpop.f32.mrb[176].mxu1  ;;  %v7550_v4 = vld [vmem:[#allocation3 + $0x2f] sm:$0xff] }
 0x510   : > { %v13424_v19 = vpop.f32.mrb[177].mxu1  ;;  %v7552_v37 = vld [vmem:[#allocation3 + $0x4f] sm:$0xff] }
 0x511   : > { %7537 = vst [vmem:[#allocation3 + $0x188] sm:$0xff] %v7432_v61  ;;  %v7433_v56 = vmax.f32 %v7401_v59, 0.0  ;;  %v13425_v17 = vadd.f32 %v13424_v19, %v13423_v28  ;;  %v13426_v12 = vpop.f32.mrb[178].mxu1  ;;  %v7551_v59 = vld [vmem:[#allocation3 + $0x47] sm:$0xff]  ;;  %v14911_v19 = vld [vmem:[%s18687_s7 + $0x90] sm:$0xff]  }
 0x512   : > { %v13427_v7 = vpop.f32.mrb[179].mxu1  ;;  %v14910_v28 = vld [vmem:[%s18687_s7 + $0x88] sm:$0xff]  }
 0x513   : > { %7538 = vst [vmem:[#allocation3 + $0x190] sm:$0xff] %v7433_v56  ;;  %v7363_v9 = vadd.f32 %v13425_v17, %v17740_v18  ;;  %v13428_v34 = vadd.f32 %v13427_v7, %v13426_v12  ;;  %v17856_v14 = vpack.c.bf16 %v7433_v56, %v7432_v61  ;;  %v7549_v61 = vld [vmem:[#allocation3 + $0x27] sm:$0xff]  ;;  %v7554_v56 = vld [vmem:[#allocation3 + $0x6f] sm:$0xff] }
 0x514   : > { %v7556_v17 = vld [vmem:[#allocation3 + $0x8f] sm:$0xff]  ;;  %v7553_v12 = vld [vmem:[#allocation3 + $0x67] sm:$0xff] }
 0x515   : > { %v7402_v53 = vadd.f32 %v17775_v57, %v7363_v9  ;;  %v7364_v26 = vadd.f32 %v13428_v34, %v17743_v27  ;;  %13731 = vmatprep.mubr.bf16.mxu0 %v17856_v14  ;;  %v17906_v7 = vpack.c.bf16 %v7554_v56, %v7553_v12  ;;  %v7555_v9 = vld [vmem:[#allocation3 + $0x87] sm:$0xff]  ;;  %v14912_v34 = vld [vmem:[%s18687_s7 + $0x98] sm:$0xff]   ;;  %v14919_v12 = vld [vmem:[%s18687_s7 + $0xd0] sm:$0xff]  }
 0x516   : > { %v14918_v56 = vld [vmem:[%s18687_s7 + $0xc8] sm:$0xff]  }
 0x517   : > { %v7434_v44 = vmax.f32 %v7402_v53, 0.0  ;;  %v7403_v48 = vadd.f32 %v17775_v57, %v7364_v26  ;;  %v13429_v50 = vpop.f32.mrb[180].mxu1  ;;  %v17911_v53 = vpack.c.bf16 %v7556_v17, %v7555_v9  ;;  %v7558_v26 = vld [vmem:[#allocation3 + $0xaf] sm:$0xff] }
 0x518   : > { %v13430_v2 = vpop.f32.mrb[181].mxu1  ;;  %v8100_v9 = vld [vmem:[#allocation3 + $0x69] sm:$0xff] }
 0x519   : > { %7539 = vst [vmem:[#allocation3 + $0x1a8] sm:$0xff] %v7434_v44  ;;  %v7435_v13 = vmax.f32 %v7403_v48, 0.0  ;;  %v13431_v29 = vadd.f32 %v13430_v2, %v13429_v50  ;;  %v13432_v21 = vpop.f32.mrb[182].mxu1  ;;  %v7557_v48 = vld [vmem:[#allocation3 + $0xa7] sm:$0xff] }
 0x51a   : > { %v13433_v62 = vpop.f32.mrb[183].mxu1  ;;  %v17918_v50 = vpack.c.bf16 %v7558_v26, %v7557_v48  ;;  %v7559_v2 = vld [vmem:[#allocation3 + $0xc7] sm:$0xff]  ;;  %v8103_v26 = vld [vmem:[#allocation3 + $0x91] sm:$0xff] }
 0x51b   : > { %7540 = vst [vmem:[#allocation3 + $0x1b0] sm:$0xff] %v7435_v13  ;;  %v7365_v18 = vadd.f32 %v13431_v29, %v17748_v24  ;;  %v13434_v11 = vadd.f32 %v13433_v62, %v13432_v21  ;;  %v17863_v43 = vpack.c.bf16 %v7435_v13, %v7434_v44  ;;  %v7560_v44 = vld [vmem:[#allocation3 + $0xcf] sm:$0xff]  ;;  %v14920_v48 = vld [vmem:[%s18687_s7 + $0xd8] sm:$0xff]  }
 0x51c   : > { %v14914_v13 = vld [vmem:[%s18687_s7 + $0xa8] sm:$0xff]   ;;  %v17923_v29 = vpack.c.bf16 %v7560_v44, %v7559_v2  ;;  %v14915_v21 = vld [vmem:[%s18687_s7 + $0xb0] sm:$0xff]  }
 0x51d   : > { %v7404_v27 = vadd.f32 %v17775_v57, %v7365_v18  ;;  %v7366_v38 = vadd.f32 %v13434_v11, %v17751_v40  ;;  %13732 = vmatmul.mubr.bf16.gmra.mrb[252].mxu0 %v17863_v43  ;;  %v7562_v62 = vld [vmem:[#allocation3 + $0xef] sm:$0xff]  ;;  %v7561_v11 = vld [vmem:[#allocation3 + $0xe7] sm:$0xff] }
 0x51e   : > { %v7564_v18 = vld [vmem:[#allocation3 + $0x10f] sm:$0xff] }
 0x51f   : > { %v7436_v51 = vmax.f32 %v7404_v27, 0.0  ;;  %v7405_v41 = vadd.f32 %v17775_v57, %v7366_v38  ;;  %v13435_v52 = vpop.f32.mrb[184].mxu1  ;;  %v17930_v27 = vpack.c.bf16 %v7562_v62, %v7561_v11  ;;  %v7563_v38 = vld [vmem:[#allocation3 + $0x107] sm:$0xff]  ;;  %v8105_v62 = vld [vmem:[#allocation3 + $0xb1] sm:$0xff] }
 0x520   : > { %v13436_v3 = vpop.f32.mrb[185].mxu1  ;;  %v8107_v11 = vld [vmem:[#allocation3 + $0xd1] sm:$0xff] }
 0x521   : > { %7541 = vst [vmem:[#allocation3 + $0x1c8] sm:$0xff] %v7436_v51  ;;  %v7437_v63 = vmax.f32 %v7405_v41, 0.0  ;;  %v13437_v35 = vadd.f32 %v13436_v3, %v13435_v52  ;;  %v13438_v25 = vpop.f32.mrb[186].mxu1  ;;  %v17935_v41 = vpack.c.bf16 %v7564_v18, %v7563_v38  ;;  %v14917_v52 = vld [vmem:[%s18687_s7 + $0xc0] sm:$0xff]   ;;  %v7566_v3 = vld [vmem:[#allocation3 + $0x12f] sm:$0xff] }
 0x522   : > { %v13439_v39 = vpop.f32.mrb[187].mxu1  ;;  %v7574_v58 = vld [vmem:[#allocation3 + $0x1af] sm:$0xff] }
 0x523   : > { %7542 = vst [vmem:[#allocation3 + $0x1d0] sm:$0xff] %v7437_v63  ;;  %v7367_v24 = vadd.f32 %v13437_v35, %v17759_v16  ;;  %v13440_v36 = vadd.f32 %v13439_v39, %v13438_v25  ;;  %v17870_v10 = vpack.c.bf16 %v7437_v63, %v7436_v51  ;;  %v14916_v51 = vld [vmem:[%s18687_s7 + $0xb8] sm:$0xff]   ;;  %v7568_v63 = vld [vmem:[#allocation3 + $0x14f] sm:$0xff]  ;;  %v7565_v35 = vld [vmem:[#allocation3 + $0x127] sm:$0xff] }
 0x524   : > { %v17942_v25 = vpack.c.bf16 %v7566_v3, %v7565_v35  ;;  %v7567_v39 = vld [vmem:[#allocation3 + $0x147] sm:$0xff]  ;;  %v14923_v3 = vld [vmem:[%s18687_s7 + $0xf0] sm:$0xff]  }
 0x525   : > { %v7406_v40 = vadd.f32 %v17775_v57, %v7367_v24  ;;  %v7368_v54 = vadd.f32 %v13440_v36, %v17762_v60  ;;  %13735 = vmatprep.mubr.bf16.mxu0 %v17870_v10  ;;  %v17944_v24 = vpack.c.bf16 %v7568_v63, %v7567_v39  ;;  %v7570_v36 = vld [vmem:[#allocation3 + $0x16f] sm:$0xff] }
 0x526   : > { %v8106_v18 = vld [vmem:[#allocation3 + $0xc9] sm:$0xff]  ;;  %v8109_v35 = vld [vmem:[#allocation3 + $0xf1] sm:$0xff] }
 0x527   : > { %v7438_v32 = vmax.f32 %v7406_v40, 0.0  ;;  %v7407_v42 = vadd.f32 %v17775_v57, %v7368_v54  ;;  %v13441_v23 = vpop.f32.mrb[188].mxu1  ;;  %v7572_v40 = vld [vmem:[#allocation3 + $0x18f] sm:$0xff]  ;;  %v7569_v54 = vld [vmem:[#allocation3 + $0x167] sm:$0xff] }
 0x528   : > { %v13442_v30 = vpop.f32.mrb[189].mxu1  ;;  %v8108_v63 = vld [vmem:[#allocation3 + $0xe9] sm:$0xff] }
 0x529   : > { %7543 = vst [vmem:[#allocation3 + $0x1e8] sm:$0xff] %v7438_v32  ;;  %v7439_v22 = vmax.f32 %v7407_v42, 0.0  ;;  %v13443_v20 = vadd.f32 %v13442_v30, %v13441_v23  ;;  %v13444_v16 = vpop.f32.mrb[190].mxu1  ;;  %v7571_v42 = vld [vmem:[#allocation3 + $0x187] sm:$0xff] }
 0x52a   : > { %v13445_v55 = vpop.f32.mrb[191].mxu1  ;;  %v17950_v23 = vpack.c.bf16 %v7572_v40, %v7571_v42  ;;  %v7576_v8 = vld [vmem:[#allocation3 + $0x1cf] sm:$0xff]  ;;  %v7573_v30 = vld [vmem:[#allocation3 + $0x1a7] sm:$0xff]  ;;  %v17999_v40 = vpack.c.bf16 %v8109_v35, %v8108_v63  ;;  %v14932_v63 = vld [vmem:[%s18687_s7 + $0x138] sm:$0xff]  }
 0x52b   : > { %7544 = vst [vmem:[#allocation3 + $0x1f0] sm:$0xff] %v7439_v22  ;;  %v7369_v46 = vadd.f32 %v13443_v20, %v17767_v33  ;;  %v13446_v0 = vadd.f32 %v13445_v55, %v13444_v16  ;;  %v17877_v60 = vpack.c.bf16 %v7439_v22, %v7438_v32  ;;  %v17948_v32 = vpack.c.bf16 %v7570_v36, %v7569_v54  ;;  %v7575_v20 = vld [vmem:[#allocation3 + $0x1c7] sm:$0xff]  ;;  %v8111_v36 = vld [vmem:[#allocation3 + $0x111] sm:$0xff] }
 0x52c   : > { %v17954_v22 = vpack.c.bf16 %v7574_v58, %v7573_v30  ;;  %v17956_v16 = vpack.c.bf16 %v7576_v8, %v7575_v20  ;;  %v8094_v55 = vld [vmem:[#allocation3 + $0x9] sm:$0xff]  ;;  %v14924_v54 = vld [vmem:[%s18687_s7 + $0xf8] sm:$0xff]   ;;  %v14925_v58 = vld [vmem:[%s18687_s7 + $0x100] sm:$0xff]  }
 0x52d   : > { %v17880_v15 = vadd.f32 %v17775_v57, %v7369_v46  ;;  %v7370_v6 = vadd.f32 %v13446_v0, %v17770_v49  ;;  %13736 = vmatmul.mubr.bf16.gmra.mrb[0].mxu0 %v17877_v60  ;;  %v17893_v49 = vpack.c.bf16 %v7550_v4, %v7549_v61  ;;  %v8097_v61 = vld [vmem:[#allocation3 + $0x31] sm:$0xff]  ;;  %v8110_v39 = vld [vmem:[#allocation3 + $0x109] sm:$0xff]  ;;  %v14933_v35 = vld [vmem:[%s18687_s7 + $0x140] sm:$0xff]  }
 0x52e   : > { %13755 = vmatprep.mubr.bf16.mxu0 %v7579_v47  ;;  %v8095_v47 = vld [vmem:[#allocation3 + $0x11] sm:$0xff]  ;;  %v18004_v42 = vpack.c.bf16 %v8111_v36, %v8110_v39  ;;  %v8112_v8 = vld [vmem:[#allocation3 + $0x129] sm:$0xff] }
 0x52f   : > { %v7440_v5 = vmax.f32 %v17880_v15, 0.0  ;;  %v17886_v31 = vadd.f32 %v17775_v57, %v7370_v6  ;;  %v17898_v57 = vpack.c.bf16 %v7552_v37, %v7551_v59  ;;  %v8126_v6 = vpack.c.bf16 %v8095_v47, %v8094_v55  ;;  %v8096_v37 = vld [vmem:[#allocation3 + $0x29] sm:$0xff]  ;;  %v8113_v30 = vld [vmem:[#allocation3 + $0x131] sm:$0xff] }
 0x530   : > { %v7577_v0 = vld [vmem:[#allocation3 + $0x1e7] sm:$0xff]  ;;  %v8115_v55 = vld [vmem:[#allocation3 + $0x151] sm:$0xff]  ;;  %v18011_v47 = vpack.c.bf16 %v8113_v30, %v8112_v8 }
 0x531   : > { %7545 = vst [vmem:[#allocation3 + $0x208] sm:$0xff] %v7440_v5  ;;  %v7441_v33 = vmax.f32 %v17886_v31, 0.0  ;;  %v8098_v59 = vld [vmem:[#allocation3 + $0x49] sm:$0xff]  ;;  %v14949_v31 = vld [vmem:[%s18687_s7 + $0x1c0] sm:$0xff]  }
 0x532   : > { %v7578_v46 = vld [vmem:[#allocation3 + $0x1ef] sm:$0xff] }
 0x533   : > { %7546 = vst [vmem:[#allocation3 + $0x210] sm:$0xff] %v7441_v33  ;;  %v17960_v4 = vpack.c.bf16 %v7578_v46, %v7577_v0  ;;  %v8114_v20 = vld [vmem:[#allocation3 + $0x149] sm:$0xff] }
 0x534   : > { %v18013_v46 = vpack.c.bf16 %v8115_v55, %v8114_v20  ;;  %v8116_v0 = vld [vmem:[#allocation3 + $0x169] sm:$0xff] }
 0x535   : > { %13756 = vmatmul.mubr.bf16.vlgmr.msra.gmra.mrb[228].mxu0 %v17893_v49  ;;  %v8707_v36 = vld [vmem:[#allocation3 + $0x30] sm:$0xff]  ;;  %v8706_v8 = vld [vmem:[#allocation3 + $0x28] sm:$0xff] }
 0x536   : > { %13759 = vmatprep.mubr.bf16.mxu0 %v17898_v57  ;;  %13788 = vmatpush3.bf16.msra.mxu0 %v17821_v1  ;;  %v14913_v1 = vld [vmem:[%s18687_s7 + $0xa0] sm:$0xff]   ;;  %v8738_v30 = vpack.c.bf16 %v8707_v36, %v8706_v8  ;;  %v8709_v20 = vld [vmem:[#allocation3 + $0x50] sm:$0xff]  ;;  %v14938_v36 = vld [vmem:[%s18687_s7 + $0x168] sm:$0xff]  }
 0x537   : > { %13789 = vmatprep.subr.bf16.mxu0 %v14910_v28  ;;  %v8711_v55 = vld [vmem:[#allocation3 + $0x70] sm:$0xff] }
 0x538   : > { %v14939_v8 = vld [vmem:[%s18687_s7 + $0x170] sm:$0xff]  }
 0x539   : > { %v14947_v15 = vld [vmem:[%s18687_s7 + $0x1b0] sm:$0xff]  }
 0x53a   : > { %13790 = vmatpush3.bf16.msra.mxu0 %v14910_v28  ;;  %v8099_v28 = vld [vmem:[#allocation3 + $0x51] sm:$0xff] }
 0x53b   : > { %13791 = vmatprep.subr.bf16.mxu0 %v14911_v19  ;;  %v17968_v17 = vpack.c.bf16 %v8099_v28, %v8098_v59  ;;  %v8431_v39 = vld [vmem:[#allocation3 + $0x20f] sm:$0xff] }
 0x53d   : > { %13760 = vmatmul.mubr.bf16.gmra.mrb[232].mxu0 %v17906_v7 }
 0x53e   : > { %13763 = vmatprep.mubr.bf16.mxu0 %v17911_v53  ;;  %13792 = vmatpush3.bf16.msra.mxu0 %v14911_v19  ;;  %v17963_v19 = vpack.c.bf16 %v8097_v61, %v8096_v37  ;;  %v8118_v37 = vld [vmem:[#allocation3 + $0x189] sm:$0xff]  ;;  %v8119_v61 = vld [vmem:[#allocation3 + $0x191] sm:$0xff] }
 0x53f   : > { %13793 = vmatprep.subr.bf16.mxu0 %v14912_v34  ;;  %v18019_v28 = vpack.c.bf16 %v8119_v61, %v8118_v37  ;;  %v8710_v37 = vld [vmem:[#allocation3 + $0x68] sm:$0xff] }
 0x540   : > { %v14934_v61 = vld [vmem:[%s18687_s7 + $0x148] sm:$0xff]  }
 0x542   : > { %13794 = vmatpush3.bf16.msra.mxu0 %v14912_v34  ;;  %v8101_v34 = vld [vmem:[#allocation3 + $0x71] sm:$0xff] }
 0x543   : > { %13795 = vmatprep.subr.bf16.mxu0 %v14913_v1  ;;  %v17975_v44 = vpack.c.bf16 %v8101_v34, %v8100_v9  ;;  %v8122_v9 = vld [vmem:[#allocation3 + $0x1c9] sm:$0xff]  ;;  %v8123_v34 = vld [vmem:[#allocation3 + $0x1d1] sm:$0xff] }
 0x545   : > { %13764 = vmatmul.mubr.bf16.gmra.mrb[236].mxu0 %v17918_v50 }
 0x546   : > { %13767 = vmatprep.mubr.bf16.mxu0 %v17923_v29  ;;  %13796 = vmatpush3.bf16.msra.mxu0 %v14913_v1  ;;  %v8102_v1 = vld [vmem:[#allocation3 + $0x89] sm:$0xff] }
 0x547   : > { %13797 = vmatprep.subr.bf16.mxu0 %v14914_v13  ;;  %v17980_v2 = vpack.c.bf16 %v8103_v26, %v8102_v1  ;;  %v18025_v26 = vpack.c.bf16 %v8123_v34, %v8122_v9  ;;  %v8713_v9 = vld [vmem:[#allocation3 + $0x90] sm:$0xff] }
 0x548   : > { %v8715_v34 = vld [vmem:[#allocation3 + $0xb0] sm:$0xff] }
 0x54a   : > { %13798 = vmatpush3.bf16.msra.mxu0 %v14914_v13  ;;  %v14921_v13 = vld [vmem:[%s18687_s7 + $0xe0] sm:$0xff]  }
 0x54b   : > { %13799 = vmatprep.subr.bf16.mxu0 %v14915_v21 }
 0x54d   : > { %13768 = vmatmul.mubr.bf16.gmra.mrb[240].mxu0 %v17930_v27 }
 0x54e   : > { %13771 = vmatprep.mubr.bf16.mxu0 %v17935_v41  ;;  %13800 = vmatpush3.bf16.msra.mxu0 %v14915_v21  ;;  %v8104_v21 = vld [vmem:[#allocation3 + $0xa9] sm:$0xff] }
 0x54f   : > { %13801 = vmatprep.subr.bf16.mxu0 %v14916_v51  ;;  %v17987_v38 = vpack.c.bf16 %v8105_v62, %v8104_v21  ;;  %v14926_v62 = vld [vmem:[%s18687_s7 + $0x108] sm:$0xff]  }
 0x552   : > { %13802 = vmatpush3.bf16.msra.mxu0 %v14916_v51  ;;  %v14922_v51 = vld [vmem:[%s18687_s7 + $0xe8] sm:$0xff]  }
 0x553   : > { %13835 = vmatprep.subr.bf16.mxu0 %v14917_v52 }
 0x555   : > { %13772 = vmatmul.mubr.bf16.gmra.mrb[244].mxu0 %v17942_v25 }
 0x556   : > { %13775 = vmatprep.mubr.bf16.mxu0 %v17944_v24 }
 0x55d   : > { %13776 = vmatmul.mubr.bf16.gmra.mrb[248].mxu0 %v17948_v32 }
 0x55e   : > { %13779 = vmatprep.mubr.bf16.mxu0 %v17950_v23 }
 0x565   : > { %13780 = vmatmul.mubr.bf16.gmra.mrb[252].mxu0 %v17954_v22 }
 0x566   : > { %13783 = vmatprep.mubr.bf16.mxu0 %v17956_v16 }
 0x56d   : > { %13784 = vmatmul.mubr.bf16.gmra.mrb[0].mxu0 %v17960_v4 }
 0x56e   : > { %13803 = vmatprep.mubr.bf16.mxu0 %v8126_v6  ;;  %v8117_v6 = vld [vmem:[#allocation3 + $0x171] sm:$0xff] }
 0x56f   : > { %v18017_v59 = vpack.c.bf16 %v8117_v6, %v8116_v0  ;;  %v8708_v0 = vld [vmem:[#allocation3 + $0x48] sm:$0xff] }
 0x570   : > { %v18074_v6 = vpack.c.bf16 %v8709_v20, %v8708_v0  ;;  %v8723_v20 = vld [vmem:[#allocation3 + $0x130] sm:$0xff] }
 0x575   : > { %13804 = vmatmul.mubr.bf16.vlgmr.msra.gmra.mrb[228].mxu0 %v17963_v19 }
 0x576   : > { %13807 = vmatprep.mubr.bf16.mxu0 %v17968_v17  ;;  %13836 = vmatpush3.bf16.msra.mxu0 %v14917_v52  ;;  %v17992_v52 = vpack.c.bf16 %v8107_v11, %v8106_v18  ;;  %v14927_v18 = vld [vmem:[%s18687_s7 + $0x110] sm:$0xff]   ;;  %v14929_v11 = vld [vmem:[%s18687_s7 + $0x120] sm:$0xff]  }
 0x577   : > { %13837 = vmatprep.subr.bf16.mxu0 %v14918_v56 }
 0x57a   : > { %13838 = vmatpush3.bf16.msra.mxu0 %v14918_v56  ;;  %v8120_v56 = vld [vmem:[#allocation3 + $0x1a9] sm:$0xff] }
 0x57b   : > { %13839 = vmatprep.subr.bf16.mxu0 %v14919_v12 }
 0x57d   : > { %13808 = vmatmul.mubr.bf16.gmra.mrb[232].mxu0 %v17975_v44 }
 0x57e   : > { %13811 = vmatprep.mubr.bf16.mxu0 %v17980_v2  ;;  %13840 = vmatpush3.bf16.msra.mxu0 %v14919_v12  ;;  %v8121_v12 = vld [vmem:[#allocation3 + $0x1b1] sm:$0xff] }
 0x57f   : > { %13841 = vmatprep.subr.bf16.mxu0 %v14920_v48  ;;  %v18023_v1 = vpack.c.bf16 %v8121_v12, %v8120_v56  ;;  %v18079_v56 = vpack.c.bf16 %v8711_v55, %v8710_v37  ;;  %v14935_v12 = vld [vmem:[%s18687_s7 + $0x150] sm:$0xff]   ;;  %v8720_v55 = vld [vmem:[#allocation3 + $0x108] sm:$0xff] }
 0x580   : > { %v8722_v37 = vld [vmem:[#allocation3 + $0x128] sm:$0xff] }
 0x582   : > { %13842 = vmatpush3.bf16.msra.mxu0 %v14920_v48  ;;  %v8124_v48 = vld [vmem:[#allocation3 + $0x1e9] sm:$0xff] }
 0x583   : > { %13843 = vmatprep.subr.bf16.mxu0 %v14921_v13 }
 0x585   : > { %13812 = vmatmul.mubr.bf16.gmra.mrb[236].mxu0 %v17987_v38 }
 0x586   : > { %13815 = vmatprep.mubr.bf16.mxu0 %v17992_v52  ;;  %13844 = vmatpush3.bf16.msra.mxu0 %v14921_v13  ;;  %v8125_v13 = vld [vmem:[#allocation3 + $0x1f1] sm:$0xff] }
 0x587   : > { %13845 = vmatprep.subr.bf16.mxu0 %v14922_v51  ;;  %v18029_v21 = vpack.c.bf16 %v8125_v13, %v8124_v48  ;;  %v8712_v48 = vld [vmem:[#allocation3 + $0x88] sm:$0xff] }
 0x588   : > { %v18086_v13 = vpack.c.bf16 %v8713_v9, %v8712_v48  ;;  %v14941_v9 = vld [vmem:[%s18687_s7 + $0x180] sm:$0xff]   ;;  %v8724_v48 = vld [vmem:[#allocation3 + $0x148] sm:$0xff] }
 0x58a   : > { %13846 = vmatpush3.bf16.msra.mxu0 %v14922_v51  ;;  %v14930_v51 = vld [vmem:[%s18687_s7 + $0x128] sm:$0xff]  }
 0x58b   : > { %13847 = vmatprep.subr.bf16.mxu0 %v14923_v3 }
 0x58d   : > { %13816 = vmatmul.mubr.bf16.gmra.mrb[240].mxu0 %v17999_v40 }
 0x58e   : > { %13819 = vmatprep.mubr.bf16.mxu0 %v18004_v42  ;;  %13848 = vmatpush3.bf16.msra.mxu0 %v14923_v3  ;;  %v14931_v3 = vld [vmem:[%s18687_s7 + $0x130] sm:$0xff]  }
 0x58f   : > { %13849 = vmatprep.subr.bf16.mxu0 %v14924_v54 }
 0x592   : > { %13850 = vmatpush3.bf16.msra.mxu0 %v14924_v54  ;;  %v8430_v54 = vld [vmem:[#allocation3 + $0x207] sm:$0xff] }
 0x593   : > { %13883 = vmatprep.subr.bf16.mxu0 %v14925_v58 }
 0x595   : > { %13820 = vmatmul.mubr.bf16.gmra.mrb[244].mxu0 %v18011_v47 }
 0x596   : > { %13823 = vmatprep.mubr.bf16.mxu0 %v18013_v46 }
 0x59d   : > { %13824 = vmatmul.mubr.bf16.gmra.mrb[248].mxu0 %v18017_v59 }
 0x59e   : > { %13827 = vmatprep.mubr.bf16.mxu0 %v18019_v28 }
 0x5a5   : > { %13828 = vmatmul.mubr.bf16.gmra.mrb[252].mxu0 %v18023_v1 }
 0x5a6   : > { %13831 = vmatprep.mubr.bf16.mxu0 %v18025_v26 }
 0x5ad   : > { %13832 = vmatmul.mubr.bf16.gmra.mrb[0].mxu0 %v18029_v21 }
 0x5ae   : > { %13851 = vmatprep.mubr.bf16.mxu0 %v17893_v49  ;;  %v14928_v49 = vld [vmem:[%s18687_s7 + $0x118] sm:$0xff]  }
 0x5b5   : > { %13852 = vmatmul.mubr.bf16.vlgmr.msra.gmra.mrb[228].mxu0 %v17898_v57 }
 0x5b6   : > { %13855 = vmatprep.mubr.bf16.mxu0 %v17906_v7  ;;  %13884 = vmatpush3.bf16.msra.mxu0 %v14925_v58  ;;  %v18071_v58 = vpack.c.bf16 %v8431_v39, %v8430_v54  ;;  %v8718_v39 = vld [vmem:[#allocation3 + $0xe8] sm:$0xff] }
 0x5b7   : > { %13885 = vmatprep.subr.bf16.mxu0 %v14926_v62 }
 0x5ba   : > { %13886 = vmatpush3.bf16.msra.mxu0 %v14926_v62  ;;  %v8714_v62 = vld [vmem:[#allocation3 + $0xa8] sm:$0xff] }
 0x5bb   : > { %13887 = vmatprep.subr.bf16.mxu0 %v14927_v18 }
 0x5bd   : > { %13856 = vmatmul.mubr.bf16.gmra.mrb[232].mxu0 %v17911_v53 }
 0x5be   : > { %13859 = vmatprep.mubr.bf16.mxu0 %v17918_v50  ;;  %13888 = vmatpush3.bf16.msra.mxu0 %v14927_v18  ;;  %v14936_v18 = vld [vmem:[%s18687_s7 + $0x158] sm:$0xff]  }
 0x5bf   : > { %13889 = vmatprep.subr.bf16.mxu0 %v14928_v49 }
 0x5c2   : > { %13890 = vmatpush3.bf16.msra.mxu0 %v14928_v49  ;;  %v18091_v49 = vpack.c.bf16 %v8715_v34, %v8714_v62  ;;  %v8725_v34 = vld [vmem:[#allocation3 + $0x150] sm:$0xff] }
 0x5c3   : > { %13891 = vmatprep.subr.bf16.mxu0 %v14929_v11  ;;  %v18122_v62 = vpack.c.bf16 %v8725_v34, %v8724_v48  ;;  %v9939_v34 = vld [vmem:[#allocation3 + $0xc9] sm:$0xff]  ;;  %v9940_v48 = vld [vmem:[#allocation3 + $0xd1] sm:$0xff] }
 0x5c5   : > { %13860 = vmatmul.mubr.bf16.gmra.mrb[236].mxu0 %v17923_v29 }
 0x5c6   : > { %13863 = vmatprep.mubr.bf16.mxu0 %v17930_v27  ;;  %13892 = vmatpush3.bf16.msra.mxu0 %v14929_v11  ;;  %v14937_v11 = vld [vmem:[%s18687_s7 + $0x160] sm:$0xff]  }
 0x5c7   : > { %13893 = vmatprep.subr.bf16.mxu0 %v14930_v51 }
 0x5ca   : > { %13894 = vmatpush3.bf16.msra.mxu0 %v14930_v51  ;;  %v8717_v51 = vld [vmem:[#allocation3 + $0xd0] sm:$0xff] }
 0x5cb   : > { %13895 = vmatprep.subr.bf16.mxu0 %v14931_v3 }
 0x5cd   : > { %13864 = vmatmul.mubr.bf16.gmra.mrb[240].mxu0 %v17935_v41 }
 0x5ce   : > { %13867 = vmatprep.mubr.bf16.mxu0 %v17942_v25  ;;  %13896 = vmatpush3.bf16.msra.mxu0 %v14931_v3  ;;  %v8719_v3 = vld [vmem:[#allocation3 + $0xf0] sm:$0xff] }
 0x5cf   : > { %13897 = vmatprep.subr.bf16.mxu0 %v14932_v63  ;;  %v18103_v54 = vpack.c.bf16 %v8719_v3, %v8718_v39  ;;  %v9653_v3 = vld [vmem:[#allocation3 + $0x208] sm:$0xff] }
 0x5d2   : > { %13898 = vmatpush3.bf16.msra.mxu0 %v14932_v63  ;;  %v8716_v63 = vld [vmem:[#allocation3 + $0xc8] sm:$0xff] }
 0x5d3   : > { %13931 = vmatprep.subr.bf16.mxu0 %v14933_v35 }
 0x5d5   : > { %13868 = vmatmul.mubr.bf16.gmra.mrb[244].mxu0 %v17944_v24 }
 0x5d6   : > { %13871 = vmatprep.mubr.bf16.mxu0 %v17948_v32 }
 0x5dd   : > { %13872 = vmatmul.mubr.bf16.gmra.mrb[248].mxu0 %v17950_v23 }
 0x5de   : > { %13875 = vmatprep.mubr.bf16.mxu0 %v17954_v22 }
 0x5e5   : > { %13876 = vmatmul.mubr.bf16.gmra.mrb[252].mxu0 %v17956_v16 }
 0x5e6   : > { %13879 = vmatprep.mubr.bf16.mxu0 %v17960_v4 }
 0x5ed   : > { %13880 = vmatmul.mubr.bf16.gmra.mrb[0].mxu0 %v18071_v58 }
 0x5ee   : > { %13899 = vmatprep.mubr.bf16.mxu0 %v8738_v30  ;;  %v8721_v30 = vld [vmem:[#allocation3 + $0x110] sm:$0xff] }
 0x5ef   : > { %v18110_v0 = vpack.c.bf16 %v8721_v30, %v8720_v55  ;;  %v9933_v30 = vld [vmem:[#allocation3 + $0x69] sm:$0xff] }
 0x5f0   : > { %v9935_v55 = vld [vmem:[#allocation3 + $0x89] sm:$0xff] }
 0x5f5   : > { %13900 = vmatmul.mubr.bf16.vlgmr.msra.gmra.mrb[228].mxu0 %v18074_v6 }
 0x5f6   : > { %13903 = vmatprep.mubr.bf16.mxu0 %v18079_v56  ;;  %13932 = vmatpush3.bf16.msra.mxu0 %v14933_v35  ;;  %v18098_v35 = vpack.c.bf16 %v8717_v51, %v8716_v63 }
 0x5f7   : > { %13933 = vmatprep.subr.bf16.mxu0 %v14934_v61 }
 0x5fa   : > { %13934 = vmatpush3.bf16.msra.mxu0 %v14934_v61  ;;  %v14940_v61 = vld [vmem:[%s18687_s7 + $0x178] sm:$0xff]  }
 0x5fb   : > { %13935 = vmatprep.subr.bf16.mxu0 %v14935_v12 }
 0x5fd   : > { %13904 = vmatmul.mubr.bf16.gmra.mrb[232].mxu0 %v18086_v13 }
 0x5fe   : > { %13907 = vmatprep.mubr.bf16.mxu0 %v18091_v49  ;;  %13936 = vmatpush3.bf16.msra.mxu0 %v14935_v12  ;;  %v18115_v12 = vpack.c.bf16 %v8723_v20, %v8722_v37  ;;  %v9934_v20 = vld [vmem:[#allocation3 + $0x71] sm:$0xff] }
 0x5ff   : > { %13937 = vmatprep.subr.bf16.mxu0 %v14936_v18  ;;  %v9964_v37 = vpack.c.bf16 %v9934_v20, %v9933_v30 }
 0x602   : > { %13938 = vmatpush3.bf16.msra.mxu0 %v14936_v18  ;;  %v8753_v18 = vpack.c.bf16 %v7441_v33, %v7440_v5  ;;  %v14948_v5 = vld [vmem:[%s18687_s7 + $0x1b8] sm:$0xff]   ;;  %v9042_v33 = vld [vmem:[#allocation3 + $0x209] sm:$0xff] }
 0x603   : > { %13939 = vmatprep.subr.bf16.mxu0 %v14937_v11 }
 0x605   : > { %13908 = vmatmul.mubr.bf16.gmra.mrb[236].mxu0 %v18098_v35 }
 0x606   : > { %13911 = vmatprep.mubr.bf16.mxu0 %v18103_v54  ;;  %13940 = vmatpush3.bf16.msra.mxu0 %v14937_v11  ;;  %v9651_v11 = vld [vmem:[#allocation3 + $0x1e8] sm:$0xff] }
 0x607   : > { %13941 = vmatprep.subr.bf16.mxu0 %v14938_v36 }
 0x60a   : > { %13942 = vmatpush3.bf16.msra.mxu0 %v14938_v36  ;;  %v9931_v36 = vld [vmem:[#allocation3 + $0x49] sm:$0xff] }
 0x60b   : > { %13943 = vmatprep.subr.bf16.mxu0 %v14939_v8 }
 0x60d   : > { %13912 = vmatmul.mubr.bf16.gmra.mrb[240].mxu0 %v18110_v0 }
 0x60e   : > { %13915 = vmatprep.mubr.bf16.mxu0 %v18115_v12  ;;  %13944 = vmatpush3.bf16.msra.mxu0 %v14939_v8 }
 0x60f   : > { %13945 = vmatprep.subr.bf16.mxu0 %v14940_v61 }
 0x612   : > { %13946 = vmatpush3.bf16.msra.mxu0 %v14940_v61 }
 0x613   : > { %13979 = vmatprep.subr.bf16.mxu0 %v14941_v9 }
 0x615   : > { %13916 = vmatmul.mubr.bf16.gmra.mrb[244].mxu0 %v18122_v62 }
 0x616   : > { %13919 = vmatprep.mubr.bf16.mxu0 %v17849_v45  ;;  %v14942_v45 = vld [vmem:[%s18687_s7 + $0x188] sm:$0xff]  }
 0x61d   : > { %13920 = vmatmul.mubr.bf16.gmra.mrb[248].mxu0 %v17856_v14  ;;  %v14943_v14 = vld [vmem:[%s18687_s7 + $0x190] sm:$0xff]  }
 0x61e   : > { %13923 = vmatprep.mubr.bf16.mxu0 %v17863_v43  ;;  %v14944_v43 = vld [vmem:[%s18687_s7 + $0x198] sm:$0xff]  }
 0x625   : > { %13924 = vmatmul.mubr.bf16.gmra.mrb[252].mxu0 %v17870_v10  ;;  %v14945_v10 = vld [vmem:[%s18687_s7 + $0x1a0] sm:$0xff]  }
 0x626   : > { %13927 = vmatprep.mubr.bf16.mxu0 %v17877_v60  ;;  %v14946_v60 = vld [vmem:[%s18687_s7 + $0x1a8] sm:$0xff]  }
 0x62d   : > { %13928 = vmatmul.mubr.bf16.gmra.mrb[0].mxu0 %v8753_v18  ;;  %v9967_v18 = vpack.c.bf16 %v9940_v48, %v9939_v34 }
 0x62e   : > { %13947 = vmatprep.mubr.bf16.mxu0 %v17963_v19  ;;  %v9043_v19 = vld [vmem:[#allocation3 + $0x211] sm:$0xff] }
 0x635   : > { %13948 = vmatmul.mubr.bf16.vlgmr.msra.gmra.mrb[228].mxu0 %v17968_v17  ;;  %v18173_v17 = vpack.c.bf16 %v9043_v19, %v9042_v33  ;;  %v9947_v33 = vld [vmem:[#allocation3 + $0x149] sm:$0xff]  ;;  %v9948_v19 = vld [vmem:[#allocation3 + $0x151] sm:$0xff] }
 0x636   : > { %13951 = vmatprep.mubr.bf16.mxu0 %v17975_v44  ;;  %13980 = vmatpush3.bf16.msra.mxu0 %v14941_v9  ;;  %v14950_v44 = vld [vmem:[%s18687_s7 + $0x1c8] sm:$0xff]   ;;  %v9938_v9 = vld [vmem:[#allocation3 + $0xb1] sm:$0xff] }
 0x637   : > { %13981 = vmatprep.subr.bf16.mxu0 %v14942_v45 }
 0x63a   : > { %13982 = vmatpush3.bf16.msra.mxu0 %v14942_v45  ;;  %v9941_v45 = vld [vmem:[#allocation3 + $0xe9] sm:$0xff] }
 0x63b   : > { %13983 = vmatprep.subr.bf16.mxu0 %v14943_v14 }
 0x63d   : > { %13952 = vmatmul.mubr.bf16.gmra.mrb[232].mxu0 %v17980_v2  ;;  %v14951_v2 = vld [vmem:[%s18687_s7 + $0x1d0] sm:$0xff]  }
 0x63e   : > { %13955 = vmatprep.mubr.bf16.mxu0 %v17987_v38  ;;  %13984 = vmatpush3.bf16.msra.mxu0 %v14943_v14  ;;  %v14963_v38 = vld [vmem:[%s18687_s7 + $0x230] sm:$0xff]  }
 0x63f   : > { %13985 = vmatprep.subr.bf16.mxu0 %v14944_v43  ;;  %v9942_v14 = vld [vmem:[#allocation3 + $0xf1] sm:$0xff] }
 0x642   : > { %13986 = vmatpush3.bf16.msra.mxu0 %v14944_v43  ;;  %v9943_v43 = vld [vmem:[#allocation3 + $0x109] sm:$0xff] }
 0x643   : > { %13987 = vmatprep.subr.bf16.mxu0 %v14945_v10 }
 0x645   : > { %13956 = vmatmul.mubr.bf16.gmra.mrb[236].mxu0 %v17992_v52  ;;  %v14964_v52 = vld [vmem:[%s18687_s7 + $0x238] sm:$0xff]  }
 0x646   : > { %13959 = vmatprep.mubr.bf16.mxu0 %v17999_v40  ;;  %13988 = vmatpush3.bf16.msra.mxu0 %v14945_v10  ;;  %v9644_v40 = vld [vmem:[#allocation3 + $0x170] sm:$0xff] }
 0x647   : > { %13989 = vmatprep.subr.bf16.mxu0 %v14946_v60  ;;  %v9944_v10 = vld [vmem:[#allocation3 + $0x111] sm:$0xff] }
 0x64a   : > { %13990 = vmatpush3.bf16.msra.mxu0 %v14946_v60  ;;  %v9968_v60 = vpack.c.bf16 %v9942_v14, %v9941_v45 }
 0x64b   : > { %13991 = vmatprep.subr.bf16.mxu0 %v14947_v15 }
 0x64d   : > { %13960 = vmatmul.mubr.bf16.gmra.mrb[240].mxu0 %v18004_v42  ;;  %v9646_v42 = vld [vmem:[#allocation3 + $0x190] sm:$0xff] }
 0x64e   : > { %13963 = vmatprep.mubr.bf16.mxu0 %v18011_v47  ;;  %13992 = vmatpush3.bf16.msra.mxu0 %v14947_v15  ;;  %v9643_v47 = vld [vmem:[#allocation3 + $0x168] sm:$0xff]  ;;  %v9969_v15 = vpack.c.bf16 %v9944_v10, %v9943_v43 }
 0x64f   : > { %13993 = vmatprep.subr.bf16.mxu0 %v14948_v5 }
 0x652   : > { %13994 = vmatpush3.bf16.msra.mxu0 %v14948_v5  ;;  %v9945_v5 = vld [vmem:[#allocation3 + $0x129] sm:$0xff] }
 0x653   : > { %14027 = vmatprep.subr.bf16.mxu0 %v14949_v31 }
 0x655   : > { %13964 = vmatmul.mubr.bf16.gmra.mrb[244].mxu0 %v18013_v46  ;;  %v9666_v46 = vpack.c.bf16 %v9644_v40, %v9643_v47  ;;  %v9962_v40 = vld [vmem:[#allocation3 + $0x231] sm:$0xff]  ;;  %v18249_v47 = vld [vmem:[%s18689_s9] sm:$0xff]  }
 0x656   : > { %13967 = vmatprep.mubr.bf16.mxu0 %v18017_v59  ;;  %v9645_v59 = vld [vmem:[#allocation3 + $0x188] sm:$0xff]  ;;  %13679 = vmatprep.mubr.msk.bf16.mxu1 %vm10331_vm2, %v18249_v47 }
 0x65d   : > { %13968 = vmatmul.mubr.bf16.gmra.mrb[248].mxu0 %v18019_v28  ;;  %v9667_v28 = vpack.c.bf16 %v9646_v42, %v9645_v59  ;;  %v18256_v59 = vld [vmem:[%s18688_s8] ss:$0 sm:$0xff] }
 0x65e   : > { %13971 = vmatprep.mubr.bf16.mxu0 %v18023_v1  ;;  %v9648_v1 = vld [vmem:[#allocation3 + $0x1b0] sm:$0xff] }
 0x665   : > { %13972 = vmatmul.mubr.bf16.gmra.mrb[252].mxu0 %v18025_v26  ;;  %v9650_v26 = vld [vmem:[#allocation3 + $0x1d0] sm:$0xff] }
 0x666   : > { %13975 = vmatprep.mubr.bf16.mxu0 %v18029_v21  ;;  %v9647_v21 = vld [vmem:[#allocation3 + $0x1a8] sm:$0xff] }
 0x66d   : > { %13976 = vmatmul.mubr.bf16.gmra.mrb[0].mxu0 %v18173_v17 }
 0x66e   : > { %13995 = vmatprep.mubr.bf16.mxu0 %v17898_v57  ;;  %v14952_v57 = vld [vmem:[%s18687_s7 + $0x1d8] sm:$0xff]  }
 0x675   : > { %13996 = vmatmul.mubr.bf16.vlgmr.msra.gmra.mrb[228].mxu0 %v17906_v7  ;;  %v14953_v7 = vld [vmem:[%s18687_s7 + $0x1e0] sm:$0xff]  }
 0x676   : > { %13999 = vmatprep.mubr.bf16.mxu0 %v17911_v53  ;;  %14028 = vmatpush3.bf16.msra.mxu0 %v14949_v31  ;;  %v14954_v53 = vld [vmem:[%s18687_s7 + $0x1e8] sm:$0xff]   ;;  %v9946_v31 = vld [vmem:[#allocation3 + $0x131] sm:$0xff] }
 0x677   : > { %14029 = vmatprep.subr.bf16.mxu0 %v14950_v44 }
 0x67a   : > { %14030 = vmatpush3.bf16.msra.mxu0 %v14950_v44  ;;  %v9970_v44 = vpack.c.bf16 %v9946_v31, %v9945_v5 }
 0x67b   : > { %14031 = vmatprep.subr.bf16.mxu0 %v14951_v2 }
 0x67d   : > { %14000 = vmatmul.mubr.bf16.gmra.mrb[232].mxu0 %v17918_v50  ;;  %v14955_v50 = vld [vmem:[%s18687_s7 + $0x1f0] sm:$0xff]  }
 0x67e   : > { %14003 = vmatprep.mubr.bf16.mxu0 %v17923_v29  ;;  %14032 = vmatpush3.bf16.msra.mxu0 %v14951_v2  ;;  %v14956_v29 = vld [vmem:[%s18687_s7 + $0x1f8] sm:$0xff]   ;;  %v9971_v2 = vpack.c.bf16 %v9948_v19, %v9947_v33 }
 0x67f   : > { %14033 = vmatprep.subr.bf16.mxu0 %v14952_v57 }
 0x682   : > { %14034 = vmatpush3.bf16.msra.mxu0 %v14952_v57  ;;  %v9949_v57 = vld [vmem:[#allocation3 + $0x169] sm:$0xff] }
 0x683   : > { %14035 = vmatprep.subr.bf16.mxu0 %v14953_v7 }
 0x685   : > { %14004 = vmatmul.mubr.bf16.gmra.mrb[236].mxu0 %v17930_v27  ;;  %v14957_v27 = vld [vmem:[%s18687_s7 + $0x200] sm:$0xff]  }
 0x686   : > { %14007 = vmatprep.mubr.bf16.mxu0 %v17935_v41  ;;  %14036 = vmatpush3.bf16.msra.mxu0 %v14953_v7  ;;  %v9349_v41 = vld [vmem:[#allocation3 + $0x227] sm:$0xff]  ;;  %v9950_v7 = vld [vmem:[#allocation3 + $0x171] sm:$0xff] }
 0x687   : > { %14037 = vmatprep.subr.bf16.mxu0 %v14954_v53 }
 0x68a   : > { %14038 = vmatpush3.bf16.msra.mxu0 %v14954_v53  ;;  %v9951_v53 = vld [vmem:[#allocation3 + $0x189] sm:$0xff] }
 0x68b   : > { %14039 = vmatprep.subr.bf16.mxu0 %v14955_v50 }
 0x68d   : > { %14008 = vmatmul.mubr.bf16.gmra.mrb[240].mxu0 %v17942_v25  ;;  %v9350_v25 = vld [vmem:[#allocation3 + $0x22f] sm:$0xff] }
 0x68e   : > { %14011 = vmatprep.mubr.bf16.mxu0 %v17944_v24  ;;  %14040 = vmatpush3.bf16.msra.mxu0 %v14955_v50  ;;  %v9366_v24 = vpack.c.bf16 %v9350_v25, %v9349_v41  ;;  %v9952_v50 = vld [vmem:[#allocation3 + $0x191] sm:$0xff]  ;;  %v9953_v41 = vld [vmem:[#allocation3 + $0x1a9] sm:$0xff] }
 0x68f   : > { %14041 = vmatprep.subr.bf16.mxu0 %v14956_v29  ;;  %v9954_v25 = vld [vmem:[#allocation3 + $0x1b1] sm:$0xff] }
 0x692   : > { %14042 = vmatpush3.bf16.msra.mxu0 %v14956_v29  ;;  %v9972_v29 = vpack.c.bf16 %v9950_v7, %v9949_v57 }
 0x693   : > { %14075 = vmatprep.subr.bf16.mxu0 %v14957_v27 }
 0x695   : > { %14012 = vmatmul.mubr.bf16.gmra.mrb[244].mxu0 %v17948_v32  ;;  %v14958_v32 = vld [vmem:[%s18687_s7 + $0x208] sm:$0xff]  }
 0x696   : > { %14015 = vmatprep.mubr.bf16.mxu0 %v17950_v23  ;;  %v14959_v23 = vld [vmem:[%s18687_s7 + $0x210] sm:$0xff]  }
 0x69d   : > { %14016 = vmatmul.mubr.bf16.gmra.mrb[248].mxu0 %v17954_v22  ;;  %v14960_v22 = vld [vmem:[%s18687_s7 + $0x218] sm:$0xff]  }
 0x69e   : > { %14019 = vmatprep.mubr.bf16.mxu0 %v17956_v16  ;;  %v14961_v16 = vld [vmem:[%s18687_s7 + $0x220] sm:$0xff]  }
 0x6a5   : > { %14020 = vmatmul.mubr.bf16.gmra.mrb[252].mxu0 %v17960_v4  ;;  %v14962_v4 = vld [vmem:[%s18687_s7 + $0x228] sm:$0xff]  }
 0x6a6   : > { %14023 = vmatprep.mubr.bf16.mxu0 %v18071_v58  ;;  %v9668_v58 = vpack.c.bf16 %v9648_v1, %v9647_v21 }
 0x6ad   : > { %14024 = vmatmul.mubr.bf16.gmra.mrb[0].mxu0 %v9366_v24  ;;  %v9955_v24 = vld [vmem:[#allocation3 + $0x1c9] sm:$0xff] }
 0x6ae   : > { %14043 = vmatprep.mubr.bf16.mxu0 %v18074_v6  ;;  %v9649_v6 = vld [vmem:[#allocation3 + $0x1c8] sm:$0xff] }
 0x6b5   : > { %14044 = vmatmul.mubr.bf16.vlgmr.msra.gmra.mrb[228].mxu0 %v18079_v56  ;;  %v9669_v56 = vpack.c.bf16 %v9650_v26, %v9649_v6 }
 0x6b6   : > { %14047 = vmatprep.mubr.bf16.mxu0 %v18086_v13  ;;  %14076 = vmatpush3.bf16.msra.mxu0 %v14957_v27  ;;  %v9652_v13 = vld [vmem:[#allocation3 + $0x1f0] sm:$0xff]  ;;  %v9973_v27 = vpack.c.bf16 %v9952_v50, %v9951_v53 }
 0x6b7   : > { %14077 = vmatprep.subr.bf16.mxu0 %v14958_v32  ;;  %v9670_v51 = vpack.c.bf16 %v9652_v13, %v9651_v11 }
 0x6ba   : > { %14078 = vmatpush3.bf16.msra.mxu0 %v14958_v32  ;;  %v9956_v32 = vld [vmem:[#allocation3 + $0x1d1] sm:$0xff] }
 0x6bb   : > { %14079 = vmatprep.subr.bf16.mxu0 %v14959_v23 }
 0x6bd   : > { %14048 = vmatmul.mubr.bf16.gmra.mrb[232].mxu0 %v18091_v49  ;;  %v9654_v49 = vld [vmem:[#allocation3 + $0x210] sm:$0xff] }
 0x6be   : > { %14051 = vmatprep.mubr.bf16.mxu0 %v18098_v35  ;;  %14080 = vmatpush3.bf16.msra.mxu0 %v14959_v23  ;;  %v9671_v63 = vpack.c.bf16 %v9654_v49, %v9653_v3  ;;  %v15022_v35 = vld [vmem:[#allocation2] sm:$0xff]  ;;  %v9974_v23 = vpack.c.bf16 %v9954_v25, %v9953_v41 }
 0x6bf   : > { %14081 = vmatprep.subr.bf16.mxu0 %v14960_v22  ;;  %v9672_v39 = vpack.c.bf16 %v15022_v35, %v15022_v35 }
 0x6c2   : > { %14082 = vmatpush3.bf16.msra.mxu0 %v14960_v22  ;;  %v9975_v22 = vpack.c.bf16 %v9956_v32, %v9955_v24 }
 0x6c3   : > { %14083 = vmatprep.subr.bf16.mxu0 %v14961_v16 }
 0x6c5   : > { %14052 = vmatmul.mubr.bf16.gmra.mrb[236].mxu0 %v18103_v54  ;;  %v9932_v54 = vld [vmem:[#allocation3 + $0x51] sm:$0xff] }
 0x6c6   : > { %14055 = vmatprep.mubr.bf16.mxu0 %v18110_v0  ;;  %14084 = vmatpush3.bf16.msra.mxu0 %v14961_v16  ;;  %v9963_v8 = vpack.c.bf16 %v9932_v54, %v9931_v36  ;;  %v9936_v0 = vld [vmem:[#allocation3 + $0x91] sm:$0xff]  ;;  %v9957_v16 = vld [vmem:[#allocation3 + $0x1e9] sm:$0xff] }
 0x6c7   : > { %14085 = vmatprep.subr.bf16.mxu0 %v14962_v4  ;;  %v9965_v61 = vpack.c.bf16 %v9936_v0, %v9935_v55 }
 0x6ca   : > { %14086 = vmatpush3.bf16.msra.mxu0 %v14962_v4  ;;  %v9958_v4 = vld [vmem:[#allocation3 + $0x1f1] sm:$0xff] }
 0x6cb   : > { %14087 = vmatprep.subr.bf16.mxu0 %v14963_v38 }
 0x6cd   : > { %14056 = vmatmul.mubr.bf16.gmra.mrb[240].mxu0 %v18115_v12  ;;  %v9937_v12 = vld [vmem:[#allocation3 + $0xa9] sm:$0xff] }
 0x6ce   : > { %14059 = vmatprep.mubr.bf16.mxu0 %v18122_v62  ;;  %14088 = vmatpush3.bf16.msra.mxu0 %v14963_v38  ;;  %v9966_v62 = vpack.c.bf16 %v9938_v9, %v9937_v12  ;;  %v9976_v38 = vpack.c.bf16 %v9958_v4, %v9957_v16 }
 0x6cf   : > { %14089 = vmatprep.subr.bf16.mxu0 %v14964_v52 }
 0x6d2   : > { %14090 = vmatpush3.bf16.msra.mxu0 %v14964_v52  ;;  %v9961_v52 = vld [vmem:[#allocation3 + $0x229] sm:$0xff] }
 0x6d3   : > { %v9978_v42 = vpack.c.bf16 %v9962_v40, %v9961_v52 }
 0x6d5   : > { %14060 = vmatmul.mubr.bf16.gmra.mrb[244].mxu0 %v9666_v46 }
 0x6d6   : > { %14063 = vmatprep.mubr.bf16.mxu0 %v9667_v28 }
 0x6dd   : > { %14064 = vmatmul.mubr.bf16.gmra.mrb[248].mxu0 %v9668_v58 }
 0x6de   : > { %14067 = vmatprep.mubr.bf16.mxu0 %v9669_v56 }
 0x6e5   : > { %14068 = vmatmul.mubr.bf16.gmra.mrb[252].mxu0 %v9670_v51 }
 0x6e6   : > { %14071 = vmatprep.mubr.bf16.mxu0 %v9671_v63 }
 0x6ed   : > { %14072 = vmatmul.mubr.bf16.gmra.mrb[0].mxu0 %v9672_v39 }
 0x6ee   : > { %14091 = vmatprep.mubr.bf16.mxu0 %v9963_v8 }
 0x6f5   : > { %14092 = vmatmul.mubr.bf16.vlgmr.msra.gmra.mrb[228].mxu0 %v9964_v37 }
 0x6f6   : > { %14095 = vmatprep.mubr.bf16.mxu0 %v9965_v61 }
 0x6fd   : > { %14096 = vmatmul.mubr.bf16.gmra.mrb[232].mxu0 %v9966_v62 }
 0x6fe   : > { %14099 = vmatprep.mubr.bf16.mxu0 %v9967_v18 }
 0x705   : > { %14100 = vmatmul.mubr.bf16.gmra.mrb[236].mxu0 %v9968_v60 }
 0x706   : > { %14103 = vmatprep.mubr.bf16.mxu0 %v9969_v15 }
 0x70d   : > { %14104 = vmatmul.mubr.bf16.gmra.mrb[240].mxu0 %v9970_v44 }
 0x70e   : > { %14107 = vmatprep.mubr.bf16.mxu0 %v9971_v2 }
 0x715   : > { %14108 = vmatmul.mubr.bf16.gmra.mrb[244].mxu0 %v9972_v29 }
 0x716   : > { %14111 = vmatprep.mubr.bf16.mxu0 %v9973_v27 }
 0x71d   : > { %14112 = vmatmul.mubr.bf16.gmra.mrb[248].mxu0 %v9974_v23 }
 0x71e   : > { %14115 = vmatprep.mubr.bf16.mxu0 %v9975_v22 }
 0x725   : > { %14116 = vmatmul.mubr.bf16.gmra.mrb[252].mxu0 %v9976_v38 }
 0x726   : > { %14119 = vmatprep.mubr.bf16.mxu0 %v18173_v17 }
 0x72d   : > { %14120 = vmatmul.mubr.bf16.gmra.mrb[0].mxu0 %v9978_v42 }
 0x7c8   : > { %v14093_v46 = vpop.f32.mrb[228].mxu0 }
 0x7c9   : > { %v10078_v17 = vpop.f32.mrb[229].mxu0  ;;  %v18259_v1 = vadd.f32 %v14093_v46, %v18256_v59 }
 0x7ca   : > { %v14094_v28 = vpop.f32.mrb[230].mxu0  ;;  %v10244_v58 = vadd.f32 %v18256_v59, %v10078_v17 }
 0x7cb   : > { %v10247_v26 = vadd.f32 %v14094_v28, %v18256_v59  ;;  %v10081_v21 = vpop.f32.mrb[231].mxu0 }
 0x7cc   : > { %v10245_v6 = vadd.f32 %v18256_v59, %v10081_v21 }
 0x7cd   : > { %v10277_v56 = vpack.c.bf16 %v10247_v26, %v18259_v1 }
 0x7ce   : > { %v10276_v13 = vpack.c.bf16 %v10245_v6, %v10244_v58 }
 0x7cf   : > { %v10354_v46 = vsel %vm10331_vm2, %v10277_v56, 0 }
 0x7d0   : > { %v14097_v49 = vpop.f32.mrb[232].mxu0  ;;  %v10351_v25 = vsel %vm10331_vm2, %v10276_v13, 0 }
 0x7d1   : > { %v10094_v11 = vpop.f32.mrb[233].mxu0  ;;  %v18266_v3 = vadd.f32 %v14097_v49, %v18256_v59 }
 0x7d2   : > { %v14098_v51 = vpop.f32.mrb[234].mxu0  ;;  %v18272_v39 = vadd.f32 %v18256_v59, %v10094_v11 }
 0x7d3   : > { %v18269_v63 = vadd.f32 %v14098_v51, %v18256_v59  ;;  %v10097_v35 = vpop.f32.mrb[235].mxu0 }
 0x7d4   : > { %v10249_v36 = vadd.f32 %v18256_v59, %v10097_v35 }
 0x7d5   : > { %v10279_v54 = vpack.c.bf16 %v18269_v63, %v18266_v3 }
 0x7d6   : > { %v10278_v8 = vpack.c.bf16 %v10249_v36, %v18272_v39 }
 0x7d8   : > { %v14101_v30 = vpop.f32.mrb[236].mxu0  ;;  %v10357_v51 = vsel %vm10331_vm2, %v10278_v8, 0  ;;  %v10360_v8 = vsel %vm10331_vm2, %v10279_v54, 0  ;;  %v14966_v54 = vld [vmem:[%s18689_s9 + $0x8] sm:$0xff]  }
 0x7d9   : > { %v10110_v20 = vpop.f32.mrb[237].mxu0  ;;  %v18279_v0 = vadd.f32 %v14101_v30, %v18256_v59 }
 0x7da   : > { %v14102_v55 = vpop.f32.mrb[238].mxu0  ;;  %v18285_v12 = vadd.f32 %v18256_v59, %v10110_v20 }
 0x7db   : > { %v18282_v37 = vadd.f32 %v14102_v55, %v18256_v59  ;;  %v10113_v61 = vpop.f32.mrb[239].mxu0 }
 0x7dc   : > { %v18288_v9 = vadd.f32 %v18256_v59, %v10113_v61 }
 0x7dd   : > { %v10281_v34 = vpack.c.bf16 %v18282_v37, %v18279_v0  ;;  %v14967_v0 = vld [vmem:[%s18689_s9 + $0x10] sm:$0xff]   ;;  %v14968_v37 = vld [vmem:[%s18689_s9 + $0x18] sm:$0xff]  }
 0x7de   : > { %v10280_v48 = vpack.c.bf16 %v18288_v9, %v18285_v12  ;;  %v14970_v12 = vld [vmem:[%s18689_s9 + $0x28] ss:$0 sps:$4 sm:$0xff]  }
 0x7e0   : > { %v14105_v62 = vpop.f32.mrb[240].mxu0 }
 0x7e1   : > { %v10126_v18 = vpop.f32.mrb[241].mxu0  ;;  %v18295_v14 = vadd.f32 %v14105_v62, %v18256_v59 }
 0x7e2   : > { %v14106_v45 = vpop.f32.mrb[242].mxu0  ;;  %v18301_v60 = vadd.f32 %v18256_v59, %v10126_v18  ;;  %v10363_v18 = vsel %vm10331_vm2, %v10280_v48, 0 }
 0x7e3   : > { %v18298_v43 = vadd.f32 %v14106_v45, %v18256_v59  ;;  %v10129_v10 = vpop.f32.mrb[243].mxu0 }
 0x7e4   : > { %v18304_v15 = vadd.f32 %v18256_v59, %v10129_v10 }
 0x7e5   : > { %v10283_v5 = vpack.c.bf16 %v18298_v43, %v18295_v14 }
 0x7e6   : > { %v10282_v31 = vpack.c.bf16 %v18304_v15, %v18301_v60 }
 0x7e7   : > { %v10372_v63 = vsel %vm10331_vm2, %v10283_v5, 0 }
 0x7e8   : > { %v14109_v33 = vpop.f32.mrb[244].mxu0  ;;  %v10369_v3 = vsel %vm10331_vm2, %v10282_v31, 0 }
 0x7e9   : > { %v10142_v19 = vpop.f32.mrb[245].mxu0  ;;  %v10262_v2 = vadd.f32 %v14109_v33, %v18256_v59 }
 0x7ea   : > { %v14110_v44 = vpop.f32.mrb[246].mxu0  ;;  %v10260_v53 = vadd.f32 %v18256_v59, %v10142_v19 }
 0x7eb   : > { %v10263_v57 = vadd.f32 %v14110_v44, %v18256_v59  ;;  %v10145_v7 = vpop.f32.mrb[247].mxu0 }
 0x7ec   : > { %v10261_v50 = vadd.f32 %v18256_v59, %v10145_v7 }
 0x7ed   : > { %v10285_v29 = vpack.c.bf16 %v10263_v57, %v10262_v2 }
 0x7ee   : > { %v10284_v27 = vpack.c.bf16 %v10261_v50, %v10260_v53 }
 0x7f0   : > { %v14113_v41 = vpop.f32.mrb[248].mxu0  ;;  %14523 = vmatprep.subr.msk.bf16.mxu1 %vm10331_vm2, %v10284_v27 }
 0x7f1   : > { %v10158_v24 = vpop.f32.mrb[249].mxu0  ;;  %13664 = vmatpush3.bf16.xpose.msra.mxu1 %v10351_v25  ;;  %v10266_v23 = vadd.f32 %v14113_v41, %v18256_v59 }
 0x7f2   : > { %v14114_v32 = vpop.f32.mrb[250].mxu0  ;;  %14524 = vmatprep.subr.msk.bf16.mxu1 %vm10331_vm2, %v10285_v29  ;;  %v10264_v4 = vadd.f32 %v18256_v59, %v10158_v24 }
 0x7f3   : > { %v10267_v22 = vadd.f32 %v14114_v32, %v18256_v59  ;;  %v10161_v16 = vpop.f32.mrb[251].mxu0 }
 0x7f4   : > { %v10265_v38 = vadd.f32 %v18256_v59, %v10161_v16 }
 0x7f5   : > { %v10287_v52 = vpack.c.bf16 %v10267_v22, %v10266_v23 }
 0x7f6   : > { %v10286_v40 = vpack.c.bf16 %v10265_v38, %v10264_v4 }
 0x7f8   : > { %v14117_v42 = vpop.f32.mrb[252].mxu0 }
 0x7f9   : > { %v10174_v17 = vpop.f32.mrb[253].mxu0  ;;  %13666 = vmatpush3.bf16.xpose.msra.mxu1 %v10354_v46  ;;  %v10270_v1 = vadd.f32 %v14117_v42, %v18256_v59 }
 0x7fa   : > { %v14118_v28 = vpop.f32.mrb[254].mxu0  ;;  %14525 = vmatprep.subr.msk.bf16.mxu1 %vm10331_vm2, %v10286_v40  ;;  %v10268_v58 = vadd.f32 %v18256_v59, %v10174_v17 }
 0x7fb   : > { %v10271_v26 = vadd.f32 %v14118_v28, %v18256_v59  ;;  %v10177_v21 = vpop.f32.mrb[255].mxu0 }
 0x7fc   : > { %v10269_v6 = vadd.f32 %v18256_v59, %v10177_v21 }
 0x7fd   : > { %v10289_v13 = vpack.c.bf16 %v10271_v26, %v10270_v1 }
 0x7fe   : > { %v10288_v49 = vpack.c.bf16 %v10269_v6, %v10268_v58 }
 0x800   : > { %v14121_v11 = vpop.f32.mrb[0].mxu0 }
 0x801   : > { %v10190_v56 = vpop.f32.mrb[1].mxu0  ;;  %13668 = vmatpush3.bf16.xpose.msra.mxu1 %v10357_v51  ;;  %v10274_v39 = vadd.f32 %v14121_v11, %v18256_v59 }
 0x802   : > { %v14122_v35 = vpop.f32.mrb[2].mxu0  ;;  %14526 = vmatprep.subr.msk.bf16.mxu1 %vm10331_vm2, %v10287_v52  ;;  %v10272_v20 = vadd.f32 %v18256_v59, %v10190_v56 }
 0x803   : > { %v10275_v36 = vadd.f32 %v14122_v35, %v18256_v59  ;;  %v10193_v30 = vpop.f32.mrb[3].mxu0 }
 0x804   : > { %v10273_v55 = vadd.f32 %v18256_v59, %v10193_v30  ;;  %v10366_v59 = vsel %vm10331_vm2, %v10281_v34, 0 }
 0x805   : > { %v10291_v61 = vpack.c.bf16 %v10275_v36, %v10274_v39 }
 0x806   : > { %v10290_v62 = vpack.c.bf16 %v10273_v55, %v10272_v20 }
 0x809   : > { %13670 = vmatpush3.bf16.xpose.msra.mxu1 %v10360_v8 }
 0x80a   : > { %14527 = vmatprep.subr.msk.bf16.mxu1 %vm10331_vm2, %v10288_v49 }
 0x811   : > { %13672 = vmatpush3.bf16.xpose.msra.mxu1 %v10363_v18 }
 0x812   : > { %14528 = vmatprep.subr.msk.bf16.mxu1 %vm10331_vm2, %v10289_v13 }
 0x819   : > { %13674 = vmatpush3.bf16.xpose.msra.mxu1 %v10366_v59 }
 0x81a   : > { %14529 = vmatprep.subr.msk.bf16.mxu1 %vm10331_vm2, %v10290_v62 }
 0x821   : > { %13676 = vmatpush3.bf16.xpose.msra.mxu1 %v10369_v3 }
 0x822   : > { %14530 = vmatprep.subr.msk.bf16.mxu1 %vm10331_vm2, %v10291_v61 }
 0x829   : > { %13678 = vmatpush3.bf16.xpose.msra.mxu1 %v10372_v63 }
 0x830   : > { %13680 = vmatmul.mubr.msk.bf16.vlgmr.msra.gmra.mrb[192].mxu1 %vm10331_vm2, %v18249_v47  ;;  %v14969_v47 = vld [vmem:[%s18689_s9 + $0x20] sm:$0xff]  }
 0x831   : > { %13681 = vmatprep.mubr.msk.bf16.mxu1 %vm10331_vm2, %v14966_v54 }
 0x838   : > { %13682 = vmatmul.mubr.msk.bf16.gmra.mrb[196].mxu1 %vm10331_vm2, %v14966_v54 }
 0x839   : > { %13683 = vmatprep.mubr.msk.bf16.mxu1 %vm10331_vm2, %v14967_v0 }
 0x840   : > { %13684 = vmatmul.mubr.msk.bf16.gmra.mrb[200].mxu1 %vm10331_vm2, %v14967_v0 }
 0x841   : > { %13685 = vmatprep.mubr.msk.bf16.mxu1 %vm10331_vm2, %v14968_v37 }
 0x848   : > { %13686 = vmatmul.mubr.msk.bf16.gmra.mrb[204].mxu1 %vm10331_vm2, %v14968_v37 }
 0x849   : > { %13687 = vmatprep.mubr.msk.bf16.mxu1 %vm10331_vm2, %v14969_v47 }
 0x850   : > { %13688 = vmatmul.mubr.msk.bf16.gmra.mrb[208].mxu1 %vm10331_vm2, %v14969_v47 }
 0x851   : > { %13689 = vmatprep.mubr.msk.bf16.mxu1 %vm10331_vm2, %v14970_v12 }
 0x858   : > { %13690 = vmatmul.mubr.msk.bf16.gmra.mrb[212].mxu1 %vm10331_vm2, %v14970_v12 }
 0x903   : > { %v10432_v9 = vpop.f32.mrb[192].mxu1 }
 0x904   : > { %10511 = vst [vmem:[#allocation4 + $0x10] sm:$0xff] %v10432_v9  ;;  %v10434_v34 = vpop.f32.mrb[193].mxu1 }
 0x905   : > { %10490 = vst [vmem:[#allocation4 + $0x8] sm:$0xff] %v10434_v34  ;;  %10512 = vst [vmem:[#allocation4 + $0x18] sm:$0xff] %v10434_v34  ;;  %v10436_v48 = vpop.f32.mrb[194].mxu1 }
 0x906   : > { %10513 = vst [vmem:[#allocation4 + $0x30] sm:$0xff] %v10436_v48  ;;  %v10438_v45 = vpop.f32.mrb[195].mxu1 }
 0x907   : > { %10492 = vst [vmem:[#allocation4 + $0x28] sm:$0xff] %v10438_v45  ;;  %10514 = vst [vmem:[#allocation4 + $0x38] sm:$0xff] %v10438_v45 }
 0x90b   : > { %v10442_v14 = vpop.f32.mrb[196].mxu1 }
 0x90c   : > { %v10536_v43 = vld [vmem:[#allocation4 + $0x8] ss:$8 sm:$0x7]  ;;  %v10562_v10 = vld [vmem:[#allocation4 + $0xa] ss:$8 sm:$0x7] }
 0x90d   : > { %10515 = vst [vmem:[#allocation4 + $0x50] sm:$0xff] %v10442_v14  ;;  %10538 = vrot.lane.b32.xlu0 %v10536_v43, %s15034_s30  ;;  %10564 = vrot.lane.b32.xlu1 %v10562_v10, %s15035_s11  ;;  %v10549_v60 = vld [vmem:[#allocation4 + $0x9] ss:$8 sm:$0x7]  ;;  %v10444_v5 = vpop.f32.mrb[197].mxu1 }
 0x90e   : > { %v10575_v15 = vld [vmem:[#allocation4 + $0xb] ss:$8 sm:$0x7]  ;;  %v10588_v31 = vld [vmem:[#allocation4 + $0xc] ss:$8 sm:$0x7] }
 0x90f   : > { %10494 = vst [vmem:[#allocation4 + $0x48] sm:$0xff] %v10444_v5  ;;  %10516 = vst [vmem:[#allocation4 + $0x58] sm:$0xff] %v10444_v5  ;;  %v10600_v33 = vld [vmem:[#allocation4 + $0xd] ss:$8 sm:$0x7]  ;;  %v10446_v19 = vpop.f32.mrb[198].mxu1 }
 0x910   : > { %10517 = vst [vmem:[#allocation4 + $0x70] sm:$0xff] %v10446_v19  ;;  %v10448_v44 = vpop.f32.mrb[199].mxu1  ;;  %v10613_v57 = vld [vmem:[#allocation4 + $0xe] ss:$8 sm:$0x7] }
 0x911   : > { %10551 = vrot.lane.b32.xlu0 %v10549_v60, %s15036_s12  ;;  %10577 = vrot.lane.b32.xlu1 %v10575_v15, %s15037_s15  ;;  %10496 = vst [vmem:[#allocation4 + $0x68] sm:$0xff] %v10448_v44  ;;  %10518 = vst [vmem:[#allocation4 + $0x78] sm:$0xff] %v10448_v44  ;;  %v10626_v53 = vld [vmem:[#allocation4 + $0xf] ss:$8 sm:$0x7] }
 0x912   : > { %v10639_v27 = vld [vmem:[#allocation4 + $0x28] ss:$8 sm:$0x7]  ;;  %v10652_v41 = vld [vmem:[#allocation4 + $0x29] ss:$8 sm:$0x7] }
 0x913   : > { %v10452_v2 = vpop.f32.mrb[200].mxu1  ;;  %v10665_v25 = vld [vmem:[#allocation4 + $0x2a] ss:$8 sm:$0x7] }
 0x914   : > { %10519 = vst [vmem:[#allocation4 + $0x90] sm:$0xff] %v10452_v2  ;;  %v10454_v7 = vpop.f32.mrb[201].mxu1  ;;  %v10678_v24 = vld [vmem:[#allocation4 + $0x2b] ss:$8 sm:$0x7] }
 0x915   : > { %10590 = vrot.lane.b32.xlu0 %v10588_v31, %s15038_s16  ;;  %10602 = vrot.lane.b32.xlu1 %v10600_v33, %s15039_s17  ;;  %10498 = vst [vmem:[#allocation4 + $0x88] sm:$0xff] %v10454_v7  ;;  %10520 = vst [vmem:[#allocation4 + $0x98] sm:$0xff] %v10454_v7  ;;  %v10456_v50 = vpop.f32.mrb[202].mxu1  ;;  %v10691_v32 = vld [vmem:[#allocation4 + $0x2c] ss:$8 sm:$0x7] }
 0x916   : > { %10499 = vst [vmem:[#allocation4 + $0xa0] sm:$0xff] %v10456_v50  ;;  %10521 = vst [vmem:[#allocation4 + $0xb0] sm:$0xff] %v10456_v50  ;;  %v10458_v29 = vpop.f32.mrb[203].mxu1  ;;  %v10704_v23 = vld [vmem:[#allocation4 + $0x2d] ss:$8 sm:$0x7] }
 0x917   : > { %10500 = vst [vmem:[#allocation4 + $0xa8] sm:$0xff] %v10458_v29  ;;  %v10717_v22 = vld [vmem:[#allocation4 + $0x2e] ss:$8 sm:$0x7] }
 0x918   : > { %v10730_v4 = vld [vmem:[#allocation4 + $0x2f] ss:$8 sm:$0x7]  ;;  %v10743_v52 = vld [vmem:[#allocation4 + $0x48] ss:$8 sm:$0x7] }
 0x919   : > { %10615 = vrot.lane.b32.xlu0 %v10613_v57, %s15040_s18  ;;  %10628 = vrot.lane.b32.xlu1 %v10626_v53, %s15041_s19  ;;  %v10756_v40 = vld [vmem:[#allocation4 + $0x49] ss:$8 sm:$0x7]  ;;  %v10769_v21 = vld [vmem:[#allocation4 + $0x4a] ss:$8 sm:$0x7] }
 0x91a   : > { %v10782_v58 = vld [vmem:[#allocation4 + $0x4b] ss:$8 sm:$0x7]  ;;  %v10795_v6 = vld [vmem:[#allocation4 + $0x4c] ss:$8 sm:$0x7] }
 0x91b   : > { %v10462_v16 = vpop.f32.mrb[204].mxu1  ;;  %v10808_v13 = vld [vmem:[#allocation4 + $0x4d] ss:$8 sm:$0x7] }
 0x91c   : > { %10501 = vst [vmem:[#allocation4 + $0xc0] sm:$0xff] %v10462_v16  ;;  %10523 = vst [vmem:[#allocation4 + $0xd0] sm:$0xff] %v10462_v16  ;;  %v10464_v38 = vpop.f32.mrb[205].mxu1  ;;  %v10821_v49 = vld [vmem:[#allocation4 + $0x4e] ss:$8 sm:$0x7] }
 0x91d   : > { %10641 = vrot.lane.b32.xlu0 %v10639_v27, %s18705_s21  ;;  %10654 = vrot.lane.b32.xlu1 %v10652_v41, %s15043_s22  ;;  %10502 = vst [vmem:[#allocation4 + $0xc8] sm:$0xff] %v10464_v38  ;;  %v10466_v42 = vpop.f32.mrb[206].mxu1  ;;  %s15052_s22 = smov 36   ;;  %v10834_v11 = vld [vmem:[#allocation4 + $0x4f] ss:$8 sm:$0x7] }
 0x91e   : > { %10503 = vst [vmem:[#allocation4 + $0xe0] sm:$0xff] %v10466_v42  ;;  %10525 = vst [vmem:[#allocation4 + $0xf0] sm:$0xff] %v10466_v42  ;;  %v10468_v46 = vpop.f32.mrb[207].mxu1  ;;  %v10847_v51 = vld [vmem:[#allocation4 + $0x68] ss:$8 sm:$0x7] }
 0x91f   : > { %10504 = vst [vmem:[#allocation4 + $0xe8] sm:$0xff] %v10468_v46  ;;  %v10860_v56 = vld [vmem:[#allocation4 + $0x69] ss:$8 sm:$0x7] }
 0x920   : > { %v10873_v35 = vld [vmem:[#allocation4 + $0x6a] ss:$8 sm:$0x7]  ;;  %v10886_v39 = vld [vmem:[#allocation4 + $0x6b] ss:$8 sm:$0x7] }
 0x921   : > { %10667 = vrot.lane.b32.xlu0 %v10665_v25, %s15044_s23  ;;  %10680 = vrot.lane.b32.xlu1 %v10678_v24, %s15045_s24  ;;  %s15053_s23 = smov 35   ;;  %s15054_s24 = smov 34   ;;  %v10899_v20 = vld [vmem:[#allocation4 + $0x6c] ss:$8 sm:$0x7] }
 0x922   : > { %v10912_v55 = vld [vmem:[#allocation4 + $0x6d] ss:$8 sm:$0x7]  ;;  %v10925_v61 = vld [vmem:[#allocation4 + $0x6e] ss:$8 sm:$0x7] }
 0x923   : > { %v10472_v17 = vpop.f32.mrb[208].mxu1  ;;  %v10938_v62 = vld [vmem:[#allocation4 + $0x6f] ss:$8 sm:$0x7] }
 0x924   : > { %10505 = vst [vmem:[#allocation4 + $0x100] sm:$0xff] %v10472_v17  ;;  %10527 = vst [vmem:[#allocation4 + $0x110] sm:$0xff] %v10472_v17  ;;  %v10474_v28 = vpop.f32.mrb[209].mxu1  ;;  %v10951_v8 = vld [vmem:[#allocation4 + $0x88] ss:$8 sm:$0x7] }
 0x925   : > { %10693 = vrot.lane.b32.xlu0 %v10691_v32, %s15046_s20  ;;  %10706 = vrot.lane.b32.xlu1 %v10704_v23, %s15047_s25  ;;  %10506 = vst [vmem:[#allocation4 + $0x108] sm:$0xff] %v10474_v28  ;;  %v10476_v1 = vpop.f32.mrb[210].mxu1  ;;  %s15055_s20 = smov 33   ;;  %s15056_s25 = smov 32  }
 0x926   : > { %10507 = vst [vmem:[#allocation4 + $0x120] sm:$0xff] %v10476_v1  ;;  %10529 = vst [vmem:[#allocation4 + $0x130] sm:$0xff] %v10476_v1  ;;  %v10478_v26 = vpop.f32.mrb[211].mxu1  ;;  %v10964_v18 = vld [vmem:[#allocation4 + $0x89] ss:$8 sm:$0x7] }
 0x927   : > { %10508 = vst [vmem:[#allocation4 + $0x128] sm:$0xff] %v10478_v26  ;;  %v10977_v63 = vld [vmem:[#allocation4 + $0x8a] ss:$8 sm:$0x7] }
 0x928   : > { %v10990_v54 = vld [vmem:[#allocation4 + $0x8b] ss:$8 sm:$0x7]  ;;  %v11003_v0 = vld [vmem:[#allocation4 + $0x8c] ss:$8 sm:$0x7] }
 0x929   : > { %10719 = vrot.lane.b32.xlu0 %v10717_v22, %s15048_s26  ;;  %10732 = vrot.lane.b32.xlu1 %v10730_v4, %s15049_s27  ;;  %s15057_s26 = smov 31   ;;  %s15058_s27 = smov 30   ;;  %v11016_v37 = vld [vmem:[#allocation4 + $0x8d] ss:$8 sm:$0x7] }
 0x92a   : > { %v11029_v47 = vld [vmem:[#allocation4 + $0x8e] ss:$8 sm:$0x7]  ;;  %v11042_v12 = vld [vmem:[#allocation4 + $0x8f] ss:$8 sm:$0x7] }
 0x92b   : > { %v10482_v36 = vpop.f32.mrb[212].mxu1  ;;  %v11061_v9 = vld [vmem:[#allocation4 + $0xa1] ss:$8 sm:$0x7] }
 0x92c   : > { %10509 = vst [vmem:[#allocation4 + $0x140] sm:$0xff] %v10482_v36  ;;  %10531 = vst [vmem:[#allocation4 + $0x150] sm:$0xff] %v10482_v36  ;;  %v10484_v30 = vpop.f32.mrb[213].mxu1  ;;  %v11074_v34 = vld [vmem:[#allocation4 + $0xa2] ss:$8 sm:$0x7] }
 0x92d   : > { %10745 = vrot.lane.b32.xlu0 %v10743_v52, %s15050_s28  ;;  %10758 = vrot.lane.b32.xlu1 %v10756_v40, %s15051_s29  ;;  %s15059_s28 = smov 29   ;;  %s15060_s29 = smov 28   ;;  %10510 = vst [vmem:[#allocation4 + $0x148] sm:$0xff] %v10484_v30  ;;  %v10486_v59 = vpop.f32.mrb[214].mxu1 }
 0x92e   : > { %v10487_v3 = vpop.f32.mrb[215].mxu1  ;;  %v11087_v48 = vld [vmem:[#allocation4 + $0xa3] ss:$8 sm:$0x7] }
 0x92f   : > { %v11100_v45 = vld [vmem:[#allocation4 + $0xa4] ss:$8 sm:$0x7]  ;;  %v11113_v14 = vld [vmem:[#allocation4 + $0xa5] ss:$8 sm:$0x7] }
 0x930   : > { %v11126_v43 = vld [vmem:[#allocation4 + $0xa6] ss:$8 sm:$0x7]  ;;  %v11152_v10 = vld [vmem:[#allocation4 + $0xc0] ss:$8 sm:$0x7] }
 0x931   : > { %10771 = vrot.lane.b32.xlu0 %v10769_v21, %s15052_s22  ;;  %10784 = vrot.lane.b32.xlu1 %v10782_v58, %s15053_s23  ;;  %s15061_s22 = smov 20   ;;  %s15062_s23 = smov 19   ;;  %v11139_v60 = vld [vmem:[#allocation4 + $0xa7] ss:$8 sm:$0x7] }
 0x932   : > { %v11165_v15 = vld [vmem:[#allocation4 + $0xc1] ss:$8 sm:$0x7]  ;;  %v11178_v5 = vld [vmem:[#allocation4 + $0xc2] ss:$8 sm:$0x7] }
 0x933   : > { %v11191_v31 = vld [vmem:[#allocation4 + $0xc3] ss:$8 sm:$0x7]  ;;  %v11204_v33 = vld [vmem:[#allocation4 + $0xc4] ss:$8 sm:$0x7] }
 0x934   : > { %v11217_v19 = vld [vmem:[#allocation4 + $0xc5] ss:$8 sm:$0x7]  ;;  %v11230_v44 = vld [vmem:[#allocation4 + $0xc6] ss:$8 sm:$0x7] }
 0x935   : > { %10797 = vrot.lane.b32.xlu0 %v10795_v6, %s15054_s24  ;;  %10810 = vrot.lane.b32.xlu1 %v10808_v13, %s15055_s20  ;;  %s15063_s24 = smov 18   ;;  %s15064_s20 = smov 17   ;;  %v11243_v2 = vld [vmem:[#allocation4 + $0xc7] ss:$8 sm:$0x7] }
 0x936   : > { %v11256_v57 = vld [vmem:[#allocation4 + $0xe0] ss:$8 sm:$0x7]  ;;  %v11269_v7 = vld [vmem:[#allocation4 + $0xe1] ss:$8 sm:$0x7] }
 0x937   : > { %v11282_v53 = vld [vmem:[#allocation4 + $0xe2] ss:$8 sm:$0x7]  ;;  %v10534_v50 = vld [vmem:[%s18682_s2] ss:$8 sm:$0x3] }
 0x938   : > { %v11295_v41 = vld [vmem:[#allocation4 + $0xe3] ss:$8 sm:$0x7]  ;;  %v11308_v24 = vld [vmem:[#allocation4 + $0xe4] ss:$8 sm:$0x7] }
 0x939   : > { %10823 = vrot.lane.b32.xlu0 %v10821_v49, %s15056_s25  ;;  %10836 = vrot.lane.b32.xlu1 %v10834_v11, %s15057_s26  ;;  %s15065_s25 = smov 16   ;;  %s15066_s26 = smov 15   ;;  %v12357_v16 = vld [vmem:[%s18682_s2 + $0x1] ss:$8 sm:$0x3] }
 0x93a   : > { %v11321_v40 = vld [vmem:[#allocation4 + $0xe5] ss:$8 sm:$0x7]  ;;  %v11334_v17 = vld [vmem:[#allocation4 + $0xe6] ss:$8 sm:$0x7] }
 0x93b   : > { %v12358_v28 = vld [vmem:[%s18682_s2 + $0x2] ss:$8 sm:$0x3]  ;;  %v11360_v21 = vld [vmem:[#allocation4 + $0x100] ss:$8 sm:$0x7] }
 0x93c   : > { %v12359_v13 = vld [vmem:[%s18682_s2 + $0x3] ss:$8 sm:$0x3] }
 0x93d   : > { %10849 = vrot.lane.b32.xlu0 %v10847_v51, %s15058_s27  ;;  %10862 = vrot.lane.b32.xlu1 %v10860_v56, %s15059_s28  ;;  %s15067_s27 = smov 14   ;;  %s15068_s28 = smov 13  }
 0x941   : > { %10875 = vrot.lane.b32.xlu0 %v10873_v35, %s15060_s29  ;;  %10888 = vrot.lane.b32.xlu1 %v10886_v39, %s15061_s22  ;;  %s15069_s29 = smov 12   ;;  %s15070_s22 = smov 4   ;;  %v11347_v39 = vld [vmem:[#allocation4 + $0xe7] ss:$8 sm:$0x7] }
 0x945   : > { %10901 = vrot.lane.b32.xlu0 %v10899_v20, %s15062_s23  ;;  %10914 = vrot.lane.b32.xlu1 %v10912_v55, %s15063_s24  ;;  %s15071_s23 = smov 3   ;;  %s15072_s24 = smov 2   ;;  %v12360_v20 = vld [vmem:[%s18682_s2 + $0x4] ss:$8 sm:$0x3] }
 0x949   : > { %10927 = vrot.lane.b32.xlu0 %v10925_v61, %s15064_s20  ;;  %10940 = vrot.lane.b32.xlu1 %v10938_v62, %s15065_s25  ;;  %s15073_s20 = smov 1   ;;  %s15074_s25 = smov 127   ;;  %v11373_v61 = vld [vmem:[#allocation4 + $0x101] ss:$8 sm:$0x7] }
 0x94a   : > { %v11386_v62 = vld [vmem:[#allocation4 + $0x102] ss:$8 sm:$0x7] }
 0x94d   : > { %10953 = vrot.lane.b32.xlu0 %v10951_v8, %s15066_s26  ;;  %10966 = vrot.lane.b32.xlu1 %v10964_v18, %s15067_s27  ;;  %s15075_s26 = smov 126   ;;  %s15076_s27 = smov 125  }
 0x951   : > { %10979 = vrot.lane.b32.xlu0 %v10977_v63, %s15068_s28  ;;  %10992 = vrot.lane.b32.xlu1 %v10990_v54, %s15069_s29  ;;  %s15077_s28 = smov 124   ;;  %s15078_s29 = smov 116   ;;  %v12361_v63 = vld [vmem:[%s18682_s2 + $0x5] ss:$8 sm:$0x3] }
 0x955   : > { %11005 = vrot.lane.b32.xlu0 %v11003_v0, %s15070_s22  ;;  %11018 = vrot.lane.b32.xlu1 %v11016_v37, %s15071_s23  ;;  %s15079_s22 = smov 115   ;;  %s15080_s23 = smov 114  }
 0x959   : > { %11031 = vrot.lane.b32.xlu0 %v11029_v47, %s15072_s24  ;;  %11044 = vrot.lane.b32.xlu1 %v11042_v12, %s15073_s20  ;;  %s15081_s24 = smov 113   ;;  %s15082_s20 = smov 112  }
 0x95d   : > { %11063 = vrot.lane.b32.xlu0 %v11061_v9, %s15074_s25  ;;  %11076 = vrot.lane.b32.xlu1 %v11074_v34, %s15075_s26  ;;  %s15083_s25 = smov 111   ;;  %s15084_s26 = smov 110   ;;  %v12362_v9 = vld [vmem:[%s18682_s2 + $0x6] ss:$8 sm:$0x3] }
 0x961   : > { %11089 = vrot.lane.b32.xlu0 %v11087_v48, %s15076_s27  ;;  %11102 = vrot.lane.b32.xlu1 %v11100_v45, %s15077_s28  ;;  %s15085_s27 = smov 109   ;;  %s15086_s28 = smov 108  }
 0x965   : > { %11115 = vrot.lane.b32.xlu0 %v11113_v14, %s15078_s29  ;;  %11128 = vrot.lane.b32.xlu1 %v11126_v43, %s15079_s22  ;;  %s15087_s29 = smov 100   ;;  %s15088_s22 = smov 99   ;;  %v12363_v14 = vld [vmem:[%s18682_s2 + $0x7] ss:$8 sm:$0x3] }
 0x969   : > { %11141 = vrot.lane.b32.xlu0 %v11139_v60, %s15080_s23  ;;  %11154 = vrot.lane.b32.xlu1 %v11152_v10, %s15081_s24  ;;  %s15089_s23 = smov 98   ;;  %s11645_s24 = sshll.u32 %s18914_s14, 1  ;;  %v11399_v60 = vld [vmem:[#allocation4 + $0x103] ss:$8 sm:$0x7] }
 0x96a   : > { %s370_s21 = scalar_lea.vmem %s18681_s1, %s11645_s24 }
 0x96b   : > { %v10533_v32 = vld [vmem:[%s370_s21] sm:$0x3]  ;;  %s15094_s21 = smov 93  }
 0x96d   : > { %11167 = vrot.lane.b32.xlu0 %v11165_v15, %s15082_s20  ;;  %11180 = vrot.lane.b32.xlu1 %v11178_v5, %s15083_s25  ;;  %s15090_s20 = smov 97   ;;  %s15091_s25 = smov 96  }
 0x971   : > { %11193 = vrot.lane.b32.xlu0 %v11191_v31, %s15084_s26  ;;  %11206 = vrot.lane.b32.xlu1 %v11204_v33, %s15085_s27  ;;  %s15097_s26 = smov 83   ;;  %v11412_v33 = vld [vmem:[#allocation4 + $0x104] ss:$8 sm:$0x7]  ;;  %s15101_s27 = smov 79  }
 0x975   : > { %11219 = vrot.lane.b32.xlu0 %v11217_v19, %s15086_s28  ;;  %11232 = vrot.lane.b32.xlu1 %v11230_v44, %s15087_s29  ;;  %s15095_s28 = smov 92   ;;  %s15099_s29 = smov 81  }
 0x979   : > { %11245 = vrot.lane.b32.xlu0 %v11243_v2, %s15088_s22  ;;  %11258 = vrot.lane.b32.xlu1 %v11256_v57, %s15089_s23  ;;  %s15092_s22 = smov 95   ;;  %s15093_s23 = smov 94   ;;  %v12364_v2 = vld [vmem:[%s18682_s2 + $0x10] ss:$8 sm:$0x3] }
 0x97d   : > { %11271 = vrot.lane.b32.xlu0 %v11269_v7, %s15090_s20  ;;  %11284 = vrot.lane.b32.xlu1 %v11282_v53, %s15091_s25  ;;  %s15096_s25 = smov 84   ;;  %s15103_s20 = smov 77  }
 0x97f   : > { %v10539_v29 = vpop.permute.xlu0 %10538  ;;  %v10565_v27 = vpop.permute.xlu1 %10564 }
 0x980   : > { %v10540_v25 = vrot.slane %v10539_v29, 1  ;;  %v10566_v22 = vrot.slane %v10565_v27, 1 }
 0x981   : > { %11297 = vrot.lane.b32.xlu0 %v11295_v41, %s15092_s22  ;;  %11310 = vrot.lane.b32.xlu1 %v11308_v24, %s15093_s23  ;;  %v11425_v41 = vld [vmem:[#allocation4 + $0x105] ss:$8 sm:$0x7]  ;;  %s15102_s23 = smov 78  }
 0x982   : > { %v10542_v23 = vsel %vm10541_vm3, %v10539_v29, %v10540_v25  ;;  %v10568_v1 = vsel %vm10567_vm4, %v10565_v27, %v10566_v22 }
 0x983   : > { %v10544_v4 = vmul.f32 %v10542_v23, %v10534_v50  ;;  %v10552_v38 = vpop.permute.xlu0 %10551  ;;  %v10578_v52 = vpop.permute.xlu1 %10577  ;;  %v10570_v36 = vmul.f32 %v12358_v28, %v10568_v1  ;;  %v12365_v50 = vld [vmem:[%s18682_s2 + $0x11] ss:$8 sm:$0x3]  ;;  %v11438_v23 = vld [vmem:[#allocation4 + $0x106] ss:$8 sm:$0x7] }
 0x984   : > { %v10553_v42 = vrot.slane %v10552_v38, 1  ;;  %v10579_v46 = vrot.slane %v10578_v52, 1  ;;  %v11451_v28 = vld [vmem:[#allocation4 + $0x107] ss:$8 sm:$0x7] }
 0x985   : > { %11323 = vrot.lane.b32.xlu0 %v11321_v40, %s15094_s21  ;;  %11336 = vrot.lane.b32.xlu1 %v11334_v17, %s15095_s28  ;;  %v10545_v58 = vadd.f32 %v10544_v4, %v10533_v32  ;;  %s15098_s28 = smov 82   ;;  %v12366_v4 = vld [vmem:[%s18682_s2 + $0x12] ss:$8 sm:$0x3] }
 0x986   : > { %v10555_v26 = vsel %vm10554_vm5, %v10552_v38, %v10553_v42  ;;  %v10581_v51 = vsel %vm10580_vm6, %v10578_v52, %v10579_v46  ;;  %v12367_v42 = vld [vmem:[%s18682_s2 + $0x13] ss:$8 sm:$0x3] }
 0x987   : > { %v10557_v6 = vmul.f32 %v12357_v16, %v10555_v26  ;;  %v10591_v49 = vpop.permute.xlu0 %10590  ;;  %v10603_v11 = vpop.permute.xlu1 %10602  ;;  %v10583_v18 = vmul.f32 %v12359_v13, %v10581_v51 }
 0x988   : > { %v10592_v56 = vrot.slane %v10591_v49, 1  ;;  %v10604_v35 = vrot.slane %v10603_v11, 1 }
 0x989   : > { %v10558_v30 = vadd.f32 %v10557_v6, %v10545_v58  ;;  %11349 = vrot.lane.b32.xlu0 %v11347_v39, %s15096_s25  ;;  %11362 = vrot.lane.b32.xlu1 %v11360_v21, %s15097_s26  ;;  %s15100_s26 = smov 80   ;;  %v11464_v58 = vld [vmem:[#allocation4 + $0x120] ss:$8 sm:$0x7]  ;;  %s374_s25 = scalar_lea.vmem %s18690_s10, %s11645_s24 }
 0x98a   : > { %v10593_v55 = vsel %vm10331_vm2, %v10591_v49, %v10592_v56  ;;  %v10606_v54 = vsel %vm10605_vm7, %v10603_v11, %v10604_v35  ;;  %v12368_v49 = vld [vmem:[%s18682_s2 + $0x14] ss:$8 sm:$0x3]  ;;  %v12369_v35 = vld [vmem:[%s18682_s2 + $0x15] ss:$8 sm:$0x3] }
 0x98b   : > { %v10571_v8 = vadd.f32 %v10570_v36, %v10558_v30  ;;  %v10616_v59 = vpop.permute.xlu0 %10615  ;;  %v10629_v3 = vpop.permute.xlu1 %10628  ;;  %v10595_v12 = vmul.f32 %v12360_v20, %v10593_v55  ;;  %v10608_v45 = vmul.f32 %v12361_v63, %v10606_v54  ;;  %v11476_v30 = vld [vmem:[#allocation4 + $0x121] ss:$8 sm:$0x7] }
 0x98c   : > { %v10617_v0 = vrot.slane %v10616_v59, 1  ;;  %v10630_v37 = vrot.slane %v10629_v3, 1 }
 0x98d   : > { %v10584_v47 = vadd.f32 %v10583_v18, %v10571_v8  ;;  %11375 = vrot.lane.b32.xlu0 %v11373_v61, %s15098_s28  ;;  %11388 = vrot.lane.b32.xlu1 %v11386_v62, %s15099_s29  ;;  %s15104_s28 = smov 76   ;;  %v11488_v62 = vld [vmem:[#allocation4 + $0x122] ss:$8 sm:$0x7] }
 0x98e   : > { %v10619_v34 = vsel %vm10618_vm8, %v10616_v59, %v10617_v0  ;;  %v10632_v15 = vsel %vm10631_vm9, %v10629_v3, %v10630_v37  ;;  %v12370_v59 = vld [vmem:[%s18682_s2 + $0x16] ss:$8 sm:$0x3]  ;;  %v12371_v0 = vld [vmem:[%s18682_s2 + $0x17] ss:$8 sm:$0x3] }
 0x98f   : > { %v10596_v48 = vadd.f32 %v10595_v12, %v10584_v47  ;;  %v10642_v43 = vpop.permute.xlu0 %10641  ;;  %v10655_v10 = vpop.permute.xlu1 %10654  ;;  %v10621_v44 = vmul.f32 %v12362_v9, %v10619_v34  ;;  %v10634_v53 = vmul.f32 %v12363_v14, %v10632_v15  ;;  %v11500_v12 = vld [vmem:[#allocation4 + $0x123] ss:$8 sm:$0x7] }
 0x990   : > { %v10643_v5 = vrot.slane %v10642_v43, 1  ;;  %v10656_v31 = vrot.slane %v10655_v10, 1 }
 0x991   : > { %v10609_v19 = vadd.f32 %v10608_v45, %v10596_v48  ;;  %11401 = vrot.lane.b32.xlu0 %v11399_v60, %s15100_s26  ;;  %11414 = vrot.lane.b32.xlu1 %v11412_v33, %s15101_s27  ;;  %v11512_v45 = vld [vmem:[#allocation4 + $0x124] ss:$8 sm:$0x7] }
 0x992   : > { %v10645_v57 = vsel %vm10644_vm10, %v10642_v43, %v10643_v5  ;;  %v10658_v25 = vsel %vm10657_vm11, %v10655_v10, %v10656_v31  ;;  %vm10748_vm11 = vcmask 367616   ;;  %v12372_v10 = vld [vmem:[%s18682_s2 + $0x20] ss:$8 sm:$0x3] }
 0x993   : > { %v10622_v7 = vadd.f32 %v10621_v44, %v10609_v19  ;;  %v10668_v29 = vpop.permute.xlu0 %10667  ;;  %v10681_v27 = vpop.permute.xlu1 %10680  ;;  %v10647_v16 = vmul.f32 %v12364_v2, %v10645_v57  ;;  %v10660_v40 = vmul.f32 %v12365_v50, %v10658_v25  ;;  %v12373_v31 = vld [vmem:[%s18682_s2 + $0x21] ss:$8 sm:$0x3]  ;;  %v11524_v44 = vld [vmem:[#allocation4 + $0x125] ss:$8 sm:$0x7] }
 0x994   : > { %v10669_v24 = vrot.slane %v10668_v29, 1  ;;  %v10682_v32 = vrot.slane %v10681_v27, 1  ;;  %v11560_v25 = vld [vmem:[#allocation4 + $0x140] ss:$8 sm:$0x7] }
 0x995   : > { %v10635_v22 = vadd.f32 %v10634_v53, %v10622_v7  ;;  %11427 = vrot.lane.b32.xlu0 %v11425_v41, %s15102_s23  ;;  %11440 = vrot.lane.b32.xlu1 %v11438_v23, %s15103_s20  ;;  %v11536_v53 = vld [vmem:[#allocation4 + $0x126] ss:$8 sm:$0x7]  ;;  %v12375_v23 = vld [vmem:[%s18682_s2 + $0x23] ss:$8 sm:$0x3] }
 0x996   : > { %v10671_v38 = vsel %vm10670_vm12, %v10668_v29, %v10669_v24  ;;  %v10684_v1 = vsel %vm10683_vm13, %v10681_v27, %v10682_v32  ;;  %vm10761_vm12 = vcmask 359424   ;;  %vm10774_vm13 = vcmask 293888   ;;  %v12374_v27 = vld [vmem:[%s18682_s2 + $0x22] ss:$8 sm:$0x3] }
 0x997   : > { %v10648_v52 = vadd.f32 %v10647_v16, %v10635_v22  ;;  %v10694_v46 = vpop.permute.xlu0 %10693  ;;  %v10707_v17 = vpop.permute.xlu1 %10706  ;;  %v10673_v13 = vmul.f32 %v12366_v4, %v10671_v38  ;;  %v10686_v56 = vmul.f32 %v12367_v42, %v10684_v1 }
 0x998   : > { %v10695_v26 = vrot.slane %v10694_v46, 1  ;;  %v10708_v21 = vrot.slane %v10707_v17, 1 }
 0x999   : > { %v10661_v6 = vadd.f32 %v10660_v40, %v10648_v52  ;;  %11453 = vrot.lane.b32.xlu0 %v11451_v28, %s15104_s28  ;;  %11466 = vrot.lane.b32.xlu1 %v11464_v58, %s15034_s30  ;;  %v11548_v40 = vld [vmem:[#allocation4 + $0x127] ss:$8 sm:$0x7] }
 0x99a   : > { %v10697_v11 = vsel %vm10696_vm14, %v10694_v46, %v10695_v26  ;;  %v10710_v20 = vsel %vm10709_vm15, %v10707_v17, %v10708_v21  ;;  %vm10787_vm14 = vcmask 285696   ;;  %vm10800_vm15 = vcmask 277504   ;;  %v12376_v17 = vld [vmem:[%s18682_s2 + $0x24] ss:$8 sm:$0x3] }
 0x99b   : > { %v10674_v51 = vadd.f32 %v10673_v13, %v10661_v6  ;;  %v10720_v39 = vpop.permute.xlu0 %10719  ;;  %v10733_v36 = vpop.permute.xlu1 %10732  ;;  %v10699_v18 = vmul.f32 %v12368_v49, %v10697_v11  ;;  %v10712_v54 = vmul.f32 %v12369_v35, %v10710_v20  ;;  %v12377_v6 = vld [vmem:[%s18682_s2 + $0x25] ss:$8 sm:$0x3]  ;;  %v12378_v35 = vld [vmem:[%s18682_s2 + $0x26] ss:$8 sm:$0x3] }
 0x99c   : > { %v10721_v55 = vrot.slane %v10720_v39, 1  ;;  %v10734_v61 = vrot.slane %v10733_v36, 1 }
 0x99d   : > { %v10687_v8 = vadd.f32 %v10686_v56, %v10674_v51  ;;  %11478 = vrot.lane.b32.xlu0 %v11476_v30, %s15036_s12  ;;  %11490 = vrot.lane.b32.xlu1 %v11488_v62, %s15035_s11 }
 0x99e   : > { %v10723_v3 = vsel %vm10722_vm0, %v10720_v39, %v10721_v55  ;;  %v10736_v9 = vsel %vm10735_vm1, %v10733_v36, %v10734_v61  ;;  %vm10813_vm0 = vcmask 269312   ;;  %vm10826_vm1 = vcmask 261120   ;;  %v12379_v61 = vld [vmem:[%s18682_s2 + $0x27] ss:$8 sm:$0x3] }
 0x99f   : > { %v10700_v63 = vadd.f32 %v10699_v18, %v10687_v8  ;;  %v10746_v37 = vpop.permute.xlu0 %10745  ;;  %v10759_v47 = vpop.permute.xlu1 %10758  ;;  %v10725_v43 = vmul.f32 %v12370_v59, %v10723_v3  ;;  %v10738_v5 = vmul.f32 %v12371_v0, %v10736_v9  ;;  %v12381_v9 = vld [vmem:[%s18682_s2 + $0x31] ss:$8 sm:$0x3] }
 0x9a0   : > { %v10747_v34 = vrot.slane %v10746_v37, 1  ;;  %v10760_v48 = vrot.slane %v10759_v47, 1 }
 0x9a1   : > { %v10713_v14 = vadd.f32 %v10712_v54, %v10700_v63  ;;  %11502 = vrot.lane.b32.xlu0 %v11500_v12, %s15037_s15  ;;  %11514 = vrot.lane.b32.xlu1 %v11512_v45, %s15038_s16  ;;  %v12380_v63 = vld [vmem:[%s18682_s2 + $0x30] ss:$8 sm:$0x3] }
 0x9a2   : > { %v10749_v60 = vsel %vm10748_vm11, %v10746_v37, %v10747_v34  ;;  %v10762_v2 = vsel %vm10761_vm12, %v10759_v47, %v10760_v48  ;;  %vm10839_vm11 = vcmask 252928   ;;  %vm10852_vm12 = vcmask 244736  }
 0x9a3   : > { %v10726_v15 = vadd.f32 %v10725_v43, %v10713_v14  ;;  %v10772_v33 = vpop.permute.xlu0 %10771  ;;  %v10785_v19 = vpop.permute.xlu1 %10784  ;;  %v10751_v29 = vmul.f32 %v12372_v10, %v10749_v60  ;;  %v10764_v32 = vmul.f32 %v12373_v31, %v10762_v2  ;;  %v12382_v10 = vld [vmem:[%s18682_s2 + $0x32] ss:$8 sm:$0x3] }
 0x9a4   : > { %v10773_v57 = vrot.slane %v10772_v33, 1  ;;  %v10786_v7 = vrot.slane %v10785_v19, 1 }
 0x9a5   : > { %v10739_v50 = vadd.f32 %v10738_v5, %v10726_v15  ;;  %11526 = vrot.lane.b32.xlu0 %v11524_v44, %s15039_s17  ;;  %11538 = vrot.lane.b32.xlu1 %v11536_v53, %s15040_s18  ;;  %s18911_s17 = smov 60  }
 0x9a6   : > { %v10775_v41 = vsel %vm10774_vm13, %v10772_v33, %v10773_v57  ;;  %v10788_v4 = vsel %vm10787_vm14, %v10785_v19, %v10786_v7  ;;  %vm10865_vm13 = vcmask 236544   ;;  %vm10878_vm14 = vcmask 228352   ;;  %v12383_v19 = vld [vmem:[%s18682_s2 + $0x33] ss:$8 sm:$0x3] }
 0x9a7   : > { %v10752_v24 = vadd.f32 %v10751_v29, %v10739_v50  ;;  %v10798_v22 = vpop.permute.xlu0 %10797  ;;  %v10811_v16 = vpop.permute.xlu1 %10810  ;;  %v10777_v46 = vmul.f32 %v12374_v27, %v10775_v41  ;;  %v10790_v26 = vmul.f32 %v12375_v23, %v10788_v4  ;;  %v12384_v50 = vld [vmem:[%s18682_s2 + $0x34] ss:$8 sm:$0x3] }
 0x9a8   : > { %v10799_v38 = vrot.slane %v10798_v22, 1  ;;  %v10812_v52 = vrot.slane %v10811_v16, 1 }
 0x9a9   : > { %v10765_v42 = vadd.f32 %v10764_v32, %v10752_v24  ;;  %11550 = vrot.lane.b32.xlu0 %v11548_v40, %s15041_s19  ;;  %11562 = vrot.lane.b32.xlu1 %v11560_v25, %s18911_s17  ;;  %v12385_v32 = vld [vmem:[%s18682_s2 + $0x35] ss:$8 sm:$0x3] }
 0x9aa   : > { %v10801_v28 = vsel %vm10800_vm15, %v10798_v22, %v10799_v38  ;;  %v10814_v13 = vsel %vm10813_vm0, %v10811_v16, %v10812_v52  ;;  %vm10891_vm15 = vcmask 162816   ;;  %vm10904_vm0 = vcmask 154624   ;;  %v12386_v52 = vld [vmem:[%s18682_s2 + $0x36] ss:$8 sm:$0x3] }
 0x9ab   : > { %v10778_v1 = vadd.f32 %v10777_v46, %v10765_v42  ;;  %v10824_v21 = vpop.permute.xlu0 %10823  ;;  %v10837_v58 = vpop.permute.xlu1 %10836  ;;  %v10803_v56 = vmul.f32 %v12376_v17, %v10801_v28  ;;  %v10816_v30 = vmul.f32 %v12377_v6, %v10814_v13 }
 0x9ac   : > { %v10825_v49 = vrot.slane %v10824_v21, 1  ;;  %v10838_v11 = vrot.slane %v10837_v58, 1 }
 0x9ad   : > { %v10791_v51 = vadd.f32 %v10790_v26, %v10778_v1  ;;  %v12387_v1 = vld [vmem:[%s18682_s2 + $0x37] ss:$8 sm:$0x3] }
 0x9ae   : > { %v10827_v39 = vsel %vm10826_vm1, %v10824_v21, %v10825_v49  ;;  %v10840_v62 = vsel %vm10839_vm11, %v10837_v58, %v10838_v11  ;;  %vm10917_vm1 = vcmask 146432   ;;  %vm10930_vm11 = vcmask 138240   ;;  %v12388_v49 = vld [vmem:[%s18682_s2 + $0x40] ss:$8 sm:$0x3] }
 0x9af   : > { %v10804_v36 = vadd.f32 %v10803_v56, %v10791_v51  ;;  %v10850_v20 = vpop.permute.xlu0 %10849  ;;  %v10863_v55 = vpop.permute.xlu1 %10862  ;;  %v10829_v3 = vmul.f32 %v12378_v35, %v10827_v39  ;;  %v10842_v37 = vmul.f32 %v12379_v61, %v10840_v62 }
 0x9b0   : > { %v10851_v8 = vrot.slane %v10850_v20, 1  ;;  %v10864_v18 = vrot.slane %v10863_v55, 1 }
 0x9b1   : > { %v10817_v59 = vadd.f32 %v10816_v30, %v10804_v36  ;;  %v12389_v36 = vld [vmem:[%s18682_s2 + $0x41] ss:$8 sm:$0x3] }
 0x9b2   : > { %v10853_v54 = vsel %vm10852_vm12, %v10850_v20, %v10851_v8  ;;  %v10866_v34 = vsel %vm10865_vm13, %v10863_v55, %v10864_v18  ;;  %vm10943_vm12 = vcmask 130048   ;;  %vm10956_vm13 = vcmask 121856   ;;  %v12390_v8 = vld [vmem:[%s18682_s2 + $0x42] ss:$8 sm:$0x3] }
 0x9b3   : > { %v10830_v0 = vadd.f32 %v10829_v3, %v10817_v59  ;;  %v10876_v47 = vpop.permute.xlu0 %10875  ;;  %v10889_v12 = vpop.permute.xlu1 %10888  ;;  %v10855_v43 = vmul.f32 %v12380_v63, %v10853_v54  ;;  %v10868_v5 = vmul.f32 %v12381_v9, %v10866_v34 }
 0x9b4   : > { %v10877_v48 = vrot.slane %v10876_v47, 1  ;;  %v10890_v45 = vrot.slane %v10889_v12, 1 }
 0x9b5   : > { %v10843_v14 = vadd.f32 %v10842_v37, %v10830_v0  ;;  %v12391_v0 = vld [vmem:[%s18682_s2 + $0x43] ss:$8 sm:$0x3] }
 0x9b6   : > { %v10879_v60 = vsel %vm10878_vm14, %v10876_v47, %v10877_v48  ;;  %v10892_v44 = vsel %vm10891_vm15, %v10889_v12, %v10890_v45  ;;  %vm10969_vm14 = vcmask 113664   ;;  %vm10982_vm15 = vcmask 105472   ;;  %v12392_v48 = vld [vmem:[%s18682_s2 + $0x44] ss:$8 sm:$0x3] }
 0x9b7   : > { %v10856_v15 = vadd.f32 %v10855_v43, %v10843_v14  ;;  %v10902_v31 = vpop.permute.xlu0 %10901  ;;  %v10915_v33 = vpop.permute.xlu1 %10914  ;;  %v10881_v53 = vmul.f32 %v12382_v10, %v10879_v60  ;;  %v10894_v41 = vmul.f32 %v12383_v19, %v10892_v44 }
 0x9b8   : > { %v10903_v2 = vrot.slane %v10902_v31, 1  ;;  %v10916_v57 = vrot.slane %v10915_v33, 1 }
 0x9b9   : > { %v10869_v7 = vadd.f32 %v10868_v5, %v10856_v15  ;;  %v12393_v15 = vld [vmem:[%s18682_s2 + $0x45] ss:$8 sm:$0x3] }
 0x9ba   : > { %v10905_v29 = vsel %vm10904_vm0, %v10902_v31, %v10903_v2  ;;  %v10918_v23 = vsel %vm10917_vm1, %v10915_v33, %v10916_v57  ;;  %vm10995_vm0 = vcmask 97280   ;;  %vm11008_vm1 = vcmask 31744   ;;  %v12394_v2 = vld [vmem:[%s18682_s2 + $0x46] ss:$8 sm:$0x3] }
 0x9bb   : > { %v10882_v27 = vadd.f32 %v10881_v53, %v10869_v7  ;;  %v10928_v25 = vpop.permute.xlu0 %10927  ;;  %v10941_v24 = vpop.permute.xlu1 %10940  ;;  %v10907_v38 = vmul.f32 %v12384_v50, %v10905_v29  ;;  %v10920_v46 = vmul.f32 %v12385_v32, %v10918_v23  ;;  %v12396_v23 = vld [vmem:[%s18682_s2 + $0x50] ss:$8 sm:$0x3] }
 0x9bc   : > { %v10929_v22 = vrot.slane %v10928_v25, 1  ;;  %v10942_v16 = vrot.slane %v10941_v24, 1 }
 0x9bd   : > { %v10895_v4 = vadd.f32 %v10894_v41, %v10882_v27  ;;  %v12395_v27 = vld [vmem:[%s18682_s2 + $0x47] ss:$8 sm:$0x3] }
 0x9be   : > { %v10931_v40 = vsel %vm10930_vm11, %v10928_v25, %v10929_v22  ;;  %v10944_v26 = vsel %vm10943_vm12, %v10941_v24, %v10942_v16  ;;  %vm11021_vm11 = vcmask 23552   ;;  %vm11034_vm12 = vcmask 15360   ;;  %v11055_v22 = vld [vmem:[#allocation4 + $0xa0] ss:$8 sm:$0x3] }
 0x9bf   : > { %v10908_v42 = vadd.f32 %v10907_v38, %v10895_v4  ;;  %v10954_v17 = vpop.permute.xlu0 %10953  ;;  %v10967_v28 = vpop.permute.xlu1 %10966  ;;  %v10933_v13 = vmul.f32 %v12386_v52, %v10931_v40  ;;  %v10946_v56 = vmul.f32 %v12387_v1, %v10944_v26  ;;  %v11056_v1 = vmul.f32 %v12396_v23, %v11055_v22  ;;  %v12398_v26 = vld [vmem:[%s18682_s2 + $0x52] ss:$8 sm:$0x3] }
 0x9c0   : > { %v10955_v21 = vrot.slane %v10954_v17, 1  ;;  %v10968_v58 = vrot.slane %v10967_v28, 1 }
 0x9c1   : > { %v10921_v6 = vadd.f32 %v10920_v46, %v10908_v42  ;;  %v12397_v42 = vld [vmem:[%s18682_s2 + $0x51] ss:$8 sm:$0x3] }
 0x9c2   : > { %v10957_v11 = vsel %vm10956_vm13, %v10954_v17, %v10955_v21  ;;  %v10970_v30 = vsel %vm10969_vm14, %v10967_v28, %v10968_v58  ;;  %vm11047_vm13 = vcmask 7168   ;;  %vm11066_vm14 = vcmask 1039360  }
 0x9c3   : > { %v10934_v51 = vadd.f32 %v10933_v13, %v10921_v6  ;;  %v10980_v35 = vpop.permute.xlu0 %10979  ;;  %v10993_v39 = vpop.permute.xlu1 %10992  ;;  %v10959_v62 = vmul.f32 %v12388_v49, %v10957_v11  ;;  %v10972_v3 = vmul.f32 %v12389_v36, %v10970_v30  ;;  %v12400_v30 = vld [vmem:[%s18682_s2 + $0x54] ss:$8 sm:$0x3] }
 0x9c4   : > { %v10981_v20 = vrot.slane %v10980_v35, 1  ;;  %v10994_v55 = vrot.slane %v10993_v39, 1 }
 0x9c5   : > { %v10947_v61 = vadd.f32 %v10946_v56, %v10934_v51  ;;  %v12399_v51 = vld [vmem:[%s18682_s2 + $0x53] ss:$8 sm:$0x3] }
 0x9c6   : > { %v10983_v18 = vsel %vm10982_vm15, %v10980_v35, %v10981_v20  ;;  %v10996_v37 = vsel %vm10995_vm0, %v10993_v39, %v10994_v55  ;;  %vm11079_vm15 = vcmask 1031168   ;;  %vm11092_vm0 = vcmask 1022976  }
 0x9c7   : > { %v10960_v59 = vadd.f32 %v10959_v62, %v10947_v61  ;;  %v11006_v63 = vpop.permute.xlu0 %11005  ;;  %v11019_v54 = vpop.permute.xlu1 %11018  ;;  %v10985_v34 = vmul.f32 %v12390_v8, %v10983_v18  ;;  %v10998_v43 = vmul.f32 %v12391_v0, %v10996_v37  ;;  %v12402_v37 = vld [vmem:[%s18682_s2 + $0x56] ss:$8 sm:$0x3] }
 0x9c8   : > { %v11007_v47 = vrot.slane %v11006_v63, 1  ;;  %v11020_v12 = vrot.slane %v11019_v54, 1 }
 0x9c9   : > { %v10973_v9 = vadd.f32 %v10972_v3, %v10960_v59  ;;  %v12401_v59 = vld [vmem:[%s18682_s2 + $0x55] ss:$8 sm:$0x3] }
 0x9ca   : > { %v11009_v45 = vsel %vm11008_vm1, %v11006_v63, %v11007_v47  ;;  %v11022_v5 = vsel %vm11021_vm11, %v11019_v54, %v11020_v12  ;;  %vm11105_vm1 = vcmask 1014784   ;;  %vm11118_vm11 = vcmask 949248  }
 0x9cb   : > { %v10986_v14 = vadd.f32 %v10985_v34, %v10973_v9  ;;  %v11032_v10 = vpop.permute.xlu0 %11031  ;;  %v11045_v60 = vpop.permute.xlu1 %11044  ;;  %v11011_v44 = vmul.f32 %v12392_v48, %v11009_v45  ;;  %v11024_v53 = vmul.f32 %v12393_v15, %v11022_v5  ;;  %v12404_v5 = vld [vmem:[%s18682_s2 + $0x60] ss:$8 sm:$0x3] }
 0x9cc   : > { %v11033_v31 = vrot.slane %v11032_v10, 1  ;;  %v11046_v33 = vrot.slane %v11045_v60, 1 }
 0x9cd   : > { %v10999_v19 = vadd.f32 %v10998_v43, %v10986_v14  ;;  %v12403_v14 = vld [vmem:[%s18682_s2 + $0x57] ss:$8 sm:$0x3] }
 0x9ce   : > { %v11035_v57 = vsel %vm11034_vm12, %v11032_v10, %v11033_v31  ;;  %v11048_v41 = vsel %vm11047_vm13, %v11045_v60, %v11046_v33  ;;  %vm11131_vm12 = vcmask 941056   ;;  %vm11144_vm13 = vcmask 932864  }
 0x9cf   : > { %v11012_v7 = vadd.f32 %v11011_v44, %v10999_v19  ;;  %v11064_v50 = vpop.permute.xlu0 %11063  ;;  %v11077_v29 = vpop.permute.xlu1 %11076  ;;  %v11037_v32 = vmul.f32 %v12394_v2, %v11035_v57  ;;  %v11050_v38 = vmul.f32 %v12395_v27, %v11048_v41  ;;  %v12406_v41 = vld [vmem:[%s18682_s2 + $0x62] ss:$8 sm:$0x3] }
 0x9d0   : > { %v11065_v25 = vrot.slane %v11064_v50, 1  ;;  %v11078_v16 = vrot.slane %v11077_v29, 1 }
 0x9d1   : > { %v11025_v24 = vadd.f32 %v11024_v53, %v11012_v7  ;;  %v12405_v7 = vld [vmem:[%s18682_s2 + $0x61] ss:$8 sm:$0x3] }
 0x9d2   : > { %v11067_v46 = vsel %vm11066_vm14, %v11064_v50, %v11065_v25  ;;  %v11080_v21 = vsel %vm11079_vm15, %v11077_v29, %v11078_v16  ;;  %vm11157_vm14 = vcmask 924672   ;;  %vm11170_vm15 = vcmask 916480  }
 0x9d3   : > { %v11038_v4 = vadd.f32 %v11037_v32, %v11025_v24  ;;  %v11090_v52 = vpop.permute.xlu0 %11089  ;;  %v11103_v40 = vpop.permute.xlu1 %11102  ;;  %v11069_v13 = vmul.f32 %v12397_v42, %v11067_v46  ;;  %v11082_v36 = vmul.f32 %v12398_v26, %v11080_v21  ;;  %v12408_v46 = vld [vmem:[%s18682_s2 + $0x64] ss:$8 sm:$0x3] }
 0x9d4   : > { %v11091_v17 = vrot.slane %v11090_v52, 1  ;;  %v11104_v58 = vrot.slane %v11103_v40, 1 }
 0x9d5   : > { %v11051_v28 = vadd.f32 %v11050_v38, %v11038_v4  ;;  %v12407_v4 = vld [vmem:[%s18682_s2 + $0x63] ss:$8 sm:$0x3] }
 0x9d6   : > { %v11093_v56 = vsel %vm11092_vm0, %v11090_v52, %v11091_v17  ;;  %v11106_v20 = vsel %vm11105_vm1, %v11103_v40, %v11104_v58  ;;  %vm11183_vm0 = vcmask 908288   ;;  %vm11196_vm1 = vcmask 900096  }
 0x9d7   : > { %v11057_v6 = vadd.f32 %v11056_v1, %v11051_v28  ;;  %v11116_v49 = vpop.permute.xlu0 %11115  ;;  %v11129_v11 = vpop.permute.xlu1 %11128  ;;  %v11095_v62 = vmul.f32 %v12399_v51, %v11093_v56  ;;  %v11108_v0 = vmul.f32 %v12400_v30, %v11106_v20  ;;  %v12410_v56 = vld [vmem:[%s18682_s2 + $0x66] ss:$8 sm:$0x3] }
 0x9d8   : > { %v11117_v35 = vrot.slane %v11116_v49, 1  ;;  %v11130_v55 = vrot.slane %v11129_v11, 1 }
 0x9d9   : > { %v11070_v39 = vadd.f32 %v11069_v13, %v11057_v6  ;;  %v12409_v6 = vld [vmem:[%s18682_s2 + $0x65] ss:$8 sm:$0x3] }
 0x9da   : > { %v11119_v3 = vsel %vm11118_vm11, %v11116_v49, %v11117_v35  ;;  %v11132_v47 = vsel %vm11131_vm12, %v11129_v11, %v11130_v55  ;;  %vm11209_vm11 = vcmask 891904   ;;  %vm11222_vm12 = vcmask 883712  }
 0x9db   : > { %v11083_v61 = vadd.f32 %v11082_v36, %v11070_v39  ;;  %v11142_v8 = vpop.permute.xlu0 %11141  ;;  %v11155_v18 = vpop.permute.xlu1 %11154  ;;  %v11121_v34 = vmul.f32 %v12401_v59, %v11119_v3  ;;  %v11134_v15 = vmul.f32 %v12402_v37, %v11132_v47  ;;  %v12412_v3 = vld [vmem:[%s18682_s2 + $0x70] ss:$8 sm:$0x3] }
 0x9dc   : > { %v11143_v63 = vrot.slane %v11142_v8, 1  ;;  %v11156_v12 = vrot.slane %v11155_v18, 1 }
 0x9dd   : > { %v11096_v54 = vadd.f32 %v11095_v62, %v11083_v61  ;;  %v12411_v61 = vld [vmem:[%s18682_s2 + $0x67] ss:$8 sm:$0x3] }
 0x9de   : > { %v11145_v43 = vsel %vm11144_vm13, %v11142_v8, %v11143_v63  ;;  %v11158_v31 = vsel %vm11157_vm14, %v11155_v18, %v11156_v12  ;;  %vm11235_vm13 = vcmask 818176   ;;  %vm11248_vm14 = vcmask 809984  }
 0x9df   : > { %v11109_v9 = vadd.f32 %v11108_v0, %v11096_v54  ;;  %v11168_v48 = vpop.permute.xlu0 %11167  ;;  %v11181_v45 = vpop.permute.xlu1 %11180  ;;  %v11147_v44 = vmul.f32 %v12403_v14, %v11145_v43  ;;  %v11160_v27 = vmul.f32 %v12404_v5, %v11158_v31  ;;  %v12414_v43 = vld [vmem:[%s18682_s2 + $0x72] ss:$8 sm:$0x3] }
 0x9e0   : > { %v11169_v10 = vrot.slane %v11168_v48, 1  ;;  %v11182_v33 = vrot.slane %v11181_v45, 1 }
 0x9e1   : > { %v11122_v60 = vadd.f32 %v11121_v34, %v11109_v9  ;;  %v12413_v9 = vld [vmem:[%s18682_s2 + $0x71] ss:$8 sm:$0x3] }
 0x9e2   : > { %v11171_v53 = vsel %vm11170_vm15, %v11168_v48, %v11169_v10  ;;  %v11184_v25 = vsel %vm11183_vm0, %v11181_v45, %v11182_v33  ;;  %vm11261_vm15 = vcmask 801792   ;;  %vm11274_vm0 = vcmask 793600  }
 0x9e3   : > { %v11135_v19 = vadd.f32 %v11134_v15, %v11122_v60  ;;  %v11194_v2 = vpop.permute.xlu0 %11193  ;;  %v11207_v57 = vpop.permute.xlu1 %11206  ;;  %v11173_v23 = vmul.f32 %v12405_v7, %v11171_v53  ;;  %v11186_v42 = vmul.f32 %v12406_v41, %v11184_v25  ;;  %v12416_v53 = vld [vmem:[%s18682_s2 + $0x74] ss:$8 sm:$0x3] }
 0x9e4   : > { %v11195_v50 = vrot.slane %v11194_v2, 1  ;;  %v11208_v24 = vrot.slane %v11207_v57, 1 }
 0x9e5   : > { %v11148_v29 = vadd.f32 %v11147_v44, %v11135_v19  ;;  %v12415_v19 = vld [vmem:[%s18682_s2 + $0x73] ss:$8 sm:$0x3] }
 0x9e6   : > { %v11197_v38 = vsel %vm11196_vm1, %v11194_v2, %v11195_v50  ;;  %v11210_v17 = vsel %vm11209_vm11, %v11207_v57, %v11208_v24  ;;  %vm11287_vm1 = vcmask 785408   ;;  %vm11300_vm11 = vcmask 777216  }
 0x9e7   : > { %v11161_v32 = vadd.f32 %v11160_v27, %v11148_v29  ;;  %v11220_v22 = vpop.permute.xlu0 %11219  ;;  %v11233_v16 = vpop.permute.xlu1 %11232  ;;  %v11199_v26 = vmul.f32 %v12407_v4, %v11197_v38  ;;  %v11212_v51 = vmul.f32 %v12408_v46, %v11210_v17  ;;  %v12418_v38 = vld [vmem:[%s18682_s2 + $0x76] ss:$8 sm:$0x3] }
 0x9e8   : > { %v11221_v52 = vrot.slane %v11220_v22, 1  ;;  %v11234_v28 = vrot.slane %v11233_v16, 1 }
 0x9e9   : > { %v11174_v40 = vadd.f32 %v11173_v23, %v11161_v32  ;;  %v12417_v32 = vld [vmem:[%s18682_s2 + $0x75] ss:$8 sm:$0x3] }
 0x9ea   : > { %v11223_v13 = vsel %vm11222_vm12, %v11220_v22, %v11221_v52  ;;  %v11236_v35 = vsel %vm11235_vm13, %v11233_v16, %v11234_v28  ;;  %vm11313_vm12 = vcmask 769024   ;;  %vm11326_vm13 = vcmask 760832  }
 0x9eb   : > { %v11187_v1 = vadd.f32 %v11186_v42, %v11174_v40  ;;  %v11246_v21 = vpop.permute.xlu0 %11245  ;;  %v11259_v58 = vpop.permute.xlu1 %11258  ;;  %v11225_v30 = vmul.f32 %v12409_v6, %v11223_v13  ;;  %v11238_v59 = vmul.f32 %v12410_v56, %v11236_v35  ;;  %v12420_v13 = vld [vmem:[%s18682_s2 + $0x80] ss:$8 sm:$0x3] }
 0x9ec   : > { %v11247_v49 = vrot.slane %v11246_v21, 1  ;;  %v11260_v39 = vrot.slane %v11259_v58, 1 }
 0x9ed   : > { %v11200_v11 = vadd.f32 %v11199_v26, %v11187_v1  ;;  %v12419_v1 = vld [vmem:[%s18682_s2 + $0x77] ss:$8 sm:$0x3] }
 0x9ee   : > { %v11249_v62 = vsel %vm11248_vm14, %v11246_v21, %v11247_v49  ;;  %v11262_v63 = vsel %vm11261_vm15, %v11259_v58, %v11260_v39  ;;  %vm11339_vm14 = vcmask 752640   ;;  %vm11352_vm15 = vcmask 687104  }
 0x9ef   : > { %v11213_v36 = vadd.f32 %v11212_v51, %v11200_v11  ;;  %v11272_v20 = vpop.permute.xlu0 %11271  ;;  %v11285_v55 = vpop.permute.xlu1 %11284  ;;  %v11251_v37 = vmul.f32 %v12411_v61, %v11249_v62  ;;  %v11264_v14 = vmul.f32 %v12412_v3, %v11262_v63  ;;  %v12422_v62 = vld [vmem:[%s18682_s2 + $0x82] ss:$8 sm:$0x3] }
 0x9f0   : > { %v11273_v8 = vrot.slane %v11272_v20, 1  ;;  %v11286_v54 = vrot.slane %v11285_v55, 1 }
 0x9f1   : > { %v11226_v18 = vadd.f32 %v11225_v30, %v11213_v36  ;;  %v12421_v36 = vld [vmem:[%s18682_s2 + $0x81] ss:$8 sm:$0x3] }
 0x9f2   : > { %v11275_v34 = vsel %vm11274_vm0, %v11272_v20, %v11273_v8  ;;  %v11288_v10 = vsel %vm11287_vm1, %v11285_v55, %v11286_v54  ;;  %vm11365_vm0 = vcmask 678912   ;;  %vm11378_vm1 = vcmask 670720  }
 0x9f3   : > { %v11239_v0 = vadd.f32 %v11238_v59, %v11226_v18  ;;  %v11298_v47 = vpop.permute.xlu0 %11297  ;;  %v11311_v12 = vpop.permute.xlu1 %11310  ;;  %v11277_v5 = vmul.f32 %v12413_v9, %v11275_v34  ;;  %v11290_v7 = vmul.f32 %v12414_v43, %v11288_v10  ;;  %v12424_v34 = vld [vmem:[%s18682_s2 + $0x84] ss:$8 sm:$0x3] }
 0x9f4   : > { %v11299_v48 = vrot.slane %v11298_v47, 1  ;;  %v11312_v60 = vrot.slane %v11311_v12, 1 }
 0x9f5   : > { %v11252_v45 = vadd.f32 %v11251_v37, %v11239_v0  ;;  %v12423_v0 = vld [vmem:[%s18682_s2 + $0x83] ss:$8 sm:$0x3] }
 0x9f6   : > { %v11301_v44 = vsel %vm11300_vm11, %v11298_v47, %v11299_v48  ;;  %v11314_v50 = vsel %vm11313_vm12, %v11311_v12, %v11312_v60  ;;  %vm11391_vm11 = vcmask 662528   ;;  %vm11404_vm12 = vcmask 654336  }
 0x9f7   : > { %v11265_v15 = vadd.f32 %v11264_v14, %v11252_v45  ;;  %v11324_v31 = vpop.permute.xlu0 %11323  ;;  %v11337_v33 = vpop.permute.xlu1 %11336  ;;  %v11303_v41 = vmul.f32 %v12415_v19, %v11301_v44  ;;  %v11316_v4 = vmul.f32 %v12416_v53, %v11314_v50  ;;  %v12426_v44 = vld [vmem:[%s18682_s2 + $0x86] ss:$8 sm:$0x3] }
 0x9f8   : > { %v11325_v2 = vrot.slane %v11324_v31, 1  ;;  %v11338_v29 = vrot.slane %v11337_v33, 1 }
 0x9f9   : > { %v11278_v57 = vadd.f32 %v11277_v5, %v11265_v15  ;;  %v12425_v15 = vld [vmem:[%s18682_s2 + $0x85] ss:$8 sm:$0x3] }
 0x9fa   : > { %v11327_v23 = vsel %vm11326_vm13, %v11324_v31, %v11325_v2  ;;  %v11340_v52 = vsel %vm11339_vm14, %v11337_v33, %v11338_v29  ;;  %vm11417_vm13 = vcmask 646144   ;;  %vm11430_vm14 = vcmask 637952  }
 0x9fb   : > { %v11291_v27 = vadd.f32 %v11290_v7, %v11278_v57  ;;  %v11350_v25 = vpop.permute.xlu0 %11349  ;;  %v11363_v24 = vpop.permute.xlu1 %11362  ;;  %v11329_v46 = vmul.f32 %v12417_v32, %v11327_v23  ;;  %v11342_v6 = vmul.f32 %v12418_v38, %v11340_v52  ;;  %v12428_v23 = vld [vmem:[%s18682_s2 + $0x90] ss:$8 sm:$0x3] }
 0x9fc   : > { %v11351_v22 = vrot.slane %v11350_v25, 1  ;;  %v11364_v40 = vrot.slane %v11363_v24, 1 }
 0x9fd   : > { %v11304_v16 = vadd.f32 %v11303_v41, %v11291_v27  ;;  %v12427_v27 = vld [vmem:[%s18682_s2 + $0x87] ss:$8 sm:$0x3] }
 0x9fe   : > { %v11353_v26 = vsel %vm11352_vm15, %v11350_v25, %v11351_v22  ;;  %v11366_v49 = vsel %vm11365_vm0, %v11363_v24, %v11364_v40  ;;  %vm11443_vm15 = vcmask 629760   ;;  %vm11456_vm0 = vcmask 621568  }
 0x9ff   : > { %v11317_v42 = vadd.f32 %v11316_v4, %v11304_v16  ;;  %v11376_v17 = vpop.permute.xlu0 %11375  ;;  %v11389_v28 = vpop.permute.xlu1 %11388  ;;  %v11355_v56 = vmul.f32 %v12419_v1, %v11353_v26  ;;  %v11368_v61 = vmul.f32 %v12420_v13, %v11366_v49  ;;  %v12430_v26 = vld [vmem:[%s18682_s2 + $0x92] ss:$8 sm:$0x3] }
 0xa00   : > { %v11377_v21 = vrot.slane %v11376_v17, 1  ;;  %v11390_v11 = vrot.slane %v11389_v28, 1 }
 0xa01   : > { %v11330_v58 = vadd.f32 %v11329_v46, %v11317_v42  ;;  %v12429_v42 = vld [vmem:[%s18682_s2 + $0x91] ss:$8 sm:$0x3] }
 0xa02   : > { %v11379_v30 = vsel %vm11378_vm1, %v11376_v17, %v11377_v21  ;;  %v11392_v8 = vsel %vm11391_vm11, %v11389_v28, %v11390_v11 }
 0xa03   : > { %v11343_v51 = vadd.f32 %v11342_v6, %v11330_v58  ;;  %v11402_v35 = vpop.permute.xlu0 %11401  ;;  %v11415_v39 = vpop.permute.xlu1 %11414  ;;  %v11381_v3 = vmul.f32 %v12421_v36, %v11379_v30  ;;  %v11394_v9 = vmul.f32 %v12422_v62, %v11392_v8  ;;  %v12432_v30 = vld [vmem:[%s18682_s2 + $0x94] ss:$8 sm:$0x3] }
 0xa04   : > { %v11403_v20 = vrot.slane %v11402_v35, 1  ;;  %v11416_v18 = vrot.slane %v11415_v39, 1 }
 0xa05   : > { %v11356_v55 = vadd.f32 %v11355_v56, %v11343_v51  ;;  %v12431_v51 = vld [vmem:[%s18682_s2 + $0x93] ss:$8 sm:$0x3] }
 0xa06   : > { %v11405_v37 = vsel %vm11404_vm12, %v11402_v35, %v11403_v20  ;;  %v11418_v48 = vsel %vm11417_vm13, %v11415_v39, %v11416_v18 }
 0xa07   : > { %v11369_v59 = vadd.f32 %v11368_v61, %v11356_v55  ;;  %v11428_v63 = vpop.permute.xlu0 %11427  ;;  %v11441_v54 = vpop.permute.xlu1 %11440  ;;  %v11407_v43 = vmul.f32 %v12423_v0, %v11405_v37  ;;  %v11420_v19 = vmul.f32 %v12424_v34, %v11418_v48  ;;  %v12434_v37 = vld [vmem:[%s18682_s2 + $0x96] ss:$8 sm:$0x3]  ;;  %v12435_v48 = vld [vmem:[%s18682_s2 + $0x97] ss:$8 sm:$0x3] }
 0xa08   : > { %v11429_v47 = vrot.slane %v11428_v63, 1  ;;  %v11442_v45 = vrot.slane %v11441_v54, 1 }
 0xa09   : > { %v11382_v12 = vadd.f32 %v11381_v3, %v11369_v59  ;;  %v12433_v59 = vld [vmem:[%s18682_s2 + $0x95] ss:$8 sm:$0x3] }
 0xa0a   : > { %v11431_v5 = vsel %vm11430_vm14, %v11428_v63, %v11429_v47  ;;  %v11444_v2 = vsel %vm11443_vm15, %v11441_v54, %v11442_v45 }
 0xa0b   : > { %v11395_v14 = vadd.f32 %v11394_v9, %v11382_v12  ;;  %v11454_v10 = vpop.permute.xlu0 %11453  ;;  %v11467_v60 = vpop.permute.xlu1 %11466  ;;  %v11433_v53 = vmul.f32 %v12425_v15, %v11431_v5  ;;  %v11446_v32 = vmul.f32 %v12426_v44, %v11444_v2 }
 0xa0c   : > { %v11455_v31 = vrot.slane %v11454_v10, 1  ;;  %v11468_v57 = vrot.slane %v11467_v60, 1 }
 0xa0d   : > { %v11408_v33 = vadd.f32 %v11407_v43, %v11395_v14 }
 0xa0e   : > { %v11457_v41 = vsel %vm11456_vm0, %v11454_v10, %v11455_v31  ;;  %v11469_v22 = vsel %vm10541_vm3, %v11467_v60, %v11468_v57  ;;  %v12436_v10 = vld [vmem:[%s18682_s2 + $0xa0] ss:$8 sm:$0x3] }
 0xa0f   : > { %v11421_v7 = vadd.f32 %v11420_v19, %v11408_v33  ;;  %v11479_v50 = vpop.permute.xlu0 %11478  ;;  %v11491_v29 = vpop.permute.xlu1 %11490  ;;  %v11459_v38 = vmul.f32 %v12427_v27, %v11457_v41  ;;  %v11471_v1 = vmul.f32 %v12428_v23, %v11469_v22  ;;  %v18912_v19 = vlaneseq }
 0xa10   : > { %v11480_v25 = vrot.slane %v11479_v50, 1  ;;  %v11492_v16 = vrot.slane %v11491_v29, 1 }
 0xa11   : > { %v11434_v24 = vadd.f32 %v11433_v53, %v11421_v7 }
 0xa12   : > { %v11481_v46 = vsel %vm10554_vm5, %v11479_v50, %v11480_v25  ;;  %v11493_v21 = vsel %vm10567_vm4, %v11491_v29, %v11492_v16 }
 0xa13   : > { %v11447_v4 = vadd.f32 %v11446_v32, %v11434_v24  ;;  %v11503_v52 = vpop.permute.xlu0 %11502  ;;  %v11515_v40 = vpop.permute.xlu1 %11514  ;;  %v11483_v13 = vmul.f32 %v12429_v42, %v11481_v46  ;;  %v11495_v36 = vmul.f32 %v12430_v26, %v11493_v21 }
 0xa14   : > { %v11504_v17 = vrot.slane %v11503_v52, 1  ;;  %v11516_v58 = vrot.slane %v11515_v40, 1 }
 0xa15   : > { %v11460_v28 = vadd.f32 %v11459_v38, %v11447_v4 }
 0xa16   : > { %v11505_v56 = vsel %vm10580_vm6, %v11503_v52, %v11504_v17  ;;  %v11517_v20 = vsel %vm10331_vm2, %v11515_v40, %v11516_v58  ;;  %vm11571_vm2 = vcmp.lt.s32.totalorder %v18912_v19, 256 }
 0xa17   : > { %v11472_v6 = vadd.f32 %v11471_v1, %v11460_v28  ;;  %v11527_v49 = vpop.permute.xlu0 %11526  ;;  %v11539_v11 = vpop.permute.xlu1 %11538  ;;  %v11507_v62 = vmul.f32 %v12431_v51, %v11505_v56  ;;  %v11519_v0 = vmul.f32 %v12432_v30, %v11517_v20 }
 0xa18   : > { %v11528_v35 = vrot.slane %v11527_v49, 1  ;;  %v11540_v55 = vrot.slane %v11539_v11, 1 }
 0xa19   : > { %v11484_v39 = vadd.f32 %v11483_v13, %v11472_v6 }
 0xa1a   : > { %v11529_v3 = vsel %vm10605_vm7, %v11527_v49, %v11528_v35  ;;  %v11541_v47 = vsel %vm10618_vm8, %v11539_v11, %v11540_v55 }
 0xa1b   : > { %v11496_v61 = vadd.f32 %v11495_v36, %v11484_v39  ;;  %v11551_v8 = vpop.permute.xlu0 %11550  ;;  %v11563_v18 = vpop.permute.xlu1 %11562  ;;  %v11531_v34 = vmul.f32 %v12433_v59, %v11529_v3  ;;  %v11543_v43 = vmul.f32 %v12434_v37, %v11541_v47 }
 0xa1c   : > { %v11552_v63 = vrot.slane %v11551_v8, 1  ;;  %v11564_v12 = vrot.slane %v11563_v18, 1 }
 0xa1d   : > { %v11508_v54 = vadd.f32 %v11507_v62, %v11496_v61 }
 0xa1e   : > { %v11553_v45 = vsel %vm10631_vm9, %v11551_v8, %v11552_v63  ;;  %v11565_v60 = vsel %vm10644_vm10, %v11563_v18, %v11564_v12 }
 0xa1f   : > { %v11520_v9 = vadd.f32 %v11519_v0, %v11508_v54  ;;  %v11555_v5 = vmul.f32 %v12435_v48, %v11553_v45  ;;  %v11567_v33 = vmul.f32 %v12436_v10, %v11565_v60 }
 0xa21   : > { %v11532_v14 = vadd.f32 %v11531_v34, %v11520_v9 }
 0xa23   : > { %v11544_v15 = vadd.f32 %v11543_v43, %v11532_v14 }
 0xa25   : > { %v11556_v31 = vadd.f32 %v11555_v5, %v11544_v15 }
 0xa27   : > { %v11568_v44 = vadd.f32 %v11567_v33, %v11556_v31 }
 0xa29   : > { %11573 = vst.msk [vmem:[%s374_s25] sm:$0x3] %vm11571_vm2, %v11568_v44 }
 0xa2a PF: > { %s20_s13 = sadd.s32 1, %s15029_s13  }
 0xa2b   : > { %p17_p4 = scmp.ge.s32.totalorder %s20_s13, 4  }
 0xa2d   :  { %19 = sbr.rel (!%p17_p4) target bundleno = 1 (0x1), region = 274 }

</bundles_post_ra>
